<compile_context>
chip_gen: v6e
topology: v6e:2x2x1
jax: 0.10.0
libtpu: 0.0.40
codegen_flags: <defaults>
</compile_context>

<pallas_src>
import functools
import numpy as np
import jax
import jax.numpy as jnp
from jax.experimental import pallas as pl
from jax.experimental.pallas import tpu as pltpu

EPS = 1e-5     # PyTorch BatchNorm2d default eps
LANE = 128


def _round_up(x, m):
    return (x + m - 1) // m * m


# ----------------------------------------------------------------------------
# Host-side constant builders
# ----------------------------------------------------------------------------
def _interp_matrix_np(n_in, n_out):
    """1-D bilinear interpolation matrix, align_corners=True."""
    a = np.zeros((n_out, n_in), np.float32)
    if n_in == 1:
        a[:, 0] = 1.0
        return a
    src = np.arange(n_out, dtype=np.float64) * (n_in - 1) / (n_out - 1)
    lo = np.clip(np.floor(src).astype(np.int64), 0, n_in - 1)
    hi = np.minimum(lo + 1, n_in - 1)
    w = (src - lo).astype(np.float32)
    a[np.arange(n_out), lo] += 1.0 - w
    a[np.arange(n_out), hi] += w
    return a


def _upsample_pad_matrix_t(h, w, hp, wp, np_pos, extw):
    """(H*W, Next): bilinear 2x upsample + zero pad-ring + flatten + lane extension."""
    ho, wo = hp - 2, wp - 2
    ah = _interp_matrix_np(h, ho)                          # (Ho, H)
    aw = _interp_matrix_np(w, wo)                          # (Wo, W)
    nxt = np_pos + 2 * extw
    m = np.zeros((nxt, h * w), np.float32)
    k = np.einsum("ab,cd->acbd", ah, aw).reshape(ho * wo, h * w)
    rows = extw + (np.arange(ho)[:, None] + 1) * wp + (np.arange(wo)[None, :] + 1)
    m[rows.reshape(-1)] = k
    return jnp.asarray(m.T)                                # (H*W, Next)


def _valid_mask(hp, wp, np_pos):
    m = np.zeros((hp, wp), np.float32)
    m[1:hp - 1, 1:wp - 1] = 1.0
    out = np.zeros((1, np_pos), np.float32)
    out[0, :hp * wp] = m.reshape(-1)
    return jnp.asarray(out)


def _pack_conv_w(w, cin_pad):
    """(Cout, Cin, 3, 3) -> (Cout, 9*cin_pad), tap-major, zero-padded input channels."""
    cout, cin = w.shape[0], w.shape[1]
    wpad = jnp.pad(w, ((0, 0), (0, cin_pad - cin), (0, 0), (0, 0)))
    return wpad.transpose(0, 2, 3, 1).reshape(cout, 9 * cin_pad)


# ----------------------------------------------------------------------------
# Fused decoder kernel (single program)
# ----------------------------------------------------------------------------
def _decoder_kernel(*refs, B, Cin, Ce, Wp, NP, extw, inv_count, inv_hw, has_skip):
    if has_skip:
        (x_ref, mt_ref, m_ref, w1_ref, g1_ref, bt1_ref, w2_ref, g2_ref, bt2_ref,
         sw1_ref, sb1_ref, sw2_ref, sb2_ref, sws_ref, e_ref, w1e_ref,
         o_ref, ext_ref, pool_ref) = refs
    else:
        (x_ref, mt_ref, m_ref, w1_ref, g1_ref, bt1_ref, w2_ref, g2_ref, bt2_ref,
         sw1_ref, sb1_ref, sw2_ref, sb2_ref, sws_ref,
         o_ref, ext_ref, pool_ref) = refs
        e_ref = w1e_ref = None

    mask = m_ref[...]                    # (1, NP): 1.0 at valid conv centers
    base = extw - Wp - 1                 # lane offset of tap (0, 0) in the extended slab

    def conv_bn_relu(groups, gamma, beta):
        # groups: list of (w_packed (Cout, 9*Cg), [per-batch (Cg, Next) slabs])
        ys = []
        for b in range(B):
            acc = None
            for w_packed, slabs in groups:
                xb = slabs[b]
                # Pack the 9 taps along K -> one MXU matmul per (group, batch).
                s = jnp.concatenate(
                    [xb[:, base + kh * Wp + kw: base + kh * Wp + kw + NP]
                     for kh in range(3) for kw in range(3)], axis=0)
                part = jnp.dot(w_packed, s, preferred_element_type=jnp.float32)
                acc = part if acc is None else acc + part
            ys.append(acc)                                 # (Cout, NP), conv bias dropped (BN cancels it)
        # Training-mode BatchNorm over (batch, valid positions), centered variance.
        ssum = None
        for y in ys:
            t = jnp.sum(y * mask, axis=1, keepdims=True)
            ssum = t if ssum is None else ssum + t
        mean = ssum * inv_count                            # (Cout, 1)
        vsum = None
        for y in ys:
            d = (y - mean) * mask
            t = jnp.sum(d * d, axis=1, keepdims=True)
            vsum = t if vsum is None else vsum + t
        scale = gamma * jax.lax.rsqrt(vsum * inv_count + EPS)
        shift = beta - mean * scale
        # ReLU, then re-zero pad ring / filler so the result feeds the next conv.
        return [jnp.maximum(y * scale + shift, 0.0) * mask for y in ys]

    # ---- bilinear 2x upsample + pad + flatten + extension: ONE matmul ----
    xe = jnp.dot(x_ref[...], mt_ref[...], preferred_element_type=jnp.float32)  # (B*Cin, Next)
    xs = [xe[b * Cin:(b + 1) * Cin, :] for b in range(B)]
    groups1 = [(w1_ref[...], xs)]
    if has_skip:
        ee = e_ref[...]
        groups1.append((w1e_ref[...], [ee[b * Ce:(b + 1) * Ce, :] for b in range(B)]))

    # ---- conv1 + BN(batch stats) + ReLU ----
    y1s = conv_bn_relu(groups1, g1_ref[...], bt1_ref[...])
    cmid = y1s[0].shape[0]

    # ---- re-extend in a VMEM scratch (aligned lane-offset store) for conv2 ----
    ext_ref[...] = jnp.zeros_like(ext_ref)
    for b in range(B):
        ext_ref[b * cmid:(b + 1) * cmid, extw:extw + NP] = y1s[b]
    y1e = [ext_ref[b * cmid:(b + 1) * cmid, :] for b in range(B)]

    # ---- conv2 + BN(batch stats) + ReLU ----
    y2s = conv_bn_relu([(w2_ref[...], y1e)], g2_ref[...], bt2_ref[...])
    cout = y2s[0].shape[0]

    # ---- ModifiedSCSEBlock (fused): channel SE as 2D matmuls over the batch ----
    for b in range(B):
        pool_ref[:, b:b + 1] = jnp.sum(y2s[b], axis=1, keepdims=True) * inv_hw
    pooled = pool_ref[...]                                 # (Cout, B)
    h = jnp.maximum(
        jnp.dot(sw1_ref[...], pooled, preferred_element_type=jnp.float32) + sb1_ref[...], 0.0)
    chn = jax.nn.sigmoid(
        jnp.dot(sw2_ref[...], h, preferred_element_type=jnp.float32) + sb2_ref[...])   # (Cout, B)
    sws = sws_ref[...]                                     # (Cout, 1)
    for b in range(B):
        spa = jax.nn.sigmoid(jnp.sum(y2s[b] * sws, axis=0, keepdims=True))             # (1, NP)
        o_ref[b * cout:(b + 1) * cout, :] = y2s[b] * chn[:, b:b + 1] * spa


# ----------------------------------------------------------------------------
# Wrapper: one pallas_call for the whole Decoder forward
# ----------------------------------------------------------------------------
def decoder_forward(params, x, e=None):
    B, cin0, H, W = x.shape
    Ho, Wo = 2 * H, 2 * W
    Hp, Wp = Ho + 2, Wo + 2
    NP = _round_up(Hp * Wp, LANE)          # lane-dense position axis
    extw = _round_up(Wp + 1, LANE)         # aligned lane extension (>= Wp+1)
    Next = NP + 2 * extw

    cmid = params["conv1_w"].shape[0]      # NOTE: PLAIN decoders use multiples of 8
    cout = params["conv2_w"].shape[0]
    cr = params["se_w1"].shape[0]

    # Pad conv1-input channels to a multiple of 8 so tap stacking is sublane-aligned.
    cin_p = _round_up(cin0, 8)
    x_p = jnp.pad(x, ((0, 0), (0, cin_p - cin0), (0, 0), (0, 0))) if cin_p != cin0 else x
    x2d = x_p.reshape(B * cin_p, H * W)

    mt = _upsample_pad_matrix_t(H, W, Hp, Wp, NP, extw)    # (H*W, Next)
    mask = _valid_mask(Hp, Wp, NP)                         # (1, NP)

    w1_full = params["conv1_w"]                            # (Cmid, cin0 [+ Ce], 3, 3)
    w1p = _pack_conv_w(w1_full[:, :cin0], cin_p)           # (Cmid, 9*cin_p)
    w2p = _pack_conv_w(params["conv2_w"], cmid)            # (Cout, 9*Cmid)

    inputs = [
        x2d, mt, mask,
        w1p, params["bn1_g"].reshape(cmid, 1), params["bn1_b"].reshape(cmid, 1),
        w2p, params["bn2_g"].reshape(cout, 1), params["bn2_b"].reshape(cout, 1),
        params["se_w1"], params["se_b1"].reshape(cr, 1),
        params["se_w2"], params["se_b2"].reshape(cout, 1),
        params["se_ws"].reshape(cout, 1),
    ]

    ce_p = 0
    if e is not None:                      # fold the skip concat into conv1 (2nd tap group)
        ce0 = e.shape[1]
        ce_p = _round_up(ce0, 8)
        e_p = jnp.pad(e, ((0, 0), (0, ce_p - ce0), (1, 1), (1, 1)))
        e_flat = e_p.reshape(B, ce_p, Hp * Wp)
        e_ext = jnp.pad(e_flat, ((0, 0), (0, 0), (extw, Next - extw - Hp * Wp)))
        inputs.append(e_ext.reshape(B * ce_p, Next))
        inputs.append(_pack_conv_w(w1_full[:, cin0:], ce_p))

    kern = functools.partial(
        _decoder_kernel, B=B, Cin=cin_p, Ce=ce_p, Wp=Wp, NP=NP, extw=extw,
        inv_count=1.0 / float(B * Ho * Wo), inv_hw=1.0 / float(Ho * Wo),
        has_skip=(e is not None))

    in_specs = [pl.BlockSpec(a.shape, lambda i: (0, 0)) for a in inputs]

    out_flat = pl.pallas_call(
        kern,
        out_shape=jax.ShapeDtypeStruct((B * cout, NP), jnp.float32),
        grid=(1,),
        in_specs=in_specs,
        out_specs=pl.BlockSpec((B * cout, NP), lambda i: (0, 0)),
        scratch_shapes=[pltpu.VMEM((B * cmid, Next), jnp.float32),   # conv1-output cache, extended
                        pltpu.VMEM((cout, B), jnp.float32)],         # SCSE pooled (Cout, B)
        compiler_params=pltpu.CompilerParams(
            dimension_semantics=("arbitrary",),
            vmem_limit_bytes=32 * 1024 * 1024),
    )(*inputs)

    out = out_flat.reshape(B, cout, NP)[:, :, :Hp * Wp].reshape(B, cout, Hp, Wp)
    return out[:, :, 1:Hp - 1, 1:Wp - 1]


# ----------------------------------------------------------------------------
# Pure-JAX reference (independent path) for validation
# ----------------------------------------------------------------------------
def reference_forward(params, x):
    B, C, H, W = x.shape
    ah = jnp.asarray(_interp_matrix_np(H, 2 * H))
    aw = jnp.asarray(_interp_matrix_np(W, 2 * W))
    xu = jnp.einsum("oh,bchw,pw->bcop", ah, x, aw)

    def convbnrelu(y, w, b, g, beta):
        y = jax.lax.conv_general_dilated(
            y, w, (1, 1), ((1, 1), (1, 1)), dimension_numbers=("NCHW", "OIHW", "NCHW"))
        y = y + b[None, :, None, None]
        m = jnp.mean(y, axis=(0, 2, 3), keepdims=True)
        v = jnp.mean(jnp.square(y - m), axis=(0, 2, 3), keepdims=True)
        y = (y - m) * jax.lax.rsqrt(v + EPS) * g[None, :, None, None] + beta[None, :, None, None]
        return jnp.maximum(y, 0.0)

    y = convbnrelu(xu, params["conv1_w"], params["conv1_b"], params["bn1_g"], params["bn1_b"])
    y = convbnrelu(y, params["conv2_w"], params["conv2_b"], params["bn2_g"], params["bn2_b"])
    pooled = jnp.mean(y, axis=(2, 3))
    h = jnp.maximum(pooled @ params["se_w1"].T + params["se_b1"], 0.0)
    chn = jax.nn.sigmoid(h @ params["se_w2"].T + params["se_b2"])
    spa = jax.nn.sigmoid(jnp.einsum("bchw,oc->bohw", y, params["se_ws"].reshape(1, -1)))
    return y * chn[:, :, None, None] * spa


def init_params(key, cin, cmid, cout, red):
    ks = jax.random.split(key, 12)
    n = lambda k, s, sc=0.2: sc * jax.random.normal(k, s, jnp.float32)
    return dict(
        conv1_w=n(ks[0], (cmid, cin, 3, 3)),
        conv1_b=n(ks[1], (cmid,)),                # used by reference; cancelled by BN in kernel
        bn1_g=1.0 + 0.1 * jax.random.normal(ks[2], (cmid,), jnp.float32),
        bn1_b=n(ks[3], (cmid,), 0.1),
        conv2_w=n(ks[4], (cout, cmid, 3, 3)),
        conv2_b=n(ks[5], (cout,)),
        bn2_g=1.0 + 0.1 * jax.random.normal(ks[6], (cout,), jnp.float32),
        bn2_b=n(ks[7], (cout,), 0.1),
        se_w1=n(ks[8], (cout // red, cout), 0.3),
        se_b1=n(ks[9], (cout // red,), 0.1),
        se_w2=n(ks[10], (cout, cout // red), 0.3),
        se_b2=n(ks[11], (cout,), 0.1),
        se_ws=n(jax.random.fold_in(key, 99), (1, cout, 1, 1), 0.3),
    )


if __name__ == "__main__":
    key = jax.random.PRNGKey(0)
    k_param, k_input = jax.random.split(key)

    B, Cin, H, W = 2, 4, 16, 16        # input 16x16 -> upsampled to 32x32
    Cmid, Cout, red = 8, 8, 2          # Decoder(in_channels=4, channels=8, out_channels=8)

    params = init_params(k_param, Cin, Cmid, Cout, red)
    x = jax.random.normal(k_input, (B, Cin, H, W), jnp.float32)

    fwd = jax.jit(decoder_forward)
    out = jax.block_until_ready(fwd(params, x))     # skip connection e supported; None here
    assert out.shape == (B, Cout, 2 * H, 2 * W), out.shape

    ref = jax.block_until_ready(reference_forward(params, x))
    np.testing.assert_allclose(np.asarray(out), np.asarray(ref), atol=2e-3, rtol=2e-3)

    print("KERNEL_OK")
</pallas_src>

<mosaic_0001>
module attributes {stable_mosaic.version = 11 : i64} {
  func.func @_decoder_kernel(%arg0: i32, %arg1: memref<16x256xf32, #tpu.memory_space<vmem>>, %arg2: memref<256x1536xf32, #tpu.memory_space<vmem>>, %arg3: memref<1x1280xf32, #tpu.memory_space<vmem>>, %arg4: memref<8x72xf32, #tpu.memory_space<vmem>>, %arg5: memref<8x1xf32, #tpu.memory_space<vmem>>, %arg6: memref<8x1xf32, #tpu.memory_space<vmem>>, %arg7: memref<8x72xf32, #tpu.memory_space<vmem>>, %arg8: memref<8x1xf32, #tpu.memory_space<vmem>>, %arg9: memref<8x1xf32, #tpu.memory_space<vmem>>, %arg10: memref<4x8xf32, #tpu.memory_space<vmem>>, %arg11: memref<4x1xf32, #tpu.memory_space<vmem>>, %arg12: memref<8x4xf32, #tpu.memory_space<vmem>>, %arg13: memref<8x1xf32, #tpu.memory_space<vmem>>, %arg14: memref<8x1xf32, #tpu.memory_space<vmem>>, %arg15: memref<16x1280xf32, #tpu.memory_space<vmem>>, %arg16: memref<16x1536xf32, #tpu.memory_space<vmem>>, %arg17: memref<8x2xf32, #tpu.memory_space<vmem>>) attributes {dimension_semantics = [#tpu.dimension_semantics<arbitrary>], iteration_bounds = array<i64: 1>, scalar_prefetch = 0 : i64, scratch_operands = 2 : i64, tpu.core_type = #tpu.core_type<tc>, window_params = [{pipeline_mode = #tpu.pipeline_mode<synchronous>, transform_indices = @transform_0, window_bounds = array<i64: 16, 256>}, {pipeline_mode = #tpu.pipeline_mode<synchronous>, transform_indices = @transform_1, window_bounds = array<i64: 256, 1536>}, {pipeline_mode = #tpu.pipeline_mode<synchronous>, transform_indices = @transform_2, window_bounds = array<i64: 1, 1280>}, {pipeline_mode = #tpu.pipeline_mode<synchronous>, transform_indices = @transform_3, window_bounds = array<i64: 8, 72>}, {pipeline_mode = #tpu.pipeline_mode<synchronous>, transform_indices = @transform_4, window_bounds = array<i64: 8, 1>}, {pipeline_mode = #tpu.pipeline_mode<synchronous>, transform_indices = @transform_5, window_bounds = array<i64: 8, 1>}, {pipeline_mode = #tpu.pipeline_mode<synchronous>, transform_indices = @transform_6, window_bounds = array<i64: 8, 72>}, {pipeline_mode = #tpu.pipeline_mode<synchronous>, transform_indices = @transform_7, window_bounds = array<i64: 8, 1>}, {pipeline_mode = #tpu.pipeline_mode<synchronous>, transform_indices = @transform_8, window_bounds = array<i64: 8, 1>}, {pipeline_mode = #tpu.pipeline_mode<synchronous>, transform_indices = @transform_9, window_bounds = array<i64: 4, 8>}, {pipeline_mode = #tpu.pipeline_mode<synchronous>, transform_indices = @transform_10, window_bounds = array<i64: 4, 1>}, {pipeline_mode = #tpu.pipeline_mode<synchronous>, transform_indices = @transform_11, window_bounds = array<i64: 8, 4>}, {pipeline_mode = #tpu.pipeline_mode<synchronous>, transform_indices = @transform_12, window_bounds = array<i64: 8, 1>}, {pipeline_mode = #tpu.pipeline_mode<synchronous>, transform_indices = @transform_13, window_bounds = array<i64: 8, 1>}, {pipeline_mode = #tpu.pipeline_mode<synchronous>, transform_indices = @transform_14, window_bounds = array<i64: 16, 1280>}]} {
    %c0 = arith.constant 0 : index
    %c0_0 = arith.constant 0 : index
    %0 = vector.load %arg3[%c0, %c0_0] : memref<1x1280xf32, #tpu.memory_space<vmem>>, vector<1x1280xf32>
    %c0_1 = arith.constant 0 : index
    %c0_2 = arith.constant 0 : index
    %1 = vector.load %arg1[%c0_1, %c0_2] : memref<16x256xf32, #tpu.memory_space<vmem>>, vector<16x256xf32>
    %c0_3 = arith.constant 0 : index
    %c0_4 = arith.constant 0 : index
    %2 = vector.load %arg2[%c0_3, %c0_4] : memref<256x1536xf32, #tpu.memory_space<vmem>>, vector<256x1536xf32>
    %cst = arith.constant dense<0.000000e+00> : vector<16x1536xf32>
    %3 = tpu.matmul %1, %2, %cst {dimension_numbers = #tpu.dot_dimension_numbers<[1], [0], [0], [1], [0, 0, 1, 1], [], []>} : vector<16x256xf32>, vector<256x1536xf32>, vector<16x1536xf32> -> vector<16x1536xf32>
    %4 = vector.extract_strided_slice %3 {offsets = [0, 0], sizes = [8, 1536], strides = [1, 1]} : vector<16x1536xf32> to vector<8x1536xf32>
    %5 = vector.extract_strided_slice %3 {offsets = [8, 0], sizes = [8, 1536], strides = [1, 1]} : vector<16x1536xf32> to vector<8x1536xf32>
    %c0_5 = arith.constant 0 : index
    %c0_6 = arith.constant 0 : index
    %6 = vector.load %arg4[%c0_5, %c0_6] : memref<8x72xf32, #tpu.memory_space<vmem>>, vector<8x72xf32>
    %c0_7 = arith.constant 0 : index
    %c0_8 = arith.constant 0 : index
    %7 = vector.load %arg5[%c0_7, %c0_8] : memref<8x1xf32, #tpu.memory_space<vmem>>, vector<8x1xf32>
    %c0_9 = arith.constant 0 : index
    %c0_10 = arith.constant 0 : index
    %8 = vector.load %arg6[%c0_9, %c0_10] : memref<8x1xf32, #tpu.memory_space<vmem>>, vector<8x1xf32>
    %9 = vector.extract_strided_slice %4 {offsets = [0, 93], sizes = [8, 1280], strides = [1, 1]} : vector<8x1536xf32> to vector<8x1280xf32>
    %10 = vector.extract_strided_slice %4 {offsets = [0, 94], sizes = [8, 1280], strides = [1, 1]} : vector<8x1536xf32> to vector<8x1280xf32>
    %11 = vector.extract_strided_slice %4 {offsets = [0, 95], sizes = [8, 1280], strides = [1, 1]} : vector<8x1536xf32> to vector<8x1280xf32>
    %12 = vector.extract_strided_slice %4 {offsets = [0, 127], sizes = [8, 1280], strides = [1, 1]} : vector<8x1536xf32> to vector<8x1280xf32>
    %13 = vector.extract_strided_slice %4 {offsets = [0, 128], sizes = [8, 1280], strides = [1, 1]} : vector<8x1536xf32> to vector<8x1280xf32>
    %14 = vector.extract_strided_slice %4 {offsets = [0, 129], sizes = [8, 1280], strides = [1, 1]} : vector<8x1536xf32> to vector<8x1280xf32>
    %15 = vector.extract_strided_slice %4 {offsets = [0, 161], sizes = [8, 1280], strides = [1, 1]} : vector<8x1536xf32> to vector<8x1280xf32>
    %16 = vector.extract_strided_slice %4 {offsets = [0, 162], sizes = [8, 1280], strides = [1, 1]} : vector<8x1536xf32> to vector<8x1280xf32>
    %17 = vector.extract_strided_slice %4 {offsets = [0, 163], sizes = [8, 1280], strides = [1, 1]} : vector<8x1536xf32> to vector<8x1280xf32>
    %18 = tpu.concatenate %9, %10, %11, %12, %13, %14, %15, %16, %17 in 0 : vector<8x1280xf32>, vector<8x1280xf32>, vector<8x1280xf32>, vector<8x1280xf32>, vector<8x1280xf32>, vector<8x1280xf32>, vector<8x1280xf32>, vector<8x1280xf32>, vector<8x1280xf32> -> vector<72x1280xf32>
    %cst_11 = arith.constant dense<0.000000e+00> : vector<8x1280xf32>
    %19 = tpu.matmul %6, %18, %cst_11 {dimension_numbers = #tpu.dot_dimension_numbers<[1], [0], [0], [1], [0, 0, 1, 1], [], []>} : vector<8x72xf32>, vector<72x1280xf32>, vector<8x1280xf32> -> vector<8x1280xf32>
    %20 = vector.extract_strided_slice %5 {offsets = [0, 93], sizes = [8, 1280], strides = [1, 1]} : vector<8x1536xf32> to vector<8x1280xf32>
    %21 = vector.extract_strided_slice %5 {offsets = [0, 94], sizes = [8, 1280], strides = [1, 1]} : vector<8x1536xf32> to vector<8x1280xf32>
    %22 = vector.extract_strided_slice %5 {offsets = [0, 95], sizes = [8, 1280], strides = [1, 1]} : vector<8x1536xf32> to vector<8x1280xf32>
    %23 = vector.extract_strided_slice %5 {offsets = [0, 127], sizes = [8, 1280], strides = [1, 1]} : vector<8x1536xf32> to vector<8x1280xf32>
    %24 = vector.extract_strided_slice %5 {offsets = [0, 128], sizes = [8, 1280], strides = [1, 1]} : vector<8x1536xf32> to vector<8x1280xf32>
    %25 = vector.extract_strided_slice %5 {offsets = [0, 129], sizes = [8, 1280], strides = [1, 1]} : vector<8x1536xf32> to vector<8x1280xf32>
    %26 = vector.extract_strided_slice %5 {offsets = [0, 161], sizes = [8, 1280], strides = [1, 1]} : vector<8x1536xf32> to vector<8x1280xf32>
    %27 = vector.extract_strided_slice %5 {offsets = [0, 162], sizes = [8, 1280], strides = [1, 1]} : vector<8x1536xf32> to vector<8x1280xf32>
    %28 = vector.extract_strided_slice %5 {offsets = [0, 163], sizes = [8, 1280], strides = [1, 1]} : vector<8x1536xf32> to vector<8x1280xf32>
    %29 = tpu.concatenate %20, %21, %22, %23, %24, %25, %26, %27, %28 in 0 : vector<8x1280xf32>, vector<8x1280xf32>, vector<8x1280xf32>, vector<8x1280xf32>, vector<8x1280xf32>, vector<8x1280xf32>, vector<8x1280xf32>, vector<8x1280xf32>, vector<8x1280xf32> -> vector<72x1280xf32>
    %cst_12 = arith.constant dense<0.000000e+00> : vector<8x1280xf32>
    %30 = tpu.matmul %6, %29, %cst_12 {dimension_numbers = #tpu.dot_dimension_numbers<[1], [0], [0], [1], [0, 0, 1, 1], [], []>} : vector<8x72xf32>, vector<72x1280xf32>, vector<8x1280xf32> -> vector<8x1280xf32>
    %31 = vector.broadcast %0 : vector<1x1280xf32> to vector<8x1280xf32>
    %32 = arith.mulf %19, %31 : vector<8x1280xf32>
    %cst_13 = arith.constant dense<0.000000e+00> : vector<8xf32>
    %33 = vector.multi_reduction <add>, %32, %cst_13 [1] : vector<8x1280xf32> to vector<8xf32>
    %34 = vector.shape_cast %33 : vector<8xf32> to vector<8x1xf32>
    %35 = vector.broadcast %0 : vector<1x1280xf32> to vector<8x1280xf32>
    %36 = arith.mulf %30, %35 : vector<8x1280xf32>
    %cst_14 = arith.constant dense<0.000000e+00> : vector<8xf32>
    %37 = vector.multi_reduction <add>, %36, %cst_14 [1] : vector<8x1280xf32> to vector<8xf32>
    %38 = vector.shape_cast %37 : vector<8xf32> to vector<8x1xf32>
    %39 = arith.addf %34, %38 : vector<8x1xf32>
    %cst_15 = arith.constant 4.8828125E-4 : f32
    %40 = vector.broadcast %cst_15 : f32 to vector<8x1xf32>
    %41 = arith.mulf %39, %40 : vector<8x1xf32>
    %42 = vector.broadcast %41 : vector<8x1xf32> to vector<8x1280xf32>
    %43 = arith.subf %19, %42 : vector<8x1280xf32>
    %44 = vector.broadcast %0 : vector<1x1280xf32> to vector<8x1280xf32>
    %45 = arith.mulf %43, %44 : vector<8x1280xf32>
    %46 = arith.mulf %45, %45 : vector<8x1280xf32>
    %cst_16 = arith.constant dense<0.000000e+00> : vector<8xf32>
    %47 = vector.multi_reduction <add>, %46, %cst_16 [1] : vector<8x1280xf32> to vector<8xf32>
    %48 = vector.shape_cast %47 : vector<8xf32> to vector<8x1xf32>
    %49 = vector.broadcast %41 : vector<8x1xf32> to vector<8x1280xf32>
    %50 = arith.subf %30, %49 : vector<8x1280xf32>
    %51 = vector.broadcast %0 : vector<1x1280xf32> to vector<8x1280xf32>
    %52 = arith.mulf %50, %51 : vector<8x1280xf32>
    %53 = arith.mulf %52, %52 : vector<8x1280xf32>
    %cst_17 = arith.constant dense<0.000000e+00> : vector<8xf32>
    %54 = vector.multi_reduction <add>, %53, %cst_17 [1] : vector<8x1280xf32> to vector<8xf32>
    %55 = vector.shape_cast %54 : vector<8xf32> to vector<8x1xf32>
    %56 = arith.addf %48, %55 : vector<8x1xf32>
    %cst_18 = arith.constant 4.8828125E-4 : f32
    %57 = vector.broadcast %cst_18 : f32 to vector<8x1xf32>
    %58 = arith.mulf %56, %57 : vector<8x1xf32>
    %cst_19 = arith.constant 9.99999974E-6 : f32
    %59 = vector.broadcast %cst_19 : f32 to vector<8x1xf32>
    %60 = arith.addf %58, %59 : vector<8x1xf32>
    %61 = math.rsqrt %60 : vector<8x1xf32>
    %62 = arith.mulf %7, %61 : vector<8x1xf32>
    %63 = arith.mulf %41, %62 : vector<8x1xf32>
    %64 = arith.subf %8, %63 : vector<8x1xf32>
    %65 = vector.broadcast %62 : vector<8x1xf32> to vector<8x1280xf32>
    %66 = arith.mulf %19, %65 : vector<8x1280xf32>
    %67 = vector.broadcast %64 : vector<8x1xf32> to vector<8x1280xf32>
    %68 = arith.addf %66, %67 : vector<8x1280xf32>
    %cst_20 = arith.constant 0.000000e+00 : f32
    %69 = vector.broadcast %cst_20 : f32 to vector<8x1280xf32>
    %70 = arith.maximumf %68, %69 : vector<8x1280xf32>
    %71 = vector.broadcast %0 : vector<1x1280xf32> to vector<8x1280xf32>
    %72 = arith.mulf %70, %71 : vector<8x1280xf32>
    %73 = vector.broadcast %62 : vector<8x1xf32> to vector<8x1280xf32>
    %74 = arith.mulf %30, %73 : vector<8x1280xf32>
    %75 = vector.broadcast %64 : vector<8x1xf32> to vector<8x1280xf32>
    %76 = arith.addf %74, %75 : vector<8x1280xf32>
    %cst_21 = arith.constant 0.000000e+00 : f32
    %77 = vector.broadcast %cst_21 : f32 to vector<8x1280xf32>
    %78 = arith.maximumf %76, %77 : vector<8x1280xf32>
    %79 = vector.broadcast %0 : vector<1x1280xf32> to vector<8x1280xf32>
    %80 = arith.mulf %78, %79 : vector<8x1280xf32>
    %cst_22 = arith.constant 0.000000e+00 : f32
    %81 = vector.broadcast %cst_22 : f32 to vector<16x1536xf32>
    %c0_23 = arith.constant 0 : index
    %c0_24 = arith.constant 0 : index
    %82 = vector.load %arg16[%c0_23, %c0_24] : memref<16x1536xf32, #tpu.memory_space<vmem>>, vector<16x1536xf32>
    tpu.vector_store %arg16[%c0_23, %c0_24], %81 {strides = array<i32>} : memref<16x1536xf32, #tpu.memory_space<vmem>>, vector<16x1536xf32>,
    %c0_25 = arith.constant 0 : index
    %c128 = arith.constant 128 : index
    %83 = vector.load %arg16[%c0_25, %c128] : memref<16x1536xf32, #tpu.memory_space<vmem>>, vector<8x1280xf32>
    tpu.vector_store %arg16[%c0_25, %c128], %72 {strides = array<i32>} : memref<16x1536xf32, #tpu.memory_space<vmem>>, vector<8x1280xf32>,
    %c8 = arith.constant 8 : index
    %c128_26 = arith.constant 128 : index
    %84 = vector.load %arg16[%c8, %c128_26] : memref<16x1536xf32, #tpu.memory_space<vmem>>, vector<8x1280xf32>
    tpu.vector_store %arg16[%c8, %c128_26], %80 {strides = array<i32>} : memref<16x1536xf32, #tpu.memory_space<vmem>>, vector<8x1280xf32>,
    %c0_27 = arith.constant 0 : index
    %c0_28 = arith.constant 0 : index
    %85 = vector.load %arg16[%c0_27, %c0_28] : memref<16x1536xf32, #tpu.memory_space<vmem>>, vector<8x1536xf32>
    %c8_29 = arith.constant 8 : index
    %c0_30 = arith.constant 0 : index
    %86 = vector.load %arg16[%c8_29, %c0_30] : memref<16x1536xf32, #tpu.memory_space<vmem>>, vector<8x1536xf32>
    %c0_31 = arith.constant 0 : index
    %c0_32 = arith.constant 0 : index
    %87 = vector.load %arg7[%c0_31, %c0_32] : memref<8x72xf32, #tpu.memory_space<vmem>>, vector<8x72xf32>
    %c0_33 = arith.constant 0 : index
    %c0_34 = arith.constant 0 : index
    %88 = vector.load %arg8[%c0_33, %c0_34] : memref<8x1xf32, #tpu.memory_space<vmem>>, vector<8x1xf32>
    %c0_35 = arith.constant 0 : index
    %c0_36 = arith.constant 0 : index
    %89 = vector.load %arg9[%c0_35, %c0_36] : memref<8x1xf32, #tpu.memory_space<vmem>>, vector<8x1xf32>
    %90 = vector.extract_strided_slice %85 {offsets = [0, 93], sizes = [8, 1280], strides = [1, 1]} : vector<8x1536xf32> to vector<8x1280xf32>
    %91 = vector.extract_strided_slice %85 {offsets = [0, 94], sizes = [8, 1280], strides = [1, 1]} : vector<8x1536xf32> to vector<8x1280xf32>
    %92 = vector.extract_strided_slice %85 {offsets = [0, 95], sizes = [8, 1280], strides = [1, 1]} : vector<8x1536xf32> to vector<8x1280xf32>
    %93 = vector.extract_strided_slice %85 {offsets = [0, 127], sizes = [8, 1280], strides = [1, 1]} : vector<8x1536xf32> to vector<8x1280xf32>
    %94 = vector.extract_strided_slice %85 {offsets = [0, 128], sizes = [8, 1280], strides = [1, 1]} : vector<8x1536xf32> to vector<8x1280xf32>
    %95 = vector.extract_strided_slice %85 {offsets = [0, 129], sizes = [8, 1280], strides = [1, 1]} : vector<8x1536xf32> to vector<8x1280xf32>
    %96 = vector.extract_strided_slice %85 {offsets = [0, 161], sizes = [8, 1280], strides = [1, 1]} : vector<8x1536xf32> to vector<8x1280xf32>
    %97 = vector.extract_strided_slice %85 {offsets = [0, 162], sizes = [8, 1280], strides = [1, 1]} : vector<8x1536xf32> to vector<8x1280xf32>
    %98 = vector.extract_strided_slice %85 {offsets = [0, 163], sizes = [8, 1280], strides = [1, 1]} : vector<8x1536xf32> to vector<8x1280xf32>
    %99 = tpu.concatenate %90, %91, %92, %93, %94, %95, %96, %97, %98 in 0 : vector<8x1280xf32>, vector<8x1280xf32>, vector<8x1280xf32>, vector<8x1280xf32>, vector<8x1280xf32>, vector<8x1280xf32>, vector<8x1280xf32>, vector<8x1280xf32>, vector<8x1280xf32> -> vector<72x1280xf32>
    %cst_37 = arith.constant dense<0.000000e+00> : vector<8x1280xf32>
    %100 = tpu.matmul %87, %99, %cst_37 {dimension_numbers = #tpu.dot_dimension_numbers<[1], [0], [0], [1], [0, 0, 1, 1], [], []>} : vector<8x72xf32>, vector<72x1280xf32>, vector<8x1280xf32> -> vector<8x1280xf32>
    %101 = vector.extract_strided_slice %86 {offsets = [0, 93], sizes = [8, 1280], strides = [1, 1]} : vector<8x1536xf32> to vector<8x1280xf32>
    %102 = vector.extract_strided_slice %86 {offsets = [0, 94], sizes = [8, 1280], strides = [1, 1]} : vector<8x1536xf32> to vector<8x1280xf32>
    %103 = vector.extract_strided_slice %86 {offsets = [0, 95], sizes = [8, 1280], strides = [1, 1]} : vector<8x1536xf32> to vector<8x1280xf32>
    %104 = vector.extract_strided_slice %86 {offsets = [0, 127], sizes = [8, 1280], strides = [1, 1]} : vector<8x1536xf32> to vector<8x1280xf32>
    %105 = vector.extract_strided_slice %86 {offsets = [0, 128], sizes = [8, 1280], strides = [1, 1]} : vector<8x1536xf32> to vector<8x1280xf32>
    %106 = vector.extract_strided_slice %86 {offsets = [0, 129], sizes = [8, 1280], strides = [1, 1]} : vector<8x1536xf32> to vector<8x1280xf32>
    %107 = vector.extract_strided_slice %86 {offsets = [0, 161], sizes = [8, 1280], strides = [1, 1]} : vector<8x1536xf32> to vector<8x1280xf32>
    %108 = vector.extract_strided_slice %86 {offsets = [0, 162], sizes = [8, 1280], strides = [1, 1]} : vector<8x1536xf32> to vector<8x1280xf32>
    %109 = vector.extract_strided_slice %86 {offsets = [0, 163], sizes = [8, 1280], strides = [1, 1]} : vector<8x1536xf32> to vector<8x1280xf32>
    %110 = tpu.concatenate %101, %102, %103, %104, %105, %106, %107, %108, %109 in 0 : vector<8x1280xf32>, vector<8x1280xf32>, vector<8x1280xf32>, vector<8x1280xf32>, vector<8x1280xf32>, vector<8x1280xf32>, vector<8x1280xf32>, vector<8x1280xf32>, vector<8x1280xf32> -> vector<72x1280xf32>
    %cst_38 = arith.constant dense<0.000000e+00> : vector<8x1280xf32>
    %111 = tpu.matmul %87, %110, %cst_38 {dimension_numbers = #tpu.dot_dimension_numbers<[1], [0], [0], [1], [0, 0, 1, 1], [], []>} : vector<8x72xf32>, vector<72x1280xf32>, vector<8x1280xf32> -> vector<8x1280xf32>
    %112 = vector.broadcast %0 : vector<1x1280xf32> to vector<8x1280xf32>
    %113 = arith.mulf %100, %112 : vector<8x1280xf32>
    %cst_39 = arith.constant dense<0.000000e+00> : vector<8xf32>
    %114 = vector.multi_reduction <add>, %113, %cst_39 [1] : vector<8x1280xf32> to vector<8xf32>
    %115 = vector.shape_cast %114 : vector<8xf32> to vector<8x1xf32>
    %116 = vector.broadcast %0 : vector<1x1280xf32> to vector<8x1280xf32>
    %117 = arith.mulf %111, %116 : vector<8x1280xf32>
    %cst_40 = arith.constant dense<0.000000e+00> : vector<8xf32>
    %118 = vector.multi_reduction <add>, %117, %cst_40 [1] : vector<8x1280xf32> to vector<8xf32>
    %119 = vector.shape_cast %118 : vector<8xf32> to vector<8x1xf32>
    %120 = arith.addf %115, %119 : vector<8x1xf32>
    %cst_41 = arith.constant 4.8828125E-4 : f32
    %121 = vector.broadcast %cst_41 : f32 to vector<8x1xf32>
    %122 = arith.mulf %120, %121 : vector<8x1xf32>
    %123 = vector.broadcast %122 : vector<8x1xf32> to vector<8x1280xf32>
    %124 = arith.subf %100, %123 : vector<8x1280xf32>
    %125 = vector.broadcast %0 : vector<1x1280xf32> to vector<8x1280xf32>
    %126 = arith.mulf %124, %125 : vector<8x1280xf32>
    %127 = arith.mulf %126, %126 : vector<8x1280xf32>
    %cst_42 = arith.constant dense<0.000000e+00> : vector<8xf32>
    %128 = vector.multi_reduction <add>, %127, %cst_42 [1] : vector<8x1280xf32> to vector<8xf32>
    %129 = vector.shape_cast %128 : vector<8xf32> to vector<8x1xf32>
    %130 = vector.broadcast %122 : vector<8x1xf32> to vector<8x1280xf32>
    %131 = arith.subf %111, %130 : vector<8x1280xf32>
    %132 = vector.broadcast %0 : vector<1x1280xf32> to vector<8x1280xf32>
    %133 = arith.mulf %131, %132 : vector<8x1280xf32>
    %134 = arith.mulf %133, %133 : vector<8x1280xf32>
    %cst_43 = arith.constant dense<0.000000e+00> : vector<8xf32>
    %135 = vector.multi_reduction <add>, %134, %cst_43 [1] : vector<8x1280xf32> to vector<8xf32>
    %136 = vector.shape_cast %135 : vector<8xf32> to vector<8x1xf32>
    %137 = arith.addf %129, %136 : vector<8x1xf32>
    %cst_44 = arith.constant 4.8828125E-4 : f32
    %138 = vector.broadcast %cst_44 : f32 to vector<8x1xf32>
    %139 = arith.mulf %137, %138 : vector<8x1xf32>
    %cst_45 = arith.constant 9.99999974E-6 : f32
    %140 = vector.broadcast %cst_45 : f32 to vector<8x1xf32>
    %141 = arith.addf %139, %140 : vector<8x1xf32>
    %142 = math.rsqrt %141 : vector<8x1xf32>
    %143 = arith.mulf %88, %142 : vector<8x1xf32>
    %144 = arith.mulf %122, %143 : vector<8x1xf32>
    %145 = arith.subf %89, %144 : vector<8x1xf32>
    %146 = vector.broadcast %143 : vector<8x1xf32> to vector<8x1280xf32>
    %147 = arith.mulf %100, %146 : vector<8x1280xf32>
    %148 = vector.broadcast %145 : vector<8x1xf32> to vector<8x1280xf32>
    %149 = arith.addf %147, %148 : vector<8x1280xf32>
    %cst_46 = arith.constant 0.000000e+00 : f32
    %150 = vector.broadcast %cst_46 : f32 to vector<8x1280xf32>
    %151 = arith.maximumf %149, %150 : vector<8x1280xf32>
    %152 = vector.broadcast %0 : vector<1x1280xf32> to vector<8x1280xf32>
    %153 = arith.mulf %151, %152 : vector<8x1280xf32>
    %154 = vector.broadcast %143 : vector<8x1xf32> to vector<8x1280xf32>
    %155 = arith.mulf %111, %154 : vector<8x1280xf32>
    %156 = vector.broadcast %145 : vector<8x1xf32> to vector<8x1280xf32>
    %157 = arith.addf %155, %156 : vector<8x1280xf32>
    %cst_47 = arith.constant 0.000000e+00 : f32
    %158 = vector.broadcast %cst_47 : f32 to vector<8x1280xf32>
    %159 = arith.maximumf %157, %158 : vector<8x1280xf32>
    %160 = vector.broadcast %0 : vector<1x1280xf32> to vector<8x1280xf32>
    %161 = arith.mulf %159, %160 : vector<8x1280xf32>
    %cst_48 = arith.constant dense<0.000000e+00> : vector<8xf32>
    %162 = vector.multi_reduction <add>, %153, %cst_48 [1] : vector<8x1280xf32> to vector<8xf32>
    %163 = vector.shape_cast %162 : vector<8xf32> to vector<8x1xf32>
    %cst_49 = arith.constant 9.765625E-4 : f32
    %164 = vector.broadcast %cst_49 : f32 to vector<8x1xf32>
    %165 = arith.mulf %163, %164 : vector<8x1xf32>
    %c0_50 = arith.constant 0 : index
    %c0_51 = arith.constant 0 : index
    %166 = vector.load %arg17[%c0_50, %c0_51] : memref<8x2xf32, #tpu.memory_space<vmem>>, vector<8x1xf32>
    tpu.vector_store %arg17[%c0_50, %c0_51], %165 {strides = array<i32>} : memref<8x2xf32, #tpu.memory_space<vmem>>, vector<8x1xf32>,
    %cst_52 = arith.constant dense<0.000000e+00> : vector<8xf32>
    %167 = vector.multi_reduction <add>, %161, %cst_52 [1] : vector<8x1280xf32> to vector<8xf32>
    %168 = vector.shape_cast %167 : vector<8xf32> to vector<8x1xf32>
    %cst_53 = arith.constant 9.765625E-4 : f32
    %169 = vector.broadcast %cst_53 : f32 to vector<8x1xf32>
    %170 = arith.mulf %168, %169 : vector<8x1xf32>
    %c0_54 = arith.constant 0 : index
    %c1 = arith.constant 1 : index
    %171 = vector.load %arg17[%c0_54, %c1] : memref<8x2xf32, #tpu.memory_space<vmem>>, vector<8x1xf32>
    tpu.vector_store %arg17[%c0_54, %c1], %170 {strides = array<i32>} : memref<8x2xf32, #tpu.memory_space<vmem>>, vector<8x1xf32>,
    %c0_55 = arith.constant 0 : index
    %c0_56 = arith.constant 0 : index
    %172 = vector.load %arg17[%c0_55, %c0_56] : memref<8x2xf32, #tpu.memory_space<vmem>>, vector<8x2xf32>
    %c0_57 = arith.constant 0 : index
    %c0_58 = arith.constant 0 : index
    %173 = vector.load %arg10[%c0_57, %c0_58] : memref<4x8xf32, #tpu.memory_space<vmem>>, vector<4x8xf32>
    %cst_59 = arith.constant dense<0.000000e+00> : vector<4x2xf32>
    %174 = tpu.matmul %173, %172, %cst_59 {dimension_numbers = #tpu.dot_dimension_numbers<[1], [0], [0], [1], [0, 0, 1, 1], [], []>} : vector<4x8xf32>, vector<8x2xf32>, vector<4x2xf32> -> vector<4x2xf32>
    %c0_60 = arith.constant 0 : index
    %c0_61 = arith.constant 0 : index
    %175 = vector.load %arg11[%c0_60, %c0_61] : memref<4x1xf32, #tpu.memory_space<vmem>>, vector<4x1xf32>
    %176 = vector.broadcast %175 : vector<4x1xf32> to vector<4x2xf32>
    %177 = arith.addf %174, %176 : vector<4x2xf32>
    %cst_62 = arith.constant 0.000000e+00 : f32
    %178 = vector.broadcast %cst_62 : f32 to vector<4x2xf32>
    %179 = arith.maximumf %177, %178 : vector<4x2xf32>
    %c0_63 = arith.constant 0 : index
    %c0_64 = arith.constant 0 : index
    %180 = vector.load %arg12[%c0_63, %c0_64] : memref<8x4xf32, #tpu.memory_space<vmem>>, vector<8x4xf32>
    %cst_65 = arith.constant dense<0.000000e+00> : vector<8x2xf32>
    %181 = tpu.matmul %180, %179, %cst_65 {dimension_numbers = #tpu.dot_dimension_numbers<[1], [0], [0], [1], [0, 0, 1, 1], [], []>} : vector<8x4xf32>, vector<4x2xf32>, vector<8x2xf32> -> vector<8x2xf32>
    %c0_66 = arith.constant 0 : index
    %c0_67 = arith.constant 0 : index
    %182 = vector.load %arg13[%c0_66, %c0_67] : memref<8x1xf32, #tpu.memory_space<vmem>>, vector<8x1xf32>
    %183 = vector.broadcast %182 : vector<8x1xf32> to vector<8x2xf32>
    %184 = arith.addf %181, %183 : vector<8x2xf32>
    %185 = arith.negf %184 : vector<8x2xf32>
    %186 = math.exp %185 : vector<8x2xf32>
    %cst_68 = arith.constant 1.000000e+00 : f32
    %187 = vector.broadcast %cst_68 : f32 to vector<8x2xf32>
    %188 = arith.addf %187, %186 : vector<8x2xf32>
    %189 = arith.divf %187, %188 : vector<8x2xf32>
    %c0_69 = arith.constant 0 : index
    %c0_70 = arith.constant 0 : index
    %190 = vector.load %arg14[%c0_69, %c0_70] : memref<8x1xf32, #tpu.memory_space<vmem>>, vector<8x1xf32>
    %191 = vector.broadcast %190 : vector<8x1xf32> to vector<8x1280xf32>
    %192 = arith.mulf %153, %191 : vector<8x1280xf32>
    %cst_71 = arith.constant dense<0.000000e+00> : vector<1280xf32>
    %193 = vector.multi_reduction <add>, %192, %cst_71 [0] : vector<8x1280xf32> to vector<1280xf32>
    %194 = vector.shape_cast %193 : vector<1280xf32> to vector<1x1280xf32>
    %195 = arith.negf %194 : vector<1x1280xf32>
    %196 = math.exp %195 : vector<1x1280xf32>
    %cst_72 = arith.constant 1.000000e+00 : f32
    %197 = vector.broadcast %cst_72 : f32 to vector<1x1280xf32>
    %198 = arith.addf %197, %196 : vector<1x1280xf32>
    %199 = arith.divf %197, %198 : vector<1x1280xf32>
    %200 = vector.extract_strided_slice %189 {offsets = [0, 0], sizes = [8, 1], strides = [1, 1]} : vector<8x2xf32> to vector<8x1xf32>
    %201 = vector.broadcast %200 : vector<8x1xf32> to vector<8x1280xf32>
    %202 = arith.mulf %153, %201 : vector<8x1280xf32>
    %203 = vector.broadcast %199 : vector<1x1280xf32> to vector<8x1280xf32>
    %204 = arith.mulf %202, %203 : vector<8x1280xf32>
    %c0_73 = arith.constant 0 : index
    %c0_74 = arith.constant 0 : index
    %205 = vector.load %arg15[%c0_73, %c0_74] : memref<16x1280xf32, #tpu.memory_space<vmem>>, vector<8x1280xf32>
    tpu.vector_store %arg15[%c0_73, %c0_74], %204 {strides = array<i32>} : memref<16x1280xf32, #tpu.memory_space<vmem>>, vector<8x1280xf32>,
    %206 = vector.broadcast %190 : vector<8x1xf32> to vector<8x1280xf32>
    %207 = arith.mulf %161, %206 : vector<8x1280xf32>
    %cst_75 = arith.constant dense<0.000000e+00> : vector<1280xf32>
    %208 = vector.multi_reduction <add>, %207, %cst_75 [0] : vector<8x1280xf32> to vector<1280xf32>
    %209 = vector.shape_cast %208 : vector<1280xf32> to vector<1x1280xf32>
    %210 = arith.negf %209 : vector<1x1280xf32>
    %211 = math.exp %210 : vector<1x1280xf32>
    %cst_76 = arith.constant 1.000000e+00 : f32
    %212 = vector.broadcast %cst_76 : f32 to vector<1x1280xf32>
    %213 = arith.addf %212, %211 : vector<1x1280xf32>
    %214 = arith.divf %212, %213 : vector<1x1280xf32>
    %215 = vector.extract_strided_slice %189 {offsets = [0, 1], sizes = [8, 1], strides = [1, 1]} : vector<8x2xf32> to vector<8x1xf32>
    %216 = vector.broadcast %215 : vector<8x1xf32> to vector<8x1280xf32>
    %217 = arith.mulf %161, %216 : vector<8x1280xf32>
    %218 = vector.broadcast %214 : vector<1x1280xf32> to vector<8x1280xf32>
    %219 = arith.mulf %217, %218 : vector<8x1280xf32>
    %c8_77 = arith.constant 8 : index
    %c0_78 = arith.constant 0 : index
    %220 = vector.load %arg15[%c8_77, %c0_78] : memref<16x1280xf32, #tpu.memory_space<vmem>>, vector<8x1280xf32>
    tpu.vector_store %arg15[%c8_77, %c0_78], %219 {strides = array<i32>} : memref<16x1280xf32, #tpu.memory_space<vmem>>, vector<8x1280xf32>,
    return
  }
  func.func @transform_0(%arg0: i32) -> (i32, i32) {
    %c0_i32 = arith.constant 0 : i32
    %c0_i32_0 = arith.constant 0 : i32
    %c0_i32_1 = arith.constant 0 : i32
    return %c0_i32, %c0_i32_0 : i32, i32
  }
  func.func @transform_1(%arg0: i32) -> (i32, i32) {
    %c0_i32 = arith.constant 0 : i32
    %c0_i32_0 = arith.constant 0 : i32
    %c0_i32_1 = arith.constant 0 : i32
    return %c0_i32, %c0_i32_0 : i32, i32
  }
  func.func @transform_2(%arg0: i32) -> (i32, i32) {
    %c0_i32 = arith.constant 0 : i32
    %c0_i32_0 = arith.constant 0 : i32
    %c0_i32_1 = arith.constant 0 : i32
    return %c0_i32, %c0_i32_0 : i32, i32
  }
  func.func @transform_3(%arg0: i32) -> (i32, i32) {
    %c0_i32 = arith.constant 0 : i32
    %c0_i32_0 = arith.constant 0 : i32
    %c0_i32_1 = arith.constant 0 : i32
    return %c0_i32, %c0_i32_0 : i32, i32
  }
  func.func @transform_4(%arg0: i32) -> (i32, i32) {
    %c0_i32 = arith.constant 0 : i32
    %c0_i32_0 = arith.constant 0 : i32
    %c0_i32_1 = arith.constant 0 : i32
    return %c0_i32, %c0_i32_0 : i32, i32
  }
  func.func @transform_5(%arg0: i32) -> (i32, i32) {
    %c0_i32 = arith.constant 0 : i32
    %c0_i32_0 = arith.constant 0 : i32
    %c0_i32_1 = arith.constant 0 : i32
    return %c0_i32, %c0_i32_0 : i32, i32
  }
  func.func @transform_6(%arg0: i32) -> (i32, i32) {
    %c0_i32 = arith.constant 0 : i32
    %c0_i32_0 = arith.constant 0 : i32
    %c0_i32_1 = arith.constant 0 : i32
    return %c0_i32, %c0_i32_0 : i32, i32
  }
  func.func @transform_7(%arg0: i32) -> (i32, i32) {
    %c0_i32 = arith.constant 0 : i32
    %c0_i32_0 = arith.constant 0 : i32
    %c0_i32_1 = arith.constant 0 : i32
    return %c0_i32, %c0_i32_0 : i32, i32
  }
  func.func @transform_8(%arg0: i32) -> (i32, i32) {
    %c0_i32 = arith.constant 0 : i32
    %c0_i32_0 = arith.constant 0 : i32
    %c0_i32_1 = arith.constant 0 : i32
    return %c0_i32, %c0_i32_0 : i32, i32
  }
  func.func @transform_9(%arg0: i32) -> (i32, i32) {
    %c0_i32 = arith.constant 0 : i32
    %c0_i32_0 = arith.constant 0 : i32
    %c0_i32_1 = arith.constant 0 : i32
    return %c0_i32, %c0_i32_0 : i32, i32
  }
  func.func @transform_10(%arg0: i32) -> (i32, i32) {
    %c0_i32 = arith.constant 0 : i32
    %c0_i32_0 = arith.constant 0 : i32
    %c0_i32_1 = arith.constant 0 : i32
    return %c0_i32, %c0_i32_0 : i32, i32
  }
  func.func @transform_11(%arg0: i32) -> (i32, i32) {
    %c0_i32 = arith.constant 0 : i32
    %c0_i32_0 = arith.constant 0 : i32
    %c0_i32_1 = arith.constant 0 : i32
    return %c0_i32, %c0_i32_0 : i32, i32
  }
  func.func @transform_12(%arg0: i32) -> (i32, i32) {
    %c0_i32 = arith.constant 0 : i32
    %c0_i32_0 = arith.constant 0 : i32
    %c0_i32_1 = arith.constant 0 : i32
    return %c0_i32, %c0_i32_0 : i32, i32
  }
  func.func @transform_13(%arg0: i32) -> (i32, i32) {
    %c0_i32 = arith.constant 0 : i32
    %c0_i32_0 = arith.constant 0 : i32
    %c0_i32_1 = arith.constant 0 : i32
    return %c0_i32, %c0_i32_0 : i32, i32
  }
  func.func @transform_14(%arg0: i32) -> (i32, i32) {
    %c0_i32 = arith.constant 0 : i32
    %c0_i32_0 = arith.constant 0 : i32
    %c0_i32_1 = arith.constant 0 : i32
    return %c0_i32, %c0_i32_0 : i32, i32
  }
}

</mosaic_0001>

<bundles_post_ra>
// kernel: decoder_forward.1
= control target key start
LH: loop header
LB: loop body
LE: loop exit
PB: predicated region body
PF: predicated region fallthrough
CT: control target
= control target key end

     0   :  { %19 = vsyncpa [#allocation5], 0  ;;  %s11084_s0 = inlined_call_operand.vmem [shape: f32[16,256], index: 0, kind: input, shape index: {}]   ;;  %s11085_s1 = inlined_call_operand.hbm [shape: f32[256,1536], index: 1, kind: input, shape index: {}]   ;;  %s11086_s2 = inlined_call_operand.hbm [shape: f32[1,1280], index: 2, kind: input, shape index: {}]   ;;  %s11087_s3 = inlined_call_operand.vmem [shape: f32[8,72], index: 3, kind: input, shape index: {}]   ;;  %s11088_s4 = inlined_call_operand.vmem [shape: f32[8,1], index: 4, kind: input, shape index: {}]   ;;  %s11089_s5 = inlined_call_operand.vmem [shape: f32[8,1], index: 5, kind: input, shape index: {}]   ;;  %s11090_s6 = inlined_call_operand.vmem [shape: f32[8,72], index: 6, kind: input, shape index: {}]   ;;  %s11091_s7 = inlined_call_operand.vmem [shape: f32[8,1], index: 7, kind: input, shape index: {}]   ;;  %s11092_s8 = inlined_call_operand.vmem [shape: f32[8,1], index: 8, kind: input, shape index: {}]   ;;  %s11093_s9 = inlined_call_operand.hbm [shape: f32[4,8], index: 9, kind: input, shape index: {}]   ;;  %s11094_s10 = inlined_call_operand.vmem [shape: f32[4,1], index: 10, kind: input, shape index: {}]   ;;  %s11095_s11 = inlined_call_operand.vmem [shape: f32[8,4], index: 11, kind: input, shape index: {}]   ;;  %s11096_s12 = inlined_call_operand.vmem [shape: f32[8,1], index: 12, kind: input, shape index: {}]   ;;  %s11097_s13 = inlined_call_operand.vmem [shape: f32[8,1], index: 13, kind: input, shape index: {}]   ;;  %s11098_s14 = inlined_call_operand.vmem [shape: f32[16,1280], index: 14, kind: output, shape index: {}]  }
   0x1   :  { %20 = vsyncpa [#allocation7], 0  ;;  %s6335_s29 = smov [#allocation6]   ;;  %s6336_s15 = smov [#allocation4]  }
   0x2   :  { %s41_s30 = sshll.u32 %s6335_s29, 4  ;;  %s28_s16 = sshll.u32 %s6336_s15, 4  ;;  %s42_s30 = int_to_ptr.vmem [resolvable:$true] %s41_s30  ;;  %s29_s16 = int_to_ptr.vmem [resolvable:$true] %s28_s16 }
   0x3   :  { %s6279_s17 = scalar_lea.vmem %s42_s30, 160  ;;  %p6284_p1 = scmp.lt.s32.totalorder %s42_s30, %s42_s30 }
   0x4   :  { %p6280_p0 = scmp.ne.s32.totalorder %s42_s30, %s6279_s17  ;;  %p6285_p2 = scmp.lt.s32.totalorder %s6279_s17, %s6279_s17 }
   0x6   :  { %p6286_p3 = por %p6285_p2, %p6284_p1 }
   0x8   :  { %p6287_p4 = pnand %p6286_p3, %p6280_p0 }
   0xa   :  { %6290 = shalt.err (!%p6287_p4)
}
   0xb   :  { %44 = dma.hbm_to_vmem [thread:$0]  %s11086_s2, 160, %s42_s30, [#allocation7]  }
   0xc   :  { %s6299_s20 = scalar_lea.vmem %s29_s16, 49152  ;;  %p6304_p6 = scmp.lt.s32.totalorder %s29_s16, %s29_s16 }
   0xd   :  { %p6300_p5 = scmp.ne.s32.totalorder %s29_s16, %s6299_s20  ;;  %p6305_p7 = scmp.lt.s32.totalorder %s6299_s20, %s6299_s20 }
   0xf   :  { %p6306_p8 = por %p6305_p7, %p6304_p6 }
  0x11   :  { %p6307_p9 = pnand %p6306_p8, %p6300_p5 }
  0x13   :  { %6310 = shalt.err (!%p6307_p9)
}
  0x14   :  { %s6337_s21 = smov 1536   ;;  %s6338_s22 = smov 96  }
  0x15   :  { %34 = dma.hbm_to_vmem [thread:$0]  %s11085_s1, 49152, %s29_s16, [#allocation5], %s6337_s21, %s6337_s21, %s6338_s22  }
  0x16   :  { %s6339_s25 = smov [#allocation8]  }
  0x17   :  { %s63_s26 = sshll.u32 %s6339_s25, 4  ;;  %s64_s26 = int_to_ptr.vmem [resolvable:$true] %s63_s26 }
  0x18   :  { %s6319_s27 = scalar_lea.vmem %s64_s26, 64  ;;  %p6324_p11 = scmp.lt.s32.totalorder %s64_s26, %s64_s26 }
  0x19   :  { %p6320_p10 = scmp.ne.s32.totalorder %s64_s26, %s6319_s27  ;;  %p6325_p12 = scmp.lt.s32.totalorder %s6319_s27, %s6319_s27 }
  0x1b   :  { %p6326_p13 = por %p6325_p12, %p6324_p11 }
  0x1d   :  { %p6327_p0 = pnand %p6326_p13, %p6320_p10 }
  0x1f   :  { %6330 = shalt.err (!%p6327_p0)
}
  0x20   :  { %66 = dma.hbm_to_vmem [thread:$0]  %s11093_s9, 64, %s64_s26, [#allocation7]  }
  0x21   :  { %6331 = dma.done.wait [#allocation5], 49152  }
  0x22   :  { %6332 = vsyncadd [#allocation5], 4294918144 }
  0x23   :  { %6333 = dma.done.wait [#allocation7], 224  }
  0x24   :  { %6334 = vsyncadd [#allocation7], 4294967072  ;;  %v273_v0 = vld [vmem:[#allocation4 + $0x5b8] sm:$0xff]  ;;  %v272_v1 = vld [vmem:[#allocation4 + $0x5b0] sm:$0xff]  ;;  %s6340_s25 = smov 60   ;;  %s6341_s26 = smov 58  }
  0x25   :  { %v261_v2 = vld [vmem:[#allocation4 + $0x558] sm:$0xff]  ;;  %551 = vmatprep.subr.mxu1 %v273_v0  ;;  %v260_v3 = vld [vmem:[#allocation4 + $0x550] sm:$0xff]  ;;  %v271_v7 = vld [vmem:[#allocation4 + $0x5a8] sm:$0xff]  ;;  %s6342_s27 = smov 93   ;;  %s6343_s2 = smov 59   ;;  %vm1201_vm0 = vcmask 474112  }
  0x26   :  { %552 = vmatpush1.msra.mxu1 %v272_v1  ;;  %v249_v4 = vld [vmem:[#allocation4 + $0x4f8] sm:$0xff]  ;;  %v248_v5 = vld [vmem:[#allocation4 + $0x4f0] sm:$0xff]  ;;  %v270_v8 = vld [vmem:[#allocation4 + $0x5a0] sm:$0xff]  ;;  %474 = vmatprep.subr.mxu0 %v271_v7  ;;  %s6344_s28 = smov 35   ;;  %s6345_s1 = smov 92   ;;  %vm1168_vm1 = vcmask 482304  }
  0x27   :  { %553 = vmatprep.subr.mxu1 %v261_v2  ;;  %v237_v6 = vld [vmem:[#allocation4 + $0x498] sm:$0xff]  ;;  %v236_v9 = vld [vmem:[#allocation4 + $0x490] sm:$0xff]  ;;  %v259_v10 = vld [vmem:[#allocation4 + $0x548] sm:$0xff]  ;;  %475 = vmatpush1.msra.mxu0 %v270_v8  ;;  %s6347_s9 = smov 126   ;;  %s6348_s29 = smov 127   ;;  %vm1135_vm2 = vcmask 490496  }
  0x28   :  { %554 = vmatpush1.msra.mxu1 %v260_v3  ;;  %v225_v11 = vld [vmem:[#allocation4 + $0x438] sm:$0xff]  ;;  %v258_v12 = vld [vmem:[#allocation4 + $0x540] sm:$0xff]  ;;  %v247_v13 = vld [vmem:[#allocation4 + $0x4e8] sm:$0xff]  ;;  %476 = vmatprep.subr.mxu0 %v259_v10  ;;  %vm1102_vm3 = vcmask 752640   ;;  %vm1069_vm4 = vcmask 760832   ;;  %vm1038_vm5 = vcmask 769024  }
  0x29   :  { %555 = vmatprep.subr.mxu1 %v249_v4  ;;  %v224_v14 = vld [vmem:[#allocation4 + $0x430] sm:$0xff]  ;;  %v246_v15 = vld [vmem:[#allocation4 + $0x4e0] sm:$0xff]  ;;  %v213_v16 = vld [vmem:[#allocation4 + $0x3d8] sm:$0xff]  ;;  %477 = vmatpush1.msra.mxu0 %v258_v12  ;;  %vm1005_vm6 = vcmask 1031168   ;;  %vm972_vm7 = vcmask 1039360   ;;  %vm1410_vm8 = vcmask 285696  }
  0x2a   :  { %556 = vmatpush1.msra.mxu1 %v248_v5  ;;  %v235_v17 = vld [vmem:[#allocation4 + $0x488] sm:$0xff]  ;;  %v212_v18 = vld [vmem:[#allocation4 + $0x3d0] sm:$0xff]  ;;  %478 = vmatprep.subr.mxu0 %v247_v13  ;;  %v234_v19 = vld [vmem:[#allocation4 + $0x480] sm:$0xff]  ;;  %vm1591_vm9 = vcmask 588800   ;;  %vm6351_vm10 = vmmov 0   ;;  %vm5528_vm11 = vcmask 7168  }
  0x2b   :  { %557 = vmatprep.subr.mxu1 %v237_v6  ;;  %v201_v20 = vld [vmem:[#allocation4 + $0x378] sm:$0xff]  ;;  %479 = vmatpush1.msra.mxu0 %v246_v15  ;;  %v223_v21 = vld [vmem:[#allocation4 + $0x428] sm:$0xff]  ;;  %v200_v22 = vld [vmem:[#allocation4 + $0x370] sm:$0xff]  ;;  %vm5542_vm12 = vcmask 15368   ;;  %vm5552_vm13 = vcmask 64512   ;;  %vm5638_vm14 = vcmask 1043456  }
  0x2c   :  { %558 = vmatpush1.msra.mxu1 %v236_v9  ;;  %480 = vmatprep.subr.mxu0 %v235_v17  ;;  %v222_v23 = vld [vmem:[#allocation4 + $0x420] sm:$0xff]  ;;  %v189_v24 = vld [vmem:[#allocation4 + $0x318] sm:$0xff]  ;;  %v211_v25 = vld [vmem:[#allocation4 + $0x3c8] sm:$0xff]  ;;  %vm5634_vm15 = vcmask 31744  }
  0x2d   :  { %559 = vmatprep.subr.mxu1 %v225_v11  ;;  %481 = vmatpush1.msra.mxu0 %v234_v19  ;;  %v188_v26 = vld [vmem:[#allocation4 + $0x310] sm:$0xff]  ;;  %v210_v27 = vld [vmem:[#allocation4 + $0x3c0] sm:$0xff]  ;;  %v177_v28 = vld [vmem:[#allocation4 + $0x2b8] sm:$0xff] }
  0x2e   :  { %560 = vmatpush1.msra.mxu1 %v224_v14  ;;  %482 = vmatprep.subr.mxu0 %v223_v21  ;;  %v199_v29 = vld [vmem:[#allocation4 + $0x368] sm:$0xff]  ;;  %v176_v30 = vld [vmem:[#allocation4 + $0x2b0] sm:$0xff]  ;;  %v198_v31 = vld [vmem:[#allocation4 + $0x360] sm:$0xff] }
  0x2f   :  { %561 = vmatprep.subr.mxu1 %v213_v16  ;;  %483 = vmatpush1.msra.mxu0 %v222_v23  ;;  %v165_v32 = vld [vmem:[#allocation4 + $0x258] sm:$0xff]  ;;  %v187_v33 = vld [vmem:[#allocation4 + $0x308] sm:$0xff]  ;;  %v164_v34 = vld [vmem:[#allocation4 + $0x250] sm:$0xff] }
  0x30   :  { %562 = vmatpush1.msra.mxu1 %v212_v18  ;;  %484 = vmatprep.subr.mxu0 %v211_v25  ;;  %v186_v35 = vld [vmem:[#allocation4 + $0x300] sm:$0xff]  ;;  %v153_v36 = vld [vmem:[#allocation4 + $0x1f8] sm:$0xff]  ;;  %v175_v37 = vld [vmem:[#allocation4 + $0x2a8] sm:$0xff] }
  0x31   :  { %563 = vmatprep.subr.mxu1 %v201_v20  ;;  %485 = vmatpush1.msra.mxu0 %v210_v27  ;;  %v152_v38 = vld [vmem:[#allocation4 + $0x1f0] sm:$0xff]  ;;  %v174_v39 = vld [vmem:[#allocation4 + $0x2a0] sm:$0xff]  ;;  %v141_v40 = vld [vmem:[#allocation4 + $0x198] sm:$0xff] }
  0x32   :  { %564 = vmatpush1.msra.mxu1 %v200_v22  ;;  %486 = vmatprep.subr.mxu0 %v199_v29  ;;  %v163_v41 = vld [vmem:[#allocation4 + $0x248] sm:$0xff]  ;;  %v140_v42 = vld [vmem:[#allocation4 + $0x190] sm:$0xff]  ;;  %v162_v43 = vld [vmem:[#allocation4 + $0x240] sm:$0xff] }
  0x33   :  { %565 = vmatprep.subr.mxu1 %v189_v24  ;;  %487 = vmatpush1.msra.mxu0 %v198_v31  ;;  %v129_v44 = vld [vmem:[#allocation4 + $0x138] sm:$0xff]  ;;  %v151_v45 = vld [vmem:[#allocation4 + $0x1e8] sm:$0xff]  ;;  %v128_v46 = vld [vmem:[#allocation4 + $0x130] sm:$0xff] }
  0x34   :  { %566 = vmatpush1.msra.mxu1 %v188_v26  ;;  %488 = vmatprep.subr.mxu0 %v187_v33  ;;  %v150_v47 = vld [vmem:[#allocation4 + $0x1e0] sm:$0xff]  ;;  %v117_v48 = vld [vmem:[#allocation4 + $0xd8] sm:$0xff]  ;;  %v139_v49 = vld [vmem:[#allocation4 + $0x188] sm:$0xff] }
  0x35   :  { %567 = vmatprep.subr.mxu1 %v177_v28  ;;  %489 = vmatpush1.msra.mxu0 %v186_v35  ;;  %v116_v50 = vld [vmem:[#allocation4 + $0xd0] sm:$0xff]  ;;  %v138_v51 = vld [vmem:[#allocation4 + $0x180] sm:$0xff]  ;;  %v105_v52 = vld [vmem:[#allocation4 + $0x78] sm:$0xff] }
  0x36   :  { %568 = vmatpush1.msra.mxu1 %v176_v30  ;;  %490 = vmatprep.subr.mxu0 %v175_v37  ;;  %v127_v53 = vld [vmem:[#allocation4 + $0x128] sm:$0xff]  ;;  %v104_v54 = vld [vmem:[#allocation4 + $0x70] sm:$0xff]  ;;  %v126_v55 = vld [vmem:[#allocation4 + $0x120] sm:$0xff] }
  0x37   :  { %569 = vmatprep.subr.mxu1 %v165_v32  ;;  %491 = vmatpush1.msra.mxu0 %v174_v39  ;;  %v93_v56 = vld [vmem:[#allocation4 + $0x18] sm:$0xff]  ;;  %v115_v57 = vld [vmem:[#allocation4 + $0xc8] sm:$0xff]  ;;  %v92_v58 = vld [vmem:[#allocation4 + $0x10] sm:$0xff] }
  0x38   :  { %570 = vmatpush1.msra.mxu1 %v164_v34  ;;  %492 = vmatprep.subr.mxu0 %v163_v41  ;;  %v114_v59 = vld [vmem:[#allocation4 + $0xc0] sm:$0xff]  ;;  %v465_v60 = vld [vmem:[#allocation4 + $0xbb8] sm:$0xff]  ;;  %v103_v61 = vld [vmem:[#allocation4 + $0x68] sm:$0xff] }
  0x39   :  { %571 = vmatprep.subr.mxu1 %v153_v36  ;;  %493 = vmatpush1.msra.mxu0 %v162_v43  ;;  %v464_v62 = vld [vmem:[#allocation4 + $0xbb0] sm:$0xff]  ;;  %v102_v63 = vld [vmem:[#allocation4 + $0x60] sm:$0xff]  ;;  %v453_v0 = vld [vmem:[#allocation4 + $0xb58] sm:$0xff] }
  0x3a   :  { %572 = vmatpush1.msra.mxu1 %v152_v38  ;;  %494 = vmatprep.subr.mxu0 %v151_v45  ;;  %v91_v1 = vld [vmem:[#allocation4 + $0x8] sm:$0xff]  ;;  %v452_v2 = vld [vmem:[#allocation4 + $0xb50] sm:$0xff]  ;;  %v90_v3 = vld [vmem:[#allocation4] sm:$0xff] }
  0x3b   :  { %573 = vmatprep.subr.mxu1 %v141_v40  ;;  %495 = vmatpush1.msra.mxu0 %v150_v47  ;;  %v441_v4 = vld [vmem:[#allocation4 + $0xaf8] sm:$0xff]  ;;  %v463_v5 = vld [vmem:[#allocation4 + $0xba8] sm:$0xff]  ;;  %v440_v6 = vld [vmem:[#allocation4 + $0xaf0] sm:$0xff] }
  0x3c   :  { %574 = vmatpush1.msra.mxu1 %v140_v42  ;;  %496 = vmatprep.subr.mxu0 %v139_v49  ;;  %v462_v7 = vld [vmem:[#allocation4 + $0xba0] sm:$0xff]  ;;  %v429_v8 = vld [vmem:[#allocation4 + $0xa98] sm:$0xff]  ;;  %v451_v9 = vld [vmem:[#allocation4 + $0xb48] sm:$0xff] }
  0x3d   :  { %575 = vmatprep.subr.mxu1 %v129_v44  ;;  %497 = vmatpush1.msra.mxu0 %v138_v51  ;;  %v428_v10 = vld [vmem:[#allocation4 + $0xa90] sm:$0xff]  ;;  %v450_v11 = vld [vmem:[#allocation4 + $0xb40] sm:$0xff]  ;;  %v417_v12 = vld [vmem:[#allocation4 + $0xa38] sm:$0xff] }
  0x3e   :  { %576 = vmatpush1.msra.mxu1 %v128_v46  ;;  %498 = vmatprep.subr.mxu0 %v127_v53  ;;  %v439_v13 = vld [vmem:[#allocation4 + $0xae8] sm:$0xff]  ;;  %v416_v14 = vld [vmem:[#allocation4 + $0xa30] sm:$0xff]  ;;  %v438_v15 = vld [vmem:[#allocation4 + $0xae0] sm:$0xff] }
  0x3f   :  { %577 = vmatprep.subr.mxu1 %v117_v48  ;;  %499 = vmatpush1.msra.mxu0 %v126_v55  ;;  %v405_v16 = vld [vmem:[#allocation4 + $0x9d8] sm:$0xff]  ;;  %v427_v17 = vld [vmem:[#allocation4 + $0xa88] sm:$0xff]  ;;  %v404_v18 = vld [vmem:[#allocation4 + $0x9d0] sm:$0xff] }
  0x40   :  { %578 = vmatpush1.msra.mxu1 %v116_v50  ;;  %500 = vmatprep.subr.mxu0 %v115_v57  ;;  %v426_v19 = vld [vmem:[#allocation4 + $0xa80] sm:$0xff]  ;;  %v393_v20 = vld [vmem:[#allocation4 + $0x978] sm:$0xff]  ;;  %v415_v21 = vld [vmem:[#allocation4 + $0xa28] sm:$0xff] }
  0x41   :  { %579 = vmatprep.subr.mxu1 %v105_v52  ;;  %501 = vmatpush1.msra.mxu0 %v114_v59  ;;  %v392_v22 = vld [vmem:[#allocation4 + $0x970] sm:$0xff]  ;;  %v414_v23 = vld [vmem:[#allocation4 + $0xa20] sm:$0xff]  ;;  %v381_v24 = vld [vmem:[#allocation4 + $0x918] sm:$0xff] }
  0x42   :  { %580 = vmatpush1.msra.mxu1 %v104_v54  ;;  %502 = vmatprep.subr.mxu0 %v103_v61  ;;  %v403_v25 = vld [vmem:[#allocation4 + $0x9c8] sm:$0xff]  ;;  %v380_v26 = vld [vmem:[#allocation4 + $0x910] sm:$0xff]  ;;  %v402_v27 = vld [vmem:[#allocation4 + $0x9c0] sm:$0xff] }
  0x43   :  { %581 = vmatprep.subr.mxu1 %v93_v56  ;;  %503 = vmatpush1.msra.mxu0 %v102_v63  ;;  %v369_v28 = vld [vmem:[#allocation4 + $0x8b8] sm:$0xff]  ;;  %v391_v29 = vld [vmem:[#allocation4 + $0x968] sm:$0xff]  ;;  %v368_v30 = vld [vmem:[#allocation4 + $0x8b0] sm:$0xff] }
  0x44   :  { %582 = vmatpush1.msra.mxu1 %v92_v58  ;;  %504 = vmatprep.subr.mxu0 %v91_v1  ;;  %v390_v31 = vld [vmem:[#allocation4 + $0x960] sm:$0xff]  ;;  %v357_v32 = vld [vmem:[#allocation4 + $0x858] sm:$0xff]  ;;  %v379_v33 = vld [vmem:[#allocation4 + $0x908] sm:$0xff] }
  0x45   :  { %583 = vmatprep.subr.mxu1 %v465_v60  ;;  %505 = vmatpush1.msra.mxu0 %v90_v3  ;;  %v356_v34 = vld [vmem:[#allocation4 + $0x850] sm:$0xff]  ;;  %v378_v35 = vld [vmem:[#allocation4 + $0x900] sm:$0xff]  ;;  %v345_v36 = vld [vmem:[#allocation4 + $0x7f8] sm:$0xff] }
  0x46   :  { %584 = vmatpush2.msra.mxu1 %v464_v62  ;;  %506 = vmatprep.subr.mxu0 %v463_v5  ;;  %v367_v37 = vld [vmem:[#allocation4 + $0x8a8] sm:$0xff]  ;;  %v344_v38 = vld [vmem:[#allocation4 + $0x7f0] sm:$0xff]  ;;  %v366_v39 = vld [vmem:[#allocation4 + $0x8a0] sm:$0xff] }
  0x47   :  { %585 = vmatprep.subr.mxu1 %v453_v0  ;;  %507 = vmatpush2.msra.mxu0 %v462_v7  ;;  %v333_v40 = vld [vmem:[#allocation4 + $0x798] sm:$0xff]  ;;  %v355_v41 = vld [vmem:[#allocation4 + $0x848] sm:$0xff]  ;;  %v332_v42 = vld [vmem:[#allocation4 + $0x790] sm:$0xff] }
  0x48   :  { %586 = vmatpush2.msra.mxu1 %v452_v2  ;;  %508 = vmatprep.subr.mxu0 %v451_v9  ;;  %v354_v43 = vld [vmem:[#allocation4 + $0x840] sm:$0xff]  ;;  %v321_v44 = vld [vmem:[#allocation4 + $0x738] sm:$0xff]  ;;  %v320_v46 = vld [vmem:[#allocation4 + $0x730] sm:$0xff] }
  0x49   :  { %587 = vmatprep.subr.mxu1 %v441_v4  ;;  %509 = vmatpush2.msra.mxu0 %v450_v11  ;;  %v6440_v45 = vld [vmem:[%s11084_s0 + $0x8] sm:$0xff]  ;;  %v343_v47 = vld [vmem:[#allocation4 + $0x7e8] sm:$0xff]  ;;  %v309_v48 = vld [vmem:[#allocation4 + $0x6d8] sm:$0xff] }
  0x4a   :  { %588 = vmatpush2.msra.mxu1 %v440_v6  ;;  %510 = vmatprep.subr.mxu0 %v439_v13  ;;  %v342_v49 = vld [vmem:[#allocation4 + $0x7e0] sm:$0xff]  ;;  %v308_v50 = vld [vmem:[#allocation4 + $0x6d0] sm:$0xff]  ;;  %v331_v51 = vld [vmem:[#allocation4 + $0x788] sm:$0xff] }
  0x4b   :  { %589 = vmatprep.subr.mxu1 %v429_v8  ;;  %511 = vmatpush2.msra.mxu0 %v438_v15  ;;  %v297_v52 = vld [vmem:[#allocation4 + $0x678] sm:$0xff]  ;;  %v330_v53 = vld [vmem:[#allocation4 + $0x780] sm:$0xff]  ;;  %v296_v54 = vld [vmem:[#allocation4 + $0x670] sm:$0xff] }
  0x4c   :  { %590 = vmatpush2.msra.mxu1 %v428_v10  ;;  %512 = vmatprep.subr.mxu0 %v427_v17  ;;  %v319_v55 = vld [vmem:[#allocation4 + $0x728] sm:$0xff]  ;;  %v285_v56 = vld [vmem:[#allocation4 + $0x618] sm:$0xff]  ;;  %v318_v57 = vld [vmem:[#allocation4 + $0x720] sm:$0xff] }
  0x4d   :  { %591 = vmatprep.subr.mxu1 %v417_v12  ;;  %513 = vmatpush2.msra.mxu0 %v426_v19  ;;  %v284_v58 = vld [vmem:[#allocation4 + $0x610] sm:$0xff]  ;;  %v307_v59 = vld [vmem:[#allocation4 + $0x6c8] sm:$0xff]  ;;  %v6446_v60 = vld [vmem:[%s11084_s0] sm:$0xff] }
  0x4e   :  { %592 = vmatpush2.msra.mxu1 %v416_v14  ;;  %514 = vmatprep.subr.mxu0 %v415_v21  ;;  %v306_v61 = vld [vmem:[#allocation4 + $0x6c0] sm:$0xff]  ;;  %v295_v62 = vld [vmem:[#allocation4 + $0x668] sm:$0xff]  ;;  %v6451_v0 = vld [vmem:[%s11084_s0 + $0x18] sm:$0xff] }
  0x4f   :  { %593 = vmatprep.subr.mxu1 %v405_v16  ;;  %515 = vmatpush2.msra.mxu0 %v414_v23  ;;  %v294_v63 = vld [vmem:[#allocation4 + $0x660] sm:$0xff]  ;;  %v283_v1 = vld [vmem:[#allocation4 + $0x608] sm:$0xff]  ;;  %v277_v2 = vld [vmem:[#allocation4 + $0x5d8] sm:$0xff] }
  0x50   :  { %594 = vmatpush2.msra.mxu1 %v404_v18  ;;  %516 = vmatprep.subr.mxu0 %v403_v25  ;;  %v282_v3 = vld [vmem:[#allocation4 + $0x600] sm:$0xff]  ;;  %v6458_v4 = vld [vmem:[%s11084_s0 + $0x10] sm:$0xff]  ;;  %v276_v7 = vld [vmem:[#allocation4 + $0x5d0] sm:$0xff] }
  0x51   :  { %595 = vmatprep.subr.mxu1 %v393_v20  ;;  %517 = vmatpush2.msra.mxu0 %v402_v27  ;;  %v275_v5 = vld [vmem:[#allocation4 + $0x5c8] sm:$0xff]  ;;  %v274_v6 = vld [vmem:[#allocation4 + $0x5c0] sm:$0xff]  ;;  %v265_v9 = vld [vmem:[#allocation4 + $0x578] sm:$0xff] }
  0x52   :  { %596 = vmatpush2.msra.mxu1 %v392_v22  ;;  %518 = vmatprep.subr.mxu0 %v391_v29  ;;  %v263_v8 = vld [vmem:[#allocation4 + $0x568] sm:$0xff]  ;;  %v262_v10 = vld [vmem:[#allocation4 + $0x560] sm:$0xff]  ;;  %v264_v11 = vld [vmem:[#allocation4 + $0x570] sm:$0xff] }
  0x53   :  { %597 = vmatprep.subr.mxu1 %v381_v24  ;;  %519 = vmatpush2.msra.mxu0 %v390_v31  ;;  %v251_v12 = vld [vmem:[#allocation4 + $0x508] sm:$0xff]  ;;  %v253_v13 = vld [vmem:[#allocation4 + $0x518] sm:$0xff]  ;;  %v250_v14 = vld [vmem:[#allocation4 + $0x500] sm:$0xff] }
  0x54   :  { %598 = vmatpush2.msra.mxu1 %v380_v26  ;;  %520 = vmatprep.subr.mxu0 %v379_v33  ;;  %v239_v15 = vld [vmem:[#allocation4 + $0x4a8] sm:$0xff]  ;;  %v252_v16 = vld [vmem:[#allocation4 + $0x510] sm:$0xff]  ;;  %v238_v17 = vld [vmem:[#allocation4 + $0x4a0] sm:$0xff] }
  0x55   :  { %599 = vmatprep.subr.mxu1 %v369_v28  ;;  %521 = vmatpush2.msra.mxu0 %v378_v35  ;;  %v241_v18 = vld [vmem:[#allocation4 + $0x4b8] sm:$0xff]  ;;  %v227_v19 = vld [vmem:[#allocation4 + $0x448] sm:$0xff]  ;;  %v226_v20 = vld [vmem:[#allocation4 + $0x440] sm:$0xff] }
  0x56   :  { %600 = vmatpush2.msra.mxu1 %v368_v30  ;;  %522 = vmatprep.subr.mxu0 %v367_v37  ;;  %v240_v21 = vld [vmem:[#allocation4 + $0x4b0] sm:$0xff]  ;;  %v215_v22 = vld [vmem:[#allocation4 + $0x3e8] sm:$0xff]  ;;  %v229_v23 = vld [vmem:[#allocation4 + $0x458] sm:$0xff] }
  0x57   :  { %601 = vmatprep.subr.mxu1 %v357_v32  ;;  %523 = vmatpush2.msra.mxu0 %v366_v39  ;;  %v214_v24 = vld [vmem:[#allocation4 + $0x3e0] sm:$0xff]  ;;  %v228_v25 = vld [vmem:[#allocation4 + $0x450] sm:$0xff]  ;;  %v203_v26 = vld [vmem:[#allocation4 + $0x388] sm:$0xff] }
  0x58   :  { %602 = vmatpush2.msra.mxu1 %v356_v34  ;;  %524 = vmatprep.subr.mxu0 %v355_v41  ;;  %v217_v27 = vld [vmem:[#allocation4 + $0x3f8] sm:$0xff]  ;;  %v202_v28 = vld [vmem:[#allocation4 + $0x380] sm:$0xff]  ;;  %v216_v29 = vld [vmem:[#allocation4 + $0x3f0] sm:$0xff] }
  0x59   :  { %603 = vmatprep.subr.mxu1 %v345_v36  ;;  %525 = vmatpush2.msra.mxu0 %v354_v43  ;;  %v191_v30 = vld [vmem:[#allocation4 + $0x328] sm:$0xff]  ;;  %v205_v31 = vld [vmem:[#allocation4 + $0x398] sm:$0xff]  ;;  %v190_v32 = vld [vmem:[#allocation4 + $0x320] sm:$0xff] }
  0x5a   :  { %604 = vmatpush2.msra.mxu1 %v344_v38  ;;  %615 = vmatprep.mubr.f32.mxu1 %v6440_v45  ;;  %v204_v33 = vld [vmem:[#allocation4 + $0x390] sm:$0xff]  ;;  %v179_v34 = vld [vmem:[#allocation4 + $0x2c8] sm:$0xff]  ;;  %v193_v35 = vld [vmem:[#allocation4 + $0x338] sm:$0xff] }
  0x5b   :  { %605 = vmatprep.subr.mxu1 %v333_v40  ;;  %526 = vmatprep.subr.mxu0 %v343_v47  ;;  %v178_v36 = vld [vmem:[#allocation4 + $0x2c0] sm:$0xff]  ;;  %v192_v37 = vld [vmem:[#allocation4 + $0x330] sm:$0xff]  ;;  %v167_v38 = vld [vmem:[#allocation4 + $0x268] sm:$0xff] }
  0x5c   :  { %606 = vmatpush2.msra.mxu1 %v332_v42  ;;  %527 = vmatpush2.msra.mxu0 %v342_v49  ;;  %v181_v39 = vld [vmem:[#allocation4 + $0x2d8] sm:$0xff]  ;;  %v166_v40 = vld [vmem:[#allocation4 + $0x260] sm:$0xff]  ;;  %v180_v41 = vld [vmem:[#allocation4 + $0x2d0] sm:$0xff] }
  0x5d   :  { %607 = vmatprep.subr.mxu1 %v321_v44  ;;  %528 = vmatprep.subr.mxu0 %v331_v51  ;;  %v155_v42 = vld [vmem:[#allocation4 + $0x208] sm:$0xff]  ;;  %v169_v43 = vld [vmem:[#allocation4 + $0x278] sm:$0xff]  ;;  %v154_v44 = vld [vmem:[#allocation4 + $0x200] sm:$0xff] }
  0x5e   :  { %608 = vmatpush2.msra.mxu1 %v320_v46  ;;  %529 = vmatpush2.msra.mxu0 %v330_v53  ;;  %v168_v46 = vld [vmem:[#allocation4 + $0x270] sm:$0xff]  ;;  %v143_v47 = vld [vmem:[#allocation4 + $0x1a8] sm:$0xff]  ;;  %v142_v49 = vld [vmem:[#allocation4 + $0x1a0] sm:$0xff] }
  0x5f   :  { %609 = vmatprep.subr.mxu1 %v309_v48  ;;  %530 = vmatprep.subr.mxu0 %v319_v55  ;;  %v157_v48 = vld [vmem:[#allocation4 + $0x218] sm:$0xff]  ;;  %v131_v51 = vld [vmem:[#allocation4 + $0x148] sm:$0xff]  ;;  %v130_v53 = vld [vmem:[#allocation4 + $0x140] sm:$0xff] }
  0x60   :  { %610 = vmatpush2.msra.mxu1 %v308_v50  ;;  %531 = vmatpush2.msra.mxu0 %v318_v57  ;;  %v156_v50 = vld [vmem:[#allocation4 + $0x210] sm:$0xff]  ;;  %v119_v55 = vld [vmem:[#allocation4 + $0xe8] sm:$0xff]  ;;  %v118_v57 = vld [vmem:[#allocation4 + $0xe0] sm:$0xff] }
  0x61   :  { %611 = vmatprep.subr.mxu1 %v297_v52  ;;  %532 = vmatprep.subr.mxu0 %v307_v59  ;;  %v145_v52 = vld [vmem:[#allocation4 + $0x1b8] sm:$0xff]  ;;  %v107_v59 = vld [vmem:[#allocation4 + $0x88] sm:$0xff] }
  0x62   :  { %612 = vmatpush2.msra.mxu1 %v296_v54  ;;  %533 = vmatpush2.msra.mxu0 %v306_v61  ;;  %v144_v54 = vld [vmem:[#allocation4 + $0x1b0] sm:$0xff]  ;;  %v121_v61 = vld [vmem:[#allocation4 + $0xf8] sm:$0xff] }
  0x63   :  { %613 = vmatprep.subr.mxu1 %v285_v56  ;;  %534 = vmatprep.subr.mxu0 %v295_v62  ;;  %v133_v56 = vld [vmem:[#allocation4 + $0x158] sm:$0xff]  ;;  %v106_v62 = vld [vmem:[#allocation4 + $0x80] sm:$0xff] }
  0x64   :  { %614 = vmatpush2.msra.mxu1 %v284_v58  ;;  %538 = vmatprep.mubr.f32.mxu0 %v6440_v45  ;;  %v132_v58 = vld [vmem:[#allocation4 + $0x150] sm:$0xff] }
  0x65   :  { %616 = vmatmul.mubr.f32.vlgmr.msra.gmra.mxu1 %v6446_v60  ;;  %535 = vmatpush2.msra.mxu0 %v294_v63  ;;  %v120_v63 = vld [vmem:[#allocation4 + $0xf0] sm:$0xff] }
  0x66   :  { %621 = vmatprep.mubr.f32.mxu1 %v6451_v0  ;;  %536 = vmatprep.subr.mxu0 %v283_v1  ;;  %v95_v1 = vld [vmem:[#allocation4 + $0x28] sm:$0xff] }
  0x67   :  { %705 = vmatprep.subr.mxu1 %v277_v2  ;;  %537 = vmatpush2.msra.mxu0 %v282_v3  ;;  %v109_v2 = vld [vmem:[#allocation4 + $0x98] sm:$0xff]  ;;  %v94_v3 = vld [vmem:[#allocation4 + $0x20] sm:$0xff] }
  0x68   :  { %539 = vmatmul.mubr.f32.vlgmr.msra.gmra.mxu0 %v6446_v60  ;;  %628 = vmatprep.subr.mxu0 %v275_v5  ;;  %v108_v5 = vld [vmem:[#allocation4 + $0x90] sm:$0xff] }
  0x69   :  { %622 = vmatmul.mubr.f32.gmra.mxu1 %v6458_v4  ;;  %629 = vmatpush1.msra.mxu0 %v274_v6  ;;  %v467_v6 = vld [vmem:[#allocation4 + $0xbc8] sm:$0xff] }
  0x6a   :  { %706 = vmatpush1.msra.mxu1 %v276_v7  ;;  %630 = vmatprep.subr.mxu0 %v263_v8  ;;  %v97_v7 = vld [vmem:[#allocation4 + $0x38] sm:$0xff]  ;;  %v466_v8 = vld [vmem:[#allocation4 + $0xbc0] sm:$0xff] }
  0x6b   :  { %707 = vmatprep.subr.mxu1 %v265_v9  ;;  %631 = vmatpush1.msra.mxu0 %v262_v10  ;;  %v96_v9 = vld [vmem:[#allocation4 + $0x30] sm:$0xff]  ;;  %v455_v10 = vld [vmem:[#allocation4 + $0xb68] sm:$0xff] }
  0x6c   :  { %708 = vmatpush1.msra.mxu1 %v264_v11  ;;  %632 = vmatprep.subr.mxu0 %v251_v12  ;;  %v469_v11 = vld [vmem:[#allocation4 + $0xbd8] sm:$0xff]  ;;  %v454_v12 = vld [vmem:[#allocation4 + $0xb60] sm:$0xff] }
  0x6d   :  { %709 = vmatprep.subr.mxu1 %v253_v13  ;;  %633 = vmatpush1.msra.mxu0 %v250_v14  ;;  %v468_v13 = vld [vmem:[#allocation4 + $0xbd0] sm:$0xff]  ;;  %v443_v14 = vld [vmem:[#allocation4 + $0xb08] sm:$0xff] }
  0x6e   :  { %544 = vmatprep.mubr.f32.mxu0 %v6451_v0  ;;  %634 = vmatprep.subr.mxu0 %v239_v15  ;;  %v457_v15 = vld [vmem:[#allocation4 + $0xb78] sm:$0xff] }
  0x6f   :  { %710 = vmatpush1.msra.mxu1 %v252_v16  ;;  %635 = vmatpush1.msra.mxu0 %v238_v17  ;;  %v442_v16 = vld [vmem:[#allocation4 + $0xb00] sm:$0xff]  ;;  %v456_v17 = vld [vmem:[#allocation4 + $0xb70] sm:$0xff] }
  0x70   :  { %711 = vmatprep.subr.mxu1 %v241_v18  ;;  %636 = vmatprep.subr.mxu0 %v227_v19  ;;  %v431_v18 = vld [vmem:[#allocation4 + $0xaa8] sm:$0xff]  ;;  %v445_v19 = vld [vmem:[#allocation4 + $0xb18] sm:$0xff] }
  0x71   :  { %545 = vmatmul.mubr.f32.gmra.mxu0 %v6458_v4  ;;  %712 = vmatpush1.msra.mxu1 %v240_v21  ;;  %v444_v21 = vld [vmem:[#allocation4 + $0xb10] sm:$0xff] }
  0x72   :  { %637 = vmatpush1.msra.mxu0 %v226_v20  ;;  %713 = vmatprep.subr.mxu1 %v229_v23  ;;  %v430_v20 = vld [vmem:[#allocation4 + $0xaa0] sm:$0xff]  ;;  %v433_v23 = vld [vmem:[#allocation4 + $0xab8] sm:$0xff] }
  0x73   :  { %638 = vmatprep.subr.mxu0 %v215_v22  ;;  %714 = vmatpush1.msra.mxu1 %v228_v25  ;;  %v419_v22 = vld [vmem:[#allocation4 + $0xa48] sm:$0xff]  ;;  %v432_v25 = vld [vmem:[#allocation4 + $0xab0] sm:$0xff] }
  0x74   :  { %639 = vmatpush1.msra.mxu0 %v214_v24  ;;  %715 = vmatprep.subr.mxu1 %v217_v27  ;;  %v418_v24 = vld [vmem:[#allocation4 + $0xa40] sm:$0xff]  ;;  %v421_v27 = vld [vmem:[#allocation4 + $0xa58] sm:$0xff] }
  0x75   :  { %640 = vmatprep.subr.mxu0 %v203_v26  ;;  %716 = vmatpush1.msra.mxu1 %v216_v29  ;;  %v407_v26 = vld [vmem:[#allocation4 + $0x9e8] sm:$0xff]  ;;  %v420_v29 = vld [vmem:[#allocation4 + $0xa50] sm:$0xff] }
  0x76   :  { %641 = vmatpush1.msra.mxu0 %v202_v28  ;;  %717 = vmatprep.subr.mxu1 %v205_v31  ;;  %v406_v28 = vld [vmem:[#allocation4 + $0x9e0] sm:$0xff]  ;;  %v409_v31 = vld [vmem:[#allocation4 + $0x9f8] sm:$0xff] }
  0x77   :  { %642 = vmatprep.subr.mxu0 %v191_v30  ;;  %718 = vmatpush1.msra.mxu1 %v204_v33  ;;  %v395_v30 = vld [vmem:[#allocation4 + $0x988] sm:$0xff]  ;;  %v408_v33 = vld [vmem:[#allocation4 + $0x9f0] sm:$0xff] }
  0x78   :  { %643 = vmatpush1.msra.mxu0 %v190_v32  ;;  %719 = vmatprep.subr.mxu1 %v193_v35  ;;  %v394_v32 = vld [vmem:[#allocation4 + $0x980] sm:$0xff]  ;;  %v397_v35 = vld [vmem:[#allocation4 + $0x998] sm:$0xff] }
  0x79   :  { %644 = vmatprep.subr.mxu0 %v179_v34  ;;  %720 = vmatpush1.msra.mxu1 %v192_v37  ;;  %v383_v34 = vld [vmem:[#allocation4 + $0x928] sm:$0xff]  ;;  %v396_v37 = vld [vmem:[#allocation4 + $0x990] sm:$0xff] }
  0x7a   :  { %645 = vmatpush1.msra.mxu0 %v178_v36  ;;  %721 = vmatprep.subr.mxu1 %v181_v39  ;;  %v382_v36 = vld [vmem:[#allocation4 + $0x920] sm:$0xff]  ;;  %v385_v39 = vld [vmem:[#allocation4 + $0x938] sm:$0xff] }
  0x7b   :  { %646 = vmatprep.subr.mxu0 %v167_v38  ;;  %722 = vmatpush1.msra.mxu1 %v180_v41  ;;  %v371_v38 = vld [vmem:[#allocation4 + $0x8c8] sm:$0xff] }
  0x7c   :  { %647 = vmatpush1.msra.mxu0 %v166_v40  ;;  %723 = vmatprep.subr.mxu1 %v169_v43  ;;  %v370_v40 = vld [vmem:[#allocation4 + $0x8c0] sm:$0xff]  ;;  %v359_v41 = vld [vmem:[#allocation4 + $0x868] sm:$0xff] }
  0x7d   :  { %648 = vmatprep.subr.mxu0 %v155_v42  ;;  %724 = vmatpush1.msra.mxu1 %v168_v46  ;;  %v384_v42 = vld [vmem:[#allocation4 + $0x930] sm:$0xff]  ;;  %v358_v43 = vld [vmem:[#allocation4 + $0x860] sm:$0xff]  ;;  %v347_v46 = vld [vmem:[#allocation4 + $0x808] sm:$0xff] }
  0x7e   :  { %649 = vmatpush1.msra.mxu0 %v154_v44  ;;  %725 = vmatprep.subr.mxu1 %v157_v48  ;;  %v373_v44 = vld [vmem:[#allocation4 + $0x8d8] sm:$0xff]  ;;  %v346_v48 = vld [vmem:[#allocation4 + $0x800] sm:$0xff] }
  0x7f   :  { %650 = vmatprep.subr.mxu0 %v143_v47  ;;  %726 = vmatpush1.msra.mxu1 %v156_v50  ;;  %v372_v47 = vld [vmem:[#allocation4 + $0x8d0] sm:$0xff]  ;;  %v335_v50 = vld [vmem:[#allocation4 + $0x7a8] sm:$0xff] }
  0x80   :  { %651 = vmatpush1.msra.mxu0 %v142_v49  ;;  %727 = vmatprep.subr.mxu1 %v145_v52  ;;  %v361_v49 = vld [vmem:[#allocation4 + $0x878] sm:$0xff]  ;;  %v334_v52 = vld [vmem:[#allocation4 + $0x7a0] sm:$0xff] }
  0x81   :  { %652 = vmatprep.subr.mxu0 %v131_v51  ;;  %728 = vmatpush1.msra.mxu1 %v144_v54  ;;  %v360_v51 = vld [vmem:[#allocation4 + $0x870] sm:$0xff]  ;;  %v323_v54 = vld [vmem:[#allocation4 + $0x748] sm:$0xff] }
  0x82   :  { %653 = vmatpush1.msra.mxu0 %v130_v53  ;;  %729 = vmatprep.subr.mxu1 %v133_v56  ;;  %v349_v53 = vld [vmem:[#allocation4 + $0x818] sm:$0xff]  ;;  %v322_v56 = vld [vmem:[#allocation4 + $0x740] sm:$0xff] }
  0x83   :  { %654 = vmatprep.subr.mxu0 %v119_v55  ;;  %730 = vmatpush1.msra.mxu1 %v132_v58  ;;  %v348_v55 = vld [vmem:[#allocation4 + $0x810] sm:$0xff]  ;;  %v311_v58 = vld [vmem:[#allocation4 + $0x6e8] sm:$0xff] }
  0x84   :  { %655 = vmatpush1.msra.mxu0 %v118_v57  ;;  %731 = vmatprep.subr.mxu1 %v121_v61  ;;  %v337_v57 = vld [vmem:[#allocation4 + $0x7b8] sm:$0xff]  ;;  %v310_v61 = vld [vmem:[#allocation4 + $0x6e0] sm:$0xff] }
  0x85   :  { %656 = vmatprep.subr.mxu0 %v107_v59  ;;  %732 = vmatpush1.msra.mxu1 %v120_v63  ;;  %v336_v59 = vld [vmem:[#allocation4 + $0x7b0] sm:$0xff]  ;;  %v299_v63 = vld [vmem:[#allocation4 + $0x688] sm:$0xff] }
  0x86   :  { %657 = vmatpush1.msra.mxu0 %v106_v62  ;;  %733 = vmatprep.subr.mxu1 %v109_v2  ;;  %v325_v62 = vld [vmem:[#allocation4 + $0x758] sm:$0xff]  ;;  %v298_v2 = vld [vmem:[#allocation4 + $0x680] sm:$0xff] }
  0x87   :  { %658 = vmatprep.subr.mxu0 %v95_v1  ;;  %734 = vmatpush1.msra.mxu1 %v108_v5  ;;  %v324_v1 = vld [vmem:[#allocation4 + $0x750] sm:$0xff]  ;;  %v287_v5 = vld [vmem:[#allocation4 + $0x628] sm:$0xff] }
  0x88   :  { %659 = vmatpush1.msra.mxu0 %v94_v3  ;;  %735 = vmatprep.subr.mxu1 %v97_v7  ;;  %v313_v3 = vld [vmem:[#allocation4 + $0x6f8] sm:$0xff]  ;;  %v286_v7 = vld [vmem:[#allocation4 + $0x620] sm:$0xff] }
  0x89   :  { %660 = vmatprep.subr.mxu0 %v467_v6  ;;  %736 = vmatpush1.msra.mxu1 %v96_v9  ;;  %v312_v6 = vld [vmem:[#allocation4 + $0x6f0] sm:$0xff] }
  0x8a   :  { %661 = vmatpush2.msra.mxu0 %v466_v8  ;;  %737 = vmatprep.subr.mxu1 %v469_v11  ;;  %v301_v8 = vld [vmem:[#allocation4 + $0x698] sm:$0xff]  ;;  %v300_v9 = vld [vmem:[#allocation4 + $0x690] sm:$0xff] }
  0x8b   :  { %662 = vmatprep.subr.mxu0 %v455_v10  ;;  %738 = vmatpush2.msra.mxu1 %v468_v13  ;;  %v289_v10 = vld [vmem:[#allocation4 + $0x638] sm:$0xff]  ;;  %v288_v11 = vld [vmem:[#allocation4 + $0x630] sm:$0xff]  ;;  %v278_v13 = vld [vmem:[#allocation4 + $0x5e0] sm:$0xff] }
  0x8c   :  { %663 = vmatpush2.msra.mxu0 %v454_v12  ;;  %739 = vmatprep.subr.mxu1 %v457_v15  ;;  %v279_v12 = vld [vmem:[#allocation4 + $0x5e8] sm:$0xff]  ;;  %v266_v15 = vld [vmem:[#allocation4 + $0x580] sm:$0xff] }
  0x8d   :  { %664 = vmatprep.subr.mxu0 %v443_v14  ;;  %740 = vmatpush2.msra.mxu1 %v456_v17  ;;  %v267_v14 = vld [vmem:[#allocation4 + $0x588] sm:$0xff]  ;;  %v254_v17 = vld [vmem:[#allocation4 + $0x520] sm:$0xff] }
  0x8e   :  { %665 = vmatpush2.msra.mxu0 %v442_v16  ;;  %741 = vmatprep.subr.mxu1 %v445_v19  ;;  %v255_v16 = vld [vmem:[#allocation4 + $0x528] sm:$0xff]  ;;  %v242_v19 = vld [vmem:[#allocation4 + $0x4c0] sm:$0xff] }
  0x8f   :  { %666 = vmatprep.subr.mxu0 %v431_v18  ;;  %742 = vmatpush2.msra.mxu1 %v444_v21  ;;  %v243_v18 = vld [vmem:[#allocation4 + $0x4c8] sm:$0xff]  ;;  %v230_v21 = vld [vmem:[#allocation4 + $0x460] sm:$0xff] }
  0x90   :  { %667 = vmatpush2.msra.mxu0 %v430_v20  ;;  %743 = vmatprep.subr.mxu1 %v433_v23  ;;  %v231_v20 = vld [vmem:[#allocation4 + $0x468] sm:$0xff] }
  0x91   :  { %668 = vmatprep.subr.mxu0 %v419_v22  ;;  %744 = vmatpush2.msra.mxu1 %v432_v25  ;;  %v219_v22 = vld [vmem:[#allocation4 + $0x408] sm:$0xff] }
  0x92   :  { %669 = vmatpush2.msra.mxu0 %v418_v24  ;;  %745 = vmatprep.subr.mxu1 %v421_v27  ;;  %v207_v23 = vld [vmem:[#allocation4 + $0x3a8] sm:$0xff]  ;;  %v206_v24 = vld [vmem:[#allocation4 + $0x3a0] sm:$0xff] }
  0x93   :  { %670 = vmatprep.subr.mxu0 %v407_v26  ;;  %746 = vmatpush2.msra.mxu1 %v420_v29  ;;  %v195_v25 = vld [vmem:[#allocation4 + $0x348] sm:$0xff]  ;;  %v194_v26 = vld [vmem:[#allocation4 + $0x340] sm:$0xff] }
  0x94   :  { %671 = vmatpush2.msra.mxu0 %v406_v28  ;;  %747 = vmatprep.subr.mxu1 %v409_v31  ;;  %v183_v27 = vld [vmem:[#allocation4 + $0x2e8] sm:$0xff]  ;;  %v182_v28 = vld [vmem:[#allocation4 + $0x2e0] sm:$0xff] }
  0x95   :  { %672 = vmatprep.subr.mxu0 %v395_v30  ;;  %748 = vmatpush2.msra.mxu1 %v408_v33  ;;  %v171_v29 = vld [vmem:[#allocation4 + $0x288] sm:$0xff]  ;;  %v170_v30 = vld [vmem:[#allocation4 + $0x280] sm:$0xff] }
  0x96   :  { %673 = vmatpush2.msra.mxu0 %v394_v32  ;;  %749 = vmatprep.subr.mxu1 %v397_v35  ;;  %v159_v31 = vld [vmem:[#allocation4 + $0x228] sm:$0xff]  ;;  %v281_v32 = vld [vmem:[#allocation4 + $0x5f8] sm:$0xff]  ;;  %v158_v33 = vld [vmem:[#allocation4 + $0x220] sm:$0xff] }
  0x97   :  { %674 = vmatprep.subr.mxu0 %v383_v34  ;;  %750 = vmatpush2.msra.mxu1 %v396_v37  ;;  %v280_v34 = vld [vmem:[#allocation4 + $0x5f0] sm:$0xff]  ;;  %v147_v35 = vld [vmem:[#allocation4 + $0x1c8] sm:$0xff]  ;;  %v146_v37 = vld [vmem:[#allocation4 + $0x1c0] sm:$0xff] }
  0x98   :  { %675 = vmatpush2.msra.mxu0 %v382_v36  ;;  %751 = vmatprep.subr.mxu1 %v385_v39  ;;  %v269_v36 = vld [vmem:[#allocation4 + $0x598] sm:$0xff]  ;;  %v135_v39 = vld [vmem:[#allocation4 + $0x168] sm:$0xff] }
  0x99   :  { %676 = vmatprep.subr.mxu0 %v371_v38  ;;  %692 = vmatprep.mubr.f32.mxu0 %v6440_v45  ;;  %v268_v38 = vld [vmem:[#allocation4 + $0x590] sm:$0xff] }
  0x9a   :  { %677 = vmatpush2.msra.mxu0 %v370_v40  ;;  %752 = vmatpush2.msra.mxu1 %v384_v42  ;;  %v257_v40 = vld [vmem:[#allocation4 + $0x538] sm:$0xff]  ;;  %v256_v42 = vld [vmem:[#allocation4 + $0x530] sm:$0xff] }
  0x9b   :  { %678 = vmatprep.subr.mxu0 %v359_v41  ;;  %753 = vmatprep.subr.mxu1 %v373_v44  ;;  %v134_v41 = vld [vmem:[#allocation4 + $0x160] sm:$0xff]  ;;  %v245_v44 = vld [vmem:[#allocation4 + $0x4d8] sm:$0xff] }
  0x9c   :  { %679 = vmatpush2.msra.mxu0 %v358_v43  ;;  %754 = vmatpush2.msra.mxu1 %v372_v47  ;;  %v123_v43 = vld [vmem:[#allocation4 + $0x108] sm:$0xff]  ;;  %v244_v47 = vld [vmem:[#allocation4 + $0x4d0] sm:$0xff] }
  0x9d   :  { %680 = vmatprep.subr.mxu0 %v347_v46  ;;  %755 = vmatprep.subr.mxu1 %v361_v49  ;;  %v122_v46 = vld [vmem:[#allocation4 + $0x100] sm:$0xff]  ;;  %v233_v49 = vld [vmem:[#allocation4 + $0x478] sm:$0xff] }
  0x9e   :  { %681 = vmatpush2.msra.mxu0 %v346_v48  ;;  %756 = vmatpush2.msra.mxu1 %v360_v51  ;;  %v111_v48 = vld [vmem:[#allocation4 + $0xa8] sm:$0xff]  ;;  %v232_v51 = vld [vmem:[#allocation4 + $0x470] sm:$0xff] }
  0x9f   :  { %682 = vmatprep.subr.mxu0 %v335_v50  ;;  %757 = vmatprep.subr.mxu1 %v349_v53  ;;  %v110_v50 = vld [vmem:[#allocation4 + $0xa0] sm:$0xff]  ;;  %v221_v53 = vld [vmem:[#allocation4 + $0x418] sm:$0xff] }
  0xa0   :  { %683 = vmatpush2.msra.mxu0 %v334_v52  ;;  %758 = vmatpush2.msra.mxu1 %v348_v55  ;;  %v99_v52 = vld [vmem:[#allocation4 + $0x48] sm:$0xff]  ;;  %v220_v55 = vld [vmem:[#allocation4 + $0x410] sm:$0xff] }
  0xa1   :  { %684 = vmatprep.subr.mxu0 %v323_v54  ;;  %759 = vmatprep.subr.mxu1 %v337_v57  ;;  %v98_v54 = vld [vmem:[#allocation4 + $0x40] sm:$0xff]  ;;  %v209_v57 = vld [vmem:[#allocation4 + $0x3b8] sm:$0xff] }
  0xa2   :  { %685 = vmatpush2.msra.mxu0 %v322_v56  ;;  %760 = vmatpush2.msra.mxu1 %v336_v59  ;;  %v471_v56 = vld [vmem:[#allocation4 + $0xbe8] sm:$0xff]  ;;  %v208_v59 = vld [vmem:[#allocation4 + $0x3b0] sm:$0xff] }
  0xa3   :  { %686 = vmatprep.subr.mxu0 %v311_v58  ;;  %761 = vmatprep.subr.mxu1 %v325_v62  ;;  %v470_v58 = vld [vmem:[#allocation4 + $0xbe0] sm:$0xff]  ;;  %v197_v62 = vld [vmem:[#allocation4 + $0x358] sm:$0xff] }
  0xa4   :  { %687 = vmatpush2.msra.mxu0 %v310_v61  ;;  %762 = vmatpush2.msra.mxu1 %v324_v1  ;;  %v459_v61 = vld [vmem:[#allocation4 + $0xb88] sm:$0xff]  ;;  %v196_v1 = vld [vmem:[#allocation4 + $0x350] sm:$0xff] }
  0xa5   :  { %688 = vmatprep.subr.mxu0 %v299_v63  ;;  %763 = vmatprep.subr.mxu1 %v313_v3  ;;  %v458_v63 = vld [vmem:[#allocation4 + $0xb80] sm:$0xff]  ;;  %v185_v3 = vld [vmem:[#allocation4 + $0x2f8] sm:$0xff] }
  0xa6   :  { %689 = vmatpush2.msra.mxu0 %v298_v2  ;;  %764 = vmatpush2.msra.mxu1 %v312_v6  ;;  %v447_v2 = vld [vmem:[#allocation4 + $0xb28] sm:$0xff]  ;;  %v184_v6 = vld [vmem:[#allocation4 + $0x2f0] sm:$0xff] }
  0xa7   :  { %690 = vmatprep.subr.mxu0 %v287_v5  ;;  %765 = vmatprep.subr.mxu1 %v301_v8  ;;  %v446_v5 = vld [vmem:[#allocation4 + $0xb20] sm:$0xff]  ;;  %v173_v8 = vld [vmem:[#allocation4 + $0x298] sm:$0xff] }
  0xa8   :  { %691 = vmatpush2.msra.mxu0 %v286_v7  ;;  %766 = vmatpush2.msra.mxu1 %v300_v9  ;;  %v435_v7 = vld [vmem:[#allocation4 + $0xac8] sm:$0xff]  ;;  %v434_v9 = vld [vmem:[#allocation4 + $0xac0] sm:$0xff] }
  0xa9   :  { %693 = vmatmul.mubr.f32.vlgmr.msra.gmra.mxu0 %v6446_v60  ;;  %767 = vmatprep.subr.mxu1 %v289_v10  ;;  %v172_v10 = vld [vmem:[#allocation4 + $0x290] sm:$0xff] }
  0xaa   :  { %769 = vmatprep.mubr.f32.mxu1 %v6440_v45  ;;  %768 = vmatpush2.msra.mxu1 %v288_v11  ;;  %v423_v11 = vld [vmem:[#allocation4 + $0xa68] sm:$0xff] }
  0xab   :  { %698 = vmatprep.mubr.f32.mxu0 %v6451_v0  ;;  %770 = vmatmul.mubr.f32.vlgmr.msra.gmra.mxu1 %v6446_v60 }
  0xac   :  { %775 = vmatprep.mubr.f32.mxu1 %v6451_v0  ;;  %782 = vmatprep.subr.mxu0 %v279_v12  ;;  %v161_v12 = vld [vmem:[#allocation4 + $0x238] sm:$0xff] }
  0xad   :  { %699 = vmatmul.mubr.f32.gmra.mxu0 %v6458_v4  ;;  %859 = vmatprep.subr.mxu1 %v281_v32  ;;  %v362_v32 = vld [vmem:[#allocation4 + $0x880] sm:$0xff] }
  0xae   :  { %846 = vmatprep.mubr.f32.mxu0 %v6440_v45  ;;  %783 = vmatpush1.msra.mxu0 %v278_v13  ;;  %v422_v13 = vld [vmem:[#allocation4 + $0xa60] sm:$0xff] }
  0xaf   :  { %776 = vmatmul.mubr.f32.gmra.mxu1 %v6458_v4  ;;  %784 = vmatprep.subr.mxu0 %v267_v14  ;;  %v160_v14 = vld [vmem:[#allocation4 + $0x230] sm:$0xff] }
  0xb0   :  { %923 = vmatprep.mubr.f32.mxu1 %v6440_v45  ;;  %785 = vmatpush1.msra.mxu0 %v266_v15  ;;  %v218_v45 = vld [vmem:[#allocation4 + $0x400] sm:$0xff]  ;;  %v411_v15 = vld [vmem:[#allocation4 + $0xa08] sm:$0xff] }
  0xb1   :  { %786 = vmatprep.subr.mxu0 %v255_v16  ;;  %860 = vmatpush1.msra.mxu1 %v280_v34  ;;  %v149_v16 = vld [vmem:[#allocation4 + $0x1d8] sm:$0xff]  ;;  %v351_v34 = vld [vmem:[#allocation4 + $0x828] sm:$0xff] }
  0xb2   :  { %787 = vmatpush1.msra.mxu0 %v254_v17  ;;  %861 = vmatprep.subr.mxu1 %v269_v36  ;;  %v410_v17 = vld [vmem:[#allocation4 + $0xa00] sm:$0xff] }
  0xb3   :  { %788 = vmatprep.subr.mxu0 %v243_v18  ;;  %862 = vmatpush1.msra.mxu1 %v268_v38  ;;  %v148_v18 = vld [vmem:[#allocation4 + $0x1d0] sm:$0xff]  ;;  %v350_v36 = vld [vmem:[#allocation4 + $0x820] sm:$0xff]  ;;  %v339_v38 = vld [vmem:[#allocation4 + $0x7c8] sm:$0xff] }
  0xb4   :  { %789 = vmatpush1.msra.mxu0 %v242_v19  ;;  %863 = vmatprep.subr.mxu1 %v257_v40  ;;  %v399_v19 = vld [vmem:[#allocation4 + $0x9a8] sm:$0xff]  ;;  %v338_v40 = vld [vmem:[#allocation4 + $0x7c0] sm:$0xff] }
  0xb5   :  { %790 = vmatprep.subr.mxu0 %v231_v20  ;;  %864 = vmatpush1.msra.mxu1 %v256_v42  ;;  %v137_v20 = vld [vmem:[#allocation4 + $0x178] sm:$0xff]  ;;  %v327_v42 = vld [vmem:[#allocation4 + $0x768] sm:$0xff] }
  0xb6   :  { %791 = vmatpush1.msra.mxu0 %v230_v21  ;;  %865 = vmatprep.subr.mxu1 %v245_v44  ;;  %v398_v21 = vld [vmem:[#allocation4 + $0x9a0] sm:$0xff] }
  0xb7   :  { %792 = vmatprep.subr.mxu0 %v219_v22  ;;  %866 = vmatpush1.msra.mxu1 %v244_v47  ;;  %v136_v22 = vld [vmem:[#allocation4 + $0x170] sm:$0xff]  ;;  %v326_v44 = vld [vmem:[#allocation4 + $0x760] sm:$0xff]  ;;  %v315_v47 = vld [vmem:[#allocation4 + $0x708] sm:$0xff] }
  0xb8   :  { %793 = vmatpush1.msra.mxu0 %v218_v45  ;;  %867 = vmatprep.subr.mxu1 %v233_v49  ;;  %v387_v45 = vld [vmem:[#allocation4 + $0x948] sm:$0xff]  ;;  %v314_v49 = vld [vmem:[#allocation4 + $0x700] sm:$0xff] }
  0xb9   :  { %794 = vmatprep.subr.mxu0 %v207_v23  ;;  %868 = vmatpush1.msra.mxu1 %v232_v51  ;;  %v125_v23 = vld [vmem:[#allocation4 + $0x118] sm:$0xff]  ;;  %v303_v51 = vld [vmem:[#allocation4 + $0x6a8] sm:$0xff] }
  0xba   :  { %795 = vmatpush1.msra.mxu0 %v206_v24  ;;  %869 = vmatprep.subr.mxu1 %v221_v53  ;;  %v386_v24 = vld [vmem:[#allocation4 + $0x940] sm:$0xff] }
  0xbb   :  { %796 = vmatprep.subr.mxu0 %v195_v25  ;;  %870 = vmatpush1.msra.mxu1 %v220_v55  ;;  %v124_v25 = vld [vmem:[#allocation4 + $0x110] sm:$0xff]  ;;  %v302_v53 = vld [vmem:[#allocation4 + $0x6a0] sm:$0xff]  ;;  %v291_v55 = vld [vmem:[#allocation4 + $0x648] sm:$0xff] }
  0xbc   :  { %797 = vmatpush1.msra.mxu0 %v194_v26  ;;  %871 = vmatprep.subr.mxu1 %v209_v57  ;;  %v375_v26 = vld [vmem:[#allocation4 + $0x8e8] sm:$0xff]  ;;  %v290_v57 = vld [vmem:[#allocation4 + $0x640] sm:$0xff] }
  0xbd   :  { %798 = vmatprep.subr.mxu0 %v183_v27  ;;  %872 = vmatpush1.msra.mxu1 %v208_v59  ;;  %v113_v27 = vld [vmem:[#allocation4 + $0xb8] sm:$0xff] }
  0xbe   :  { %799 = vmatpush1.msra.mxu0 %v182_v28  ;;  %873 = vmatprep.subr.mxu1 %v197_v62  ;;  %v374_v28 = vld [vmem:[#allocation4 + $0x8e0] sm:$0xff]  ;;  %v401_v59 = vld [vmem:[#allocation4 + $0x9b8] sm:$0xff] }
  0xbf   :  { %800 = vmatprep.subr.mxu0 %v171_v29  ;;  %874 = vmatpush1.msra.mxu1 %v196_v1  ;;  %v112_v29 = vld [vmem:[#allocation4 + $0xb0] sm:$0xff]  ;;  %v389_v62 = vld [vmem:[#allocation4 + $0x958] sm:$0xff] }
  0xc0   :  { %801 = vmatpush1.msra.mxu0 %v170_v30  ;;  %875 = vmatprep.subr.mxu1 %v185_v3  ;;  %v363_v30 = vld [vmem:[#allocation4 + $0x888] sm:$0xff]  ;;  %v377_v1 = vld [vmem:[#allocation4 + $0x8f8] sm:$0xff] }
  0xc1   :  { %802 = vmatprep.subr.mxu0 %v159_v31  ;;  %876 = vmatpush1.msra.mxu1 %v184_v6  ;;  %v101_v31 = vld [vmem:[#allocation4 + $0x58] sm:$0xff] }
  0xc2   :  { %803 = vmatpush1.msra.mxu0 %v158_v33  ;;  %877 = vmatprep.subr.mxu1 %v173_v8  ;;  %v100_v33 = vld [vmem:[#allocation4 + $0x50] sm:$0xff]  ;;  %v365_v3 = vld [vmem:[#allocation4 + $0x898] sm:$0xff] }
  0xc3   :  { %804 = vmatprep.subr.mxu0 %v147_v35  ;;  %878 = vmatpush1.msra.mxu1 %v172_v10  ;;  %v473_v35 = vld [vmem:[#allocation4 + $0xbf8] sm:$0xff]  ;;  %v340_v8 = vld [vmem:[#allocation4 + $0x7d0] sm:$0xff] }
  0xc4   :  { %805 = vmatpush1.msra.mxu0 %v146_v37  ;;  %879 = vmatprep.subr.mxu1 %v161_v12  ;;  %v472_v37 = vld [vmem:[#allocation4 + $0xbf0] sm:$0xff]  ;;  %v353_v6 = vld [vmem:[#allocation4 + $0x838] sm:$0xff] }
  0xc5   :  { %806 = vmatprep.subr.mxu0 %v135_v39  ;;  %880 = vmatpush1.msra.mxu1 %v160_v14  ;;  %v461_v39 = vld [vmem:[#allocation4 + $0xb98] sm:$0xff]  ;;  %v304_v12 = vld [vmem:[#allocation4 + $0x6b0] sm:$0xff] }
  0xc6   :  { %807 = vmatpush1.msra.mxu0 %v134_v41  ;;  %881 = vmatprep.subr.mxu1 %v149_v16  ;;  %v460_v41 = vld [vmem:[#allocation4 + $0xb90] sm:$0xff]  ;;  %v317_v10 = vld [vmem:[#allocation4 + $0x718] sm:$0xff] }
  0xc7   :  { %808 = vmatprep.subr.mxu0 %v123_v43  ;;  %882 = vmatpush1.msra.mxu1 %v148_v18  ;;  %v449_v43 = vld [vmem:[#allocation4 + $0xb38] sm:$0xff]  ;;  %v292_v14 = vld [vmem:[#allocation4 + $0x650] sm:$0xff] }
  0xc8   :  { %809 = vmatpush1.msra.mxu0 %v122_v46  ;;  %883 = vmatprep.subr.mxu1 %v137_v20  ;;  %v448_v46 = vld [vmem:[#allocation4 + $0xb30] sm:$0xff] }
  0xc9   :  { %810 = vmatprep.subr.mxu0 %v111_v48  ;;  %884 = vmatpush1.msra.mxu1 %v136_v22  ;;  %v437_v48 = vld [vmem:[#allocation4 + $0xad8] sm:$0xff]  ;;  %v6267_v16 = vld [vmem:[%s11084_s0 + $0x18] sm:$0xff] }
  0xca   :  { %811 = vmatpush1.msra.mxu0 %v110_v50  ;;  %885 = vmatprep.subr.mxu1 %v125_v23  ;;  %v436_v50 = vld [vmem:[#allocation4 + $0xad0] sm:$0xff] }
  0xcb   :  { %812 = vmatprep.subr.mxu0 %v99_v52  ;;  %886 = vmatpush1.msra.mxu1 %v124_v25  ;;  %v425_v52 = vld [vmem:[#allocation4 + $0xa78] sm:$0xff] }
  0xcc   :  { %813 = vmatpush1.msra.mxu0 %v98_v54  ;;  %887 = vmatprep.subr.mxu1 %v113_v27  ;;  %v424_v54 = vld [vmem:[#allocation4 + $0xa70] sm:$0xff] }
  0xcd   :  { %814 = vmatprep.subr.mxu0 %v471_v56  ;;  %888 = vmatpush1.msra.mxu1 %v112_v29  ;;  %v413_v56 = vld [vmem:[#allocation4 + $0xa18] sm:$0xff] }
  0xce   :  { %815 = vmatpush2.msra.mxu0 %v470_v58  ;;  %889 = vmatprep.subr.mxu1 %v101_v31  ;;  %v412_v58 = vld [vmem:[#allocation4 + $0xa10] sm:$0xff] }
  0xcf   :  { %816 = vmatprep.subr.mxu0 %v459_v61  ;;  %890 = vmatpush1.msra.mxu1 %v100_v33  ;;  %v400_v61 = vld [vmem:[#allocation4 + $0x9b0] sm:$0xff] }
  0xd0   :  { %817 = vmatpush2.msra.mxu0 %v458_v63  ;;  %891 = vmatprep.subr.mxu1 %v473_v35  ;;  %v388_v63 = vld [vmem:[#allocation4 + $0x950] sm:$0xff] }
  0xd1   :  { %818 = vmatprep.subr.mxu0 %v447_v2  ;;  %892 = vmatpush2.msra.mxu1 %v472_v37  ;;  %v376_v2 = vld [vmem:[#allocation4 + $0x8f0] sm:$0xff] }
  0xd2   :  { %819 = vmatpush2.msra.mxu0 %v446_v5  ;;  %893 = vmatprep.subr.mxu1 %v461_v39  ;;  %v364_v5 = vld [vmem:[#allocation4 + $0x890] sm:$0xff] }
  0xd3   :  { %820 = vmatprep.subr.mxu0 %v435_v7  ;;  %894 = vmatpush2.msra.mxu1 %v460_v41  ;;  %v352_v7 = vld [vmem:[#allocation4 + $0x830] sm:$0xff] }
  0xd4   :  { %821 = vmatpush2.msra.mxu0 %v434_v9  ;;  %895 = vmatprep.subr.mxu1 %v449_v43  ;;  %v328_v9 = vld [vmem:[#allocation4 + $0x770] sm:$0xff] }
  0xd5   :  { %822 = vmatprep.subr.mxu0 %v423_v11  ;;  %896 = vmatpush2.msra.mxu1 %v448_v46  ;;  %v316_v11 = vld [vmem:[#allocation4 + $0x710] sm:$0xff] }
  0xd6   :  { %823 = vmatpush2.msra.mxu0 %v422_v13  ;;  %897 = vmatprep.subr.mxu1 %v437_v48  ;;  %v293_v13 = vld [vmem:[#allocation4 + $0x658] sm:$0xff] }
  0xd7   :  { %824 = vmatprep.subr.mxu0 %v411_v15  ;;  %898 = vmatpush2.msra.mxu1 %v436_v50  ;;  %v6266_v15 = vld [vmem:[%s11084_s0] sm:$0xff] }
  0xd8   :  { %825 = vmatpush2.msra.mxu0 %v410_v17  ;;  %899 = vmatprep.subr.mxu1 %v425_v52  ;;  %v6268_v17 = vld [vmem:[%s11084_s0 + $0x10] sm:$0xff]  ;;  %s6346_s0 = smov 94  }
  0xd9   :  { %826 = vmatprep.subr.mxu0 %v399_v19  ;;  %900 = vmatpush2.msra.mxu1 %v424_v54 }
  0xda   :  { %827 = vmatpush2.msra.mxu0 %v398_v21  ;;  %901 = vmatprep.subr.mxu1 %v413_v56 }
  0xdb   :  { %828 = vmatprep.subr.mxu0 %v387_v45  ;;  %902 = vmatpush2.msra.mxu1 %v412_v58 }
  0xdc   :  { %829 = vmatpush2.msra.mxu0 %v386_v24  ;;  %903 = vmatprep.subr.mxu1 %v401_v59 }
  0xdd   :  { %830 = vmatprep.subr.mxu0 %v375_v26  ;;  %904 = vmatpush2.msra.mxu1 %v400_v61 }
  0xde   :  { %831 = vmatpush2.msra.mxu0 %v374_v28  ;;  %905 = vmatprep.subr.mxu1 %v389_v62 }
  0xdf   :  { %832 = vmatprep.subr.mxu0 %v363_v30  ;;  %906 = vmatpush2.msra.mxu1 %v388_v63 }
  0xe0   :  { %833 = vmatpush2.msra.mxu0 %v362_v32  ;;  %907 = vmatprep.subr.mxu1 %v377_v1 }
  0xe1   :  { %834 = vmatprep.subr.mxu0 %v351_v34  ;;  %908 = vmatpush2.msra.mxu1 %v376_v2 }
  0xe2   :  { %835 = vmatpush2.msra.mxu0 %v350_v36  ;;  %909 = vmatprep.subr.mxu1 %v365_v3 }
  0xe3   :  { %836 = vmatprep.subr.mxu0 %v339_v38  ;;  %910 = vmatpush2.msra.mxu1 %v364_v5 }
  0xe4   :  { %837 = vmatpush2.msra.mxu0 %v338_v40  ;;  %911 = vmatprep.subr.mxu1 %v353_v6 }
  0xe5   :  { %838 = vmatprep.subr.mxu0 %v327_v42  ;;  %912 = vmatpush2.msra.mxu1 %v352_v7 }
  0xe6   :  { %839 = vmatpush2.msra.mxu0 %v326_v44 }
  0xe7   :  { %840 = vmatprep.subr.mxu0 %v315_v47 }
  0xe8   :  { %841 = vmatpush2.msra.mxu0 %v314_v49 }
  0xe9   :  { %842 = vmatprep.subr.mxu0 %v303_v51 }
  0xea   :  { %843 = vmatpush2.msra.mxu0 %v302_v53 }
  0xeb   :  { %844 = vmatprep.subr.mxu0 %v291_v55 }
  0xec   :  { %845 = vmatpush2.msra.mxu0 %v290_v57 }
  0xed   :  { %847 = vmatmul.mubr.f32.vlgmr.msra.gmra.mxu0 %v6446_v60  ;;  %v341_v60 = vld [vmem:[#allocation4 + $0x7d8] sm:$0xff] }
  0xee   :  { %852 = vmatprep.mubr.f32.mxu0 %v6451_v0  ;;  %913 = vmatprep.subr.mxu1 %v341_v60  ;;  %v329_v0 = vld [vmem:[#allocation4 + $0x778] sm:$0xff] }
  0xef   :  { %914 = vmatpush2.msra.mxu1 %v340_v8 }
  0xf0   :  { %915 = vmatprep.subr.mxu1 %v329_v0 }
  0xf1   :  { %853 = vmatmul.mubr.f32.gmra.mxu0 %v6458_v4  ;;  %916 = vmatpush2.msra.mxu1 %v328_v9  ;;  %v305_v4 = vld [vmem:[#allocation4 + $0x6b8] sm:$0xff] }
  0xf2   :  { %917 = vmatprep.subr.mxu1 %v317_v10 }
  0xf3   :  { %918 = vmatpush2.msra.mxu1 %v316_v11 }
  0xf4   :  { %919 = vmatprep.subr.mxu1 %v305_v4 }
  0xf5   :  { %920 = vmatpush2.msra.mxu1 %v304_v12 }
  0xf6   :  { %921 = vmatprep.subr.mxu1 %v293_v13 }
  0xf7   :  { %922 = vmatpush2.msra.mxu1 %v292_v14 }
  0xf8   :  { %924 = vmatmul.mubr.f32.vlgmr.msra.gmra.mxu1 %v6266_v15 }
  0xf9   :  { %929 = vmatprep.mubr.f32.mxu1 %v6267_v16 }
  0xfc   :  { %930 = vmatmul.mubr.f32.gmra.mxu1 %v6268_v17 }
 0x125   :  { %v617_v18 = vpop.f32.mrf.mxu1 }
 0x126   :  { %1115 = vrot.lane.b32.xlu1 %v617_v18, %s6340_s25  ;;  %1181 = vrot.lane.b32.xlu0 %v617_v18, %s6341_s26 }
 0x127   :  { %v619_v19 = vpop.f32.mrf.mxu1 }
 0x128   :  { %v540_v20 = vpop.f32.mrf.mxu0 }
 0x129   :  { %v6517_v22 = vpop.f32.mrf.mxu1 }
 0x12a   :  { %1051 = vrot.lane.b32.xlu1 %v617_v18, %s6342_s27  ;;  %1148 = vrot.lane.b32.xlu0 %v617_v18, %s6343_s2  ;;  %v542_v21 = vpop.f32.mrf.mxu0  ;;  %11334 = vst [vmem:[#allocation11_spill] sm:$0xff] %v6517_v22 }
 0x12b   :  { %v6534_v24 = vpop.f32.mrf.mxu1 }
 0x12c   :  { %11337 = vst [vmem:[#allocation14_spill] sm:$0xff] %v6534_v24 }
 0x12e   :  { %1216 = vrot.lane.b32.xlu1 %v617_v18, %s6344_s28  ;;  %1082 = vrot.lane.b32.xlu0 %v617_v18, %s6345_s1 }
 0x131   :  { %v6522_v45 = vpop.f32.mrf.mxu0 }
 0x132   :  { %1020 = vrot.lane.b32.xlu0 %v617_v18, %s6346_s0  ;;  %1183 = vrot.lane.b32.xlu1 %v619_v19, %s6341_s26  ;;  %11335 = vst [vmem:[#allocation12_spill] sm:$0xff] %v6522_v45 }
 0x133   :  { %v6528_v23 = vpop.f32.mrf.mxu0 }
 0x134   :  { %11336 = vst [vmem:[#allocation13_spill] sm:$0xff] %v6528_v23 }
 0x136   :  { %1016 = vrot.lane.b32.xlu0 %v540_v20, %s6346_s0  ;;  %1146 = vrot.lane.b32.xlu1 %v542_v21, %s6343_s2 }
 0x13a   :  { %987 = vrot.lane.b32.xlu0 %v617_v18, %s6347_s9  ;;  %1150 = vrot.lane.b32.xlu1 %v619_v19, %s6343_s2 }
 0x13e   :  { %983 = vrot.lane.b32.xlu0 %v540_v20, %s6347_s9  ;;  %1080 = vrot.lane.b32.xlu1 %v542_v21, %s6345_s1 }
 0x142   :  { %954 = vrot.lane.b32.xlu0 %v617_v18, %s6348_s29  ;;  %1084 = vrot.lane.b32.xlu1 %v619_v19, %s6345_s1 }
 0x146   :  { %950 = vrot.lane.b32.xlu0 %v540_v20, %s6348_s29  ;;  %1018 = vrot.lane.b32.xlu1 %v542_v21, %s6346_s0 }
 0x14a   :  { %1212 = vrot.lane.b32.xlu0 %v540_v20, %s6344_s28  ;;  %1022 = vrot.lane.b32.xlu1 %v619_v19, %s6346_s0 }
 0x14e   :  { %985 = vrot.lane.b32.xlu1 %v542_v21, %s6347_s9  ;;  %1179 = vrot.lane.b32.xlu0 %v542_v21, %s6341_s26 }
 0x152   :  { %989 = vrot.lane.b32.xlu1 %v619_v19, %s6347_s9  ;;  %1113 = vrot.lane.b32.xlu0 %v542_v21, %s6340_s25 }
 0x156   :  { %952 = vrot.lane.b32.xlu1 %v542_v21, %s6348_s29  ;;  %1117 = vrot.lane.b32.xlu0 %v619_v19, %s6340_s25 }
 0x15a   :  { %956 = vrot.lane.b32.xlu1 %v619_v19, %s6348_s29  ;;  %1049 = vrot.lane.b32.xlu0 %v542_v21, %s6342_s27 }
 0x15e   :  { %1218 = vrot.lane.b32.xlu1 %v619_v19, %s6344_s28  ;;  %1053 = vrot.lane.b32.xlu0 %v619_v19, %s6342_s27 }
 0x162   :  { %2153 = vrot.lane.b32.xlu1 %v6517_v22, %s6343_s2  ;;  %1214 = vrot.lane.b32.xlu0 %v542_v21, %s6344_s28 }
 0x166   :  { %2121 = vrot.lane.b32.xlu1 %v6517_v22, %s6340_s25  ;;  %2185 = vrot.lane.b32.xlu0 %v6517_v22, %s6341_s26 }
 0x169   :  { %v694_v25 = vpop.f32.mrf.mxu0 }
 0x16a   :  { %2089 = vrot.lane.b32.xlu1 %v6517_v22, %s6345_s1  ;;  %2151 = vrot.lane.b32.xlu0 %v6528_v23, %s6343_s2 }
 0x16b   :  { %v6596_v32 = vpop.f32.mrf.mxu1  ;;  %v6633_v43 = vpop.f32.mrf.mxu0 }
 0x16c   :  { %11338 = vst [vmem:[#allocation15_spill] sm:$0xff] %v6596_v32  ;;  %11339 = vst [vmem:[#allocation16_spill] sm:$0xff] %v6633_v43 }
 0x16d   :  { %v6667_v53 = vpop.f32.mrf.mxu1  ;;  %v6693_v61 = vpop.f32.mrf.mxu0 }
 0x16e   :  { %2059 = vrot.lane.b32.xlu1 %v6517_v22, %s6342_s27  ;;  %2155 = vrot.lane.b32.xlu0 %v6534_v24, %s6343_s2  ;;  %11340 = vst [vmem:[#allocation17_spill] sm:$0xff] %v6667_v53  ;;  %11342 = vst [vmem:[#allocation19_spill] sm:$0xff] %v6693_v61 }
 0x16f   :  { %v6711_v3 = vpop.f32.mrf.mxu1  ;;  %v6761_v14 = vpop.f32.mrf.mxu0 }
 0x170   :  { %11346 = vst [vmem:[#allocation23_spill] sm:$0xff] %v6711_v3  ;;  %11359 = vst [vmem:[#allocation36_spill] sm:$0xff] %v6761_v14 }
 0x171   :  { %v6779_v19 = vpop.f32.mrf.mxu1 }
 0x172   :  { %2029 = vrot.lane.b32.xlu1 %v6517_v22, %s6346_s0  ;;  %2119 = vrot.lane.b32.xlu0 %v6528_v23, %s6340_s25  ;;  %11364 = vst [vmem:[#allocation41_spill] sm:$0xff] %v6779_v19 }
 0x176   :  { %2025 = vrot.lane.b32.xlu1 %v6522_v45, %s6346_s0  ;;  %2123 = vrot.lane.b32.xlu0 %v6534_v24, %s6340_s25 }
 0x17a   :  { %1997 = vrot.lane.b32.xlu1 %v6517_v22, %s6347_s9  ;;  %2087 = vrot.lane.b32.xlu0 %v6528_v23, %s6345_s1 }
 0x17e   :  { %1993 = vrot.lane.b32.xlu1 %v6522_v45, %s6347_s9  ;;  %2091 = vrot.lane.b32.xlu0 %v6534_v24, %s6345_s1 }
 0x182   :  { %1965 = vrot.lane.b32.xlu1 %v6517_v22, %s6348_s29  ;;  %2057 = vrot.lane.b32.xlu0 %v6528_v23, %s6342_s27 }
 0x186   :  { %1961 = vrot.lane.b32.xlu1 %v6522_v45, %s6348_s29  ;;  %2061 = vrot.lane.b32.xlu0 %v6534_v24, %s6342_s27 }
 0x18a   :  { %2027 = vrot.lane.b32.xlu0 %v6528_v23, %s6346_s0  ;;  %2183 = vrot.lane.b32.xlu1 %v6528_v23, %s6341_s26 }
 0x18e   :  { %2031 = vrot.lane.b32.xlu0 %v6534_v24, %s6346_s0  ;;  %2187 = vrot.lane.b32.xlu1 %v6534_v24, %s6341_s26 }
 0x192   :  { %1995 = vrot.lane.b32.xlu0 %v6528_v23, %s6347_s9  ;;  %1185 = vrot.lane.b32.xlu1 %v694_v25, %s6341_s26 }
 0x196   :  { %1999 = vrot.lane.b32.xlu0 %v6534_v24, %s6347_s9  ;;  %1119 = vrot.lane.b32.xlu1 %v694_v25, %s6340_s25 }
 0x198   :  { %v6578_v26 = vpop.permute.xlu1 %1115  ;;  %v6580_v27 = vpop.permute.xlu0 %1181 }
 0x19a   :  { %1963 = vrot.lane.b32.xlu0 %v6528_v23, %s6348_s29  ;;  %991 = vrot.lane.b32.xlu1 %v694_v25, %s6347_s9 }
 0x19c   :  { %v6585_v28 = vpop.permute.xlu1 %1051  ;;  %v6587_v29 = vpop.permute.xlu0 %1148 }
 0x19e   :  { %1967 = vrot.lane.b32.xlu0 %v6534_v24, %s6348_s29  ;;  %958 = vrot.lane.b32.xlu1 %v694_v25, %s6348_s29 }
 0x1a0   :  { %v6592_v30 = vpop.permute.xlu1 %1216  ;;  %v6594_v31 = vpop.permute.xlu0 %1082 }
 0x1a2   :  { %1152 = vrot.lane.b32.xlu0 %v694_v25, %s6343_s2  ;;  %1189 = vrot.lane.b32.xlu1 %v6596_v32, %s6341_s26 }
 0x1a4   :  { %v6601_v33 = vpop.permute.xlu0 %1020  ;;  %v6603_v34 = vpop.permute.xlu1 %1183 }
 0x1a6   :  { %1086 = vrot.lane.b32.xlu0 %v694_v25, %s6345_s1  ;;  %1156 = vrot.lane.b32.xlu1 %v6596_v32, %s6343_s2 }
 0x1a8   :  { %v6608_v35 = vpop.permute.xlu0 %1016  ;;  %v6610_v36 = vpop.permute.xlu1 %1146 }
 0x1aa   :  { %1055 = vrot.lane.b32.xlu0 %v694_v25, %s6342_s27  ;;  %1123 = vrot.lane.b32.xlu1 %v6596_v32, %s6340_s25 }
 0x1ac   :  { %v6615_v37 = vpop.permute.xlu0 %987  ;;  %v6617_v38 = vpop.permute.xlu1 %1150 }
 0x1ae   :  { %1024 = vrot.lane.b32.xlu0 %v694_v25, %s6346_s0  ;;  %1090 = vrot.lane.b32.xlu1 %v6596_v32, %s6345_s1 }
 0x1b0   :  { %v6622_v39 = vpop.permute.xlu0 %983  ;;  %v6624_v40 = vpop.permute.xlu1 %1080 }
 0x1b2   :  { %1220 = vrot.lane.b32.xlu0 %v694_v25, %s6344_s28  ;;  %1059 = vrot.lane.b32.xlu1 %v6596_v32, %s6342_s27 }
 0x1b4   :  { %v6629_v41 = vpop.permute.xlu0 %954  ;;  %v6631_v42 = vpop.permute.xlu1 %1084 }
 0x1b6   :  { %1028 = vrot.lane.b32.xlu1 %v6596_v32, %s6346_s0  ;;  %1187 = vrot.lane.b32.xlu0 %v6633_v43, %s6341_s26 }
 0x1b8   :  { %v6639_v44 = vpop.permute.xlu0 %950  ;;  %v6641_v46 = vpop.permute.xlu1 %1018 }
 0x1ba   :  { %995 = vrot.lane.b32.xlu1 %v6596_v32, %s6347_s9  ;;  %1121 = vrot.lane.b32.xlu0 %v6633_v43, %s6340_s25 }
 0x1bc   :  { %v6647_v47 = vpop.permute.xlu0 %1212  ;;  %v6649_v48 = vpop.permute.xlu1 %1022 }
 0x1be   :  { %962 = vrot.lane.b32.xlu1 %v6596_v32, %s6348_s29  ;;  %993 = vrot.lane.b32.xlu0 %v6633_v43, %s6347_s9 }
 0x1c0   :  { %v6655_v49 = vpop.permute.xlu1 %985  ;;  %v6657_v50 = vpop.permute.xlu0 %1179 }
 0x1c2   :  { %1154 = vrot.lane.b32.xlu1 %v6633_v43, %s6343_s2  ;;  %960 = vrot.lane.b32.xlu0 %v6633_v43, %s6348_s29 }
 0x1c4   :  { %v6663_v51 = vpop.permute.xlu1 %989  ;;  %v6665_v52 = vpop.permute.xlu0 %1113 }
 0x1c6   :  { %1088 = vrot.lane.b32.xlu1 %v6633_v43, %s6345_s1  ;;  %1191 = vrot.lane.b32.xlu0 %v6667_v53, %s6341_s26 }
 0x1c8   :  { %v6673_v54 = vpop.permute.xlu1 %952  ;;  %v6675_v55 = vpop.permute.xlu0 %1117 }
 0x1ca   :  { %1057 = vrot.lane.b32.xlu1 %v6633_v43, %s6342_s27  ;;  %1158 = vrot.lane.b32.xlu0 %v6667_v53, %s6343_s2 }
 0x1cc   :  { %v6681_v56 = vpop.permute.xlu1 %956  ;;  %v6683_v57 = vpop.permute.xlu0 %1049 }
 0x1ce   :  { %1026 = vrot.lane.b32.xlu1 %v6633_v43, %s6346_s0  ;;  %1125 = vrot.lane.b32.xlu0 %v6667_v53, %s6340_s25 }
 0x1d0   :  { %v6689_v58 = vpop.permute.xlu1 %1218  ;;  %v6691_v59 = vpop.permute.xlu0 %1053 }
 0x1d1   :  { %11341 = vst [vmem:[#allocation18_spill] sm:$0xff] %v6689_v58  ;;  %v1008_v58 = vsel %vm1005_vm6, %v6615_v37, %v6663_v51 }
 0x1d2   :  { %1092 = vrot.lane.b32.xlu0 %v6667_v53, %s6345_s1  ;;  %2189 = vrot.lane.b32.xlu1 %v6693_v61, %s6341_s26 }
 0x1d4   :  { %v6699_v62 = vpop.permute.xlu1 %2153  ;;  %v6701_v63 = vpop.permute.xlu0 %1214 }
 0x1d5   :  { %11343 = vst [vmem:[#allocation20_spill] sm:$0xff] %v6699_v62 }
 0x1d6   :  { %1061 = vrot.lane.b32.xlu0 %v6667_v53, %s6342_s27  ;;  %2093 = vrot.lane.b32.xlu1 %v6693_v61, %s6345_s1 }
 0x1d8   :  { %v6707_v1 = vpop.permute.xlu1 %2121  ;;  %v6709_v2 = vpop.permute.xlu0 %2185 }
 0x1d9   :  { %11344 = vst [vmem:[#allocation21_spill] sm:$0xff] %v6707_v1  ;;  %11345 = vst [vmem:[#allocation22_spill] sm:$0xff] %v6709_v2 }
 0x1da   :  { %1030 = vrot.lane.b32.xlu0 %v6667_v53, %s6346_s0  ;;  %2161 = vrot.lane.b32.xlu1 %v6711_v3, %s6343_s2 }
 0x1dc   :  { %v6717_v5 = vpop.permute.xlu1 %2089  ;;  %v6719_v6 = vpop.permute.xlu0 %2151 }
 0x1dd   :  { %11347 = vst [vmem:[#allocation24_spill] sm:$0xff] %v6717_v5  ;;  %11348 = vst [vmem:[#allocation25_spill] sm:$0xff] %v6719_v6  ;;  %v1039_v5 = vsel %vm1038_vm5, %v6608_v35, %v6641_v46  ;;  %v1170_v35 = vsel %vm1168_vm1, %v6587_v29, %v6617_v38 }
 0x1de   :  { %997 = vrot.lane.b32.xlu0 %v6667_v53, %s6347_s9  ;;  %2033 = vrot.lane.b32.xlu1 %v6693_v61, %s6346_s0 }
 0x1e0   :  { %v6725_v7 = vpop.permute.xlu1 %2059  ;;  %v6727_v60 = vpop.permute.xlu0 %2155 }
 0x1e1   :  { %11349 = vst [vmem:[#allocation26_spill] sm:$0xff] %v6725_v7  ;;  %11350 = vst [vmem:[#allocation27_spill] sm:$0xff] %v6727_v60  ;;  %v1040_v7 = vsel %vm1038_vm5, %v6641_v46, %v6601_v33 }
 0x1e2   :  { %964 = vrot.lane.b32.xlu0 %v6667_v53, %s6348_s29  ;;  %2097 = vrot.lane.b32.xlu1 %v6711_v3, %s6345_s1 }
 0x1e4   :  { %v6733_v8 = vpop.permute.xlu1 %2029  ;;  %v6735_v0 = vpop.permute.xlu0 %2119 }
 0x1e5   :  { %11351 = vst [vmem:[#allocation28_spill] sm:$0xff] %v6733_v8  ;;  %11352 = vst [vmem:[#allocation29_spill] sm:$0xff] %v6735_v0  ;;  %v1169_v8 = vsel %vm1168_vm1, %v6610_v36, %v6587_v29 }
 0x1e6   :  { %2157 = vrot.lane.b32.xlu0 %v6693_v61, %s6343_s2  ;;  %1969 = vrot.lane.b32.xlu1 %v6693_v61, %s6348_s29 }
 0x1e8   :  { %v6741_v9 = vpop.permute.xlu1 %2025  ;;  %v6743_v10 = vpop.permute.xlu0 %2123 }
 0x1e9   :  { %11353 = vst [vmem:[#allocation30_spill] sm:$0xff] %v6741_v9  ;;  %11354 = vst [vmem:[#allocation31_spill] sm:$0xff] %v6743_v10 }
 0x1ea   :  { %2125 = vrot.lane.b32.xlu0 %v6693_v61, %s6340_s25  ;;  %2037 = vrot.lane.b32.xlu1 %v6711_v3, %s6346_s0 }
 0x1ec   :  { %v6749_v11 = vpop.permute.xlu1 %1997  ;;  %v6751_v4 = vpop.permute.xlu0 %2087 }
 0x1ed   :  { %11355 = vst [vmem:[#allocation32_spill] sm:$0xff] %v6749_v11  ;;  %11356 = vst [vmem:[#allocation33_spill] sm:$0xff] %v6751_v4  ;;  %v1203_v11 = vsel %vm1201_vm0, %v6580_v27, %v6603_v34 }
 0x1ee   :  { %2193 = vrot.lane.b32.xlu0 %v6711_v3, %s6341_s26  ;;  %1973 = vrot.lane.b32.xlu1 %v6711_v3, %s6348_s29 }
 0x1f0   :  { %v6757_v12 = vpop.permute.xlu1 %1993  ;;  %v6759_v13 = vpop.permute.xlu0 %2091 }
 0x1f1   :  { %11357 = vst [vmem:[#allocation34_spill] sm:$0xff] %v6757_v12  ;;  %11358 = vst [vmem:[#allocation35_spill] sm:$0xff] %v6759_v13  ;;  %v1202_v13 = vsel %vm1201_vm0, %v6657_v50, %v6580_v27 }
 0x1f2   :  { %2063 = vrot.lane.b32.xlu0 %v6693_v61, %s6342_s27  ;;  %2159 = vrot.lane.b32.xlu1 %v6761_v14, %s6343_s2 }
 0x1f4   :  { %v6767_v15 = vpop.permute.xlu1 %1965  ;;  %v6769_v16 = vpop.permute.xlu0 %2057 }
 0x1f5   :  { %11360 = vst [vmem:[#allocation37_spill] sm:$0xff] %v6767_v15  ;;  %11361 = vst [vmem:[#allocation38_spill] sm:$0xff] %v6769_v16 }
 0x1f6   :  { %2129 = vrot.lane.b32.xlu0 %v6711_v3, %s6340_s25  ;;  %2127 = vrot.lane.b32.xlu1 %v6761_v14, %s6340_s25 }
 0x1f8   :  { %v6775_v17 = vpop.permute.xlu1 %1961  ;;  %v6777_v18 = vpop.permute.xlu0 %2061 }
 0x1f9   :  { %11362 = vst [vmem:[#allocation39_spill] sm:$0xff] %v6775_v17  ;;  %11363 = vst [vmem:[#allocation40_spill] sm:$0xff] %v6777_v18  ;;  %v1103_v18 = vsel %vm1102_vm3, %v6624_v40, %v6594_v31 }
 0x1fa   :  { %2001 = vrot.lane.b32.xlu0 %v6693_v61, %s6347_s9  ;;  %2195 = vrot.lane.b32.xlu1 %v6779_v19, %s6341_s26 }
 0x1fc   :  { %v6785_v20 = vpop.permute.xlu0 %2027  ;;  %v6787_v21 = vpop.permute.xlu1 %2183 }
 0x1fd   :  { %11365 = vst [vmem:[#allocation42_spill] sm:$0xff] %v6785_v20  ;;  %11366 = vst [vmem:[#allocation43_spill] sm:$0xff] %v6787_v21 }
 0x1fe   :  { %2067 = vrot.lane.b32.xlu0 %v6711_v3, %s6342_s27  ;;  %2065 = vrot.lane.b32.xlu1 %v6761_v14, %s6342_s27 }
 0x200   :  { %v6793_v25 = vpop.permute.xlu0 %2031  ;;  %v6795_v24 = vpop.permute.xlu1 %2187 }
 0x201   :  { %11367 = vst [vmem:[#allocation44_spill] sm:$0xff] %v6793_v25  ;;  %11368 = vst [vmem:[#allocation45_spill] sm:$0xff] %v6795_v24 }
 0x202   :  { %2005 = vrot.lane.b32.xlu0 %v6711_v3, %s6347_s9  ;;  %2131 = vrot.lane.b32.xlu1 %v6779_v19, %s6340_s25 }
 0x204   :  { %v6801_v61 = vpop.permute.xlu0 %1995  ;;  %v6803_v45 = vpop.permute.xlu1 %1185 }
 0x205   :  { %11369 = vst [vmem:[#allocation46_spill] sm:$0xff] %v6801_v61 }
 0x206   :  { %2003 = vrot.lane.b32.xlu1 %v6761_v14, %s6347_s9  ;;  %2191 = vrot.lane.b32.xlu0 %v6761_v14, %s6341_s26 }
 0x208   :  { %v6809_v22 = vpop.permute.xlu0 %1999  ;;  %v6811_v17 = vpop.permute.xlu1 %1119 }
 0x209   :  { %11370 = vst [vmem:[#allocation47_spill] sm:$0xff] %v6809_v22 }
 0x20a   :  { %2069 = vrot.lane.b32.xlu1 %v6779_v19, %s6342_s27  ;;  %2095 = vrot.lane.b32.xlu0 %v6761_v14, %s6345_s1 }
 0x20c   :  { %v6817_v3 = vpop.permute.xlu0 %1963  ;;  %v6819_v23 = vpop.permute.xlu1 %991 }
 0x20d   :  { %11371 = vst [vmem:[#allocation48_spill] sm:$0xff] %v6817_v3 }
 0x20e   :  { %2007 = vrot.lane.b32.xlu1 %v6779_v19, %s6347_s9  ;;  %2163 = vrot.lane.b32.xlu0 %v6779_v19, %s6343_s2 }
 0x210   :  { %v6825_v15 = vpop.permute.xlu0 %1967  ;;  %v6827_v22 = vpop.permute.xlu1 %958 }
 0x211   :  { %11372 = vst [vmem:[#allocation49_spill] sm:$0xff] %v6825_v15 }
 0x212   :  { %1366 = vrot.lane.b32.xlu1 %v6610_v36, %s6344_s28  ;;  %2035 = vrot.lane.b32.xlu0 %v6761_v14, %s6346_s0 }
 0x214   :  { %v6833_v12 = vpop.permute.xlu0 %1152  ;;  %v6835_v3 = vpop.permute.xlu1 %1189 }
 0x216   :  { %1322 = vrot.lane.b32.xlu1 %v6624_v40, %s6344_s28  ;;  %2099 = vrot.lane.b32.xlu0 %v6779_v19, %s6345_s1 }
 0x218   :  { %v6841_v15 = vpop.permute.xlu0 %1086  ;;  %v6843_v61 = vpop.permute.xlu1 %1156 }
 0x21a   :  { %1392 = vrot.lane.b32.xlu1 %v1203_v11, %s6344_s28  ;;  %1971 = vrot.lane.b32.xlu0 %v6761_v14, %s6348_s29  ;;  %v1137_v14 = vsel %vm1135_vm2, %v6578_v26, %v6675_v55 }
 0x21c   :  { %v6851_v9 = vpop.permute.xlu0 %1055  ;;  %v6853_v20 = vpop.permute.xlu1 %1123 }
 0x21e   :  { %1368 = vrot.lane.b32.xlu1 %v1169_v8, %s6344_s28  ;;  %2039 = vrot.lane.b32.xlu0 %v6779_v19, %s6346_s0 }
 0x220   :  { %v6861_v25 = vpop.permute.xlu0 %1024  ;;  %v6863_v11 = vpop.permute.xlu1 %1090 }
 0x222   :  { %1348 = vrot.lane.b32.xlu1 %v1137_v14, %s6344_s28  ;;  %1975 = vrot.lane.b32.xlu0 %v6779_v19, %s6348_s29  ;;  %v1071_v19 = vsel %vm1069_vm4, %v6585_v28, %v6691_v59 }
 0x224   :  { %v6871_v36 = vpop.permute.xlu0 %1220  ;;  %v6873_v8 = vpop.permute.xlu1 %1059 }
 0x225   :  { %11373 = vst [vmem:[#allocation50_spill] sm:$0xff] %v6871_v36 }
 0x226   :  { %1324 = vrot.lane.b32.xlu1 %v1103_v18, %s6344_s28  ;;  %1388 = vrot.lane.b32.xlu0 %v6657_v50, %s6344_s28  ;;  %v974_v50 = vsel %vm972_vm7, %v6673_v54, %v6629_v41 }
 0x228   :  { %v6881_v16 = vpop.permute.xlu1 %1028  ;;  %v6883_v14 = vpop.permute.xlu0 %1187 }
 0x22a   :  { %1304 = vrot.lane.b32.xlu1 %v1071_v19, %s6344_s28  ;;  %1344 = vrot.lane.b32.xlu0 %v6665_v52, %s6344_s28 }
 0x22c   :  { %v6891_v40 = vpop.permute.xlu1 %995  ;;  %v6893_v18 = vpop.permute.xlu0 %1121 }
 0x22e   :  { %1280 = vrot.lane.b32.xlu1 %v1040_v7, %s6344_s28  ;;  %1300 = vrot.lane.b32.xlu0 %v6683_v57, %s6344_s28 }
 0x230   :  { %v6901_v4 = vpop.permute.xlu1 %962  ;;  %v6903_v19 = vpop.permute.xlu0 %993 }
 0x232   :  { %1278 = vrot.lane.b32.xlu1 %v1039_v5, %s6344_s28  ;;  %1390 = vrot.lane.b32.xlu0 %v1202_v13, %s6344_s28  ;;  %v1136_v5 = vsel %vm1135_vm2, %v6665_v52, %v6578_v26  ;;  %v973_v13 = vsel %vm972_vm7, %v6639_v44, %v6673_v54  ;;  %v1041_v54 = vsel %vm1038_vm5, %v6601_v33, %v6649_v48 }
 0x234   :  { %v6913_v7 = vpop.permute.xlu1 %1154  ;;  %v6915_v10 = vpop.permute.xlu0 %960 }
 0x236   :  { %1260 = vrot.lane.b32.xlu1 %v1008_v58, %s6344_s28  ;;  %1370 = vrot.lane.b32.xlu0 %v1170_v35, %s6344_s28  ;;  %v1104_v35 = vsel %vm1102_vm3, %v6594_v31, %v6631_v42 }
 0x238   :  { %v6925_v27 = vpop.permute.xlu1 %1088  ;;  %v6927_v46 = vpop.permute.xlu0 %1191 }
 0x23a   :  { %1236 = vrot.lane.b32.xlu1 %v974_v50, %s6344_s28  ;;  %1346 = vrot.lane.b32.xlu0 %v1136_v5, %s6344_s28  ;;  %v6953_v50 = vpop.f32.mrf.mxu0  ;;  %v1070_v5 = vsel %vm1069_vm4, %v6683_v57, %v6585_v28  ;;  %v1007_v57 = vsel %vm1005_vm6, %v6655_v49, %v6615_v37 }
 0x23b   :  { %11374 = vst [vmem:[#allocation51_spill] sm:$0xff] %v6953_v50 }
 0x23c   :  { %v6937_v29 = vpop.permute.xlu1 %1057  ;;  %v6939_v58 = vpop.permute.xlu0 %1158 }
 0x23e   :  { %1234 = vrot.lane.b32.xlu1 %v973_v13, %s6344_s28  ;;  %1326 = vrot.lane.b32.xlu0 %v1104_v35, %s6344_s28 }
 0x240   :  { %v6949_v26 = vpop.permute.xlu1 %1026  ;;  %v6951_v52 = vpop.permute.xlu0 %1125 }
 0x242   :  { %1302 = vrot.lane.b32.xlu0 %v1070_v5, %s6344_s28  ;;  %1193 = vrot.lane.b32.xlu1 %v6953_v50, %s6341_s26  ;;  %v1006_v5 = vsel %vm1005_vm6, %v6622_v39, %v6655_v49  ;;  %v7005_v49 = vpop.f32.mrf.mxu1 }
 0x243   :  { %11381 = vst [vmem:[#allocation58_spill] sm:$0xff] %v7005_v49 }
 0x244   :  { %v6961_v31 = vpop.permute.xlu0 %1092  ;;  %v6963_v44 = vpop.permute.xlu1 %2189 }
 0x245   :  { %11375 = vst [vmem:[#allocation52_spill] sm:$0xff] %v6963_v44 }
 0x246   :  { %1282 = vrot.lane.b32.xlu0 %v1041_v54, %s6344_s28  ;;  %1160 = vrot.lane.b32.xlu1 %v6953_v50, %s6343_s2 }
 0x248   :  { %v6971_v13 = vpop.permute.xlu0 %1061  ;;  %v6973_v28 = vpop.permute.xlu1 %2093 }
 0x249   :  { %11376 = vst [vmem:[#allocation53_spill] sm:$0xff] %v6973_v28 }
 0x24a   :  { %1258 = vrot.lane.b32.xlu0 %v1007_v57, %s6344_s28  ;;  %1127 = vrot.lane.b32.xlu1 %v6953_v50, %s6340_s25  ;;  %v975_v57 = vsel %vm972_vm7, %v6629_v41, %v6681_v56 }
 0x24c   :  { %v6981_v35 = vpop.permute.xlu0 %1030  ;;  %v6983_v33 = vpop.permute.xlu1 %2161 }
 0x24d   :  { %11377 = vst [vmem:[#allocation54_spill] sm:$0xff] %v6983_v33 }
 0x24e   :  { %1256 = vrot.lane.b32.xlu0 %v1006_v5, %s6344_s28  ;;  %1094 = vrot.lane.b32.xlu1 %v6953_v50, %s6345_s1 }
 0x250   :  { %v6991_v54 = vpop.permute.xlu0 %997  ;;  %v6993_v37 = vpop.permute.xlu1 %2033 }
 0x251   :  { %11378 = vst [vmem:[#allocation55_spill] sm:$0xff] %v6993_v37 }
 0x252   :  { %1238 = vrot.lane.b32.xlu0 %v975_v57, %s6344_s28  ;;  %1063 = vrot.lane.b32.xlu1 %v6953_v50, %s6342_s27  ;;  %v7015_v57 = vpop.f32.mrf.mxu0 }
 0x253   :  { %11384 = vst [vmem:[#allocation61_spill] sm:$0xff] %v7015_v57 }
 0x254   :  { %v7001_v33 = vpop.permute.xlu0 %964  ;;  %v7003_v39 = vpop.permute.xlu1 %2097 }
 0x255   :  { %11379 = vst [vmem:[#allocation56_spill] sm:$0xff] %v7001_v33  ;;  %11380 = vst [vmem:[#allocation57_spill] sm:$0xff] %v7003_v39 }
 0x256   :  { %1098 = vrot.lane.b32.xlu0 %v7005_v49, %s6345_s1  ;;  %1032 = vrot.lane.b32.xlu1 %v6953_v50, %s6346_s0 }
 0x258   :  { %v7011_v5 = vpop.permute.xlu0 %2157  ;;  %v7013_v41 = vpop.permute.xlu1 %1969 }
 0x259   :  { %11382 = vst [vmem:[#allocation59_spill] sm:$0xff] %v7011_v5  ;;  %11383 = vst [vmem:[#allocation60_spill] sm:$0xff] %v7013_v41 }
 0x25a   :  { %999 = vrot.lane.b32.xlu1 %v6953_v50, %s6347_s9  ;;  %1195 = vrot.lane.b32.xlu0 %v7015_v57, %s6341_s26 }
 0x25c   :  { %v7021_v39 = vpop.permute.xlu0 %2125  ;;  %v7023_v37 = vpop.permute.xlu1 %2037 }
 0x25d   :  { %11385 = vst [vmem:[#allocation62_spill] sm:$0xff] %v7021_v39  ;;  %11386 = vst [vmem:[#allocation63_spill] sm:$0xff] %v7023_v37 }
 0x25e   :  { %966 = vrot.lane.b32.xlu1 %v6953_v50, %s6348_s29  ;;  %1162 = vrot.lane.b32.xlu0 %v7015_v57, %s6343_s2 }
 0x260   :  { %v7029_v28 = vpop.permute.xlu0 %2193  ;;  %v7031_v41 = vpop.permute.xlu1 %1973 }
 0x261   :  { %11387 = vst [vmem:[#allocation64_spill] sm:$0xff] %v7029_v28  ;;  %11388 = vst [vmem:[#allocation65_spill] sm:$0xff] %v7031_v41 }
 0x262   :  { %1197 = vrot.lane.b32.xlu1 %v7005_v49, %s6341_s26  ;;  %1129 = vrot.lane.b32.xlu0 %v7015_v57, %s6340_s25 }
 0x264   :  { %v7037_v5 = vpop.permute.xlu0 %2063  ;;  %v7039_v39 = vpop.permute.xlu1 %2159 }
 0x265   :  { %11389 = vst [vmem:[#allocation66_spill] sm:$0xff] %v7037_v5  ;;  %11390 = vst [vmem:[#allocation67_spill] sm:$0xff] %v7039_v39 }
 0x266   :  { %1164 = vrot.lane.b32.xlu1 %v7005_v49, %s6343_s2  ;;  %1096 = vrot.lane.b32.xlu0 %v7015_v57, %s6345_s1 }
 0x268   :  { %v7045_v37 = vpop.permute.xlu0 %2129  ;;  %v7047_v28 = vpop.permute.xlu1 %2127 }
 0x269   :  { %11391 = vst [vmem:[#allocation68_spill] sm:$0xff] %v7045_v37  ;;  %11392 = vst [vmem:[#allocation69_spill] sm:$0xff] %v7047_v28 }
 0x26a   :  { %1131 = vrot.lane.b32.xlu1 %v7005_v49, %s6340_s25  ;;  %1065 = vrot.lane.b32.xlu0 %v7015_v57, %s6342_s27 }
 0x26c   :  { %v7053_v41 = vpop.permute.xlu0 %2001  ;;  %v7055_v5 = vpop.permute.xlu1 %2195 }
 0x26d   :  { %11393 = vst [vmem:[#allocation70_spill] sm:$0xff] %v7053_v41  ;;  %11394 = vst [vmem:[#allocation71_spill] sm:$0xff] %v7055_v5 }
 0x26e   :  { %1067 = vrot.lane.b32.xlu1 %v7005_v49, %s6342_s27  ;;  %1034 = vrot.lane.b32.xlu0 %v7015_v57, %s6346_s0 }
 0x270   :  { %v7061_v39 = vpop.permute.xlu0 %2067  ;;  %v7063_v37 = vpop.permute.xlu1 %2065 }
 0x271   :  { %11395 = vst [vmem:[#allocation72_spill] sm:$0xff] %v7061_v39  ;;  %11396 = vst [vmem:[#allocation73_spill] sm:$0xff] %v7063_v37  ;;  %v927_v37 = vpop.f32.mrf.mxu1 }
 0x272   :  { %1036 = vrot.lane.b32.xlu1 %v7005_v49, %s6346_s0  ;;  %1001 = vrot.lane.b32.xlu0 %v7015_v57, %s6347_s9 }
 0x274   :  { %v7069_v28 = vpop.permute.xlu0 %2005  ;;  %v7071_v41 = vpop.permute.xlu1 %2131 }
 0x275   :  { %11397 = vst [vmem:[#allocation74_spill] sm:$0xff] %v7069_v28  ;;  %11398 = vst [vmem:[#allocation75_spill] sm:$0xff] %v7071_v41 }
 0x276   :  { %1003 = vrot.lane.b32.xlu1 %v7005_v49, %s6347_s9  ;;  %968 = vrot.lane.b32.xlu0 %v7015_v57, %s6348_s29 }
 0x278   :  { %v7077_v5 = vpop.permute.xlu1 %2003  ;;  %v7079_v39 = vpop.permute.xlu0 %2191 }
 0x279   :  { %11399 = vst [vmem:[#allocation76_spill] sm:$0xff] %v7077_v5  ;;  %11400 = vst [vmem:[#allocation77_spill] sm:$0xff] %v7079_v39  ;;  %v7094_v5 = vpop.f32.mrf.mxu0 }
 0x27a   :  { %970 = vrot.lane.b32.xlu1 %v7005_v49, %s6348_s29  ;;  %1199 = vrot.lane.b32.xlu0 %v927_v37, %s6341_s26  ;;  %11405 = vst [vmem:[#allocation82_spill] sm:$0xff] %v7094_v5 }
 0x27c   :  { %v7084_v44 = vpop.permute.xlu1 %2069  ;;  %v7086_v28 = vpop.permute.xlu0 %2095 }
 0x27d   :  { %11401 = vst [vmem:[#allocation78_spill] sm:$0xff] %v7084_v44  ;;  %11402 = vst [vmem:[#allocation79_spill] sm:$0xff] %v7086_v28  ;;  %v7111_v28 = vpop.f32.mrf.mxu1 }
 0x27e   :  { %1100 = vrot.lane.b32.xlu1 %v927_v37, %s6345_s1  ;;  %1166 = vrot.lane.b32.xlu0 %v927_v37, %s6343_s2  ;;  %11409 = vst [vmem:[#allocation86_spill] sm:$0xff] %v7111_v28 }
 0x27f   :  { %v933_v0 = vpop.f32.mrf.mxu1 }
 0x280   :  { %v7090_v41 = vpop.permute.xlu1 %2007  ;;  %v7092_v57 = vpop.permute.xlu0 %2163 }
 0x281   :  { %11403 = vst [vmem:[#allocation80_spill] sm:$0xff] %v7090_v41  ;;  %11404 = vst [vmem:[#allocation81_spill] sm:$0xff] %v7092_v57  ;;  %v7109_v57 = vpop.f32.mrf.mxu0 }
 0x282   :  { %1133 = vrot.lane.b32.xlu0 %v927_v37, %s6340_s25  ;;  %2197 = vrot.lane.b32.xlu1 %v7094_v5, %s6341_s26  ;;  %11408 = vst [vmem:[#allocation85_spill] sm:$0xff] %v7109_v57 }
 0x284   :  { %v1367_v39 = vpop.permute.xlu1 %1366  ;;  %v7099_v49 = vpop.permute.xlu0 %2035 }
 0x285   :  { %11406 = vst [vmem:[#allocation83_spill] sm:$0xff] %v7099_v49 }
 0x286   :  { %2165 = vrot.lane.b32.xlu0 %v7094_v5, %s6343_s2  ;;  %2133 = vrot.lane.b32.xlu1 %v7094_v5, %s6340_s25 }
 0x288   :  { %v7105_v44 = vpop.permute.xlu1 %1322  ;;  %v7107_v41 = vpop.permute.xlu0 %2099 }
 0x289   :  { %11407 = vst [vmem:[#allocation84_spill] sm:$0xff] %v7107_v41 }
 0x28a   :  { %2201 = vrot.lane.b32.xlu1 %v7111_v28, %s6341_s26  ;;  %2199 = vrot.lane.b32.xlu0 %v7109_v57, %s6341_s26 }
 0x28c   :  { %v7117_v37 = vpop.permute.xlu1 %1392  ;;  %v7119_v49 = vpop.permute.xlu0 %1971 }
 0x28d   :  { %11410 = vst [vmem:[#allocation87_spill] sm:$0xff] %v7117_v37  ;;  %11411 = vst [vmem:[#allocation88_spill] sm:$0xff] %v7119_v49 }
 0x28e   :  { %2101 = vrot.lane.b32.xlu1 %v7094_v5, %s6345_s1  ;;  %2135 = vrot.lane.b32.xlu0 %v7109_v57, %s6340_s25 }
 0x290   :  { %v1369_v41 = vpop.permute.xlu1 %1368  ;;  %v7125_v36 = vpop.permute.xlu0 %2039 }
 0x291   :  { %11412 = vst [vmem:[#allocation89_spill] sm:$0xff] %v7125_v36 }
 0x292   :  { %2169 = vrot.lane.b32.xlu1 %v7111_v28, %s6343_s2  ;;  %2203 = vrot.lane.b32.xlu0 %v933_v0, %s6341_s26 }
 0x294   :  { %v7130_v1 = vpop.permute.xlu1 %1348  ;;  %v7132_v6 = vpop.permute.xlu0 %1975 }
 0x295   :  { %11413 = vst [vmem:[#allocation90_spill] sm:$0xff] %v7132_v6 }
 0x296   :  { %2071 = vrot.lane.b32.xlu1 %v7094_v5, %s6342_s27  ;;  %2103 = vrot.lane.b32.xlu0 %v7109_v57, %s6345_s1 }
 0x298   :  { %v1325_v49 = vpop.permute.xlu1 %1324  ;;  %v1389_v62 = vpop.permute.xlu0 %1388 }
 0x29a   :  { %2137 = vrot.lane.b32.xlu1 %v7111_v28, %s6340_s25  ;;  %2171 = vrot.lane.b32.xlu0 %v933_v0, %s6343_s2 }
 0x29c   :  { %v7141_v36 = vpop.permute.xlu1 %1304  ;;  %v1345_v60 = vpop.permute.xlu0 %1344 }
 0x29e   :  { %2041 = vrot.lane.b32.xlu1 %v7094_v5, %s6346_s0  ;;  %2073 = vrot.lane.b32.xlu0 %v7109_v57, %s6342_s27 }
 0x2a0   :  { %v1281_v6 = vpop.permute.xlu1 %1280  ;;  %v1301_v24 = vpop.permute.xlu0 %1300 }
 0x2a2   :  { %2105 = vrot.lane.b32.xlu1 %v7111_v28, %s6345_s1  ;;  %2139 = vrot.lane.b32.xlu0 %v933_v0, %s6340_s25 }
 0x2a4   :  { %v1279_v21 = vpop.permute.xlu1 %1278  ;;  %v1391_v2 = vpop.permute.xlu0 %1390 }
 0x2a5   :  { %v1492_v50 = vsel %vm1410_vm8, %v1391_v2, %v7117_v37  ;;  %v1491_v32 = vsel %vm1410_vm8, %v1389_v62, %v1391_v2  ;;  %v1481_v62 = vsel %vm1410_vm8, %v1367_v39, %v1369_v41 }
 0x2a6   :  { %1609 = vmatprep.subr.mxu0 %v1492_v50  ;;  %2009 = vrot.lane.b32.xlu1 %v7094_v5, %s6347_s9 }
 0x2a7   :  { %2043 = vrot.lane.b32.xlu0 %v7109_v57, %s6346_s0  ;;  %1610 = vmatpush1.msra.mxu0 %v1491_v32 }
 0x2a8   :  { %v7157_v53 = vpop.permute.xlu1 %1260  ;;  %v7159_v33 = vpop.permute.xlu0 %1370 }
 0x2a9   :  { %v1482_v43 = vsel %vm1410_vm8, %v1369_v41, %v7159_v33  ;;  %v1171_v41 = vsel %vm1168_vm1, %v6617_v38, %v6833_v12  ;;  %v1105_v38 = vsel %vm1102_vm3, %v6631_v42, %v6841_v15  ;;  %v1441_v42 = vsel %vm1410_vm8, %v1279_v21, %v1281_v6 }
 0x2aa   :  { %1611 = vmatprep.subr.mxu0 %v1482_v43  ;;  %2075 = vrot.lane.b32.xlu1 %v7111_v28, %s6342_s27 }
 0x2ab   :  { %2107 = vrot.lane.b32.xlu0 %v933_v0, %s6345_s1  ;;  %1612 = vmatpush1.msra.mxu0 %v1481_v62 }
 0x2ac   :  { %v1237_v2 = vpop.permute.xlu1 %1236  ;;  %v1347_v50 = vpop.permute.xlu0 %1346 }
 0x2ad   :  { %v1472_v32 = vsel %vm1410_vm8, %v1347_v50, %v7130_v1  ;;  %v1471_v37 = vsel %vm1410_vm8, %v1345_v60, %v1347_v50  ;;  %v1204_v60 = vsel %vm1201_vm0, %v6603_v34, %v6803_v45  ;;  %v1138_v34 = vsel %vm1135_vm2, %v6675_v55, %v6811_v17 }
 0x2ae   :  { %1613 = vmatprep.subr.mxu0 %v1472_v32  ;;  %2167 = vrot.lane.b32.xlu1 %v7109_v57, %s6343_s2  ;;  %v1072_v55 = vsel %vm1069_vm4, %v6691_v59, %v6851_v9  ;;  %v1009_v59 = vsel %vm1005_vm6, %v6663_v51, %v6819_v23 }
 0x2af   :  { %2011 = vrot.lane.b32.xlu0 %v7109_v57, %s6347_s9  ;;  %1614 = vmatpush1.msra.mxu0 %v1471_v37  ;;  %v1461_v37 = vsel %vm1410_vm8, %v7105_v44, %v1325_v49 }
 0x2b0   :  { %v1235_v43 = vpop.permute.xlu1 %1234  ;;  %v7174_v39 = vpop.permute.xlu0 %1326 }
 0x2b1   :  { %v1462_v0 = vsel %vm1410_vm8, %v1325_v49, %v7174_v39 }
 0x2b2   :  { %1615 = vmatprep.subr.mxu0 %v1462_v0  ;;  %1372 = vrot.lane.b32.xlu1 %v1171_v41, %s6344_s28 }
 0x2b3   :  { %1394 = vrot.lane.b32.xlu0 %v1204_v60, %s6344_s28  ;;  %1616 = vmatpush1.msra.mxu0 %v1461_v37 }
 0x2b4   :  { %v1303_v62 = vpop.permute.xlu0 %1302  ;;  %v7188_v50 = vpop.permute.xlu1 %1193 }
 0x2b5   :  { %v1452_v32 = vsel %vm1410_vm8, %v1303_v62, %v7141_v36  ;;  %v1451_v0 = vsel %vm1410_vm8, %v1301_v24, %v1303_v62  ;;  %v1042_v24 = vsel %vm1038_vm5, %v6649_v48, %v6861_v25  ;;  %v976_v48 = vsel %vm972_vm7, %v6681_v56, %v6827_v22 }
 0x2b6   :  { %1617 = vmatprep.subr.mxu0 %v1452_v32  ;;  %1328 = vrot.lane.b32.xlu1 %v1105_v38, %s6344_s28  ;;  %v1205_v38 = vsel %vm1201_vm0, %v6803_v45, %v6883_v14  ;;  %v1172_v56 = vsel %vm1168_vm1, %v6833_v12, %v6913_v7  ;;  %v1139_v45 = vsel %vm1135_vm2, %v6811_v17, %v6893_v18  ;;  %v7260_v17 = vld [vmem:[%s11087_s3] sm:$0xff] }
 0x2b7   :  { %1350 = vrot.lane.b32.xlu0 %v1138_v34, %s6344_s28  ;;  %1618 = vmatpush1.msra.mxu0 %v1451_v0  ;;  %v1106_v12 = vsel %vm1102_vm3, %v6841_v15, %v6925_v27  ;;  %v1411_v15 = vsel %vm1410_vm8, %v6647_v47, %v6701_v63 }
 0x2b8   :  { %v7201_v44 = vpop.permute.xlu0 %1282  ;;  %v7203_v49 = vpop.permute.xlu1 %1160 }
 0x2b9   :  { %v1442_v41 = vsel %vm1410_vm8, %v1281_v6, %v7201_v44 }
 0x2ba   :  { %1619 = vmatprep.subr.mxu0 %v1442_v41  ;;  %1284 = vrot.lane.b32.xlu1 %v1042_v24, %s6344_s28  ;;  %v1421_v41 = vsel %vm1410_vm8, %v1235_v43, %v1237_v2  ;;  %v1412_v24 = vsel %vm1410_vm8, %v6701_v63, %v6592_v30 }
 0x2bb   :  { %1306 = vrot.lane.b32.xlu0 %v1072_v55, %s6344_s28  ;;  %1620 = vmatpush1.msra.mxu0 %v1441_v42  ;;  %v11173_v42 = vmov 0.0   ;;  %v1073_v55 = vsel %vm1069_vm4, %v6851_v9, %v6937_v29  ;;  %v1010_v9 = vsel %vm1005_vm6, %v6819_v23, %v6903_v19  ;;  %v1207_v23 = vsel %vm1201_vm0, %v6835_v3, %v6927_v46 }
 0x2bc   :  { %v1259_v60 = vpop.permute.xlu0 %1258  ;;  %v7216_v37 = vpop.permute.xlu1 %1127  ;;  %1659 = vmatprep.mubr.f32.mxu0 %v11173_v42  ;;  %1730 = vmatprep.mubr.f32.mxu1 %v11173_v42 }
 0x2bd   :  { %v1432_v62 = vsel %vm1410_vm8, %v1259_v60, %v7157_v53 }
 0x2be   :  { %1621 = vmatprep.subr.mxu0 %v1432_v62  ;;  %1240 = vrot.lane.b32.xlu1 %v976_v48, %s6344_s28 }
 0x2bf   :  { %1262 = vrot.lane.b32.xlu0 %v1009_v59, %s6344_s28  ;;  %v1206_v59 = vsel %vm1201_vm0, %v6883_v14, %v6835_v3  ;;  %v1174_v14 = vsel %vm1168_vm1, %v6843_v61, %v6939_v58 }
 0x2c0   :  { %v1257_v6 = vpop.permute.xlu0 %1256  ;;  %v7228_v21 = vpop.permute.xlu1 %1094 }
 0x2c1   :  { %v1431_v32 = vsel %vm1410_vm8, %v1257_v6, %v1259_v60  ;;  %v1043_v60 = vsel %vm1038_vm5, %v6861_v25, %v6949_v26  ;;  %v977_v25 = vsel %vm972_vm7, %v6827_v22, %v6915_v10 }
 0x2c2   :  { %1622 = vmatpush1.msra.mxu0 %v1431_v32  ;;  %1396 = vrot.lane.b32.xlu1 %v1205_v38, %s6344_s28  ;;  %v1173_v32 = vsel %vm1168_vm1, %v6913_v7, %v6843_v61  ;;  %v1141_v7 = vsel %vm1135_vm2, %v6853_v20, %v6951_v52 }
 0x2c3   :  { %1374 = vrot.lane.b32.xlu0 %v1172_v56, %s6344_s28  ;;  %v1140_v56 = vsel %vm1135_vm2, %v6893_v18, %v6853_v20  ;;  %v1108_v18 = vsel %vm1102_vm3, %v6863_v11, %v6961_v31 }
 0x2c4   :  { %v7239_v51 = vpop.permute.xlu0 %1238  ;;  %v7241_v0 = vpop.permute.xlu1 %1063 }
 0x2c5   :  { %v1422_v34 = vsel %vm1410_vm8, %v1237_v2, %v7239_v51 }
 0x2c6   :  { %1623 = vmatprep.subr.mxu0 %v1422_v34  ;;  %1352 = vrot.lane.b32.xlu1 %v1139_v45, %s6344_s28  ;;  %v1107_v45 = vsel %vm1102_vm3, %v6925_v27, %v6863_v11  ;;  %v1074_v27 = vsel %vm1069_vm4, %v6937_v29, %v6873_v8 }
 0x2c7   :  { %1330 = vrot.lane.b32.xlu0 %v1106_v12, %s6344_s28  ;;  %1624 = vmatpush1.msra.mxu0 %v1421_v41  ;;  %v1075_v12 = vsel %vm1069_vm4, %v6873_v8, %v6971_v13  ;;  %v1044_v8 = vsel %vm1038_vm5, %v6949_v26, %v6881_v16 }
 0x2c8   :  { %1625 = vmatprep.subr.mxu0 %v1412_v24  ;;  %v7262_v2 = vpop.permute.xlu0 %1098  ;;  %v7264_v43 = vpop.permute.xlu1 %1032 }
 0x2c9   :  { %1626 = vmatpush1.msra.mxu0 %v1411_v15 }
 0x2ca   :  { %1308 = vrot.lane.b32.xlu1 %v1073_v55, %s6344_s28  ;;  %6059 = vmatmul.mubr.msk.f32.vlgmr.msra.gmra.mxu0 %vm1591_vm9, %v7260_v17 }
 0x2cb   :  { %1286 = vrot.lane.b32.xlu0 %v1043_v60, %s6344_s28  ;;  %1801 = vmatprep.mubr.f32.mxu0 %v11173_v42 }
 0x2cc   :  { %v7282_v47 = vpop.permute.xlu1 %999  ;;  %v7284_v63 = vpop.permute.xlu0 %1195 }
 0x2ce   :  { %1264 = vrot.lane.b32.xlu1 %v1010_v9, %s6344_s28  ;;  %v1045_v9 = vsel %vm1038_vm5, %v6881_v16, %v6981_v35 }
 0x2cf   :  { %1242 = vrot.lane.b32.xlu0 %v977_v25, %s6344_s28 }
 0x2d0   :  { %v7294_v62 = vpop.permute.xlu1 %966  ;;  %v7296_v48 = vpop.permute.xlu0 %1162 }
 0x2d2   :  { %1398 = vrot.lane.b32.xlu1 %v1206_v59, %s6344_s28  ;;  %v1012_v59 = vsel %vm1005_vm6, %v6891_v40, %v6991_v54 }
 0x2d3   :  { %1400 = vrot.lane.b32.xlu0 %v1207_v23, %s6344_s28  ;;  %v1011_v23 = vsel %vm1005_vm6, %v6903_v19, %v6891_v40  ;;  %v11414_v40 = vld [vmem:[#allocation16_spill] sm:$0xff] }
 0x2d4   :  { %v7306_v6 = vpop.permute.xlu1 %1197  ;;  %v7308_v22 = vpop.permute.xlu0 %1129  ;;  %v11415_v19 = vld [vmem:[#allocation56_spill] sm:$0xff] }
 0x2d6   :  { %1376 = vrot.lane.b32.xlu1 %v1173_v32, %s6344_s28 }
 0x2d7   :  { %1378 = vrot.lane.b32.xlu0 %v1174_v14, %s6344_s28  ;;  %v978_v14 = vsel %vm972_vm7, %v6915_v10, %v6901_v4 }
 0x2d8   :  { %v7318_v38 = vpop.permute.xlu1 %1164  ;;  %v7320_v3 = vpop.permute.xlu0 %1096 }
 0x2da   :  { %1354 = vrot.lane.b32.xlu1 %v1140_v56, %s6344_s28 }
 0x2db   :  { %1356 = vrot.lane.b32.xlu0 %v1141_v7, %s6344_s28 }
 0x2dc   :  { %v7330_v34 = vpop.permute.xlu1 %1131  ;;  %v7332_v61 = vpop.permute.xlu0 %1065 }
 0x2de   :  { %1332 = vrot.lane.b32.xlu1 %v1107_v45, %s6344_s28  ;;  %v979_v45 = vsel %vm972_vm7, %v6901_v4, %v11415_v19  ;;  %v1208_v4 = vsel %vm1201_vm0, %v6927_v46, %v7188_v50  ;;  %v1076_v46 = vsel %vm1069_vm4, %v6971_v13, %v7241_v0 }
 0x2df   :  { %1334 = vrot.lane.b32.xlu0 %v1108_v18, %s6344_s28 }
 0x2e0   :  { %v7342_v41 = vpop.permute.xlu1 %1067  ;;  %v7344_v20 = vpop.permute.xlu0 %1034 }
 0x2e2   :  { %1312 = vrot.lane.b32.xlu1 %v1075_v12, %s6344_s28  ;;  %v11416_v12 = vld [vmem:[#allocation17_spill] sm:$0xff] }
 0x2e3   :  { %1310 = vrot.lane.b32.xlu0 %v1074_v27, %s6344_s28  ;;  %v11417_v27 = vld [vmem:[#allocation15_spill] sm:$0xff] }
 0x2e4   :  { %v7354_v24 = vpop.permute.xlu1 %1036  ;;  %v7356_v11 = vpop.permute.xlu0 %1001 }
 0x2e6   :  { %1979 = vrot.lane.b32.xlu1 %v7109_v57, %s6348_s29  ;;  %v11458_v57 = vld [vmem:[#allocation59_spill] sm:$0xff] }
 0x2e7   :  { %1977 = vrot.lane.b32.xlu0 %v7094_v5, %s6348_s29 }
 0x2e8   :  { %v7362_v15 = vpop.permute.xlu1 %1003  ;;  %v7364_v55 = vpop.permute.xlu0 %968 }
 0x2ea   :  { %1288 = vrot.lane.b32.xlu1 %v1044_v8, %s6344_s28 }
 0x2eb   :  { %2045 = vrot.lane.b32.xlu0 %v7111_v28, %s6346_s0 }
 0x2ec   :  { %v7372_v29 = vpop.permute.xlu1 %970  ;;  %v7374_v60 = vpop.permute.xlu0 %1199 }
 0x2ee   :  { %2013 = vrot.lane.b32.xlu1 %v7111_v28, %s6347_s9 }
 0x2ef   :  { %1290 = vrot.lane.b32.xlu0 %v1045_v9, %s6344_s28 }
 0x2f0   :  { %v7382_v25 = vpop.permute.xlu1 %1100  ;;  %v7384_v26 = vpop.permute.xlu0 %1166 }
 0x2f2   :  { %1268 = vrot.lane.b32.xlu1 %v1012_v59, %s6344_s28  ;;  %v1142_v59 = vsel %vm1135_vm2, %v6951_v52, %v7216_v37 }
 0x2f3   :  { %1266 = vrot.lane.b32.xlu0 %v1011_v23, %s6344_s28 }
 0x2f4   :  { %v7394_v32 = vpop.permute.xlu0 %1133  ;;  %v7396_v16 = vpop.permute.xlu1 %2197 }
 0x2f6   :  { %1244 = vrot.lane.b32.xlu1 %v978_v14, %s6344_s28 }
 0x2f7   :  { %1981 = vrot.lane.b32.xlu0 %v7111_v28, %s6348_s29  ;;  %v11461_v28 = vld [vmem:[#allocation67_spill] sm:$0xff] }
 0x2f8   :  { %v7404_v56 = vpop.permute.xlu0 %2165  ;;  %v7406_v7 = vpop.permute.xlu1 %2133 }
 0x2fa   :  { %1222 = vrot.lane.b32.xlu1 %v11414_v40, %s6344_s28  ;;  %v1175_v40 = vsel %vm1168_vm1, %v6939_v58, %v7203_v49  ;;  %v1209_v58 = vsel %vm1201_vm0, %v7188_v50, %v7284_v63 }
 0x2fb   :  { %1246 = vrot.lane.b32.xlu0 %v979_v45, %s6344_s28 }
 0x2fc   :  { %v7414_v18 = vpop.permute.xlu1 %2201  ;;  %v7416_v10 = vpop.permute.xlu0 %2199 }
 0x2fe   :  { %1226 = vrot.lane.b32.xlu1 %v11416_v12, %s6344_s28  ;;  %v1109_v12 = vsel %vm1102_vm3, %v6961_v31, %v7228_v21  ;;  %v1176_v31 = vsel %vm1168_vm1, %v7203_v49, %v7296_v48 }
 0x2ff   :  { %1224 = vrot.lane.b32.xlu0 %v11417_v27, %s6344_s28 }
 0x300   :  { %v7422_v8 = vpop.permute.xlu1 %2101  ;;  %v7424_v9 = vpop.permute.xlu0 %2135 }
 0x302   :  { %1402 = vrot.lane.b32.xlu1 %v1208_v4, %s6344_s28  ;;  %v1046_v4 = vsel %vm1038_vm5, %v6981_v35, %v7264_v43  ;;  %v1110_v35 = vsel %vm1102_vm3, %v7228_v21, %v7320_v3 }
 0x303   :  { %1358 = vrot.lane.b32.xlu0 %v1142_v59, %s6344_s28 }
 0x304   :  { %v7434_v23 = vpop.permute.xlu1 %2169  ;;  %v7436_v14 = vpop.permute.xlu0 %2203 }
 0x306   :  { %1380 = vrot.lane.b32.xlu1 %v1175_v40, %s6344_s28  ;;  %v1013_v40 = vsel %vm1005_vm6, %v6991_v54, %v7282_v47  ;;  %v1047_v54 = vsel %vm1038_vm5, %v7264_v43, %v7344_v20 }
 0x307   :  { %1314 = vrot.lane.b32.xlu0 %v1076_v46, %s6344_s28 }
 0x308   :  { %v7446_v45 = vpop.permute.xlu1 %2071  ;;  %v7448_v52 = vpop.permute.xlu0 %2103 }
 0x30a   :  { %1336 = vrot.lane.b32.xlu1 %v1109_v12, %s6344_s28  ;;  %v980_v12 = vsel %vm972_vm7, %v11415_v19, %v7294_v62  ;;  %v1014_v19 = vsel %vm1005_vm6, %v7282_v47, %v7356_v11 }
 0x30b   :  { %1404 = vrot.lane.b32.xlu0 %v1209_v58, %s6344_s28 }
 0x30c   :  { %v7458_v27 = vpop.permute.xlu1 %2137  ;;  %v7460_v13 = vpop.permute.xlu0 %2171 }
 0x30e   :  { %1292 = vrot.lane.b32.xlu1 %v1046_v4, %s6344_s28  ;;  %v1143_v4 = vsel %vm1135_vm2, %v7216_v37, %v7308_v22  ;;  %v981_v37 = vsel %vm972_vm7, %v7294_v62, %v7364_v55 }
 0x30f   :  { %1382 = vrot.lane.b32.xlu0 %v1176_v31, %s6344_s28 }
 0x310   :  { %v7470_v59 = vpop.permute.xlu1 %2041  ;;  %v7472_v50 = vpop.permute.xlu0 %2073 }
 0x312   :  { %1270 = vrot.lane.b32.xlu1 %v1013_v40, %s6344_s28  ;;  %v1077_v40 = vsel %vm1069_vm4, %v7241_v0, %v7332_v61  ;;  %v1211_v0 = vsel %vm1201_vm0, %v7306_v6, %v7374_v60  ;;  %v1178_v60 = vsel %vm1168_vm1, %v7318_v38, %v7384_v26  ;;  %v11421_v26 = vld [vmem:[#allocation45_spill] sm:$0xff] }
 0x313   :  { %1338 = vrot.lane.b32.xlu0 %v1110_v35, %s6344_s28 }
 0x314   :  { %v7482_v46 = vpop.permute.xlu1 %2105  ;;  %v7484_v49 = vpop.permute.xlu0 %2139 }
 0x316   :  { %1248 = vrot.lane.b32.xlu1 %v980_v12, %s6344_s28  ;;  %v1210_v12 = vsel %vm1201_vm0, %v7284_v63, %v7306_v6  ;;  %v1144_v6 = vsel %vm1135_vm2, %v7308_v22, %v7330_v34 }
 0x317   :  { %1294 = vrot.lane.b32.xlu0 %v1047_v54, %s6344_s28 }
 0x318   :  { %v7494_v58 = vpop.permute.xlu1 %2009 }
 0x319   :  { %v7496_v21 = vpop.permute.xlu0 %2043 }
 0x31a   :  { %1360 = vrot.lane.b32.xlu1 %v1143_v4, %s6344_s28  ;;  %v1177_v4 = vsel %vm1168_vm1, %v7296_v48, %v7318_v38 }
 0x31b   :  { %1272 = vrot.lane.b32.xlu0 %v1014_v19, %s6344_s28  ;;  %v11418_v19 = vld [vmem:[#allocation51_spill] sm:$0xff] }
 0x31c   :  { %v7506_v31 = vpop.permute.xlu1 %2075 }
 0x31d   :  { %v7508_v43 = vpop.permute.xlu0 %2107 }
 0x31e   :  { %1316 = vrot.lane.b32.xlu1 %v1077_v40, %s6344_s28 }
 0x31f   :  { %1250 = vrot.lane.b32.xlu0 %v981_v37, %s6344_s28 }
 0x320   :  { %v7518_v35 = vpop.permute.xlu1 %2167 }
 0x321   :  { %v7520_v47 = vpop.permute.xlu0 %2011 }
 0x322   :  { %1406 = vrot.lane.b32.xlu1 %v1210_v12, %s6344_s28  ;;  %v11419_v12 = vld [vmem:[#allocation22_spill] sm:$0xff] }
 0x323   :  { %1408 = vrot.lane.b32.xlu0 %v1211_v0, %s6344_s28  ;;  %v11420_v0 = vld [vmem:[#allocation43_spill] sm:$0xff] }
 0x324   :  { %v1373_v54 = vpop.permute.xlu1 %1372 }
 0x325   :  { %v1395_v62 = vpop.permute.xlu0 %1394 }
 0x326   :  { %1384 = vrot.lane.b32.xlu1 %v1177_v4, %s6344_s28  ;;  %v2205_v4 = vsel %vm1201_vm0, %v11420_v0, %v11419_v12 }
 0x327   :  { %1228 = vrot.lane.b32.xlu0 %v11418_v19, %s6344_s28  ;;  %v1145_v19 = vsel %vm1135_vm2, %v7330_v34, %v7394_v32  ;;  %v1112_v34 = vsel %vm1102_vm3, %v7262_v2, %v7382_v25 }
 0x328   :  { %v1329_v63 = vpop.permute.xlu1 %1328 }
 0x329   :  { %v1351_v40 = vpop.permute.xlu0 %1350 }
 0x32a   :  { %1362 = vrot.lane.b32.xlu1 %v1144_v6, %s6344_s28  ;;  %v2206_v6 = vsel %vm1201_vm0, %v11419_v12, %v11421_v26 }
 0x32b   :  { %1386 = vrot.lane.b32.xlu0 %v1178_v60, %s6344_s28 }
 0x32c   :  { %v1285_v48 = vpop.permute.xlu1 %1284 }
 0x32d   :  { %v1307_v37 = vpop.permute.xlu0 %1306 }
 0x32e   :  { %2393 = vrot.lane.b32.xlu1 %v2205_v4, %s6344_s28 }
 0x32f   :  { %1364 = vrot.lane.b32.xlu0 %v1145_v19, %s6344_s28  ;;  %v11422_v19 = vld [vmem:[#allocation87_spill] sm:$0xff] }
 0x330   :  { %v1241_v22 = vpop.permute.xlu1 %1240  ;;  %v1493_v12 = vsel %vm1410_vm8, %v11422_v19, %v1395_v62 }
 0x331   :  { %v1263_v38 = vpop.permute.xlu0 %1262 }
 0x332   :  { %2391 = vrot.lane.b32.xlu1 %v11420_v0, %s6344_s28  ;;  %v1111_v0 = vsel %vm1102_vm3, %v7320_v3, %v7262_v2  ;;  %v11423_v2 = vld [vmem:[#allocation27_spill] sm:$0xff]  ;;  %v11424_v3 = vld [vmem:[#allocation20_spill] sm:$0xff] }
 0x333   :  { %2395 = vrot.lane.b32.xlu0 %v2206_v6, %s6344_s28 }
 0x334   :  { %v1397_v60 = vpop.permute.xlu1 %1396 }
 0x335   :  { %v7561_v32 = vpop.permute.xlu0 %1374  ;;  %v1494_v4 = vsel %vm1410_vm8, %v1395_v62, %v1397_v60 }
 0x336   :  { %1342 = vrot.lane.b32.xlu1 %v1112_v34, %s6344_s28  ;;  %1680 = vmatprep.subr.mxu1 %v1494_v4  ;;  %v1484_v25 = vsel %vm1410_vm8, %v1373_v54, %v7561_v32  ;;  %v1483_v34 = vsel %vm1410_vm8, %v7159_v33, %v1373_v54  ;;  %v2174_v4 = vsel %vm1168_vm1, %v11424_v3, %v11423_v2 }
 0x337   :  { %1340 = vrot.lane.b32.xlu0 %v1111_v0, %s6344_s28  ;;  %1681 = vmatpush1.msra.mxu1 %v1493_v12  ;;  %v11425_v0 = vld [vmem:[#allocation25_spill] sm:$0xff]  ;;  %v1473_v33 = vsel %vm1410_vm8, %v7130_v1, %v1351_v40 }
 0x338   :  { %v7573_v6 = vpop.permute.xlu1 %1352  ;;  %1682 = vmatprep.subr.mxu1 %v1484_v25  ;;  %v2173_v19 = vsel %vm1168_vm1, %v11425_v0, %v11424_v3  ;;  %v1463_v25 = vsel %vm1410_vm8, %v7174_v39, %v1329_v63  ;;  %v1078_v3 = vsel %vm1069_vm4, %v7332_v61, %v7342_v41  ;;  %v1443_v61 = vsel %vm1410_vm8, %v7201_v44, %v1285_v48 }
 0x339   :  { %v7577_v42 = vpop.permute.xlu0 %1330  ;;  %1683 = vmatpush1.msra.mxu1 %v1483_v34  ;;  %v1474_v62 = vsel %vm1410_vm8, %v1351_v40, %v7573_v6  ;;  %v1453_v40 = vsel %vm1410_vm8, %v7141_v36, %v1307_v37 }
 0x33a   :  { %2373 = vrot.lane.b32.xlu1 %v2174_v4, %s6344_s28  ;;  %1684 = vmatprep.subr.mxu1 %v1474_v62  ;;  %v1464_v54 = vsel %vm1410_vm8, %v1329_v63, %v7577_v42  ;;  %v11426_v62 = vld [vmem:[#allocation21_spill] sm:$0xff] }
 0x33b   :  { %2371 = vrot.lane.b32.xlu0 %v2173_v19, %s6344_s28  ;;  %1685 = vmatpush1.msra.mxu1 %v1473_v33  ;;  %v11427_v19 = vld [vmem:[#allocation29_spill] sm:$0xff]  ;;  %v1423_v33 = vsel %vm1410_vm8, %v7239_v51, %v1241_v22 }
 0x33c   :  { %v7593_v12 = vpop.permute.xlu1 %1308  ;;  %1686 = vmatprep.subr.mxu1 %v1464_v54  ;;  %v2141_v36 = vsel %vm1135_vm2, %v11427_v19, %v11426_v62 }
 0x33d   :  { %v7597_v34 = vpop.permute.xlu0 %1286  ;;  %1687 = vmatpush1.msra.mxu1 %v1463_v25  ;;  %v1454_v1 = vsel %vm1410_vm8, %v1307_v37, %v7593_v12  ;;  %v11428_v25 = vld [vmem:[#allocation50_spill] sm:$0xff] }
 0x33e   :  { %1318 = vrot.lane.b32.xlu1 %v1078_v3, %s6344_s28  ;;  %1688 = vmatprep.subr.mxu1 %v1454_v1  ;;  %v1444_v39 = vsel %vm1410_vm8, %v1285_v48, %v7597_v34  ;;  %v11429_v3 = vld [vmem:[#allocation18_spill] sm:$0xff] }
 0x33f   :  { %2369 = vrot.lane.b32.xlu0 %v11425_v0, %s6344_s28  ;;  %1689 = vmatpush1.msra.mxu1 %v1453_v40  ;;  %v1433_v0 = vsel %vm1410_vm8, %v7157_v53, %v1263_v38  ;;  %v1414_v1 = vsel %vm1410_vm8, %v11429_v3, %v11428_v25 }
 0x340   :  { %v7611_v63 = vpop.permute.xlu1 %1264  ;;  %1690 = vmatprep.subr.mxu1 %v1444_v39 }
 0x341   :  { %v7615_v4 = vpop.permute.xlu0 %1242  ;;  %1691 = vmatpush1.msra.mxu1 %v1443_v61  ;;  %v1434_v37 = vsel %vm1410_vm8, %v1263_v38, %v7611_v63  ;;  %v1048_v61 = vsel %vm1038_vm5, %v7344_v20, %v7354_v24  ;;  %v11434_v20 = vld [vmem:[#allocation33_spill] sm:$0xff] }
 0x342   :  { %2349 = vrot.lane.b32.xlu1 %v2141_v36, %s6344_s28  ;;  %1692 = vmatprep.subr.mxu1 %v1434_v37  ;;  %v1424_v44 = vsel %vm1410_vm8, %v1241_v22, %v7615_v4  ;;  %v1413_v22 = vsel %vm1410_vm8, %v6592_v30, %v11429_v3  ;;  %v11432_v36 = vld [vmem:[#allocation35_spill] sm:$0xff]  ;;  %v11433_v37 = vld [vmem:[#allocation24_spill] sm:$0xff] }
 0x343   :  { %1320 = vrot.lane.b32.xlu0 %v7342_v41, %s6344_s28  ;;  %1693 = vmatpush1.msra.mxu1 %v1433_v0  ;;  %v11430_v41 = vld [vmem:[#allocation31_spill] sm:$0xff]  ;;  %v2110_v0 = vsel %vm1102_vm3, %v11433_v37, %v11432_v36 }
 0x344   :  { %v1399_v48 = vpop.permute.xlu1 %1398  ;;  %1694 = vmatprep.subr.mxu1 %v1424_v44  ;;  %v2142_v38 = vsel %vm1135_vm2, %v11426_v62, %v11430_v41  ;;  %v11431_v62 = vmov 0.0  }
 0x345   :  { %v7631_v54 = vpop.permute.xlu0 %1400  ;;  %1695 = vmatpush1.msra.mxu1 %v1423_v33  ;;  %v1495_v53 = vsel %vm1410_vm8, %v1397_v60, %v1399_v48 }
 0x346   :  { %2347 = vrot.lane.b32.xlu1 %v11427_v19, %s6344_s28  ;;  %1696 = vmatprep.subr.mxu1 %v1414_v1  ;;  %v1496_v51 = vsel %vm1410_vm8, %v1399_v48, %v7631_v54 }
 0x347   :  { %2351 = vrot.lane.b32.xlu0 %v2142_v38, %s6344_s28  ;;  %1751 = vmatprep.subr.mxu0 %v1496_v51 }
 0x348   :  { %1697 = vmatpush1.msra.mxu1 %v1413_v22  ;;  %1752 = vmatpush1.msra.mxu0 %v1495_v53  ;;  %v1377_v60 = vpop.permute.xlu1 %1376  ;;  %v11435_v22 = vld [vmem:[#allocation26_spill] sm:$0xff] }
 0x349   :  { %v7648_v40 = vpop.permute.xlu0 %1378  ;;  %v1485_v39 = vsel %vm1410_vm8, %v7561_v32, %v1377_v60  ;;  %6060 = vmatmul.mubr.msk.f32.vlgmr.msra.gmra.mxu1 %vm1591_vm9, %v7260_v17 }
 0x34a   :  { %1298 = vrot.lane.b32.xlu1 %v7354_v24, %s6344_s28  ;;  %v1486_v30 = vsel %vm1410_vm8, %v1377_v60, %v7648_v40  ;;  %1872 = vmatprep.mubr.f32.mxu1 %v11431_v62  ;;  %v2109_v24 = vsel %vm1102_vm3, %v11434_v20, %v11433_v37  ;;  %v11436_v60 = vld [vmem:[#allocation38_spill] sm:$0xff] }
 0x34b   :  { %1296 = vrot.lane.b32.xlu0 %v1048_v61, %s6344_s28  ;;  %1753 = vmatprep.subr.mxu0 %v1486_v30 }
 0x34c   :  { %1754 = vmatpush1.msra.mxu0 %v1485_v39  ;;  %v1355_v32 = vpop.permute.xlu1 %1354 }
 0x34d   :  { %v7663_v19 = vpop.permute.xlu0 %1356  ;;  %v1475_v44 = vsel %vm1410_vm8, %v7573_v6, %v1355_v32  ;;  %v1015_v6 = vsel %vm1005_vm6, %v7356_v11, %v7362_v15  ;;  %v2077_v11 = vsel %vm1069_vm4, %v11436_v60, %v11435_v22 }
 0x34e   :  { %2329 = vrot.lane.b32.xlu1 %v2110_v0, %s6344_s28  ;;  %v1476_v48 = vsel %vm1410_vm8, %v1355_v32, %v7663_v19  ;;  %v11437_v32 = vld [vmem:[#allocation40_spill] sm:$0xff] }
 0x34f   :  { %2327 = vrot.lane.b32.xlu0 %v2109_v24, %s6344_s28  ;;  %1755 = vmatprep.subr.mxu0 %v1476_v48  ;;  %v2078_v37 = vsel %vm1069_vm4, %v11435_v22, %v11437_v32  ;;  %v11440_v24 = vld [vmem:[#allocation44_spill] sm:$0xff]  ;;  %v11443_v22 = vld [vmem:[#allocation61_spill] sm:$0xff] }
 0x350   :  { %1756 = vmatpush1.msra.mxu0 %v1475_v44  ;;  %v1333_v33 = vpop.permute.xlu1 %1332  ;;  %v11441_v48 = vld [vmem:[#allocation28_spill] sm:$0xff] }
 0x351   :  { %v7677_v3 = vpop.permute.xlu0 %1334  ;;  %v1465_v1 = vsel %vm1410_vm8, %v7577_v42, %v1333_v33 }
 0x352   :  { %1274 = vrot.lane.b32.xlu1 %v1015_v6, %s6344_s28  ;;  %v1466_v53 = vsel %vm1410_vm8, %v1333_v33, %v7677_v3  ;;  %v2049_v33 = vsel %vm1038_vm5, %v11441_v48, %v11440_v24  ;;  %v11442_v6 = vld [vmem:[#allocation42_spill] sm:$0xff] }
 0x353   :  { %2325 = vrot.lane.b32.xlu0 %v11434_v20, %s6344_s28  ;;  %1757 = vmatprep.subr.mxu0 %v1466_v53 }
 0x354   :  { %1758 = vmatpush1.msra.mxu0 %v1465_v1  ;;  %v7689_v38 = vpop.permute.xlu1 %1312  ;;  %v2048_v1 = vsel %vm1038_vm5, %v11442_v6, %v11441_v48 }
 0x355   :  { %v1311_v51 = vpop.permute.xlu0 %1310 }
 0x356   :  { %2305 = vrot.lane.b32.xlu1 %v2077_v11, %s6344_s28  ;;  %v1456_v42 = vsel %vm1410_vm8, %v1311_v51, %v7689_v38  ;;  %v1455_v39 = vsel %vm1410_vm8, %v7593_v12, %v1311_v51 }
 0x357   :  { %1276 = vrot.lane.b32.xlu0 %v7362_v15, %s6344_s28  ;;  %1759 = vmatprep.subr.mxu0 %v1456_v42  ;;  %v982_v15 = vsel %vm972_vm7, %v7364_v55, %v7372_v29 }
 0x358   :  { %1760 = vmatpush1.msra.mxu0 %v1455_v39  ;;  %v7701_v61 = vpop.permute.xlu1 %1979 }
 0x359   :  { %v7703_v30 = vpop.permute.xlu0 %1977 }
 0x35a   :  { %2303 = vrot.lane.b32.xlu1 %v11436_v60, %s6344_s28  ;;  %v11444_v60 = vld [vmem:[#allocation30_spill] sm:$0xff] }
 0x35b   :  { %2307 = vrot.lane.b32.xlu0 %v2078_v37, %s6344_s28  ;;  %v2047_v11 = vsel %vm1038_vm5, %v11444_v60, %v11442_v6 }
 0x35c   :  { %v1289_v0 = vpop.permute.xlu1 %1288 }
 0x35d   :  { %v7711_v12 = vpop.permute.xlu0 %2045  ;;  %v1445_v55 = vsel %vm1410_vm8, %v7597_v34, %v1289_v0 }
 0x35e   :  { %11438 = vst [vmem:[#allocation16_spill] sm:$0xff] %v7711_v12  ;;  %1254 = vrot.lane.b32.xlu1 %v7372_v29, %s6344_s28 }
 0x35f   :  { %1252 = vrot.lane.b32.xlu0 %v982_v15, %s6344_s28  ;;  %v11447_v15 = vld [vmem:[#allocation46_spill] sm:$0xff] }
 0x360   :  { %v7719_v44 = vpop.permute.xlu1 %2013 }
 0x361   :  { %11439 = vst [vmem:[#allocation56_spill] sm:$0xff] %v7719_v44  ;;  %v7721_v20 = vpop.permute.xlu0 %1290 }
 0x362   :  { %2285 = vrot.lane.b32.xlu1 %v2049_v33, %s6344_s28  ;;  %v1446_v53 = vsel %vm1410_vm8, %v1289_v0, %v7721_v20  ;;  %v11446_v0 = vld [vmem:[#allocation32_spill] sm:$0xff]  ;;  %v11448_v33 = vld [vmem:[#allocation58_spill] sm:$0xff] }
 0x363   :  { %2283 = vrot.lane.b32.xlu0 %v2048_v1, %s6344_s28  ;;  %1761 = vmatprep.subr.mxu0 %v1446_v53  ;;  %v2016_v48 = vsel %vm1005_vm6, %v11447_v15, %v11446_v0 }
 0x364   :  { %1762 = vmatpush1.msra.mxu0 %v1445_v55  ;;  %v7735_v29 = vpop.permute.xlu1 %1268  ;;  %v11450_v55 = vld [vmem:[#allocation47_spill] sm:$0xff] }
 0x365   :  { %v1267_v51 = vpop.permute.xlu0 %1266 }
 0x366   :  { %1230 = vrot.lane.b32.xlu1 %v11443_v22, %s6344_s28  ;;  %v1436_v42 = vsel %vm1410_vm8, %v1267_v51, %v7735_v29  ;;  %v1435_v39 = vsel %vm1410_vm8, %v7611_v63, %v1267_v51  ;;  %v11449_v63 = vld [vmem:[#allocation34_spill] sm:$0xff]  ;;  %v2017_v51 = vsel %vm1005_vm6, %v11446_v0, %v11450_v55  ;;  %v11453_v0 = vld [vmem:[#allocation48_spill] sm:$0xff] }
 0x367   :  { %2281 = vrot.lane.b32.xlu0 %v2047_v11, %s6344_s28  ;;  %1763 = vmatprep.subr.mxu0 %v1436_v42  ;;  %v2015_v53 = vsel %vm1005_vm6, %v11449_v63, %v11447_v15  ;;  %v11452_v15 = vld [vmem:[#allocation37_spill] sm:$0xff] }
 0x368   :  { %1764 = vmatpush1.msra.mxu0 %v1435_v39  ;;  %v1245_v34 = vpop.permute.xlu1 %1244  ;;  %v11451_v39 = vld [vmem:[#allocation49_spill] sm:$0xff] }
 0x369   :  { %v7747_v37 = vpop.permute.xlu0 %1981  ;;  %v1425_v60 = vsel %vm1410_vm8, %v7615_v4, %v1245_v34 }
 0x36a   :  { %11445 = vst [vmem:[#allocation17_spill] sm:$0xff] %v7747_v37  ;;  %2261 = vrot.lane.b32.xlu1 %v2016_v48, %s6344_s28  ;;  %v1985_v48 = vsel %vm972_vm7, %v11452_v15, %v11451_v39 }
 0x36b   :  { %1232 = vrot.lane.b32.xlu0 %v11448_v33, %s6344_s28  ;;  %v1984_v33 = vsel %vm972_vm7, %v11453_v0, %v11452_v15 }
 0x36c   :  { %v1223_v6 = vpop.permute.xlu1 %1222 }
 0x36d   :  { %v7755_v1 = vpop.permute.xlu0 %1246  ;;  %v1415_v4 = vsel %vm1410_vm8, %v11428_v25, %v1223_v6 }
 0x36e   :  { %2259 = vrot.lane.b32.xlu1 %v2015_v53, %s6344_s28  ;;  %v1426_v22 = vsel %vm1410_vm8, %v1245_v34, %v7755_v1 }
 0x36f   :  { %2263 = vrot.lane.b32.xlu0 %v2017_v51, %s6344_s28  ;;  %1765 = vmatprep.subr.mxu0 %v1426_v22  ;;  %v11454_v51 = vld [vmem:[#allocation77_spill] sm:$0xff]  ;;  %v11455_v22 = vld [vmem:[#allocation52_spill] sm:$0xff] }
 0x370   :  { %1766 = vmatpush1.msra.mxu0 %v1425_v60  ;;  %v7769_v11 = vpop.permute.xlu1 %1226  ;;  %v2208_v60 = vsel %vm1201_vm0, %v11455_v22, %v11454_v51  ;;  %v2207_v15 = vsel %vm1201_vm0, %v11421_v26, %v11455_v22  ;;  %v2175_v26 = vsel %vm1168_vm1, %v11423_v2, %v11458_v57  ;;  %v2176_v2 = vsel %vm1168_vm1, %v11458_v57, %v11461_v28 }
 0x371   :  { %v7771_v42 = vpop.permute.xlu0 %1224 }
 0x372   :  { %2241 = vrot.lane.b32.xlu1 %v1985_v48, %s6344_s28  ;;  %v1416_v63 = vsel %vm1410_vm8, %v1223_v6, %v7771_v42  ;;  %v11456_v48 = vld [vmem:[#allocation13_spill] sm:$0xff] }
 0x373   :  { %2239 = vrot.lane.b32.xlu0 %v1984_v33, %s6344_s28  ;;  %1767 = vmatprep.subr.mxu0 %v1416_v63  ;;  %v11457_v33 = vld [vmem:[#allocation39_spill] sm:$0xff] }
 0x374   :  { %1768 = vmatpush1.msra.mxu0 %v1415_v4  ;;  %v1403_v34 = vpop.permute.xlu1 %1402  ;;  %v1983_v63 = vsel %vm972_vm7, %v11457_v33, %v11453_v0 }
 0x375   :  { %v1359_v53 = vpop.permute.xlu0 %1358  ;;  %6061 = vmatmul.mubr.msk.f32.vlgmr.msra.gmra.mxu0 %vm1591_vm9, %v7260_v17 }
 0x376   :  { %2399 = vrot.lane.b32.xlu1 %v2208_v60, %s6344_s28  ;;  %1943 = vmatprep.mubr.f32.mxu0 %v11431_v62 }
 0x377   :  { %2397 = vrot.lane.b32.xlu0 %v2207_v15, %s6344_s28  ;;  %v11459_v15 = vld [vmem:[#allocation11_spill] sm:$0xff] }
 0x378   :  { %v1381_v25 = vpop.permute.xlu1 %1380 }
 0x379   :  { %v1315_v6 = vpop.permute.xlu0 %1314 }
 0x37a   :  { %2217 = vrot.lane.b32.xlu1 %v11456_v48, %s6344_s28  ;;  %v1497_v48 = vsel %vm1410_vm8, %v7631_v54, %v1403_v34  ;;  %v1487_v54 = vsel %vm1410_vm8, %v7648_v40, %v1381_v25  ;;  %v11464_v40 = vld [vmem:[#allocation71_spill] sm:$0xff] }
 0x37b   :  { %2237 = vrot.lane.b32.xlu0 %v1983_v63, %s6344_s28  ;;  %v11460_v63 = vld [vmem:[#allocation12_spill] sm:$0xff] }
 0x37c   :  { %v1337_v4 = vpop.permute.xlu1 %1336 }
 0x37d   :  { %v1405_v60 = vpop.permute.xlu0 %1404 }
 0x37e   :  { %2375 = vrot.lane.b32.xlu1 %v2175_v26, %s6344_s28  ;;  %v1498_v22 = vsel %vm1410_vm8, %v1403_v34, %v1405_v60 }
 0x37f   :  { %2219 = vrot.lane.b32.xlu0 %v11459_v15, %s6344_s28  ;;  %1822 = vmatprep.subr.mxu1 %v1498_v22  ;;  %v11462_v15 = vld [vmem:[#allocation69_spill] sm:$0xff] }
 0x380   :  { %1823 = vmatpush1.msra.mxu1 %v1497_v48  ;;  %v1293_v0 = vpop.permute.xlu1 %1292  ;;  %v11463_v48 = vld [vmem:[#allocation62_spill] sm:$0xff] }
 0x381   :  { %v7811_v33 = vpop.permute.xlu0 %1382  ;;  %v2143_v57 = vsel %vm1135_vm2, %v11430_v41, %v11463_v48 }
 0x382   :  { %2215 = vrot.lane.b32.xlu1 %v11460_v63, %s6344_s28  ;;  %v1488_v26 = vsel %vm1410_vm8, %v1381_v25, %v7811_v33  ;;  %v2144_v63 = vsel %vm1135_vm2, %v11463_v48, %v11462_v15  ;;  %v11465_v25 = vld [vmem:[#allocation64_spill] sm:$0xff]  ;;  %v11466_v48 = vld [vmem:[#allocation79_spill] sm:$0xff] }
 0x383   :  { %2377 = vrot.lane.b32.xlu0 %v2176_v2, %s6344_s28  ;;  %1824 = vmatprep.subr.mxu1 %v1488_v26  ;;  %v2209_v37 = vsel %vm1201_vm0, %v11454_v51, %v11465_v25 }
 0x384   :  { %1825 = vmatpush1.msra.mxu1 %v1487_v54  ;;  %v1271_v34 = vpop.permute.xlu1 %1270  ;;  %v2210_v54 = vsel %vm1201_vm0, %v11465_v25, %v11464_v40 }
 0x385   :  { %v7823_v22 = vpop.permute.xlu0 %1338 }
 0x386   :  { %2355 = vrot.lane.b32.xlu1 %v2144_v63, %s6344_s28  ;;  %v1468_v51 = vsel %vm1410_vm8, %v1337_v4, %v7823_v22 }
 0x387   :  { %2353 = vrot.lane.b32.xlu0 %v2143_v57, %s6344_s28  ;;  %v11467_v57 = vld [vmem:[#allocation53_spill] sm:$0xff] }
 0x388   :  { %v1249_v2 = vpop.permute.xlu1 %1248  ;;  %v2112_v44 = vsel %vm1102_vm3, %v11467_v57, %v11466_v48 }
 0x389   :  { %v7833_v26 = vpop.permute.xlu0 %1294 }
 0x38a   :  { %2403 = vrot.lane.b32.xlu1 %v2210_v54, %s6344_s28  ;;  %v2111_v54 = vsel %vm1102_vm3, %v11432_v36, %v11467_v57  ;;  %v11468_v36 = vld [vmem:[#allocation81_spill] sm:$0xff] }
 0x38b   :  { %2401 = vrot.lane.b32.xlu0 %v2209_v37, %s6344_s28  ;;  %v1477_v37 = vsel %vm1410_vm8, %v7663_v19, %v1359_v53 }
 0x38c   :  { %v7843_v63 = vpop.permute.xlu1 %1360 }
 0x38d   :  { %v7845_v41 = vpop.permute.xlu0 %1272  ;;  %v1478_v5 = vsel %vm1410_vm8, %v1359_v53, %v7843_v63 }
 0x38e   :  { %2333 = vrot.lane.b32.xlu1 %v2112_v44, %s6344_s28  ;;  %1826 = vmatprep.subr.mxu1 %v1478_v5  ;;  %v1467_v44 = vsel %vm1410_vm8, %v7677_v3, %v1337_v4  ;;  %v11469_v5 = vld [vmem:[#allocation54_spill] sm:$0xff]  ;;  %v1457_v3 = vsel %vm1410_vm8, %v7689_v38, %v1315_v6  ;;  %v1448_v4 = vsel %vm1410_vm8, %v1293_v0, %v7833_v26 }
 0x38f   :  { %2331 = vrot.lane.b32.xlu0 %v2111_v54, %s6344_s28  ;;  %1827 = vmatpush1.msra.mxu1 %v1477_v37  ;;  %v2178_v57 = vsel %vm1168_vm1, %v11469_v5, %v11468_v36  ;;  %v2177_v53 = vsel %vm1168_vm1, %v11461_v28, %v11469_v5  ;;  %v1447_v37 = vsel %vm1410_vm8, %v7721_v20, %v1293_v0 }
 0x390   :  { %v7861_v25 = vpop.permute.xlu1 %1316  ;;  %1828 = vmatprep.subr.mxu1 %v1468_v51  ;;  %v1438_v38 = vsel %vm1410_vm8, %v1271_v34, %v7845_v41  ;;  %v1437_v0 = vsel %vm1410_vm8, %v7735_v29, %v1271_v34 }
 0x391   :  { %v7865_v12 = vpop.permute.xlu0 %1250  ;;  %1829 = vmatpush1.msra.mxu1 %v1467_v44  ;;  %v1458_v19 = vsel %vm1410_vm8, %v1315_v6, %v7861_v25  ;;  %v11470_v44 = vld [vmem:[#allocation73_spill] sm:$0xff] }
 0x392   :  { %2381 = vrot.lane.b32.xlu1 %v2178_v57, %s6344_s28  ;;  %1830 = vmatprep.subr.mxu1 %v1458_v19  ;;  %v11471_v57 = vld [vmem:[#allocation66_spill] sm:$0xff] }
 0x393   :  { %2379 = vrot.lane.b32.xlu0 %v2177_v53, %s6344_s28  ;;  %1831 = vmatpush1.msra.mxu1 %v1457_v3  ;;  %v2080_v28 = vsel %vm1069_vm4, %v11471_v57, %v11470_v44  ;;  %v2079_v5 = vsel %vm1069_vm4, %v11437_v32, %v11471_v57  ;;  %v1427_v32 = vsel %vm1410_vm8, %v7755_v1, %v1249_v2  ;;  %v11472_v3 = vld [vmem:[#allocation75_spill] sm:$0xff] }
 0x394   :  { %v1407_v54 = vpop.permute.xlu1 %1406  ;;  %1832 = vmatprep.subr.mxu1 %v1448_v4  ;;  %v11473_v4 = vld [vmem:[#allocation68_spill] sm:$0xff]  ;;  %v1417_v1 = vsel %vm1410_vm8, %v7771_v42, %v7769_v11  ;;  %v11475_v57 = vld [vmem:[#allocation55_spill] sm:$0xff] }
 0x395   :  { %v1409_v51 = vpop.permute.xlu0 %1408  ;;  %1833 = vmatpush1.msra.mxu1 %v1447_v37  ;;  %v1499_v6 = vsel %vm1410_vm8, %v1405_v60, %v1407_v54  ;;  %v1428_v60 = vsel %vm1410_vm8, %v1249_v2, %v7865_v12  ;;  %v2145_v29 = vsel %vm1135_vm2, %v11462_v15, %v11473_v4  ;;  %v2050_v15 = vsel %vm1038_vm5, %v11440_v24, %v11475_v57 }
 0x396   :  { %2311 = vrot.lane.b32.xlu1 %v2080_v28, %s6344_s28  ;;  %1834 = vmatprep.subr.mxu1 %v1438_v38  ;;  %v1500_v20 = vsel %vm1410_vm8, %v1407_v54, %v1409_v51  ;;  %v2146_v54 = vsel %vm1135_vm2, %v11473_v4, %v11472_v3  ;;  %v11474_v51 = vld [vmem:[#allocation83_spill] sm:$0xff]  ;;  %v11478_v4 = vld [vmem:[#allocation76_spill] sm:$0xff] }
 0x397   :  { %2309 = vrot.lane.b32.xlu0 %v2079_v5, %s6344_s28  ;;  %1893 = vmatprep.subr.mxu0 %v1500_v20  ;;  %v2051_v28 = vsel %vm1038_vm5, %v11475_v57, %v11474_v51  ;;  %v11477_v5 = vld [vmem:[#allocation57_spill] sm:$0xff] }
 0x398   :  { %1835 = vmatpush1.msra.mxu1 %v1437_v0  ;;  %1894 = vmatpush1.msra.mxu0 %v1499_v6  ;;  %v1385_v19 = vpop.permute.xlu1 %1384  ;;  %v2113_v24 = vsel %vm1102_vm3, %v11466_v48, %v11477_v5 }
 0x399   :  { %1836 = vmatprep.subr.mxu1 %v1428_v60  ;;  %v7899_v53 = vpop.permute.xlu0 %1228 }
 0x39a   :  { %1837 = vmatpush1.msra.mxu1 %v1427_v32  ;;  %2359 = vrot.lane.b32.xlu1 %v2146_v54, %s6344_s28  ;;  %v1418_v34 = vsel %vm1410_vm8, %v7769_v11, %v7899_v53  ;;  %v1489_v11 = vsel %vm1410_vm8, %v7811_v33, %v1385_v19  ;;  %v11479_v54 = vld [vmem:[#allocation70_spill] sm:$0xff] }
 0x39b   :  { %2357 = vrot.lane.b32.xlu0 %v2145_v29, %s6344_s28  ;;  %1838 = vmatprep.subr.mxu1 %v1418_v34  ;;  %v2019_v29 = vsel %vm1005_vm6, %v11479_v54, %v11478_v4  ;;  %v2018_v48 = vsel %vm1005_vm6, %v11450_v55, %v11479_v54 }
 0x39c   :  { %1839 = vmatpush1.msra.mxu1 %v1417_v1  ;;  %v1363_v2 = vpop.permute.xlu1 %1362 }
 0x39d   :  { %v1387_v37 = vpop.permute.xlu0 %1386  ;;  %6062 = vmatmul.mubr.msk.f32.vlgmr.msra.gmra.mxu1 %vm1591_vm9, %v7260_v17  ;;  %v11476_v17 = vld [vmem:[#allocation84_spill] sm:$0xff]  ;;  %v1479_v33 = vsel %vm1410_vm8, %v7843_v63, %v1363_v2 }
 0x39e   :  { %2289 = vrot.lane.b32.xlu1 %v2051_v28, %s6344_s28  ;;  %v1490_v38 = vsel %vm1410_vm8, %v1385_v19, %v1387_v37  ;;  %2657 = vmatprep.mubr.f32.mxu1 %v11431_v62  ;;  %v2114_v20 = vsel %vm1102_vm3, %v11477_v5, %v11476_v17  ;;  %v11481_v37 = vld [vmem:[#allocation72_spill] sm:$0xff] }
 0x39f   :  { %2287 = vrot.lane.b32.xlu0 %v2050_v15, %s6344_s28  ;;  %1895 = vmatprep.subr.mxu0 %v1490_v38  ;;  %v2081_v28 = vsel %vm1069_vm4, %v11470_v44, %v11481_v37 }
 0x3a0   :  { %1896 = vmatpush1.msra.mxu0 %v1489_v11  ;;  %v2394_v42 = vpop.permute.xlu1 %2393 }
 0x3a1   :  { %v1365_v6 = vpop.permute.xlu0 %1364 }
 0x3a2   :  { %2337 = vrot.lane.b32.xlu1 %v2114_v20, %s6344_s28  ;;  %v1480_v0 = vsel %vm1410_vm8, %v1363_v2, %v1365_v6  ;;  %v11480_v2 = vld [vmem:[#allocation78_spill] sm:$0xff]  ;;  %v11483_v6 = vld [vmem:[#allocation60_spill] sm:$0xff] }
 0x3a3   :  { %2335 = vrot.lane.b32.xlu0 %v2113_v24, %s6344_s28  ;;  %1897 = vmatprep.subr.mxu0 %v1480_v0  ;;  %v2082_v57 = vsel %vm1069_vm4, %v11481_v37, %v11480_v2  ;;  %v1986_v44 = vsel %vm972_vm7, %v11451_v39, %v11483_v6  ;;  %v11484_v0 = vld [vmem:[#allocation89_spill] sm:$0xff] }
 0x3a4   :  { %1898 = vmatpush1.msra.mxu0 %v1479_v33  ;;  %v2392_v19 = vpop.permute.xlu1 %2391  ;;  %v11485_v33 = vld [vmem:[#allocation63_spill] sm:$0xff] }
 0x3a5   :  { %v2493_v60 = vsel %vm1410_vm8, %v2392_v19, %v2394_v42  ;;  %v7943_v32 = vpop.permute.xlu0 %2395  ;;  %v2053_v19 = vsel %vm1038_vm5, %v11485_v33, %v11484_v0  ;;  %v2052_v39 = vsel %vm1038_vm5, %v11474_v51, %v11485_v33 }
 0x3a6   :  { %2267 = vrot.lane.b32.xlu1 %v2019_v29, %s6344_s28  ;;  %v2494_v34 = vsel %vm1410_vm8, %v2394_v42, %v7943_v32  ;;  %v11482_v42 = vld [vmem:[#allocation88_spill] sm:$0xff] }
 0x3a7   :  { %2265 = vrot.lane.b32.xlu0 %v2018_v48, %s6344_s28  ;;  %2607 = vmatprep.subr.mxu1 %v2494_v34  ;;  %v1987_v5 = vsel %vm972_vm7, %v11483_v6, %v11482_v42  ;;  %v11486_v48 = vld [vmem:[#allocation19_spill] sm:$0xff] }
 0x3a8   :  { %2608 = vmatpush1.msra.mxu1 %v2493_v60  ;;  %v1343_v63 = vpop.permute.xlu1 %1342 }
 0x3a9   :  { %v1341_v1 = vpop.permute.xlu0 %1340 }
 0x3aa   :  { %2315 = vrot.lane.b32.xlu1 %v2082_v57, %s6344_s28  ;;  %v1470_v55 = vsel %vm1410_vm8, %v1341_v1, %v1343_v63  ;;  %v1469_v15 = vsel %vm1410_vm8, %v7823_v22, %v1341_v1  ;;  %v11487_v63 = vld [vmem:[#allocation14_spill] sm:$0xff] }
 0x3ab   :  { %2313 = vrot.lane.b32.xlu0 %v2081_v28, %s6344_s28  ;;  %1899 = vmatprep.subr.mxu0 %v1470_v55  ;;  %v11488_v28 = vld [vmem:[#allocation80_spill] sm:$0xff]  ;;  %v11489_v55 = vld [vmem:[#allocation74_spill] sm:$0xff] }
 0x3ac   :  { %1900 = vmatpush1.msra.mxu0 %v1469_v15  ;;  %v7966_v38 = vpop.permute.xlu1 %2373  ;;  %v2021_v15 = vsel %vm1005_vm6, %v11489_v55, %v11488_v28 }
 0x3ad   :  { %v2372_v11 = vpop.permute.xlu0 %2371 }
 0x3ae   :  { %2245 = vrot.lane.b32.xlu1 %v1987_v5, %s6344_s28  ;;  %v2484_v22 = vsel %vm1410_vm8, %v2372_v11, %v7966_v38 }
 0x3af   :  { %2243 = vrot.lane.b32.xlu0 %v1986_v44, %s6344_s28  ;;  %2609 = vmatprep.subr.mxu1 %v2484_v22  ;;  %v11490_v44 = vld [vmem:[#allocation90_spill] sm:$0xff]  ;;  %v11491_v22 = vld [vmem:[#allocation65_spill] sm:$0xff] }
 0x3b0   :  { %v1319_v20 = vpop.permute.xlu1 %1318 }
 0x3b1   :  { %v2370_v24 = vpop.permute.xlu0 %2369  ;;  %v1459_v1 = vsel %vm1410_vm8, %v7861_v25, %v1319_v20 }
 0x3b2   :  { %v2483_v60 = vsel %vm1410_vm8, %v2370_v24, %v2372_v11  ;;  %2293 = vrot.lane.b32.xlu1 %v2053_v19, %s6344_s28  ;;  %v2020_v11 = vsel %vm1005_vm6, %v11478_v4, %v11489_v55  ;;  %v1988_v24 = vsel %vm972_vm7, %v11482_v42, %v11491_v22  ;;  %v2211_v42 = vsel %vm1201_vm0, %v11464_v40, %v7396_v16 }
 0x3b3   :  { %2291 = vrot.lane.b32.xlu0 %v2052_v39, %s6344_s28  ;;  %2610 = vmatpush1.msra.mxu1 %v2483_v60  ;;  %v2212_v39 = vsel %vm1201_vm0, %v7396_v16, %v7416_v10  ;;  %v2180_v16 = vsel %vm1168_vm1, %v7404_v56, %v7518_v35  ;;  %v2179_v40 = vsel %vm1168_vm1, %v11468_v36, %v7404_v56 }
 0x3b4   :  { %v2350_v54 = vpop.permute.xlu1 %2349  ;;  %v2147_v56 = vsel %vm1135_vm2, %v11472_v3, %v7406_v7 }
 0x3b5   :  { %v1321_v29 = vpop.permute.xlu0 %1320 }
 0x3b6   :  { %2223 = vrot.lane.b32.xlu1 %v11486_v48, %s6344_s28  ;;  %v1460_v34 = vsel %vm1410_vm8, %v1319_v20, %v1321_v29  ;;  %v1989_v20 = vsel %vm972_vm7, %v11491_v22, %v11490_v44 }
 0x3b7   :  { %2221 = vrot.lane.b32.xlu0 %v11487_v63, %s6344_s28  ;;  %1901 = vmatprep.subr.mxu0 %v1460_v34  ;;  %v11492_v34 = vld [vmem:[#allocation23_spill] sm:$0xff]  ;;  %v11493_v63 = vld [vmem:[#allocation36_spill] sm:$0xff] }
 0x3b8   :  { %1902 = vmatpush1.msra.mxu0 %v1459_v1  ;;  %v2348_v37 = vpop.permute.xlu1 %2347 }
 0x3b9   :  { %v2473_v51 = vsel %vm1410_vm8, %v2348_v37, %v2350_v54  ;;  %v7995_v57 = vpop.permute.xlu0 %2351 }
 0x3ba   :  { %2271 = vrot.lane.b32.xlu1 %v2021_v15, %s6344_s28  ;;  %v2474_v6 = vsel %vm1410_vm8, %v2350_v54, %v7995_v57 }
 0x3bb   :  { %2269 = vrot.lane.b32.xlu0 %v2020_v11, %s6344_s28  ;;  %2611 = vmatprep.subr.mxu1 %v2474_v6 }
 0x3bc   :  { %2612 = vmatpush1.msra.mxu1 %v2473_v51  ;;  %v1299_v25 = vpop.permute.xlu1 %1298 }
 0x3bd   :  { %v1297_v5 = vpop.permute.xlu0 %1296 }
 0x3be   :  { %2249 = vrot.lane.b32.xlu1 %v1989_v20, %s6344_s28  ;;  %v1450_v4 = vsel %vm1410_vm8, %v1297_v5, %v1299_v25  ;;  %v1449_v33 = vsel %vm1410_vm8, %v7833_v26, %v1297_v5  ;;  %v2148_v25 = vsel %vm1135_vm2, %v7406_v7, %v7424_v9  ;;  %v2214_v5 = vsel %vm1201_vm0, %v7414_v18, %v7436_v14 }
 0x3bf   :  { %2247 = vrot.lane.b32.xlu0 %v1988_v24, %s6344_s28  ;;  %1903 = vmatprep.subr.mxu0 %v1450_v4  ;;  %v2213_v20 = vsel %vm1201_vm0, %v7416_v10, %v7414_v18  ;;  %v2116_v14 = vsel %vm1102_vm3, %v7422_v8, %v7448_v52  ;;  %v2115_v18 = vsel %vm1102_vm3, %v11476_v17, %v7422_v8 }
 0x3c0   :  { %1904 = vmatpush1.msra.mxu0 %v1449_v33  ;;  %v8018_v19 = vpop.permute.xlu1 %2329  ;;  %v2182_v33 = vsel %vm1168_vm1, %v7434_v23, %v7460_v13  ;;  %v2181_v8 = vsel %vm1168_vm1, %v7518_v35, %v7434_v23  ;;  %v2083_v13 = vsel %vm1069_vm4, %v11480_v2, %v7446_v45 }
 0x3c1   :  { %v2328_v60 = vpop.permute.xlu0 %2327 }
 0x3c2   :  { %2407 = vrot.lane.b32.xlu1 %v2212_v39, %s6344_s28  ;;  %v2464_v26 = vsel %vm1410_vm8, %v2328_v60, %v8018_v19 }
 0x3c3   :  { %2405 = vrot.lane.b32.xlu0 %v2211_v42, %s6344_s28  ;;  %2613 = vmatprep.subr.mxu1 %v2464_v26  ;;  %v2084_v26 = vsel %vm1069_vm4, %v7446_v45, %v7472_v50  ;;  %v8111_v45 = vld [vmem:[%s11087_s3] sm:$0xff] }
 0x3c4   :  { %v1275_v54 = vpop.permute.xlu1 %1274 }
 0x3c5   :  { %v2326_v29 = vpop.permute.xlu0 %2325  ;;  %v1439_v55 = vsel %vm1410_vm8, %v7845_v41, %v1275_v54 }
 0x3c6   :  { %v2463_v48 = vsel %vm1410_vm8, %v2326_v29, %v2328_v60  ;;  %2227 = vrot.lane.b32.xlu1 %v11492_v34, %s6344_s28  ;;  %v2150_v29 = vsel %vm1135_vm2, %v7458_v27, %v7484_v49 }
 0x3c7   :  { %2225 = vrot.lane.b32.xlu0 %v11493_v63, %s6344_s28  ;;  %2614 = vmatpush1.msra.mxu1 %v2463_v48 }
 0x3c8   :  { %v2306_v1 = vpop.permute.xlu1 %2305 }
 0x3c9   :  { %v1277_v37 = vpop.permute.xlu0 %1276 }
 0x3ca   :  { %2385 = vrot.lane.b32.xlu1 %v2180_v16, %s6344_s28  ;;  %v1440_v51 = vsel %vm1410_vm8, %v1275_v54, %v1277_v37  ;;  %v2118_v16 = vsel %vm1102_vm3, %v7482_v46, %v7508_v43  ;;  %v2023_v43 = vsel %vm1005_vm6, %v7494_v58, %v7520_v47 }
 0x3cb   :  { %2383 = vrot.lane.b32.xlu0 %v2179_v40, %s6344_s28  ;;  %1905 = vmatprep.subr.mxu0 %v1440_v51  ;;  %v2117_v51 = vsel %vm1102_vm3, %v7448_v52, %v7482_v46  ;;  %v2022_v52 = vsel %vm1005_vm6, %v11488_v28, %v7494_v58 }
 0x3cc   :  { %1906 = vmatpush1.msra.mxu0 %v1439_v55  ;;  %v2304_v15 = vpop.permute.xlu1 %2303 }
 0x3cd   :  { %v2453_v11 = vsel %vm1410_vm8, %v2304_v15, %v2306_v1  ;;  %v8047_v6 = vpop.permute.xlu0 %2307 }
 0x3ce   :  { %2363 = vrot.lane.b32.xlu1 %v2148_v25, %s6344_s28  ;;  %v2454_v36 = vsel %vm1410_vm8, %v2306_v1, %v8047_v6  ;;  %v2055_v1 = vsel %vm1038_vm5, %v7470_v59, %v7496_v21  ;;  %v2085_v25 = vsel %vm1069_vm4, %v7472_v50, %v7506_v31  ;;  %v1990_v50 = vsel %vm972_vm7, %v11490_v44, %v7703_v30 }
 0x3cf   :  { %2361 = vrot.lane.b32.xlu0 %v2147_v56, %s6344_s28  ;;  %2615 = vmatprep.subr.mxu1 %v2454_v36 }
 0x3d0   :  { %2616 = vmatpush1.msra.mxu1 %v2453_v11  ;;  %v1255_v41 = vpop.permute.xlu1 %1254 }
 0x3d1   :  { %v1253_v22 = vpop.permute.xlu0 %1252 }
 0x3d2   :  { %2411 = vrot.lane.b32.xlu1 %v2214_v5, %s6344_s28  ;;  %v1430_v7 = vsel %vm1410_vm8, %v1253_v22, %v1255_v41  ;;  %v1429_v3 = vsel %vm1410_vm8, %v7865_v12, %v1253_v22  ;;  %v1991_v41 = vsel %vm972_vm7, %v7703_v30, %v7701_v61 }
 0x3d3   :  { %2409 = vrot.lane.b32.xlu0 %v2213_v20, %s6344_s28  ;;  %1907 = vmatprep.subr.mxu0 %v1430_v7  ;;  %v11494_v7 = vld [vmem:[#allocation16_spill] sm:$0xff] }
 0x3d4   :  { %1908 = vmatpush1.msra.mxu0 %v1429_v3  ;;  %v8070_v24 = vpop.permute.xlu1 %2285  ;;  %v2056_v30 = vsel %vm1038_vm5, %v7496_v21, %v11494_v7 }
 0x3d5   :  { %v2284_v4 = vpop.permute.xlu0 %2283 }
 0x3d6   :  { %2341 = vrot.lane.b32.xlu1 %v2116_v14, %s6344_s28  ;;  %v2444_v10 = vsel %vm1410_vm8, %v2284_v4, %v8070_v24  ;;  %v11495_v14 = vld [vmem:[#allocation82_spill] sm:$0xff] }
 0x3d7   :  { %2339 = vrot.lane.b32.xlu0 %v2115_v18, %s6344_s28  ;;  %2617 = vmatprep.subr.mxu1 %v2444_v10  ;;  %v11496_v10 = vld [vmem:[#allocation41_spill] sm:$0xff] }
 0x3d8   :  { %v1231_v12 = vpop.permute.xlu1 %1230 }
 0x3d9   :  { %v2282_v60 = vpop.permute.xlu0 %2281  ;;  %v1419_v23 = vsel %vm1410_vm8, %v7899_v53, %v1231_v12  ;;  %v2149_v53 = vsel %vm1135_vm2, %v7424_v9, %v7458_v27  ;;  %v2054_v9 = vsel %vm1038_vm5, %v11484_v0, %v7470_v59 }
 0x3da   :  { %v2443_v39 = vsel %vm1410_vm8, %v2282_v60, %v2284_v4  ;;  %2389 = vrot.lane.b32.xlu1 %v2182_v33, %s6344_s28  ;;  %v11497_v33 = vld [vmem:[#allocation56_spill] sm:$0xff] }
 0x3db   :  { %2387 = vrot.lane.b32.xlu0 %v2181_v8, %s6344_s28  ;;  %2618 = vmatpush1.msra.mxu1 %v2443_v39  ;;  %v2024_v60 = vsel %vm1005_vm6, %v7520_v47, %v11497_v33 }
 0x3dc   :  { %v2262_v17 = vpop.permute.xlu1 %2261 }
 0x3dd   :  { %v1233_v42 = vpop.permute.xlu0 %1232 }
 0x3de   :  { %2319 = vrot.lane.b32.xlu1 %v2084_v26, %s6344_s28  ;;  %v1420_v54 = vsel %vm1410_vm8, %v1231_v12, %v1233_v42  ;;  %v11498_v26 = vld [vmem:[#allocation17_spill] sm:$0xff] }
 0x3df   :  { %2317 = vrot.lane.b32.xlu0 %v2083_v13, %s6344_s28  ;;  %1909 = vmatprep.subr.mxu0 %v1420_v54  ;;  %v1992_v13 = vsel %vm972_vm7, %v7701_v61, %v11498_v26  ;;  %v11500_v61 = vld [vmem:[#allocation85_spill] sm:$0xff] }
 0x3e0   :  { %1910 = vmatpush1.msra.mxu0 %v1419_v23  ;;  %v2260_v35 = vpop.permute.xlu1 %2259 }
 0x3e1   :  { %v2433_v48 = vsel %vm1410_vm8, %v2260_v35, %v2262_v17  ;;  %v8106_v34 = vpop.permute.xlu0 %2263  ;;  %6063 = vmatmul.mubr.msk.f32.vlgmr.msra.gmra.mxu0 %vm1591_vm9, %v8111_v45  ;;  %v11499_v35 = vld [vmem:[#allocation86_spill] sm:$0xff] }
 0x3e2   :  { %2367 = vrot.lane.b32.xlu1 %v2150_v29, %s6344_s28  ;;  %v2434_v49 = vsel %vm1410_vm8, %v2262_v17, %v8106_v34  ;;  %2728 = vmatprep.mubr.f32.mxu0 %v11431_v62 }
 0x3e3   :  { %2365 = vrot.lane.b32.xlu0 %v2149_v53, %s6344_s28  ;;  %2619 = vmatprep.subr.mxu1 %v2434_v49 }
 0x3e4   :  { %2620 = vmatpush1.msra.mxu1 %v2433_v48  ;;  %v8123_v2 = vpop.permute.xlu1 %2241 }
 0x3e5   :  { %v2240_v63 = vpop.permute.xlu0 %2239 }
 0x3e6   :  { %2297 = vrot.lane.b32.xlu1 %v2055_v1, %s6344_s28  ;;  %v2424_v27 = vsel %vm1410_vm8, %v2240_v63, %v8123_v2 }
 0x3e7   :  { %2295 = vrot.lane.b32.xlu0 %v2054_v9, %s6344_s28  ;;  %2621 = vmatprep.subr.mxu1 %v2424_v27 }
 0x3e8   :  { %v2400_v37 = vpop.permute.xlu1 %2399 }
 0x3e9   :  { %v2398_v40 = vpop.permute.xlu0 %2397 }
 0x3ea   :  { %2345 = vrot.lane.b32.xlu1 %v2118_v16, %s6344_s28  ;;  %v2496_v59 = vsel %vm1410_vm8, %v2398_v40, %v2400_v37  ;;  %v2495_v0 = vsel %vm1410_vm8, %v7943_v32, %v2398_v40 }
 0x3eb   :  { %2343 = vrot.lane.b32.xlu0 %v2117_v51, %s6344_s28  ;;  %2678 = vmatprep.subr.mxu0 %v2496_v59 }
 0x3ec   :  { %2679 = vmatpush1.msra.mxu0 %v2495_v0  ;;  %v2218_v55 = vpop.permute.xlu1 %2217 }
 0x3ed   :  { %v2238_v15 = vpop.permute.xlu0 %2237 }
 0x3ee   :  { %v2423_v11 = vsel %vm1410_vm8, %v2238_v15, %v2240_v63  ;;  %2275 = vrot.lane.b32.xlu1 %v2023_v43, %s6344_s28 }
 0x3ef   :  { %2273 = vrot.lane.b32.xlu0 %v2022_v52, %s6344_s28  ;;  %2622 = vmatpush1.msra.mxu1 %v2423_v11 }
 0x3f0   :  { %v2376_v46 = vpop.permute.xlu1 %2375 }
 0x3f1   :  { %v8155_v32 = vpop.permute.xlu0 %2219  ;;  %v2485_v5 = vsel %vm1410_vm8, %v7966_v38, %v2376_v46 }
 0x3f2   :  { %2323 = vrot.lane.b32.xlu1 %v7506_v31, %s6344_s28  ;;  %v2414_v56 = vsel %vm1410_vm8, %v2218_v55, %v8155_v32 }
 0x3f3   :  { %2321 = vrot.lane.b32.xlu0 %v2085_v25, %s6344_s28  ;;  %2623 = vmatprep.subr.mxu1 %v2414_v56 }
 0x3f4   :  { %v2216_v58 = vpop.permute.xlu1 %2215 }
 0x3f5   :  { %v2413_v28 = vsel %vm1410_vm8, %v2216_v58, %v2218_v55  ;;  %v2378_v36 = vpop.permute.xlu0 %2377 }
 0x3f6   :  { %2253 = vrot.lane.b32.xlu1 %v1991_v41, %s6344_s28  ;;  %2624 = vmatpush1.msra.mxu1 %v2413_v28  ;;  %v2486_v31 = vsel %vm1410_vm8, %v2376_v46, %v2378_v36 }
 0x3f7   :  { %2251 = vrot.lane.b32.xlu0 %v1990_v50, %s6344_s28  ;;  %2680 = vmatprep.subr.mxu0 %v2486_v31 }
 0x3f8   :  { %2681 = vmatpush1.msra.mxu0 %v2485_v5  ;;  %v2356_v22 = vpop.permute.xlu1 %2355  ;;  %6064 = vmatmul.mubr.msk.f32.vlgmr.msra.gmra.mxu1 %vm1591_vm9, %v8111_v45 }
 0x3f9   :  { %v2354_v20 = vpop.permute.xlu0 %2353  ;;  %2799 = vmatprep.mubr.f32.mxu1 %v11431_v62 }
 0x3fa   :  { %2301 = vrot.lane.b32.xlu1 %v11494_v7, %s6344_s28  ;;  %v2476_v44 = vsel %vm1410_vm8, %v2354_v20, %v2356_v22  ;;  %v2475_v38 = vsel %vm1410_vm8, %v7995_v57, %v2354_v20 }
 0x3fb   :  { %2299 = vrot.lane.b32.xlu0 %v2056_v30, %s6344_s28  ;;  %2682 = vmatprep.subr.mxu0 %v2476_v44 }
 0x3fc   :  { %2683 = vmatpush1.msra.mxu0 %v2475_v38  ;;  %v8189_v3 = vpop.permute.xlu1 %2403 }
 0x3fd   :  { %v2402_v4 = vpop.permute.xlu0 %2401 }
 0x3fe   :  { %2231 = vrot.lane.b32.xlu1 %v11495_v14, %s6344_s28  ;;  %v2498_v18 = vsel %vm1410_vm8, %v2402_v4, %v8189_v3  ;;  %v2497_v21 = vsel %vm1410_vm8, %v2400_v37, %v2402_v4 }
 0x3ff   :  { %2229 = vrot.lane.b32.xlu0 %v11496_v10, %s6344_s28  ;;  %2749 = vmatprep.subr.mxu1 %v2498_v18 }
 0x400   :  { %2750 = vmatpush1.msra.mxu1 %v2497_v21  ;;  %v2334_v57 = vpop.permute.xlu1 %2333 }
 0x401   :  { %v2332_v12 = vpop.permute.xlu0 %2331 }
 0x402   :  { %2279 = vrot.lane.b32.xlu1 %v11497_v33, %s6344_s28  ;;  %v2466_v39 = vsel %vm1410_vm8, %v2332_v12, %v2334_v57  ;;  %v2465_v8 = vsel %vm1410_vm8, %v8018_v19, %v2332_v12 }
 0x403   :  { %2277 = vrot.lane.b32.xlu0 %v2024_v60, %s6344_s28  ;;  %2684 = vmatprep.subr.mxu0 %v2466_v39 }
 0x404   :  { %2685 = vmatpush1.msra.mxu0 %v2465_v8  ;;  %v8207_v17 = vpop.permute.xlu1 %2381 }
 0x405   :  { %v2380_v42 = vpop.permute.xlu0 %2379 }
 0x406   :  { %2257 = vrot.lane.b32.xlu1 %v11498_v26, %s6344_s28  ;;  %v2488_v47 = vsel %vm1410_vm8, %v2380_v42, %v8207_v17  ;;  %v2487_v54 = vsel %vm1410_vm8, %v2378_v36, %v2380_v42 }
 0x407   :  { %2255 = vrot.lane.b32.xlu0 %v1992_v13, %s6344_s28  ;;  %2751 = vmatprep.subr.mxu1 %v2488_v47 }
 0x408   :  { %2752 = vmatpush1.msra.mxu1 %v2487_v54  ;;  %v2312_v19 = vpop.permute.xlu1 %2311 }
 0x409   :  { %v2310_v23 = vpop.permute.xlu0 %2309 }
 0x40a   :  { %2235 = vrot.lane.b32.xlu1 %v11499_v35, %s6344_s28  ;;  %v2456_v29 = vsel %vm1410_vm8, %v2310_v23, %v2312_v19  ;;  %v2455_v48 = vsel %vm1410_vm8, %v8047_v6, %v2310_v23 }
 0x40b   :  { %2233 = vrot.lane.b32.xlu0 %v11500_v61, %s6344_s28  ;;  %2686 = vmatprep.subr.mxu0 %v2456_v29 }
 0x40c   :  { %2687 = vmatpush1.msra.mxu0 %v2455_v48  ;;  %v8225_v53 = vpop.permute.xlu1 %2359 }
 0x40d   :  { %v2358_v49 = vpop.permute.xlu0 %2357 }
 0x40e   :  { %v2478_v63 = vsel %vm1410_vm8, %v2358_v49, %v8225_v53  ;;  %v2477_v1 = vsel %vm1410_vm8, %v2356_v22, %v2358_v49  ;;  %6166 = vrot.lane.b32.xlu1 %v11431_v62, %s6345_s1 }
 0x40f   :  { %2753 = vmatprep.subr.mxu1 %v2478_v63  ;;  %6136 = vrot.lane.b32.xlu0 %v11431_v62, %s6346_s0 }
 0x410   :  { %2754 = vmatpush1.msra.mxu1 %v2477_v1  ;;  %v2290_v9 = vpop.permute.xlu1 %2289 }
 0x411   :  { %v2288_v6 = vpop.permute.xlu0 %2287 }
 0x412   :  { %v2446_v27 = vsel %vm1410_vm8, %v2288_v6, %v2290_v9  ;;  %v2445_v37 = vsel %vm1410_vm8, %v8070_v24, %v2288_v6  ;;  %6171 = vrot.lane.b32.xlu1 %v11431_v62, %s6344_s28 }
 0x413   :  { %2688 = vmatprep.subr.mxu0 %v2446_v27  ;;  %6141 = vrot.lane.b32.xlu0 %v11431_v62, %s6347_s9 }
 0x414   :  { %2689 = vmatpush1.msra.mxu0 %v2445_v37  ;;  %v8237_v16 = vpop.permute.xlu1 %2337 }
 0x415   :  { %v2336_v40 = vpop.permute.xlu0 %2335 }
 0x416   :  { %v2468_v51 = vsel %vm1410_vm8, %v2336_v40, %v8237_v16  ;;  %v2467_v59 = vsel %vm1410_vm8, %v2334_v57, %v2336_v40 }
 0x417   :  { %2755 = vmatprep.subr.mxu1 %v2468_v51  ;;  %6146 = vrot.lane.b32.xlu0 %v11431_v62, %s6348_s29 }
 0x418   :  { %2756 = vmatpush1.msra.mxu1 %v2467_v59  ;;  %v2268_v0 = vpop.permute.xlu1 %2267 }
 0x419   :  { %v2266_v24 = vpop.permute.xlu0 %2265 }
 0x41a   :  { %v2436_v55 = vsel %vm1410_vm8, %v2266_v24, %v2268_v0  ;;  %v2435_v15 = vsel %vm1410_vm8, %v8106_v34, %v2266_v24 }
 0x41b   :  { %2690 = vmatprep.subr.mxu0 %v2436_v55  ;;  %6151 = vrot.lane.b32.xlu0 %v11431_v62, %s6341_s26 }
 0x41c   :  { %2691 = vmatpush1.msra.mxu0 %v2435_v15  ;;  %v8249_v43 = vpop.permute.xlu1 %2315 }
 0x41d   :  { %v2314_v11 = vpop.permute.xlu0 %2313 }
 0x41e   :  { %v2458_v52 = vsel %vm1410_vm8, %v2314_v11, %v8249_v43  ;;  %v2457_v46 = vsel %vm1410_vm8, %v2312_v19, %v2314_v11 }
 0x41f   :  { %2757 = vmatprep.subr.mxu1 %v2458_v52  ;;  %6156 = vrot.lane.b32.xlu0 %v11431_v62, %s6343_s2 }
 0x420   :  { %2758 = vmatpush1.msra.mxu1 %v2457_v46  ;;  %v2246_v25 = vpop.permute.xlu1 %2245 }
 0x421   :  { %v2244_v34 = vpop.permute.xlu0 %2243 }
 0x422   :  { %v2426_v56 = vsel %vm1410_vm8, %v2244_v34, %v2246_v25  ;;  %v2425_v58 = vsel %vm1410_vm8, %v8123_v2, %v2244_v34 }
 0x423   :  { %2692 = vmatprep.subr.mxu0 %v2426_v56  ;;  %6161 = vrot.lane.b32.xlu0 %v11431_v62, %s6340_s25 }
 0x424   :  { %2693 = vmatpush1.msra.mxu0 %v2425_v58  ;;  %v8261_v28 = vpop.permute.xlu1 %2293 }
 0x425   :  { %v2292_v36 = vpop.permute.xlu0 %2291 }
 0x426   :  { %v2448_v41 = vsel %vm1410_vm8, %v2292_v36, %v8261_v28  ;;  %v2447_v50 = vsel %vm1410_vm8, %v2290_v9, %v2292_v36 }
 0x427   :  { %2759 = vmatprep.subr.mxu1 %v2448_v41 }
 0x428   :  { %2760 = vmatpush1.msra.mxu1 %v2447_v50  ;;  %v2224_v31 = vpop.permute.xlu1 %2223 }
 0x429   :  { %v2222_v5 = vpop.permute.xlu0 %2221 }
 0x42a   :  { %v2416_v22 = vsel %vm1410_vm8, %v2222_v5, %v2224_v31  ;;  %v2415_v2 = vsel %vm1410_vm8, %v8155_v32, %v2222_v5 }
 0x42b   :  { %2694 = vmatprep.subr.mxu0 %v2416_v22 }
 0x42c   :  { %2695 = vmatpush1.msra.mxu0 %v2415_v2  ;;  %v8269_v20 = vpop.permute.xlu1 %2271 }
 0x42d   :  { %v2270_v7 = vpop.permute.xlu0 %2269  ;;  %6065 = vmatmul.mubr.msk.f32.vlgmr.msra.gmra.mxu0 %vm1591_vm9, %v8111_v45 }
 0x42e   :  { %v2438_v30 = vsel %vm1410_vm8, %v2270_v7, %v8269_v20  ;;  %v2437_v44 = vsel %vm1410_vm8, %v2268_v0, %v2270_v7  ;;  %2870 = vmatprep.mubr.f32.mxu0 %v11431_v62 }
 0x42f   :  { %2761 = vmatprep.subr.mxu1 %v2438_v30 }
 0x430   :  { %2762 = vmatpush1.msra.mxu1 %v2437_v44  ;;  %v8277_v38 = vpop.permute.xlu1 %2249 }
 0x431   :  { %v2248_v32 = vpop.permute.xlu0 %2247 }
 0x432   :  { %v2428_v4 = vsel %vm1410_vm8, %v2248_v32, %v8277_v38  ;;  %v2427_v14 = vsel %vm1410_vm8, %v2246_v25, %v2248_v32 }
 0x433   :  { %2763 = vmatprep.subr.mxu1 %v2428_v4 }
 0x434   :  { %2764 = vmatpush1.msra.mxu1 %v2427_v14  ;;  %v2408_v18 = vpop.permute.xlu1 %2407 }
 0x435   :  { %v2406_v21 = vpop.permute.xlu0 %2405 }
 0x436   :  { %v2500_v10 = vsel %vm1410_vm8, %v2406_v21, %v2408_v18  ;;  %v2499_v57 = vsel %vm1410_vm8, %v8189_v3, %v2406_v21 }
 0x437   :  { %2820 = vmatprep.subr.mxu0 %v2500_v10 }
 0x438   :  { %2821 = vmatpush1.msra.mxu0 %v2499_v57  ;;  %v8285_v12 = vpop.permute.xlu1 %2227  ;;  %v2950_v57 = vlaneseq }
 0x439   :  { %v2226_v33 = vpop.permute.xlu0 %2225 }
 0x43a   :  { %v2418_v60 = vsel %vm1410_vm8, %v2226_v33, %v8285_v12  ;;  %v2417_v39 = vsel %vm1410_vm8, %v2224_v31, %v2226_v33 }
 0x43b   :  { %2765 = vmatprep.subr.mxu1 %v2418_v60 }
 0x43c   :  { %2766 = vmatpush1.msra.mxu1 %v2417_v39  ;;  %v2386_v8 = vpop.permute.xlu1 %2385 }
 0x43d   :  { %v2384_v42 = vpop.permute.xlu0 %2383  ;;  %6066 = vmatmul.mubr.msk.f32.vlgmr.msra.gmra.mxu1 %vm1591_vm9, %v8111_v45 }
 0x43e   :  { %v2490_v26 = vsel %vm1410_vm8, %v2384_v42, %v2386_v8  ;;  %v2489_v3 = vsel %vm1410_vm8, %v8207_v17, %v2384_v42  ;;  %2941 = vmatprep.mubr.f32.mxu1 %v11431_v62 }
 0x43f   :  { %2822 = vmatprep.subr.mxu0 %v2490_v26 }
 0x440   :  { %2823 = vmatpush1.msra.mxu0 %v2489_v3  ;;  %v2364_v13 = vpop.permute.xlu1 %2363 }
 0x441   :  { %v2362_v47 = vpop.permute.xlu0 %2361 }
 0x442   :  { %v2480_v54 = vsel %vm1410_vm8, %v2362_v47, %v2364_v13  ;;  %v2479_v19 = vsel %vm1410_vm8, %v8225_v53, %v2362_v47 }
 0x443   :  { %2824 = vmatprep.subr.mxu0 %v2480_v54 }
 0x444   :  { %2825 = vmatpush1.msra.mxu0 %v2479_v19  ;;  %v2412_v23 = vpop.permute.xlu1 %2411 }
 0x445   :  { %v2410_v35 = vpop.permute.xlu0 %2409 }
 0x446   :  { %v2502_v17 = vsel %vm1410_vm8, %v2410_v35, %v2412_v23  ;;  %v2501_v29 = vsel %vm1410_vm8, %v2408_v18, %v2410_v35  ;;  %v84_v23 = vld [vmem:[#allocation6] sm:$0xff]  ;;  %v8340_v35 = vpop.f32.mrf.mxu0 }
 0x447   :  { %2891 = vmatprep.subr.mxu1 %v2502_v17 }
 0x448   :  { %2892 = vmatpush1.msra.mxu1 %v2501_v29  ;;  %v2342_v48 = vpop.permute.xlu1 %2341 }
 0x449   :  { %v2340_v61 = vpop.permute.xlu0 %2339 }
 0x44a   :  { %v2470_v49 = vsel %vm1410_vm8, %v2340_v61, %v2342_v48  ;;  %v2469_v63 = vsel %vm1410_vm8, %v8237_v16, %v2340_v61 }
 0x44b   :  { %2826 = vmatprep.subr.mxu0 %v2470_v49 }
 0x44c   :  { %2827 = vmatpush1.msra.mxu0 %v2469_v63  ;;  %v2390_v53 = vpop.permute.xlu1 %2389  ;;  %v8350_v63 = vpop.f32.mrf.mxu0 }
 0x44d   :  { %v2388_v1 = vpop.permute.xlu0 %2387 }
 0x44e   :  { %v2492_v9 = vsel %vm1410_vm8, %v2388_v1, %v2390_v53  ;;  %v2491_v6 = vsel %vm1410_vm8, %v2386_v8, %v2388_v1  ;;  %v2951_v8 = vshrl.u32 %v2950_v57, 7 }
 0x44f   :  { %2893 = vmatprep.subr.mxu1 %v2492_v9 }
 0x450   :  { %2894 = vmatpush1.msra.mxu1 %v2491_v6  ;;  %v2320_v27 = vpop.permute.xlu1 %2319  ;;  %v2952_v47 = vsub.s32 0, %v2951_v8  ;;  %v2956_v54 = vsub.s32 1, %v2951_v8  ;;  %v2960_v49 = vsub.s32 2, %v2951_v8  ;;  %v2964_v6 = vsub.s32 3, %v2951_v8 }
 0x451   :  { %v2318_v37 = vpop.permute.xlu0 %2317 }
 0x452   :  { %v2460_v40 = vsel %vm1410_vm8, %v2318_v37, %v2320_v27  ;;  %v2459_v51 = vsel %vm1410_vm8, %v8249_v43, %v2318_v37  ;;  %v8346_v61 = vrot.slane %v84_v23, %v2956_v54  ;;  %v8357_v9 = vrot.slane %v84_v23, %v2960_v49 }
 0x453   :  { %2828 = vmatprep.subr.mxu0 %v2460_v40 }
 0x454   :  { %2829 = vmatpush1.msra.mxu0 %v2459_v51  ;;  %v2368_v16 = vpop.permute.xlu1 %2367  ;;  %11502 = vst [vmem:[#allocation51_spill] sm:$0xff] %v8346_v61  ;;  %v3001_v1 = vmul.f32 %v8346_v61, %v8350_v63  ;;  %11503 = vst [vmem:[#allocation22_spill] sm:$0xff] %v8357_v9  ;;  %v2968_v51 = vsub.s32 4, %v2951_v8 }
 0x455   :  { %v2366_v59 = vpop.permute.xlu0 %2365 }
 0x456   :  { %v2482_v0 = vsel %vm1410_vm8, %v2366_v59, %v2368_v16  ;;  %v2481_v24 = vsel %vm1410_vm8, %v2364_v13, %v2366_v59 }
 0x457   :  { %2895 = vmatprep.subr.mxu1 %v2482_v0 }
 0x458   :  { %2896 = vmatpush1.msra.mxu1 %v2481_v24  ;;  %v2298_v55 = vpop.permute.xlu1 %2297  ;;  %v8369_v24 = vrot.slane %v84_v23, %v2968_v51 }
 0x459   :  { %v2296_v15 = vpop.permute.xlu0 %2295 }
 0x45a   :  { %v2450_v11 = vsel %vm1410_vm8, %v2296_v15, %v2298_v55  ;;  %v2449_v52 = vsel %vm1410_vm8, %v8261_v28, %v2296_v15  ;;  %11505 = vst [vmem:[#allocation45_spill] sm:$0xff] %v8369_v24  ;;  %v8371_v15 = vpop.f32.mrf.mxu0 }
 0x45b   :  { %2830 = vmatprep.subr.mxu0 %v2450_v11 }
 0x45c   :  { %2831 = vmatpush1.msra.mxu0 %v2449_v52  ;;  %v2346_v43 = vpop.permute.xlu1 %2345  ;;  %v3004_v52 = vmul.f32 %v8369_v24, %v8371_v15 }
 0x45d   :  { %v2344_v46 = vpop.permute.xlu0 %2343 }
 0x45e   :  { %v2472_v25 = vsel %vm1410_vm8, %v2344_v46, %v2346_v43  ;;  %v2471_v34 = vsel %vm1410_vm8, %v2342_v48, %v2344_v46  ;;  %v8344_v48 = vrot.slane %v84_v23, %v2952_v47  ;;  %v2976_v46 = vsub.s32 6, %v2951_v8 }
 0x45f   :  { %2897 = vmatprep.subr.mxu1 %v2472_v25  ;;  %v8377_v25 = vpop.f32.mrf.mxu0 }
 0x460   :  { %2898 = vmatpush1.msra.mxu1 %v2471_v34  ;;  %v2276_v56 = vpop.permute.xlu1 %2275  ;;  %11501 = vst [vmem:[#allocation15_spill] sm:$0xff] %v8344_v48  ;;  %v3000_v53 = vmul.f32 %v8344_v48, %v8340_v35 }
 0x461   :  { %v2274_v58 = vpop.permute.xlu0 %2273 }
 0x462   :  { %v2440_v36 = vsel %vm1410_vm8, %v2274_v58, %v2276_v56  ;;  %v2439_v41 = vsel %vm1410_vm8, %v8269_v20, %v2274_v58  ;;  %v3010_v37 = vadd.f32 %v3001_v1, %v3000_v53  ;;  %v8381_v58 = vrot.slane %v84_v23, %v2976_v46 }
 0x463   :  { %2832 = vmatprep.subr.mxu0 %v2440_v36  ;;  %v2980_v36 = vsub.s32 7, %v2951_v8 }
 0x464   :  { %2833 = vmatpush1.msra.mxu0 %v2439_v41  ;;  %v2324_v28 = vpop.permute.xlu1 %2323  ;;  %11507 = vst [vmem:[#allocation27_spill] sm:$0xff] %v8381_v58 }
 0x465   :  { %v2322_v50 = vpop.permute.xlu0 %2321 }
 0x466   :  { %v2462_v31 = vsel %vm1410_vm8, %v2322_v50, %v2324_v28  ;;  %v2461_v5 = vsel %vm1410_vm8, %v2320_v27, %v2322_v50  ;;  %v8359_v27 = vpop.f32.mrf.mxu1 }
 0x467   :  { %2899 = vmatprep.subr.mxu1 %v2462_v31  ;;  %v3002_v40 = vmul.f32 %v8357_v9, %v8359_v27  ;;  %v8387_v31 = vrot.slane %v84_v23, %v2980_v36 }
 0x468   :  { %2900 = vmatpush1.msra.mxu1 %v2461_v5  ;;  %v2254_v22 = vpop.permute.xlu1 %2253  ;;  %v8365_v16 = vpop.f32.mrf.mxu1 }
 0x469   :  { %v2252_v2 = vpop.permute.xlu0 %2251  ;;  %v3011_v59 = vadd.f32 %v3010_v37, %v3002_v40  ;;  %11508 = vst [vmem:[#allocation20_spill] sm:$0xff] %v8387_v31 }
 0x46a   :  { %v2430_v7 = vsel %vm1410_vm8, %v2252_v2, %v2254_v22  ;;  %v2429_v30 = vsel %vm1410_vm8, %v8277_v38, %v2252_v2  ;;  %v8383_v41 = vpop.f32.mrf.mxu1 }
 0x46b   :  { %2834 = vmatprep.subr.mxu0 %v2430_v7  ;;  %v3006_v50 = vmul.f32 %v8381_v58, %v8383_v41 }
 0x46c   :  { %2835 = vmatpush1.msra.mxu0 %v2429_v30  ;;  %v2302_v20 = vpop.permute.xlu1 %2301  ;;  %v8389_v5 = vpop.f32.mrf.mxu1 }
 0x46d   :  { %v2300_v44 = vpop.permute.xlu0 %2299  ;;  %v3007_v7 = vmul.f32 %v8387_v31, %v8389_v5 }
 0x46e   :  { %v2452_v32 = vsel %vm1410_vm8, %v2300_v44, %v2302_v20  ;;  %v2451_v4 = vsel %vm1410_vm8, %v2298_v55, %v2300_v44  ;;  %v2972_v55 = vsub.s32 5, %v2951_v8 }
 0x46f   :  { %2901 = vmatprep.subr.mxu1 %v2452_v32 }
 0x470   :  { %2902 = vmatpush1.msra.mxu1 %v2451_v4  ;;  %v2232_v14 = vpop.permute.xlu1 %2231  ;;  %v8375_v43 = vrot.slane %v84_v23, %v2972_v55 }
 0x471   :  { %v2230_v18 = vpop.permute.xlu0 %2229 }
 0x472   :  { %v2420_v21 = vsel %vm1410_vm8, %v2230_v18, %v2232_v14  ;;  %v2419_v10 = vsel %vm1410_vm8, %v8285_v12, %v2230_v18  ;;  %11506 = vst [vmem:[#allocation87_spill] sm:$0xff] %v8375_v43 }
 0x473   :  { %2836 = vmatprep.subr.mxu0 %v2420_v21 }
 0x474   :  { %2837 = vmatpush1.msra.mxu0 %v2419_v10  ;;  %v2280_v38 = vpop.permute.xlu1 %2279 }
 0x475   :  { %6067 = vmatmul.mubr.msk.f32.vlgmr.msra.gmra.mxu0 %vm1591_vm9, %v8111_v45  ;;  %v2278_v33 = vpop.permute.xlu0 %2277 }
 0x476   :  { %v2442_v60 = vsel %vm1410_vm8, %v2278_v33, %v2280_v38  ;;  %v2441_v39 = vsel %vm1410_vm8, %v2276_v56, %v2278_v33  ;;  %4004 = vmatprep.mubr.f32.mxu0 %v11431_v62  ;;  %v3005_v56 = vmul.f32 %v8375_v43, %v8377_v25 }
 0x477   :  { %2903 = vmatprep.subr.mxu1 %v2442_v60 }
 0x478   :  { %2904 = vmatpush1.msra.mxu1 %v2441_v39  ;;  %v2258_v12 = vpop.permute.xlu1 %2257 }
 0x479   :  { %v2256_v42 = vpop.permute.xlu0 %2255 }
 0x47a   :  { %v2432_v26 = vsel %vm1410_vm8, %v2256_v42, %v2258_v12  ;;  %v2431_v3 = vsel %vm1410_vm8, %v2254_v22, %v2256_v42  ;;  %v85_v22 = vld [vmem:[#allocation6 + $0x8] sm:$0x3] }
 0x47b   :  { %2905 = vmatprep.subr.mxu1 %v2432_v26  ;;  %v8393_v30 = vrot.slane %v85_v22, %v2952_v47  ;;  %v8395_v44 = vrot.slane %v85_v22, %v2956_v54 }
 0x47c   :  { %2906 = vmatpush1.msra.mxu1 %v2431_v3  ;;  %v2236_v13 = vpop.permute.xlu1 %2235 }
 0x47d   :  { %v2234_v19 = vpop.permute.xlu0 %2233  ;;  %11509 = vst [vmem:[#allocation25_spill] sm:$0xff] %v8393_v30  ;;  %11510 = vst [vmem:[#allocation21_spill] sm:$0xff] %v8395_v44 }
 0x47e   :  { %v2422_v17 = vsel %vm1410_vm8, %v2234_v19, %v2236_v13  ;;  %v2421_v29 = vsel %vm1410_vm8, %v2232_v14, %v2234_v19 }
 0x47f   :  { %2907 = vmatprep.subr.mxu1 %v2422_v17 }
 0x480   :  { %2908 = vmatpush1.msra.mxu1 %v2421_v29 }
 0x481   :  { %6068 = vmatmul.mubr.msk.f32.vlgmr.msra.gmra.mxu1 %vm1591_vm9, %v8111_v45  ;;  %v8363_v45 = vrot.slane %v84_v23, %v2964_v6  ;;  %v8445_v46 = vpop.permute.xlu0 %6136 }
 0x482   :  { %4075 = vmatprep.mubr.f32.mxu1 %v11431_v62 }
 0x483   :  { %11504 = vst [vmem:[#allocation43_spill] sm:$0xff] %v8363_v45  ;;  %v3003_v0 = vmul.f32 %v8363_v45, %v8365_v16 }
 0x485   :  { %v3012_v11 = vadd.f32 %v3011_v59, %v3003_v0 }
 0x487   :  { %v3013_v34 = vadd.f32 %v3012_v11, %v3004_v52 }
 0x489   :  { %v3014_v28 = vadd.f32 %v3013_v34, %v3005_v56  ;;  %v8447_v34 = vpop.permute.xlu0 %6141 }
 0x48a   :  { %11511 = vst [vmem:[#allocation29_spill] sm:$0xff] %v8447_v34 }
 0x48b   :  { %v3015_v2 = vadd.f32 %v3014_v28, %v3006_v50  ;;  %v8455_v50 = vpop.permute.xlu1 %6166 }
 0x48c   :  { %11515 = vst [vmem:[#allocation35_spill] sm:$0xff] %v8455_v50 }
 0x48d   :  { %v3016_v20 = vadd.f32 %v3015_v2, %v3007_v7  ;;  %v8449_v56 = vpop.permute.xlu0 %6146 }
 0x48e   :  { %11512 = vst [vmem:[#allocation50_spill] sm:$0xff] %v8449_v56 }
 0x48f   :  { %v8459_v2 = vpop.permute.xlu1 %6171 }
 0x490   :  { %11517 = vst [vmem:[#allocation33_spill] sm:$0xff] %v8459_v2 }
 0x491   :  { %v8451_v36 = vpop.permute.xlu0 %6151 }
 0x492   :  { %11513 = vst [vmem:[#allocation18_spill] sm:$0xff] %v8451_v36 }
 0x495   :  { %v8453_v28 = vpop.permute.xlu0 %6156 }
 0x496   :  { %11514 = vst [vmem:[#allocation31_spill] sm:$0xff] %v8453_v28 }
 0x499   :  { %v8457_v22 = vpop.permute.xlu0 %6161 }
 0x49a   :  { %11516 = vst [vmem:[#allocation24_spill] sm:$0xff] %v8457_v22 }
 0x4a1   :  { %v8397_v32 = vpop.f32.mrf.mxu0 }
 0x4a2   :  { %v3008_v4 = vmul.f32 %v8393_v30, %v8397_v32 }
 0x4a3   :  { %v8401_v14 = vpop.f32.mrf.mxu0 }
 0x4a4   :  { %v3017_v18 = vadd.f32 %v3016_v20, %v3008_v4  ;;  %v3009_v21 = vmul.f32 %v8395_v44, %v8401_v14 }
 0x4a6   :  { %v3018_v10 = vadd.f32 %v3017_v18, %v3009_v21 }
 0x4a8   :  { %3019 = vadd.xlane.f32.xlu0 %v3018_v10 }
 0x4b8   :  { %v8405_v38 = vpop.f32.mrf.mxu1 }
 0x4b9   :  { %v3021_v33 = vmul.f32 %v8344_v48, %v8405_v38 }
 0x4ba   :  { %v8407_v57 = vpop.f32.mrf.mxu1 }
 0x4bb   :  { %v3022_v60 = vmul.f32 %v8346_v61, %v8407_v57 }
 0x4bd   :  { %v3031_v12 = vadd.f32 %v3022_v60, %v3021_v33 }
 0x4ed   :  { %v8413_v39 = vpop.f32.mrf.mxu0 }
 0x4ee   :  { %v3023_v8 = vmul.f32 %v8357_v9, %v8413_v39 }
 0x4ef   :  { %v8417_v42 = vpop.f32.mrf.mxu0 }
 0x4f0   :  { %v3032_v26 = vadd.f32 %v3031_v12, %v3023_v8  ;;  %v3024_v3 = vmul.f32 %v8363_v45, %v8417_v42 }
 0x4f2   :  { %v3033_v47 = vadd.f32 %v3032_v26, %v3024_v3 }
 0x4fd   :  { %v8421_v13 = vpop.f32.mrf.mxu1 }
 0x4fe   :  { %v3025_v54 = vmul.f32 %v8369_v24, %v8421_v13 }
 0x4ff   :  { %v8425_v19 = vpop.f32.mrf.mxu1 }
 0x500   :  { %v3034_v17 = vadd.f32 %v3033_v47, %v3025_v54  ;;  %v3026_v29 = vmul.f32 %v8375_v43, %v8425_v19 }
 0x502   :  { %v3035_v1 = vadd.f32 %v3034_v17, %v3026_v29 }
 0x531   :  { %v3020_v7 = vpop.xlane.xlu0 %3019 }
 0x535   :  { %v8427_v23 = vpop.f32.mrf.mxu0 }
 0x536   :  { %v3027_v49 = vmul.f32 %v8381_v58, %v8427_v23 }
 0x537   :  { %v8433_v53 = vpop.f32.mrf.mxu0 }
 0x538   :  { %v3036_v6 = vadd.f32 %v3035_v1, %v3027_v49  ;;  %v3028_v37 = vmul.f32 %v8387_v31, %v8433_v53 }
 0x53a   :  { %v3037_v51 = vadd.f32 %v3036_v6, %v3028_v37 }
 0x541   :  { %v8437_v40 = vpop.f32.mrf.mxu1 }
 0x542   :  { %v3029_v59 = vmul.f32 %v8393_v30, %v8437_v40 }
 0x543   :  { %v8441_v0 = vpop.f32.mrf.mxu1 }
 0x544   :  { %v3038_v55 = vadd.f32 %v3037_v51, %v3029_v59  ;;  %v3030_v11 = vmul.f32 %v8395_v44, %v8441_v0 }
 0x546   :  { %v3039_v52 = vadd.f32 %v3038_v55, %v3030_v11 }
 0x548   :  { %3040 = vadd.xlane.f32.xlu1 %v3039_v52 }
 0x5d1   :  { %v3041_v20 = vpop.xlane.xlu1 %3040 }
 0x5d2   :  { %v3042_v4 = vadd.f32 %v3041_v20, %v3020_v7 }
 0x5d4   :  { %v8461_v18 = vmul.f32 0.00048828125, %v3042_v4 }
 0x5d6   :  { %v3044_v21 = vsub.f32 %v8340_v35, %v8461_v18  ;;  %v3045_v10 = vsub.f32 %v8350_v63, %v8461_v18  ;;  %v3046_v33 = vsub.f32 %v8359_v27, %v8461_v18  ;;  %v3047_v60 = vsub.f32 %v8365_v16, %v8461_v18 }
 0x5d7   :  { %v3048_v26 = vsub.f32 %v8371_v15, %v8461_v18  ;;  %v3049_v47 = vsub.f32 %v8377_v25, %v8461_v18  ;;  %v3050_v49 = vsub.f32 %v8383_v41, %v8461_v18  ;;  %v3085_v51 = vsub.f32 %v8405_v38, %v8461_v18 }
 0x5d8   :  { %v3054_v12 = vmul.f32 %v3044_v21, %v8344_v48  ;;  %v3055_v8 = vmul.f32 %v3045_v10, %v8346_v61  ;;  %v3056_v3 = vmul.f32 %v3046_v33, %v8357_v9  ;;  %v3057_v54 = vmul.f32 %v3047_v60, %v8363_v45 }
 0x5d9   :  { %v3058_v1 = vmul.f32 %v3048_v26, %v8369_v24  ;;  %v3051_v59 = vsub.f32 %v8389_v5, %v8461_v18  ;;  %v3086_v55 = vsub.f32 %v8407_v57, %v8461_v18  ;;  %v3087_v11 = vsub.f32 %v8413_v39, %v8461_v18 }
 0x5da   :  { %v3064_v17 = vmul.f32 %v3054_v12, %v3054_v12  ;;  %v3065_v29 = vmul.f32 %v3055_v8, %v3055_v8  ;;  %v3066_v6 = vmul.f32 %v3056_v3, %v3056_v3  ;;  %v3059_v52 = vmul.f32 %v3049_v47, %v8375_v43 }
 0x5db   :  { %v3067_v7 = vmul.f32 %v3057_v54, %v3057_v54  ;;  %v3088_v4 = vsub.f32 %v8417_v42, %v8461_v18  ;;  %v3095_v21 = vmul.f32 %v3085_v51, %v8344_v48  ;;  %v3096_v10 = vmul.f32 %v3086_v55, %v8346_v61 }
 0x5dc   :  { %v3074_v37 = vadd.f32 %v3065_v29, %v3064_v17  ;;  %v3052_v33 = vsub.f32 %v8397_v32, %v8461_v18  ;;  %v3060_v60 = vmul.f32 %v3050_v49, %v8381_v58  ;;  %v3068_v12 = vmul.f32 %v3058_v1, %v3058_v1 }
 0x5dd   :  { %v3053_v26 = vsub.f32 %v8401_v14, %v8461_v18  ;;  %v3061_v3 = vmul.f32 %v3051_v59, %v8387_v31  ;;  %v3089_v47 = vsub.f32 %v8421_v13, %v8461_v18  ;;  %v3097_v54 = vmul.f32 %v3087_v11, %v8357_v9 }
 0x5de   :  { %v3075_v20 = vadd.f32 %v3074_v37, %v3066_v6  ;;  %v3069_v17 = vmul.f32 %v3059_v52, %v3059_v52  ;;  %v3105_v6 = vmul.f32 %v3095_v21, %v3095_v21  ;;  %v3106_v37 = vmul.f32 %v3096_v10, %v3096_v10 }
 0x5df   :  { %v3090_v51 = vsub.f32 %v8425_v19, %v8461_v18  ;;  %v3098_v49 = vmul.f32 %v3088_v4, %v8363_v45  ;;  %v3062_v1 = vmul.f32 %v3052_v33, %v8393_v30  ;;  %v3070_v55 = vmul.f32 %v3060_v60, %v3060_v60 }
 0x5e0   :  { %v3076_v8 = vadd.f32 %v3075_v20, %v3067_v7  ;;  %v3091_v59 = vsub.f32 %v8427_v23, %v8461_v18  ;;  %v3099_v20 = vmul.f32 %v3089_v47, %v8369_v24  ;;  %v3107_v62 = vmul.f32 %v3097_v54, %v3097_v54 }
 0x5e1   :  { %v3115_v11 = vadd.f32 %v3106_v37, %v3105_v6  ;;  %v3063_v52 = vmul.f32 %v3053_v26, %v8395_v44  ;;  %v3071_v21 = vmul.f32 %v3061_v3, %v3061_v3  ;;  %v3100_v4 = vmul.f32 %v3090_v51, %v8375_v43 }
 0x5e2   :  { %v3077_v29 = vadd.f32 %v3076_v8, %v3068_v12  ;;  %v3092_v12 = vsub.f32 %v8433_v53, %v8461_v18  ;;  %v3108_v8 = vmul.f32 %v3098_v49, %v3098_v49  ;;  %v3072_v60 = vmul.f32 %v3062_v1, %v3062_v1 }
 0x5e3   :  { %v3116_v33 = vadd.f32 %v3115_v11, %v3107_v62  ;;  %v3101_v47 = vmul.f32 %v3091_v59, %v8381_v58  ;;  %v3109_v54 = vmul.f32 %v3099_v20, %v3099_v20  ;;  %v3073_v37 = vmul.f32 %v3063_v52, %v3063_v52 }
 0x5e4   :  { %v3078_v7 = vadd.f32 %v3077_v29, %v3069_v17  ;;  %v3093_v29 = vsub.f32 %v8437_v40, %v8461_v18  ;;  %v3094_v3 = vsub.f32 %v8441_v0, %v8461_v18 }
 0x5e5   :  { %v3117_v6 = vadd.f32 %v3116_v33, %v3108_v8  ;;  %v3111_v1 = vmul.f32 %v3101_v47, %v3101_v47 }
 0x5e6   :  { %v3079_v10 = vadd.f32 %v3078_v7, %v3070_v55  ;;  %v3102_v55 = vmul.f32 %v3092_v12, %v8387_v31  ;;  %v3110_v7 = vmul.f32 %v3100_v4, %v3100_v4  ;;  %v3103_v62 = vmul.f32 %v3093_v29, %v8393_v30 }
 0x5e7   :  { %v3118_v51 = vadd.f32 %v3117_v6, %v3109_v54  ;;  %v937_v6 = vld [vmem:[%s11088_s4] sm:$0xff] }
 0x5e8   :  { %v3080_v17 = vadd.f32 %v3079_v10, %v3071_v21  ;;  %v3104_v21 = vmul.f32 %v3094_v3, %v8395_v44  ;;  %v3112_v59 = vmul.f32 %v3102_v55, %v3102_v55  ;;  %v3113_v10 = vmul.f32 %v3103_v62, %v3103_v62  ;;  %v938_v3 = vld [vmem:[%s11089_s5] sm:$0xff] }
 0x5e9   :  { %v3119_v11 = vadd.f32 %v3118_v51, %v3110_v7 }
 0x5ea   :  { %v3081_v26 = vadd.f32 %v3080_v17, %v3072_v60  ;;  %v3114_v8 = vmul.f32 %v3104_v21, %v3104_v21  ;;  %v6350_v17 = vmov 0  }
 0x5eb   :  { %v3120_v20 = vadd.f32 %v3119_v11, %v3111_v1  ;;  %6175 = vset.pattern.permute.xlu1 %v6350_v17  ;;  %6176 = vset.pattern.permute.xlu0 %v6350_v17 }
 0x5ec   :  { %v3082_v49 = vadd.f32 %v3081_v26, %v3073_v37 }
 0x5ed   :  { %v3121_v52 = vadd.f32 %v3120_v20, %v3112_v59 }
 0x5ee   :  { %3083 = vadd.xlane.f32.xlu0 %v3082_v49 }
 0x5ef   :  { %v3122_v33 = vadd.f32 %v3121_v52, %v3113_v10 }
 0x5f1   :  { %v3123_v60 = vadd.f32 %v3122_v33, %v3114_v8 }
 0x5f3   :  { %3124 = vadd.xlane.f32.xlu0 %v3123_v60 }
 0x677   :  { %v3084_v12 = vpop.xlane.xlu0 %3083 }
 0x67c   :  { %v3125_v4 = vpop.xlane.xlu0 %3124 }
 0x67d   :  { %v3126_v54 = vadd.f32 %v3125_v4, %v3084_v12 }
 0x67f   :  { %v3127_v29 = vmul.f32 0.00048828125, %v3126_v54 }
 0x681   :  { %v3128_v47 = vadd.f32 1e-05, %v3127_v29 }
 0x683   :  { %6178 = vrsqrt.f32 %v3128_v47 }
 0x690   :  { %v6179_v37 = vpop.eup %6178 }
 0x691   :  { %v3130_v26 = vmul.f32 %v6179_v37, %v937_v6 }
 0x693   :  { %3135 = vperm.xlu1 %6175, %v3130_v26   ;;  %v3131_v55 = vmul.f32 %v3130_v26, %v8461_v18 }
 0x695   :  { %v3132_v7 = vsub.f32 %v938_v3, %v3131_v55 }
 0x697   :  { %3150 = vperm.xlu0 %6176, %v3132_v7  }
 0x70e   :  { %v8530_v51 = vpop.permute.xlu1 %3135 }
 0x70f   :  { %v3140_v49 = vmul.f32 %v8530_v51, %v8359_v27  ;;  %v3138_v62 = vmul.f32 %v8530_v51, %v8340_v35  ;;  %v3142_v1 = vmul.f32 %v8530_v51, %v8371_v15  ;;  %v3139_v11 = vmul.f32 %v8530_v51, %v8350_v63 }
 0x710   :  { %v3141_v33 = vmul.f32 %v8530_v51, %v8365_v16  ;;  %v3144_v54 = vmul.f32 %v8530_v51, %v8383_v41  ;;  %v3146_v41 = vmul.f32 %v8530_v51, %v8397_v32  ;;  %v3143_v32 = vmul.f32 %v8530_v51, %v8377_v25 }
 0x711   :  { %v3145_v25 = vmul.f32 %v8530_v51, %v8389_v5  ;;  %v3184_v5 = vmul.f32 %v8530_v51, %v8407_v57  ;;  %v3187_v36 = vmul.f32 %v8530_v51, %v8421_v13 }
 0x712   :  { %v8540_v21 = vpop.permute.xlu0 %3150 }
 0x713   :  { %v3155_v18 = vadd.f32 %v8540_v21, %v3140_v49  ;;  %v3153_v59 = vadd.f32 %v8540_v21, %v3138_v62  ;;  %v3157_v20 = vadd.f32 %v8540_v21, %v3142_v1  ;;  %v3154_v10 = vadd.f32 %v8540_v21, %v3139_v11 }
 0x714   :  { %v3156_v12 = vadd.f32 %v8540_v21, %v3141_v33  ;;  %v3159_v29 = vadd.f32 %v8540_v21, %v3144_v54  ;;  %v3161_v37 = vadd.f32 %v8540_v21, %v3146_v41  ;;  %v3158_v55 = vadd.f32 %v8540_v21, %v3143_v32 }
 0x715   :  { %v3165_v27 = vmax.f32 %v3155_v18, 0.0  ;;  %v3163_v52 = vmax.f32 %v3153_v59, 0.0  ;;  %v3167_v8 = vmax.f32 %v3157_v20, 0.0  ;;  %v3164_v63 = vmax.f32 %v3154_v10, 0.0 }
 0x716   :  { %v3166_v4 = vmax.f32 %v3156_v12, 0.0  ;;  %v3169_v47 = vmax.f32 %v3159_v29, 0.0  ;;  %v3171_v26 = vmax.f32 %v3161_v37, 0.0  ;;  %v3168_v7 = vmax.f32 %v3158_v55, 0.0 }
 0x717   :  { %v8547_v35 = vmul.f32 %v3165_v27, %v8357_v9  ;;  %v8550_v15 = vmul.f32 %v3163_v52, %v8344_v48  ;;  %v8559_v60 = vmul.f32 %v3167_v8, %v8369_v24  ;;  %v8562_v17 = vmul.f32 %v3164_v63, %v8346_v61 }
 0x718   :  { %v8574_v16 = vmul.f32 %v3166_v4, %v8363_v45  ;;  %v8628_v6 = vmul.f32 %v3169_v47, %v8381_v58  ;;  %v8646_v3 = vmul.f32 %v3171_v26, %v8393_v30  ;;  %v8680_v49 = vmul.f32 %v3168_v7, %v8375_v43 }
 0x719   :  { %3467 = vrot.lane.b32.xlu0 %v8547_v35, %s6340_s25  ;;  %3527 = vrot.lane.b32.xlu1 %v8550_v15, %s6341_s26  ;;  %v3160_v62 = vadd.f32 %v8540_v21, %v3145_v25  ;;  %v3194_v20 = vadd.f32 %v3184_v5, %v8540_v21  ;;  %v3147_v10 = vmul.f32 %v8530_v51, %v8401_v14 }
 0x71a   :  { %v3183_v63 = vmul.f32 %v8530_v51, %v8405_v38  ;;  %v3185_v29 = vmul.f32 %v8530_v51, %v8413_v39 }
 0x71b   :  { %v3170_v1 = vmax.f32 %v3160_v62, 0.0  ;;  %v3204_v57 = vmax.f32 %v3194_v20, 0.0  ;;  %v3162_v8 = vadd.f32 %v8540_v21, %v3147_v10 }
 0x71c   :  { %v3193_v54 = vadd.f32 %v3183_v63, %v8540_v21  ;;  %v3195_v26 = vadd.f32 %v3185_v29, %v8540_v21 }
 0x71d   :  { %3535 = vrot.lane.b32.xlu0 %v8559_v60, %s6341_s26  ;;  %3529 = vrot.lane.b32.xlu1 %v8562_v17, %s6341_s26  ;;  %v8698_v11 = vmul.f32 %v3170_v1, %v8387_v31  ;;  %v8733_v14 = vmul.f32 %v3204_v57, %v8346_v61  ;;  %v3172_v4 = vmax.f32 %v3162_v8, 0.0 }
 0x71e   :  { %v3203_v37 = vmax.f32 %v3193_v54, 0.0  ;;  %v3205_v7 = vmax.f32 %v3195_v26, 0.0 }
 0x71f   :  { %v8747_v41 = vmul.f32 %v3172_v4, %v8395_v44 }
 0x720   :  { %v8759_v39 = vmul.f32 %v3203_v37, %v8344_v48  ;;  %v8770_v1 = vmul.f32 %v3205_v7, %v8357_v9 }
 0x721   :  { %3433 = vrot.lane.b32.xlu0 %v8562_v17, %s6345_s1  ;;  %3531 = vrot.lane.b32.xlu1 %v8547_v35, %s6341_s26 }
 0x725   :  { %3501 = vrot.lane.b32.xlu0 %v8574_v16, %s6343_s2  ;;  %3495 = vrot.lane.b32.xlu1 %v8550_v15, %s6343_s2 }
 0x729   :  { %3401 = vrot.lane.b32.xlu0 %v8550_v15, %s6342_s27  ;;  %3497 = vrot.lane.b32.xlu1 %v8562_v17, %s6343_s2 }
 0x72d   :  { %3405 = vrot.lane.b32.xlu0 %v8547_v35, %s6342_s27  ;;  %3499 = vrot.lane.b32.xlu1 %v8547_v35, %s6343_s2 }
 0x731   :  { %3471 = vrot.lane.b32.xlu0 %v8559_v60, %s6340_s25  ;;  %3463 = vrot.lane.b32.xlu1 %v8550_v15, %s6340_s25 }
 0x735   :  { %3373 = vrot.lane.b32.xlu0 %v8562_v17, %s6346_s0  ;;  %3465 = vrot.lane.b32.xlu1 %v8562_v17, %s6340_s25 }
 0x739   :  { %3437 = vrot.lane.b32.xlu0 %v8574_v16, %s6345_s1  ;;  %3533 = vrot.lane.b32.xlu1 %v8574_v16, %s6341_s26 }
 0x73d   :  { %3341 = vrot.lane.b32.xlu0 %v8562_v17, %s6347_s9  ;;  %3431 = vrot.lane.b32.xlu1 %v8550_v15, %s6345_s1 }
 0x741   :  { %3407 = vrot.lane.b32.xlu0 %v8574_v16, %s6342_s27  ;;  %3435 = vrot.lane.b32.xlu1 %v8547_v35, %s6345_s1 }
 0x745   :  { %3309 = vrot.lane.b32.xlu0 %v8562_v17, %s6348_s29  ;;  %3503 = vrot.lane.b32.xlu1 %v8559_v60, %s6343_s2 }
 0x749   :  { %3377 = vrot.lane.b32.xlu0 %v8574_v16, %s6346_s0  ;;  %3403 = vrot.lane.b32.xlu1 %v8562_v17, %s6342_s27 }
 0x74d   :  { %3347 = vrot.lane.b32.xlu0 %v8559_v60, %s6347_s9  ;;  %3469 = vrot.lane.b32.xlu1 %v8574_v16, %s6340_s25 }
 0x751   :  { %3315 = vrot.lane.b32.xlu0 %v8559_v60, %s6348_s29  ;;  %3371 = vrot.lane.b32.xlu1 %v8550_v15, %s6346_s0 }
 0x755   :  { %3539 = vrot.lane.b32.xlu0 %v8628_v6, %s6341_s26  ;;  %3375 = vrot.lane.b32.xlu1 %v8547_v35, %s6346_s0 }
 0x759   :  { %3507 = vrot.lane.b32.xlu0 %v8628_v6, %s6343_s2  ;;  %3439 = vrot.lane.b32.xlu1 %v8559_v60, %s6345_s1 }
 0x75d   :  { %3475 = vrot.lane.b32.xlu0 %v8628_v6, %s6340_s25  ;;  %3339 = vrot.lane.b32.xlu1 %v8550_v15, %s6347_s9 }
 0x761   :  { %3543 = vrot.lane.b32.xlu0 %v8646_v3, %s6341_s26  ;;  %3343 = vrot.lane.b32.xlu1 %v8547_v35, %s6347_s9 }
 0x765   :  { %3443 = vrot.lane.b32.xlu0 %v8628_v6, %s6345_s1  ;;  %3409 = vrot.lane.b32.xlu1 %v8559_v60, %s6342_s27 }
 0x769   :  { %3511 = vrot.lane.b32.xlu0 %v8646_v3, %s6343_s2  ;;  %3307 = vrot.lane.b32.xlu1 %v8550_v15, %s6348_s29 }
 0x76d   :  { %3413 = vrot.lane.b32.xlu0 %v8628_v6, %s6342_s27  ;;  %3311 = vrot.lane.b32.xlu1 %v8547_v35, %s6348_s29 }
 0x771   :  { %3479 = vrot.lane.b32.xlu0 %v8646_v3, %s6340_s25  ;;  %3379 = vrot.lane.b32.xlu1 %v8559_v60, %s6346_s0 }
 0x775   :  { %3383 = vrot.lane.b32.xlu0 %v8628_v6, %s6346_s0  ;;  %3345 = vrot.lane.b32.xlu1 %v8574_v16, %s6347_s9 }
 0x779   :  { %3447 = vrot.lane.b32.xlu0 %v8646_v3, %s6345_s1  ;;  %3313 = vrot.lane.b32.xlu1 %v8574_v16, %s6348_s29 }
 0x77d   :  { %3351 = vrot.lane.b32.xlu0 %v8628_v6, %s6347_s9  ;;  %3537 = vrot.lane.b32.xlu1 %v8680_v49, %s6341_s26 }
 0x781   :  { %3417 = vrot.lane.b32.xlu0 %v8646_v3, %s6342_s27  ;;  %3505 = vrot.lane.b32.xlu1 %v8680_v49, %s6343_s2 }
 0x785   :  { %3319 = vrot.lane.b32.xlu0 %v8628_v6, %s6348_s29  ;;  %3473 = vrot.lane.b32.xlu1 %v8680_v49, %s6340_s25 }
 0x789   :  { %3387 = vrot.lane.b32.xlu0 %v8646_v3, %s6346_s0  ;;  %3541 = vrot.lane.b32.xlu1 %v8698_v11, %s6341_s26 }
 0x78b   :  { %v8706_v18 = vpop.permute.xlu0 %3467  ;;  %v8708_v59 = vpop.permute.xlu1 %3527 }
 0x78d   :  { %3355 = vrot.lane.b32.xlu0 %v8646_v3, %s6347_s9  ;;  %3441 = vrot.lane.b32.xlu1 %v8680_v49, %s6345_s1 }
 0x78f   :  { %v8717_v27 = vpop.permute.xlu0 %3535  ;;  %v8719_v52 = vpop.permute.xlu1 %3529 }
 0x791   :  { %3323 = vrot.lane.b32.xlu0 %v8646_v3, %s6348_s29  ;;  %3509 = vrot.lane.b32.xlu1 %v8698_v11, %s6343_s2 }
 0x793   :  { %v8728_v33 = vpop.permute.xlu0 %3433  ;;  %v8730_v12 = vpop.permute.xlu1 %3531 }
 0x795   :  { %3411 = vrot.lane.b32.xlu1 %v8680_v49, %s6342_s27  ;;  %4530 = vrot.lane.b32.xlu0 %v8733_v14, %s6341_s26 }
 0x797   :  { %v8742_v38 = vpop.permute.xlu0 %3501  ;;  %v8744_v47 = vpop.permute.xlu1 %3495 }
 0x799   :  { %3477 = vrot.lane.b32.xlu1 %v8698_v11, %s6340_s25  ;;  %3449 = vrot.lane.b32.xlu0 %v8747_v41, %s6345_s1 }
 0x79b   :  { %v8754_v32 = vpop.permute.xlu0 %3401  ;;  %v8756_v55 = vpop.permute.xlu1 %3497 }
 0x79d   :  { %3381 = vrot.lane.b32.xlu1 %v8680_v49, %s6346_s0  ;;  %4496 = vrot.lane.b32.xlu0 %v8759_v39, %s6343_s2 }
 0x79f   :  { %v8765_v25 = vpop.permute.xlu0 %3405  ;;  %v8767_v62 = vpop.permute.xlu1 %3499 }
 0x7a1   :  { %3445 = vrot.lane.b32.xlu1 %v8698_v11, %s6345_s1  ;;  %4500 = vrot.lane.b32.xlu0 %v8770_v1, %s6343_s2 }
 0x7a3   :  { %v8776_v5 = vpop.permute.xlu0 %3471  ;;  %v8778_v20 = vpop.permute.xlu1 %3463 }
 0x7a5   :  { %3349 = vrot.lane.b32.xlu1 %v8680_v49, %s6347_s9  ;;  %4464 = vrot.lane.b32.xlu0 %v8759_v39, %s6340_s25 }
 0x7a7   :  { %v8784_v10 = vpop.permute.xlu0 %3373  ;;  %v8786_v57 = vpop.permute.xlu1 %3465 }
 0x7a9   :  { %3415 = vrot.lane.b32.xlu1 %v8698_v11, %s6342_s27  ;;  %4468 = vrot.lane.b32.xlu0 %v8770_v1, %s6340_s25 }
 0x7ab   :  { %v8792_v8 = vpop.permute.xlu0 %3437  ;;  %v8794_v63 = vpop.permute.xlu1 %3533 }
 0x7ad   :  { %3317 = vrot.lane.b32.xlu1 %v8680_v49, %s6348_s29  ;;  %4432 = vrot.lane.b32.xlu0 %v8759_v39, %s6345_s1 }
 0x7af   :  { %v8800_v4 = vpop.permute.xlu0 %3341  ;;  %v8802_v54 = vpop.permute.xlu1 %3431 }
 0x7b1   :  { %3385 = vrot.lane.b32.xlu1 %v8698_v11, %s6346_s0  ;;  %4436 = vrot.lane.b32.xlu0 %v8770_v1, %s6345_s1 }
 0x7b3   :  { %v8808_v29 = vpop.permute.xlu0 %3407  ;;  %v8810_v37 = vpop.permute.xlu1 %3435 }
 0x7b5   :  { %3353 = vrot.lane.b32.xlu1 %v8698_v11, %s6347_s9  ;;  %4402 = vrot.lane.b32.xlu0 %v8759_v39, %s6342_s27 }
 0x7b7   :  { %v8816_v26 = vpop.permute.xlu0 %3309  ;;  %v8818_v7 = vpop.permute.xlu1 %3503 }
 0x7b8   :  { %11518 = vst [vmem:[#allocation26_spill] sm:$0xff] %v8816_v26  ;;  %11519 = vst [vmem:[#allocation38_spill] sm:$0xff] %v8818_v7  ;;  %v3197_v7 = vadd.f32 %v3187_v36, %v8540_v21 }
 0x7b9   :  { %3321 = vrot.lane.b32.xlu1 %v8698_v11, %s6348_s29  ;;  %4406 = vrot.lane.b32.xlu0 %v8770_v1, %s6342_s27 }
 0x7ba   :  { %v3207_v56 = vmax.f32 %v3197_v7, 0.0  ;;  %v3189_v7 = vmul.f32 %v8530_v51, %v8427_v23 }
 0x7bb   :  { %v8824_v9 = vpop.permute.xlu0 %3377  ;;  %v8826_v61 = vpop.permute.xlu1 %3403 }
 0x7bc   :  { %11520 = vst [vmem:[#allocation40_spill] sm:$0xff] %v8824_v9 }
 0x7bd   :  { %3545 = vrot.lane.b32.xlu1 %v8747_v41, %s6341_s26  ;;  %4372 = vrot.lane.b32.xlu0 %v8759_v39, %s6346_s0 }
 0x7bf   :  { %v8832_v48 = vpop.permute.xlu0 %3347  ;;  %v8834_v2 = vpop.permute.xlu1 %3469 }
 0x7c0   :  { %11521 = vst [vmem:[#allocation44_spill] sm:$0xff] %v8832_v48 }
 0x7c1   :  { %3513 = vrot.lane.b32.xlu1 %v8747_v41, %s6343_s2  ;;  %4376 = vrot.lane.b32.xlu0 %v8770_v1, %s6346_s0 }
 0x7c3   :  { %v8840_v22 = vpop.permute.xlu0 %3315  ;;  %v8842_v28 = vpop.permute.xlu1 %3371 }
 0x7c4   :  { %11522 = vst [vmem:[#allocation28_spill] sm:$0xff] %v8840_v22 }
 0x7c5   :  { %3481 = vrot.lane.b32.xlu1 %v8747_v41, %s6340_s25  ;;  %4342 = vrot.lane.b32.xlu0 %v8733_v14, %s6347_s9 }
 0x7c7   :  { %v8850_v50 = vpop.permute.xlu0 %3539  ;;  %v8852_v34 = vpop.permute.xlu1 %3375 }
 0x7c8   :  { %11523 = vst [vmem:[#allocation42_spill] sm:$0xff] %v8850_v50  ;;  %11524 = vst [vmem:[#allocation61_spill] sm:$0xff] %v8852_v34  ;;  %v8872_v50 = vmul.f32 %v3207_v56, %v8369_v24  ;;  %v3186_v56 = vmul.f32 %v8530_v51, %v8417_v42 }
 0x7c9   :  { %4308 = vrot.lane.b32.xlu0 %v8759_v39, %s6348_s29  ;;  %4528 = vrot.lane.b32.xlu1 %v8759_v39, %s6341_s26 }
 0x7cb   :  { %v8859_v22 = vpop.permute.xlu0 %3507  ;;  %v8861_v48 = vpop.permute.xlu1 %3439 }
 0x7cc   :  { %11525 = vst [vmem:[#allocation30_spill] sm:$0xff] %v8859_v22  ;;  %11526 = vst [vmem:[#allocation32_spill] sm:$0xff] %v8861_v48 }
 0x7cd   :  { %4312 = vrot.lane.b32.xlu0 %v8770_v1, %s6348_s29  ;;  %4532 = vrot.lane.b32.xlu1 %v8770_v1, %s6341_s26 }
 0x7cf   :  { %v8867_v13 = vpop.permute.xlu0 %3475  ;;  %v8869_v36 = vpop.permute.xlu1 %3339 }
 0x7d0   :  { %11527 = vst [vmem:[#allocation46_spill] sm:$0xff] %v8867_v13  ;;  %11528 = vst [vmem:[#allocation58_spill] sm:$0xff] %v8869_v36  ;;  %v3199_v13 = vadd.f32 %v3189_v7, %v8540_v21  ;;  %v3188_v7 = vmul.f32 %v8530_v51, %v8425_v19 }
 0x7d1   :  { %4536 = vrot.lane.b32.xlu0 %v8872_v50, %s6341_s26  ;;  %4498 = vrot.lane.b32.xlu1 %v8733_v14, %s6343_s2 }
 0x7d2   :  { %v3209_v23 = vmax.f32 %v3199_v13, 0.0  ;;  %v3198_v13 = vadd.f32 %v3188_v7, %v8540_v21 }
 0x7d3   :  { %v8880_v22 = vpop.permute.xlu0 %3543  ;;  %v8882_v48 = vpop.permute.xlu1 %3343 }
 0x7d4   :  { %11529 = vst [vmem:[#allocation34_spill] sm:$0xff] %v8880_v22  ;;  %v3196_v22 = vadd.f32 %v3186_v56, %v8540_v21  ;;  %v8907_v42 = vmul.f32 %v3209_v23, %v8381_v58 }
 0x7d5   :  { %4504 = vrot.lane.b32.xlu0 %v8872_v50, %s6343_s2  ;;  %3419 = vrot.lane.b32.xlu1 %v8747_v41, %s6342_s27 }
 0x7d6   :  { %11532 = vst [vmem:[#allocation37_spill] sm:$0xff] %v8907_v42 }
 0x7d7   :  { %v8891_v24 = vpop.permute.xlu0 %3443  ;;  %v8893_v36 = vpop.permute.xlu1 %3409 }
 0x7d8   :  { %11530 = vst [vmem:[#allocation47_spill] sm:$0xff] %v8891_v24  ;;  %v3206_v24 = vmax.f32 %v3196_v22, 0.0 }
 0x7d9   :  { %4472 = vrot.lane.b32.xlu0 %v8872_v50, %s6340_s25  ;;  %4466 = vrot.lane.b32.xlu1 %v8733_v14, %s6340_s25 }
 0x7da   :  { %v8919_v19 = vmul.f32 %v3206_v24, %v8363_v45 }
 0x7db   :  { %v8902_v34 = vpop.permute.xlu0 %3511  ;;  %v8904_v9 = vpop.permute.xlu1 %3307 }
 0x7dc   :  { %11531 = vst [vmem:[#allocation49_spill] sm:$0xff] %v8902_v34  ;;  %v3208_v34 = vmax.f32 %v3198_v13, 0.0 }
 0x7dd   :  { %4540 = vrot.lane.b32.xlu0 %v8907_v42, %s6341_s26  ;;  %3389 = vrot.lane.b32.xlu1 %v8747_v41, %s6346_s0 }
 0x7de   :  { %v8930_v7 = vmul.f32 %v3208_v34, %v8375_v43 }
 0x7df   :  { %v8914_v56 = vpop.permute.xlu0 %3413  ;;  %v8916_v26 = vpop.permute.xlu1 %3311 }
 0x7e0   :  { %11533 = vst [vmem:[#allocation48_spill] sm:$0xff] %v8914_v56  ;;  %11534 = vst [vmem:[#allocation77_spill] sm:$0xff] %v8916_v26 }
 0x7e1   :  { %4438 = vrot.lane.b32.xlu0 %v8919_v19, %s6345_s1  ;;  %4434 = vrot.lane.b32.xlu1 %v8733_v14, %s6345_s1 }
 0x7e3   :  { %v8925_v22 = vpop.permute.xlu0 %3479  ;;  %v8927_v23 = vpop.permute.xlu1 %3379 }
 0x7e4   :  { %11535 = vst [vmem:[#allocation52_spill] sm:$0xff] %v8925_v22  ;;  %11536 = vst [vmem:[#allocation13_spill] sm:$0xff] %v8927_v23 }
 0x7e5   :  { %4506 = vrot.lane.b32.xlu0 %v8930_v7, %s6343_s2  ;;  %3357 = vrot.lane.b32.xlu1 %v8747_v41, %s6347_s9 }
 0x7e7   :  { %v8936_v24 = vpop.permute.xlu0 %3383  ;;  %v8938_v13 = vpop.permute.xlu1 %3345 }
 0x7e8   :  { %11537 = vst [vmem:[#allocation39_spill] sm:$0xff] %v8936_v24 }
 0x7e9   :  { %4410 = vrot.lane.b32.xlu0 %v8872_v50, %s6342_s27  ;;  %4404 = vrot.lane.b32.xlu1 %v8733_v14, %s6342_s27 }
 0x7eb   :  { %v8944_v58 = vpop.permute.xlu0 %3447  ;;  %v8946_v34 = vpop.permute.xlu1 %3313 }
 0x7ec   :  { %11538 = vst [vmem:[#allocation59_spill] sm:$0xff] %v8944_v58 }
 0x7ed   :  { %4476 = vrot.lane.b32.xlu0 %v8907_v42, %s6340_s25  ;;  %3325 = vrot.lane.b32.xlu1 %v8747_v41, %s6348_s29 }
 0x7ef   :  { %v8952_v43 = vpop.permute.xlu0 %3351  ;;  %v8954_v45 = vpop.permute.xlu1 %3537 }
 0x7f0   :  { %11539 = vst [vmem:[#allocation11_spill] sm:$0xff] %v8952_v43  ;;  %11540 = vst [vmem:[#allocation12_spill] sm:$0xff] %v8954_v45 }
 0x7f1   :  { %4378 = vrot.lane.b32.xlu0 %v8919_v19, %s6346_s0  ;;  %4374 = vrot.lane.b32.xlu1 %v8733_v14, %s6346_s0 }
 0x7f3   :  { %v8960_v24 = vpop.permute.xlu0 %3417  ;;  %v8962_v58 = vpop.permute.xlu1 %3505 }
 0x7f4   :  { %11541 = vst [vmem:[#allocation67_spill] sm:$0xff] %v8960_v24  ;;  %11542 = vst [vmem:[#allocation69_spill] sm:$0xff] %v8962_v58 }
 0x7f5   :  { %4442 = vrot.lane.b32.xlu0 %v8930_v7, %s6345_s1  ;;  %4340 = vrot.lane.b32.xlu1 %v8759_v39, %s6347_s9 }
 0x7f7   :  { %v8968_v23 = vpop.permute.xlu0 %3319  ;;  %v8970_v43 = vpop.permute.xlu1 %3473 }
 0x7f8   :  { %11543 = vst [vmem:[#allocation62_spill] sm:$0xff] %v8968_v23  ;;  %11544 = vst [vmem:[#allocation71_spill] sm:$0xff] %v8970_v43 }
 0x7f9   :  { %4348 = vrot.lane.b32.xlu0 %v8872_v50, %s6347_s9  ;;  %4344 = vrot.lane.b32.xlu1 %v8770_v1, %s6347_s9 }
 0x7fb   :  { %v8976_v26 = vpop.permute.xlu0 %3387  ;;  %v8978_v24 = vpop.permute.xlu1 %3541 }
 0x7fc   :  { %11545 = vst [vmem:[#allocation64_spill] sm:$0xff] %v8976_v26  ;;  %11546 = vst [vmem:[#allocation79_spill] sm:$0xff] %v8978_v24 }
 0x7fd   :  { %4414 = vrot.lane.b32.xlu0 %v8907_v42, %s6342_s27  ;;  %4310 = vrot.lane.b32.xlu1 %v8733_v14, %s6348_s29 }
 0x7ff   :  { %v8984_v22 = vpop.permute.xlu0 %3355  ;;  %v8986_v23 = vpop.permute.xlu1 %3441 }
 0x800   :  { %11547 = vst [vmem:[#allocation53_spill] sm:$0xff] %v8984_v22  ;;  %11548 = vst [vmem:[#allocation81_spill] sm:$0xff] %v8986_v23  ;;  %v3190_v22 = vmul.f32 %v8530_v51, %v8433_v53 }
 0x801   :  { %4314 = vrot.lane.b32.xlu0 %v8919_v19, %s6348_s29  ;;  %4534 = vrot.lane.b32.xlu1 %v8919_v19, %s6341_s26 }
 0x802   :  { %v3200_v43 = vadd.f32 %v3190_v22, %v8540_v21 }
 0x803   :  { %v8992_v56 = vpop.permute.xlu0 %3323  ;;  %v8994_v26 = vpop.permute.xlu1 %3509 }
 0x804   :  { %11549 = vst [vmem:[#allocation54_spill] sm:$0xff] %v8992_v56  ;;  %11550 = vst [vmem:[#allocation73_spill] sm:$0xff] %v8994_v26  ;;  %v3191_v56 = vmul.f32 %v8530_v51, %v8437_v40  ;;  %v3210_v53 = vmax.f32 %v3200_v43, 0.0 }
 0x805   :  { %4382 = vrot.lane.b32.xlu0 %v8930_v7, %s6346_s0  ;;  %4502 = vrot.lane.b32.xlu1 %v8919_v19, %s6343_s2 }
 0x806   :  { %v9027_v45 = vmul.f32 %v3210_v53, %v8387_v31 }
 0x807   :  { %v9002_v23 = vpop.permute.xlu1 %3411  ;;  %v9004_v24 = vpop.permute.xlu0 %4530 }
 0x808   :  { %11551 = vst [vmem:[#allocation66_spill] sm:$0xff] %v9002_v23  ;;  %11552 = vst [vmem:[#allocation75_spill] sm:$0xff] %v9004_v24  ;;  %v3201_v23 = vadd.f32 %v3191_v56, %v8540_v21 }
 0x809   :  { %4352 = vrot.lane.b32.xlu0 %v8907_v42, %s6347_s9  ;;  %4470 = vrot.lane.b32.xlu1 %v8919_v19, %s6340_s25  ;;  %11554 = vst [vmem:[#allocation83_spill] sm:$0xff] %v9027_v45 }
 0x80a   :  { %v3211_v40 = vmax.f32 %v3201_v23, 0.0  ;;  %v3192_v23 = vmul.f32 %v8530_v51, %v8441_v0 }
 0x80b   :  { %v9013_v26 = vpop.permute.xlu1 %3477  ;;  %v9015_v58 = vpop.permute.xlu0 %3449 }
 0x80c   :  { %11553 = vst [vmem:[#allocation68_spill] sm:$0xff] %v9015_v58  ;;  %v9038_v58 = vmul.f32 %v3211_v40, %v8393_v30 }
 0x80d   :  { %4318 = vrot.lane.b32.xlu0 %v8930_v7, %s6348_s29  ;;  %4538 = vrot.lane.b32.xlu1 %v8930_v7, %s6341_s26 }
 0x80e   :  { %11557 = vst [vmem:[#allocation57_spill] sm:$0xff] %v9038_v58 }
 0x80f   :  { %v9022_v22 = vpop.permute.xlu1 %3381  ;;  %v9024_v24 = vpop.permute.xlu0 %4496 }
 0x811   :  { %4542 = vrot.lane.b32.xlu0 %v9027_v45, %s6341_s26  ;;  %4440 = vrot.lane.b32.xlu1 %v8872_v50, %s6345_s1 }
 0x813   :  { %v9033_v43 = vpop.permute.xlu1 %3445  ;;  %v9035_v56 = vpop.permute.xlu0 %4500 }
 0x814   :  { %11555 = vst [vmem:[#allocation55_spill] sm:$0xff] %v9033_v43  ;;  %11556 = vst [vmem:[#allocation84_spill] sm:$0xff] %v9035_v56  ;;  %v3202_v43 = vadd.f32 %v3192_v23, %v8540_v21 }
 0x815   :  { %4512 = vrot.lane.b32.xlu0 %v9038_v58, %s6343_s2  ;;  %4508 = vrot.lane.b32.xlu1 %v8907_v42, %s6343_s2 }
 0x816   :  { %v3212_v56 = vmax.f32 %v3202_v43, 0.0 }
 0x817   :  { %v9046_v53 = vpop.permute.xlu1 %3349  ;;  %v9048_v31 = vpop.permute.xlu0 %4464 }
 0x818   :  { %v9068_v21 = vmul.f32 %v3212_v56, %v8395_v44 }
 0x819   :  { %3563 = vrot.lane.b32.xlu0 %v8562_v17, %s6344_s28  ;;  %4408 = vrot.lane.b32.xlu1 %v8919_v19, %s6342_s27 }
 0x81a   :  { %11559 = vst [vmem:[#allocation70_spill] sm:$0xff] %v9068_v21 }
 0x81b   :  { %v9055_v40 = vpop.permute.xlu1 %3415  ;;  %v9057_v30 = vpop.permute.xlu0 %4468 }
 0x81c   :  { %11558 = vst [vmem:[#allocation76_spill] sm:$0xff] %v9057_v30 }
 0x81d   :  { %4478 = vrot.lane.b32.xlu0 %v9027_v45, %s6340_s25  ;;  %4474 = vrot.lane.b32.xlu1 %v8930_v7, %s6340_s25 }
 0x81f   :  { %v9063_v0 = vpop.permute.xlu1 %3317  ;;  %v9065_v51 = vpop.permute.xlu0 %4432 }
 0x821   :  { %4546 = vrot.lane.b32.xlu0 %v9068_v21, %s6341_s26  ;;  %4380 = vrot.lane.b32.xlu1 %v8872_v50, %s6346_s0 }
 0x823   :  { %v9074_v17 = vpop.permute.xlu1 %3385  ;;  %v9076_v43 = vpop.permute.xlu0 %4436 }
 0x824   :  { %11560 = vst [vmem:[#allocation78_spill] sm:$0xff] %v9076_v43 }
 0x825   :  { %4448 = vrot.lane.b32.xlu0 %v9038_v58, %s6345_s1  ;;  %4444 = vrot.lane.b32.xlu1 %v8907_v42, %s6345_s1 }
 0x827   :  { %v9082_v23 = vpop.permute.xlu1 %3353  ;;  %v9084_v56 = vpop.permute.xlu0 %4402 }
 0x828   :  { %11561 = vst [vmem:[#allocation72_spill] sm:$0xff] %v9082_v23 }
 0x829   :  { %3565 = vrot.lane.b32.xlu0 %v8547_v35, %s6344_s28  ;;  %4346 = vrot.lane.b32.xlu1 %v8919_v19, %s6347_s9 }
 0x82b   :  { %v9090_v44 = vpop.permute.xlu1 %3321  ;;  %v9092_v30 = vpop.permute.xlu0 %4406 }
 0x82c   :  { %11562 = vst [vmem:[#allocation88_spill] sm:$0xff] %v9090_v44  ;;  %11563 = vst [vmem:[#allocation60_spill] sm:$0xff] %v9092_v30 }
 0x82d   :  { %4416 = vrot.lane.b32.xlu0 %v9027_v45, %s6342_s27  ;;  %4412 = vrot.lane.b32.xlu1 %v8930_v7, %s6342_s27 }
 0x82f   :  { %v9098_v43 = vpop.permute.xlu1 %3545  ;;  %v9100_v23 = vpop.permute.xlu0 %4372 }
 0x830   :  { %11564 = vst [vmem:[#allocation89_spill] sm:$0xff] %v9098_v43  ;;  %11565 = vst [vmem:[#allocation63_spill] sm:$0xff] %v9100_v23 }
 0x831   :  { %4482 = vrot.lane.b32.xlu0 %v9068_v21, %s6340_s25  ;;  %4316 = vrot.lane.b32.xlu1 %v8872_v50, %s6348_s29 }
 0x833   :  { %v9106_v35 = vpop.permute.xlu1 %3513  ;;  %v9108_v44 = vpop.permute.xlu0 %4376 }
 0x834   :  { %11566 = vst [vmem:[#allocation19_spill] sm:$0xff] %v9106_v35  ;;  %11567 = vst [vmem:[#allocation14_spill] sm:$0xff] %v9108_v44 }
 0x835   :  { %4388 = vrot.lane.b32.xlu0 %v9038_v58, %s6346_s0  ;;  %4384 = vrot.lane.b32.xlu1 %v8907_v42, %s6346_s0 }
 0x837   :  { %v9114_v30 = vpop.permute.xlu1 %3481  ;;  %v9116_v43 = vpop.permute.xlu0 %4342 }
 0x838   :  { %11568 = vst [vmem:[#allocation80_spill] sm:$0xff] %v9114_v30  ;;  %11569 = vst [vmem:[#allocation74_spill] sm:$0xff] %v9116_v43 }
 0x839   :  { %4354 = vrot.lane.b32.xlu0 %v9027_v45, %s6347_s9  ;;  %4350 = vrot.lane.b32.xlu1 %v8930_v7, %s6347_s9 }
 0x83b   :  { %v9122_v23 = vpop.permute.xlu0 %4308  ;;  %v9124_v35 = vpop.permute.xlu1 %4528 }
 0x83c   :  { %11570 = vst [vmem:[#allocation90_spill] sm:$0xff] %v9122_v23 }
 0x83d   :  { %4420 = vrot.lane.b32.xlu0 %v9068_v21, %s6342_s27  ;;  %4320 = vrot.lane.b32.xlu1 %v8907_v42, %s6348_s29 }
 0x83f   :  { %v9130_v44 = vpop.permute.xlu0 %4312  ;;  %v9132_v30 = vpop.permute.xlu1 %4532 }
 0x840   :  { %11571 = vst [vmem:[#allocation65_spill] sm:$0xff] %v9130_v44  ;;  %11572 = vst [vmem:[#allocation23_spill] sm:$0xff] %v9132_v30 }
 0x841   :  { %4324 = vrot.lane.b32.xlu0 %v9038_v58, %s6348_s29  ;;  %4544 = vrot.lane.b32.xlu1 %v9038_v58, %s6341_s26 }
 0x843   :  { %v9138_v43 = vpop.permute.xlu0 %4536  ;;  %v9140_v23 = vpop.permute.xlu1 %4498 }
 0x844   :  { %11573 = vst [vmem:[#allocation36_spill] sm:$0xff] %v9138_v43  ;;  %11574 = vst [vmem:[#allocation16_spill] sm:$0xff] %v9140_v23 }
 0x845   :  { %4358 = vrot.lane.b32.xlu0 %v9068_v21, %s6347_s9  ;;  %4510 = vrot.lane.b32.xlu1 %v9027_v45, %s6343_s2 }
 0x847   :  { %v9146_v42 = vpop.permute.xlu0 %4504  ;;  %v9148_v44 = vpop.permute.xlu1 %3419 }
 0x848   :  { %11575 = vst [vmem:[#allocation82_spill] sm:$0xff] %v9146_v42 }
 0x849   :  { %3569 = vrot.lane.b32.xlu0 %v8559_v60, %s6344_s28  ;;  %3561 = vrot.lane.b32.xlu1 %v8550_v15, %s6344_s28 }
 0x84b   :  { %v9154_v30 = vpop.permute.xlu0 %4472  ;;  %v9156_v43 = vpop.permute.xlu1 %4466 }
 0x84c   :  { %11576 = vst [vmem:[#allocation41_spill] sm:$0xff] %v9154_v30 }
 0x84d   :  { %3573 = vrot.lane.b32.xlu0 %v8628_v6, %s6344_s28  ;;  %4480 = vrot.lane.b32.xlu1 %v9038_v58, %s6340_s25 }
 0x84f   :  { %v9162_v23 = vpop.permute.xlu0 %4540  ;;  %v9164_v42 = vpop.permute.xlu1 %3389 }
 0x850   :  { %11577 = vst [vmem:[#allocation56_spill] sm:$0xff] %v9162_v23  ;;  %11578 = vst [vmem:[#allocation17_spill] sm:$0xff] %v9164_v42 }
 0x851   :  { %3577 = vrot.lane.b32.xlu0 %v8646_v3, %s6344_s28  ;;  %4446 = vrot.lane.b32.xlu1 %v9027_v45, %s6345_s1 }
 0x853   :  { %v9170_v15 = vpop.permute.xlu0 %4438  ;;  %v9172_v60 = vpop.permute.xlu1 %4434 }
 0x854   :  { %11579 = vst [vmem:[#allocation86_spill] sm:$0xff] %v9170_v15 }
 0x855   :  { %4562 = vrot.lane.b32.xlu0 %v8759_v39, %s6344_s28  ;;  %4514 = vrot.lane.b32.xlu1 %v9068_v21, %s6343_s2 }
 0x857   :  { %v9178_v6 = vpop.permute.xlu0 %4506  ;;  %v9180_v23 = vpop.permute.xlu1 %3357 }
 0x858   :  { %11580 = vst [vmem:[#allocation85_spill] sm:$0xff] %v9178_v6 }
 0x859   :  { %4566 = vrot.lane.b32.xlu0 %v8770_v1, %s6344_s28  ;;  %3567 = vrot.lane.b32.xlu1 %v8574_v16, %s6344_s28 }
 0x85b   :  { %v9186_v3 = vpop.permute.xlu0 %4410  ;;  %v9188_v30 = vpop.permute.xlu1 %4404 }
 0x85c   :  { %11581 = vst [vmem:[#allocation91_spill] sm:$0xff] %v9186_v3 }
 0x85d   :  { %4570 = vrot.lane.b32.xlu0 %v8872_v50, %s6344_s28  ;;  %4418 = vrot.lane.b32.xlu1 %v9038_v58, %s6342_s27 }
 0x85f   :  { %v9194_v39 = vpop.permute.xlu0 %4476  ;;  %v9196_v6 = vpop.permute.xlu1 %3325 }
 0x860   :  { %11582 = vst [vmem:[#allocation92_spill] sm:$0xff] %v9194_v39  ;;  %11583 = vst [vmem:[#allocation93_spill] sm:$0xff] %v9196_v6 }
 0x861   :  { %3713 = vrot.lane.b32.xlu0 %v8744_v47, %s6344_s28  ;;  %4386 = vrot.lane.b32.xlu1 %v9027_v45, %s6346_s0 }
 0x863   :  { %v9202_v16 = vpop.permute.xlu0 %4378  ;;  %v9204_v1 = vpop.permute.xlu1 %4374 }
 0x864   :  { %11584 = vst [vmem:[#allocation94_spill] sm:$0xff] %v9202_v16 }
 0x865   :  { %3669 = vrot.lane.b32.xlu0 %v8802_v54, %s6344_s28  ;;  %4450 = vrot.lane.b32.xlu1 %v9068_v21, %s6345_s1 }
 0x867   :  { %v9210_v50 = vpop.permute.xlu0 %4442  ;;  %v9212_v39 = vpop.permute.xlu1 %4340 }
 0x868   :  { %11585 = vst [vmem:[#allocation95_spill] sm:$0xff] %v9210_v50 }
 0x869   :  { %4356 = vrot.lane.b32.xlu1 %v9038_v58, %s6347_s9  ;;  %4736 = vrot.lane.b32.xlu0 %v9124_v35, %s6344_s28 }
 0x86b   :  { %v9218_v3 = vpop.permute.xlu0 %4348  ;;  %v9220_v16 = vpop.permute.xlu1 %4344 }
 0x86c   :  { %11586 = vst [vmem:[#allocation96_spill] sm:$0xff] %v9218_v3  ;;  %11587 = vst [vmem:[#allocation97_spill] sm:$0xff] %v9220_v16 }
 0x86d   :  { %4322 = vrot.lane.b32.xlu1 %v9027_v45, %s6348_s29  ;;  %4692 = vrot.lane.b32.xlu0 %v9048_v31, %s6344_s28 }
 0x86f   :  { %v9226_v15 = vpop.permute.xlu0 %4414  ;;  %v9228_v50 = vpop.permute.xlu1 %4310 }
 0x870   :  { %11588 = vst [vmem:[#allocation98_spill] sm:$0xff] %v9226_v15 }
 0x871   :  { %4390 = vrot.lane.b32.xlu1 %v9068_v21, %s6346_s0  ;;  %3645 = vrot.lane.b32.xlu0 %v9164_v42, %s6344_s28 }
 0x873   :  { %v9234_v58 = vpop.permute.xlu0 %4314  ;;  %v9236_v3 = vpop.permute.xlu1 %4534 }
 0x874   :  { %11589 = vst [vmem:[#allocation99_spill] sm:$0xff] %v9234_v58 }
 0x875   :  { %4326 = vrot.lane.b32.xlu1 %v9068_v21, %s6348_s29  ;;  %4648 = vrot.lane.b32.xlu0 %v9084_v56, %s6344_s28  ;;  %v3550_v21 = vsel %vm1201_vm0, %v8719_v52, %v8730_v12 }
 0x877   :  { %v9242_v45 = vpop.permute.xlu0 %4382  ;;  %v9244_v15 = vpop.permute.xlu1 %4502 }
 0x878   :  { %11590 = vst [vmem:[#allocation100_spill] sm:$0xff] %v9242_v45 }
 0x879   :  { %3571 = vrot.lane.b32.xlu1 %v8680_v49, %s6344_s28  ;;  %3601 = vrot.lane.b32.xlu0 %v9196_v6, %s6344_s28  ;;  %v3517_v49 = vsel %vm1168_vm1, %v8744_v47, %v8756_v55 }
 0x87b   :  { %v9250_v16 = vpop.permute.xlu0 %4352  ;;  %v9252_v58 = vpop.permute.xlu1 %4470 }
 0x87c   :  { %11591 = vst [vmem:[#allocation101_spill] sm:$0xff] %v9250_v16 }
 0x87d   :  { %3575 = vrot.lane.b32.xlu1 %v8698_v11, %s6344_s28  ;;  %3739 = vrot.lane.b32.xlu0 %v3550_v21, %s6344_s28  ;;  %v3486_v11 = vsel %vm1135_vm2, %v8786_v57, %v8706_v18 }
 0x87f   :  { %v9260_v45 = vpop.permute.xlu0 %4318  ;;  %v9262_v42 = vpop.permute.xlu1 %4538 }
 0x880   :  { %11592 = vst [vmem:[#allocation102_spill] sm:$0xff] %v9260_v45  ;;  %v6138_v45 = vunpack.i.l.bf16 %v8445_v46 }
 0x881   :  { %3579 = vrot.lane.b32.xlu1 %v8747_v41, %s6344_s28  ;;  %3715 = vrot.lane.b32.xlu0 %v3517_v49, %s6344_s28  ;;  %v3552_v41 = vsel %vm1201_vm0, %v8794_v63, %v8717_v27 }
 0x883   :  { %v9270_v16 = vpop.permute.xlu0 %4542  ;;  %v9272_v6 = vpop.permute.xlu1 %4440 }
 0x884   :  { %11593 = vst [vmem:[#allocation103_spill] sm:$0xff] %v9270_v16  ;;  %11594 = vst [vmem:[#allocation104_spill] sm:$0xff] %v9272_v6 }
 0x885   :  { %4564 = vrot.lane.b32.xlu1 %v8733_v14, %s6344_s28  ;;  %3695 = vrot.lane.b32.xlu0 %v3486_v11, %s6344_s28  ;;  %v3453_v14 = vsel %vm1102_vm3, %v8802_v54, %v8728_v33 }
 0x887   :  { %v9280_v21 = vpop.permute.xlu0 %4512  ;;  %v9282_v47 = vpop.permute.xlu1 %4508 }
 0x888   :  { %11595 = vst [vmem:[#allocation105_spill] sm:$0xff] %v9280_v21  ;;  %11596 = vst [vmem:[#allocation106_spill] sm:$0xff] %v9282_v47 }
 0x889   :  { %4568 = vrot.lane.b32.xlu1 %v8919_v19, %s6344_s28  ;;  %3743 = vrot.lane.b32.xlu0 %v3552_v41, %s6344_s28  ;;  %v3519_v19 = vsel %vm1168_vm1, %v8767_v62, %v8742_v38 }
 0x88b   :  { %v9290_v49 = vpop.permute.xlu0 %3563  ;;  %v9292_v16 = vpop.permute.xlu1 %4408 }
 0x88d   :  { %4572 = vrot.lane.b32.xlu1 %v8930_v7, %s6344_s28  ;;  %3671 = vrot.lane.b32.xlu0 %v3453_v14, %s6344_s28  ;;  %v3422_v7 = vsel %vm1069_vm4, %v8826_v61, %v8765_v25 }
 0x88f   :  { %v9300_v11 = vpop.permute.xlu0 %4478  ;;  %v9302_v21 = vpop.permute.xlu1 %4474 }
 0x890   :  { %11597 = vst [vmem:[#allocation107_spill] sm:$0xff] %v9300_v11 }
 0x891   :  { %3735 = vrot.lane.b32.xlu1 %v8708_v59, %s6344_s28  ;;  %3719 = vrot.lane.b32.xlu0 %v3519_v19, %s6344_s28  ;;  %v3488_v19 = vsel %vm1135_vm2, %v8834_v2, %v8776_v5 }
 0x893   :  { %v9310_v41 = vpop.permute.xlu0 %4546  ;;  %v9312_v54 = vpop.permute.xlu1 %4380 }
 0x894   :  { %11598 = vst [vmem:[#allocation108_spill] sm:$0xff] %v9310_v41  ;;  %11599 = vst [vmem:[#allocation109_spill] sm:$0xff] %v9312_v54 }
 0x895   :  { %3691 = vrot.lane.b32.xlu1 %v8778_v20, %s6344_s28  ;;  %3651 = vrot.lane.b32.xlu0 %v3422_v7, %s6344_s28  ;;  %v3392_v7 = vsel %vm1038_vm5, %v8842_v28, %v8784_v10 }
 0x897   :  { %v9320_v14 = vpop.permute.xlu0 %4448  ;;  %v9322_v11 = vpop.permute.xlu1 %4444 }
 0x898   :  { %11600 = vst [vmem:[#allocation110_spill] sm:$0xff] %v9320_v14  ;;  %11601 = vst [vmem:[#allocation111_spill] sm:$0xff] %v9322_v11 }
 0x899   :  { %3647 = vrot.lane.b32.xlu1 %v8754_v32, %s6344_s28  ;;  %3699 = vrot.lane.b32.xlu0 %v3488_v19, %s6344_s28  ;;  %v3455_v19 = vsel %vm1102_vm3, %v8810_v37, %v8792_v8 }
 0x89b   :  { %v9330_v41 = vpop.permute.xlu0 %3565  ;;  %v9332_v47 = vpop.permute.xlu1 %4346 }
 0x89c   :  { %11602 = vst [vmem:[#allocation112_spill] sm:$0xff] %v9330_v41  ;;  %11603 = vst [vmem:[#allocation113_spill] sm:$0xff] %v9332_v47 }
 0x89d   :  { %4714 = vrot.lane.b32.xlu1 %v9024_v24, %s6344_s28  ;;  %3627 = vrot.lane.b32.xlu0 %v3392_v7, %s6344_s28  ;;  %v3391_v7 = vsel %vm1038_vm5, %v6138_v45, %v8842_v28  ;;  %v3549_v28 = vsel %vm1201_vm0, %v8708_v59, %v8719_v52 }
 0x89f   :  { %v9340_v14 = vpop.permute.xlu0 %4416  ;;  %v9342_v11 = vpop.permute.xlu1 %4412 }
 0x8a0   :  { %11604 = vst [vmem:[#allocation114_spill] sm:$0xff] %v9340_v14  ;;  %11605 = vst [vmem:[#allocation115_spill] sm:$0xff] %v9342_v11 }
 0x8a1   :  { %3667 = vrot.lane.b32.xlu1 %v9148_v44, %s6344_s28  ;;  %3675 = vrot.lane.b32.xlu0 %v3455_v19, %s6344_s28  ;;  %v3361_v19 = vsel %vm1005_vm6, %v8800_v4, %v8882_v48 }
 0x8a3   :  { %v9351_v54 = vpop.permute.xlu0 %4482  ;;  %v9353_v47 = vpop.permute.xlu1 %4316 }
 0x8a4   :  { %11606 = vst [vmem:[#allocation116_spill] sm:$0xff] %v9351_v54  ;;  %11607 = vst [vmem:[#allocation117_spill] sm:$0xff] %v9353_v47 }
 0x8a5   :  { %4670 = vrot.lane.b32.xlu1 %v9065_v51, %s6344_s28  ;;  %3625 = vrot.lane.b32.xlu0 %v3391_v7, %s6344_s28  ;;  %v3424_v7 = vsel %vm1069_vm4, %v8808_v29, %v8893_v36 }
 0x8a7   :  { %v9360_v14 = vpop.permute.xlu0 %4388  ;;  %v9362_v11 = vpop.permute.xlu1 %4384 }
 0x8a8   :  { %11608 = vst [vmem:[#allocation118_spill] sm:$0xff] %v9360_v14  ;;  %11609 = vst [vmem:[#allocation119_spill] sm:$0xff] %v9362_v11 }
 0x8a9   :  { %3623 = vrot.lane.b32.xlu1 %v9180_v23, %s6344_s28  ;;  %3607 = vrot.lane.b32.xlu0 %v3361_v19, %s6344_s28  ;;  %v3518_v19 = vsel %vm1168_vm1, %v8756_v55, %v8767_v62  ;;  %v3485_v55 = vsel %vm1135_vm2, %v8778_v20, %v8786_v57  ;;  %v11619_v62 = vld [vmem:[#allocation50_spill] sm:$0xff] }
 0x8ab   :  { %v9370_v54 = vpop.permute.xlu0 %4354  ;;  %v9372_v45 = vpop.permute.xlu1 %4350 }
 0x8ac   :  { %11610 = vst [vmem:[#allocation120_spill] sm:$0xff] %v9370_v54  ;;  %11611 = vst [vmem:[#allocation121_spill] sm:$0xff] %v9372_v45  ;;  %v11614_v54 = vld [vmem:[#allocation26_spill] sm:$0xff] }
 0x8ad   :  { %3737 = vrot.lane.b32.xlu1 %v3549_v28, %s6344_s28  ;;  %3655 = vrot.lane.b32.xlu0 %v3424_v7, %s6344_s28  ;;  %v3328_v59 = vsel %vm972_vm7, %v8904_v9, %v11614_v54  ;;  %v11617_v7 = vld [vmem:[#allocation40_spill] sm:$0xff] }
 0x8af   :  { %v9382_v14 = vpop.permute.xlu0 %4420  ;;  %v9384_v11 = vpop.permute.xlu1 %4320 }
 0x8b0   :  { %11612 = vst [vmem:[#allocation122_spill] sm:$0xff] %v9382_v14  ;;  %11613 = vst [vmem:[#allocation123_spill] sm:$0xff] %v9384_v11  ;;  %v11618_v14 = vld [vmem:[#allocation61_spill] sm:$0xff] }
 0x8b1   :  { %3717 = vrot.lane.b32.xlu1 %v3518_v19, %s6344_s28  ;;  %3583 = vrot.lane.b32.xlu0 %v3328_v59, %s6344_s28  ;;  %v3394_v11 = vsel %vm1038_vm5, %v11618_v14, %v11617_v7  ;;  %v6148_v19 = vunpack.i.l.bf16 %v11619_v62  ;;  %v11652_v62 = vld [vmem:[#allocation48_spill] sm:$0xff] }
 0x8b3   :  { %v9394_v52 = vpop.permute.xlu0 %4324  ;;  %v9396_v28 = vpop.permute.xlu1 %4544 }
 0x8b4   :  { %11615 = vst [vmem:[#allocation26_spill] sm:$0xff] %v9394_v52  ;;  %11616 = vst [vmem:[#allocation124_spill] sm:$0xff] %v9396_v28  ;;  %v3327_v52 = vsel %vm972_vm7, %v6148_v19, %v8904_v9  ;;  %v3551_v28 = vsel %vm1201_vm0, %v8730_v12, %v8794_v63  ;;  %v3454_v9 = vsel %vm1102_vm3, %v8728_v33, %v8810_v37  ;;  %v11627_v19 = vld [vmem:[#allocation38_spill] sm:$0xff] }
 0x8b5   :  { %3631 = vrot.lane.b32.xlu0 %v3394_v11, %s6344_s28  ;;  %3693 = vrot.lane.b32.xlu1 %v3485_v55, %s6344_s28  ;;  %v11623_v11 = vld [vmem:[#allocation44_spill] sm:$0xff] }
 0x8b6   :  { %v3363_v55 = vsel %vm1005_vm6, %v8938_v13, %v11623_v11 }
 0x8b7   :  { %v9407_v47 = vpop.permute.xlu0 %4358  ;;  %v9409_v59 = vpop.permute.xlu1 %4510 }
 0x8b8   :  { %11620 = vst [vmem:[#allocation40_spill] sm:$0xff] %v9407_v47  ;;  %11621 = vst [vmem:[#allocation61_spill] sm:$0xff] %v9409_v59  ;;  %v3520_v47 = vsel %vm1168_vm1, %v8742_v38, %v11627_v19  ;;  %v11648_v59 = vld [vmem:[#allocation30_spill] sm:$0xff] }
 0x8b9   :  { %3581 = vrot.lane.b32.xlu0 %v3327_v52, %s6344_s28  ;;  %3741 = vrot.lane.b32.xlu1 %v3551_v28, %s6344_s28  ;;  %v11626_v52 = vld [vmem:[#allocation28_spill] sm:$0xff] }
 0x8ba   :  { %v3331_v28 = vsel %vm972_vm7, %v8946_v34, %v11626_v52 }
 0x8bb   :  { %v9418_v20 = vpop.permute.xlu0 %3569  ;;  %v9420_v57 = vpop.permute.xlu1 %3561 }
 0x8bc   :  { %11622 = vst [vmem:[#allocation125_spill] sm:$0xff] %v9418_v20  ;;  %v3487_v20 = vsel %vm1135_vm2, %v8706_v18, %v8834_v2 }
 0x8bd   :  { %3611 = vrot.lane.b32.xlu0 %v3363_v55, %s6344_s28  ;;  %3673 = vrot.lane.b32.xlu1 %v3454_v9, %s6344_s28  ;;  %v11630_v55 = vld [vmem:[#allocation42_spill] sm:$0xff]  ;;  %v11631_v9 = vld [vmem:[#allocation12_spill] sm:$0xff] }
 0x8bf   :  { %v9430_v12 = vpop.permute.xlu0 %3573  ;;  %v9432_v63 = vpop.permute.xlu1 %4480 }
 0x8c0   :  { %11624 = vst [vmem:[#allocation44_spill] sm:$0xff] %v9430_v12  ;;  %11625 = vst [vmem:[#allocation126_spill] sm:$0xff] %v9432_v63  ;;  %v3554_v12 = vsel %vm1201_vm0, %v11631_v9, %v11630_v55  ;;  %v3421_v63 = vsel %vm1069_vm4, %v8754_v32, %v8826_v61 }
 0x8c1   :  { %3589 = vrot.lane.b32.xlu0 %v3331_v28, %s6344_s28  ;;  %3721 = vrot.lane.b32.xlu1 %v3520_v47, %s6344_s28  ;;  %v11634_v47 = vld [vmem:[#allocation69_spill] sm:$0xff] }
 0x8c3   :  { %v9442_v33 = vpop.permute.xlu0 %3577  ;;  %v9444_v37 = vpop.permute.xlu1 %4446 }
 0x8c4   :  { %11628 = vst [vmem:[#allocation28_spill] sm:$0xff] %v9442_v33  ;;  %11629 = vst [vmem:[#allocation38_spill] sm:$0xff] %v9444_v37  ;;  %v3521_v33 = vsel %vm1168_vm1, %v11627_v19, %v11634_v47  ;;  %v3393_v19 = vsel %vm1038_vm5, %v8784_v10, %v11618_v14 }
 0x8c5   :  { %3747 = vrot.lane.b32.xlu0 %v3554_v12, %s6344_s28  ;;  %3649 = vrot.lane.b32.xlu1 %v3421_v63, %s6344_s28  ;;  %v11636_v12 = vld [vmem:[#allocation46_spill] sm:$0xff]  ;;  %v11637_v63 = vld [vmem:[#allocation71_spill] sm:$0xff] }
 0x8c7   :  { %v9454_v38 = vpop.permute.xlu0 %4562  ;;  %v9456_v28 = vpop.permute.xlu1 %4514 }
 0x8c8   :  { %11632 = vst [vmem:[#allocation42_spill] sm:$0xff] %v9454_v38  ;;  %11633 = vst [vmem:[#allocation12_spill] sm:$0xff] %v9456_v28  ;;  %v3490_v38 = vsel %vm1135_vm2, %v11637_v63, %v11636_v12  ;;  %v11642_v28 = vld [vmem:[#allocation32_spill] sm:$0xff] }
 0x8c9   :  { %3723 = vrot.lane.b32.xlu0 %v3521_v33, %s6344_s28  ;;  %3697 = vrot.lane.b32.xlu1 %v3487_v20, %s6344_s28  ;;  %v11640_v20 = vld [vmem:[#allocation34_spill] sm:$0xff]  ;;  %v11641_v33 = vld [vmem:[#allocation79_spill] sm:$0xff]  ;;  %v3456_v37 = vsel %vm1102_vm3, %v8792_v8, %v11642_v28 }
 0x8cb   :  { %v9466_v61 = vpop.permute.xlu0 %4566  ;;  %v9468_v32 = vpop.permute.xlu1 %3567 }
 0x8cc   :  { %11635 = vst [vmem:[#allocation69_spill] sm:$0xff] %v9466_v61  ;;  %v3556_v61 = vsel %vm1201_vm0, %v11641_v33, %v11640_v20 }
 0x8cd   :  { %3703 = vrot.lane.b32.xlu0 %v3490_v38, %s6344_s28  ;;  %3629 = vrot.lane.b32.xlu1 %v3393_v19, %s6344_s28  ;;  %v11644_v38 = vld [vmem:[#allocation81_spill] sm:$0xff] }
 0x8ce   :  { %v3457_v19 = vsel %vm1102_vm3, %v11642_v28, %v11644_v38  ;;  %v3423_v28 = vsel %vm1069_vm4, %v8765_v25, %v8808_v29 }
 0x8cf   :  { %v9478_v2 = vpop.permute.xlu0 %4570  ;;  %v9480_v18 = vpop.permute.xlu1 %4418 }
 0x8d0   :  { %11638 = vst [vmem:[#allocation46_spill] sm:$0xff] %v9478_v2  ;;  %11639 = vst [vmem:[#allocation71_spill] sm:$0xff] %v9480_v18  ;;  %v11645_v2 = vld [vmem:[#allocation58_spill] sm:$0xff] }
 0x8d1   :  { %3751 = vrot.lane.b32.xlu0 %v3556_v61, %s6344_s28  ;;  %3677 = vrot.lane.b32.xlu1 %v3456_v37, %s6344_s28  ;;  %v3360_v18 = vsel %vm1005_vm6, %v11645_v2, %v8800_v4  ;;  %v11647_v37 = vld [vmem:[#allocation73_spill] sm:$0xff] }
 0x8d2   :  { %v11649_v4 = vld [vmem:[#allocation29_spill] sm:$0xff] }
 0x8d3   :  { %v9490_v10 = vpop.permute.xlu0 %3713  ;;  %v9492_v14 = vpop.permute.xlu1 %4386 }
 0x8d4   :  { %11643 = vst [vmem:[#allocation34_spill] sm:$0xff] %v9492_v14  ;;  %v3523_v14 = vsel %vm1168_vm1, %v11648_v59, %v11647_v37 }
 0x8d5   :  { %3679 = vrot.lane.b32.xlu0 %v3457_v19, %s6344_s28  ;;  %3605 = vrot.lane.b32.xlu1 %v3360_v18, %s6344_s28  ;;  %v6143_v19 = vunpack.i.l.bf16 %v11649_v4 }
 0x8d7   :  { %v9502_v8 = vpop.permute.xlu0 %3669  ;;  %v9504_v61 = vpop.permute.xlu1 %4450  ;;  %v3359_v41 = vsel %vm1005_vm6, %v6143_v19, %v11645_v2 }
 0x8d8   :  { %11646 = vst [vmem:[#allocation79_spill] sm:$0xff] %v9504_v61  ;;  %v11653_v61 = vld [vmem:[#allocation66_spill] sm:$0xff] }
 0x8d9   :  { %3727 = vrot.lane.b32.xlu0 %v3523_v14, %s6344_s28  ;;  %3653 = vrot.lane.b32.xlu1 %v3423_v28, %s6344_s28  ;;  %v3426_v6 = vsel %vm1069_vm4, %v11653_v61, %v11652_v62  ;;  %v11656_v14 = vld [vmem:[#allocation52_spill] sm:$0xff] }
 0x8da   :  { %v3492_v28 = vsel %vm1135_vm2, %v9013_v26, %v11656_v14 }
 0x8db   :  { %v9515_v45 = vpop.permute.xlu0 %4736  ;;  %v9517_v18 = vpop.permute.xlu1 %4356 }
 0x8dc   :  { %11650 = vst [vmem:[#allocation32_spill] sm:$0xff] %v9515_v45  ;;  %11651 = vst [vmem:[#allocation81_spill] sm:$0xff] %v9517_v18  ;;  %v11657_v18 = vld [vmem:[#allocation77_spill] sm:$0xff] }
 0x8dd   :  { %3659 = vrot.lane.b32.xlu0 %v3426_v6, %s6344_s28  ;;  %3603 = vrot.lane.b32.xlu1 %v3359_v41, %s6344_s28  ;;  %v3329_v45 = vsel %vm972_vm7, %v11614_v54, %v11657_v18  ;;  %v11660_v41 = vld [vmem:[#allocation13_spill] sm:$0xff] }
 0x8de   :  { %v3396_v19 = vsel %vm1038_vm5, %v11660_v41, %v9022_v22 }
 0x8df   :  { %v9526_v25 = vpop.permute.xlu0 %4692  ;;  %v9528_v29 = vpop.permute.xlu1 %4322 }
 0x8e0   :  { %11654 = vst [vmem:[#allocation58_spill] sm:$0xff] %v9526_v25  ;;  %11655 = vst [vmem:[#allocation73_spill] sm:$0xff] %v9528_v29  ;;  %v3395_v25 = vsel %vm1038_vm5, %v11617_v7, %v11660_v41  ;;  %v3362_v29 = vsel %vm1005_vm6, %v8882_v48, %v8938_v13 }
 0x8e1   :  { %3707 = vrot.lane.b32.xlu0 %v3492_v28, %s6344_s28  ;;  %3585 = vrot.lane.b32.xlu1 %v3329_v45, %s6344_s28  ;;  %v11663_v45 = vld [vmem:[#allocation55_spill] sm:$0xff] }
 0x8e3   :  { %v9538_v2 = vpop.permute.xlu0 %3645  ;;  %v9540_v6 = vpop.permute.xlu1 %4390 }
 0x8e4   :  { %11658 = vst [vmem:[#allocation30_spill] sm:$0xff] %v9538_v2  ;;  %11659 = vst [vmem:[#allocation29_spill] sm:$0xff] %v9540_v6  ;;  %v11664_v2 = vld [vmem:[#allocation47_spill] sm:$0xff] }
 0x8e5   :  { %3635 = vrot.lane.b32.xlu0 %v3396_v19, %s6344_s28  ;;  %3633 = vrot.lane.b32.xlu1 %v3395_v25, %s6344_s28  ;;  %v3459_v6 = vsel %vm1102_vm3, %v11664_v2, %v11663_v45  ;;  %v11667_v25 = vld [vmem:[#allocation11_spill] sm:$0xff] }
 0x8e6   :  { %v3365_v19 = vsel %vm1005_vm6, %v9046_v53, %v11667_v25 }
 0x8e7   :  { %v9550_v54 = vpop.permute.xlu0 %4648  ;;  %v9552_v28 = vpop.permute.xlu1 %4326 }
 0x8e8   :  { %11661 = vst [vmem:[#allocation48_spill] sm:$0xff] %v9550_v54  ;;  %11662 = vst [vmem:[#allocation66_spill] sm:$0xff] %v9552_v28  ;;  %v3330_v54 = vsel %vm972_vm7, %v11657_v18, %v8946_v34  ;;  %v3425_v28 = vsel %vm1069_vm4, %v8893_v36, %v11653_v61 }
 0x8e9   :  { %3683 = vrot.lane.b32.xlu0 %v3459_v6, %s6344_s28  ;;  %3609 = vrot.lane.b32.xlu1 %v3362_v29, %s6344_s28  ;;  %v11669_v29 = vld [vmem:[#allocation67_spill] sm:$0xff] }
 0x8ea   :  { %v3428_v6 = vsel %vm1069_vm4, %v9055_v40, %v11669_v29 }
 0x8eb   :  { %v9562_v7 = vpop.permute.xlu0 %3601  ;;  %v9564_v41 = vpop.permute.xlu1 %3571 }
 0x8ec   :  { %11665 = vst [vmem:[#allocation52_spill] sm:$0xff] %v9562_v7  ;;  %11666 = vst [vmem:[#allocation77_spill] sm:$0xff] %v9564_v41  ;;  %v3553_v7 = vsel %vm1201_vm0, %v8717_v27, %v11631_v9  ;;  %v11686_v41 = vld [vmem:[#allocation59_spill] sm:$0xff] }
 0x8ed   :  { %3615 = vrot.lane.b32.xlu0 %v3365_v19, %s6344_s28  ;;  %3587 = vrot.lane.b32.xlu1 %v3330_v54, %s6344_s28  ;;  %v3332_v54 = vsel %vm972_vm7, %v11626_v52, %v9063_v0  ;;  %v3522_v19 = vsel %vm1168_vm1, %v11634_v47, %v11648_v59  ;;  %v3489_v52 = vsel %vm1135_vm2, %v8776_v5, %v11637_v63 }
 0x8ef   :  { %v9574_v48 = vpop.permute.xlu0 %3739  ;;  %v9576_v13 = vpop.permute.xlu1 %3575 }
 0x8f0   :  { %11668 = vst [vmem:[#allocation13_spill] sm:$0xff] %v9576_v13  ;;  %v11685_v13 = vld [vmem:[#allocation68_spill] sm:$0xff] }
 0x8f1   :  { %3663 = vrot.lane.b32.xlu0 %v3428_v6, %s6344_s28  ;;  %3745 = vrot.lane.b32.xlu1 %v3553_v7, %s6344_s28  ;;  %v11672_v7 = vld [vmem:[#allocation39_spill] sm:$0xff] }
 0x8f2   :  { %v3398_v6 = vsel %vm1038_vm5, %v11672_v7, %v9074_v17 }
 0x8f3   :  { %v9586_v34 = vpop.permute.xlu0 %3715  ;;  %v9588_v18 = vpop.permute.xlu1 %3579 }
 0x8f4   :  { %11670 = vst [vmem:[#allocation55_spill] sm:$0xff] %v9588_v18 }
 0x8f5   :  { %3591 = vrot.lane.b32.xlu0 %v3332_v54, %s6344_s28  ;;  %3725 = vrot.lane.b32.xlu1 %v3522_v19, %s6344_s28  ;;  %v11674_v54 = vld [vmem:[#allocation72_spill] sm:$0xff] }
 0x8f6   :  { %v3366_v19 = vsel %vm1005_vm6, %v11667_v25, %v11674_v54  ;;  %v3458_v25 = vsel %vm1102_vm3, %v11644_v38, %v11664_v2 }
 0x8f7   :  { %v9598_v27 = vpop.permute.xlu0 %3695  ;;  %v9600_v9 = vpop.permute.xlu1 %4564 }
 0x8f8   :  { %11671 = vst [vmem:[#allocation47_spill] sm:$0xff] %v9600_v9  ;;  %v3555_v9 = vsel %vm1201_vm0, %v11630_v55, %v11641_v33 }
 0x8f9   :  { %3639 = vrot.lane.b32.xlu0 %v3398_v6, %s6344_s28  ;;  %3701 = vrot.lane.b32.xlu1 %v3489_v52, %s6344_s28  ;;  %v11676_v6 = vld [vmem:[#allocation88_spill] sm:$0xff]  ;;  %v11677_v52 = vld [vmem:[#allocation62_spill] sm:$0xff] }
 0x8fb   :  { %v9610_v59 = vpop.permute.xlu0 %3743  ;;  %v9612_v47 = vpop.permute.xlu1 %4568 }
 0x8fc   :  { %11673 = vst [vmem:[#allocation11_spill] sm:$0xff] %v9612_v47  ;;  %v3334_v47 = vsel %vm972_vm7, %v11677_v52, %v11676_v6 }
 0x8fd   :  { %3617 = vrot.lane.b32.xlu0 %v3366_v19, %s6344_s28  ;;  %3749 = vrot.lane.b32.xlu1 %v3555_v9, %s6344_s28  ;;  %v11678_v9 = vld [vmem:[#allocation89_spill] sm:$0xff] }
 0x8fe   :  { %v3557_v19 = vsel %vm1201_vm0, %v11640_v20, %v11678_v9 }
 0x8ff   :  { %v9622_v5 = vpop.permute.xlu0 %3671  ;;  %v9624_v63 = vpop.permute.xlu1 %4572 }
 0x900   :  { %11675 = vst [vmem:[#allocation67_spill] sm:$0xff] %v9624_v63  ;;  %v11679_v63 = vld [vmem:[#allocation49_spill] sm:$0xff] }
 0x901   :  { %3595 = vrot.lane.b32.xlu0 %v3334_v47, %s6344_s28  ;;  %3681 = vrot.lane.b32.xlu1 %v3458_v25, %s6344_s28  ;;  %v3524_v18 = vsel %vm1168_vm1, %v11647_v37, %v11679_v63  ;;  %v11680_v47 = vld [vmem:[#allocation19_spill] sm:$0xff] }
 0x902   :  { %v3525_v25 = vsel %vm1168_vm1, %v11679_v63, %v11680_v47  ;;  %v3491_v63 = vsel %vm1135_vm2, %v11636_v12, %v9013_v26  ;;  %v11684_v26 = vld [vmem:[#allocation35_spill] sm:$0xff] }
 0x903   :  { %v9634_v55 = vpop.permute.xlu0 %3719  ;;  %v3736_v33 = vpop.permute.xlu1 %3735  ;;  %v6168_v12 = vunpack.i.l.bf16 %v11684_v26 }
 0x905   :  { %3753 = vrot.lane.b32.xlu0 %v3557_v19, %s6344_s28  ;;  %3729 = vrot.lane.b32.xlu1 %v3524_v18, %s6344_s28  ;;  %v11681_v18 = vld [vmem:[#allocation80_spill] sm:$0xff] }
 0x906   :  { %v3493_v19 = vsel %vm1135_vm2, %v11656_v14, %v11681_v18  ;;  %v3397_v14 = vsel %vm1038_vm5, %v9022_v22, %v11672_v7 }
 0x907   :  { %v9644_v38 = vpop.permute.xlu0 %3651  ;;  %v3692_v2 = vpop.permute.xlu1 %3691 }
 0x909   :  { %3731 = vrot.lane.b32.xlu0 %v3525_v25, %s6344_s28  ;;  %3657 = vrot.lane.b32.xlu1 %v3425_v28, %s6344_s28  ;;  %v11683_v28 = vld [vmem:[#allocation75_spill] sm:$0xff] }
 0x90a   :  { %v4550_v25 = vsel %vm1201_vm0, %v9124_v35, %v11683_v28  ;;  %v3460_v35 = vsel %vm1102_vm3, %v11663_v45, %v11686_v41 }
 0x90b   :  { %v9654_v20 = vpop.permute.xlu0 %3699  ;;  %v9656_v37 = vpop.permute.xlu1 %3647 }
 0x90d   :  { %3709 = vrot.lane.b32.xlu0 %v3493_v19, %s6344_s28  ;;  %3705 = vrot.lane.b32.xlu1 %v3491_v63, %s6344_s28 }
 0x90f   :  { %v9666_v36 = vpop.permute.xlu0 %3627  ;;  %v9668_v61 = vpop.permute.xlu1 %4714 }
 0x910   :  { %11682 = vst [vmem:[#allocation39_spill] sm:$0xff] %v9668_v61  ;;  %v3462_v61 = vsel %vm1102_vm3, %v11685_v13, %v6168_v12  ;;  %v3364_v12 = vsel %vm1005_vm6, %v11623_v11, %v9046_v53 }
 0x911   :  { %4738 = vrot.lane.b32.xlu0 %v4550_v25, %s6344_s28  ;;  %3637 = vrot.lane.b32.xlu1 %v3397_v14, %s6344_s28  ;;  %v11688_v25 = vld [vmem:[#allocation84_spill] sm:$0xff] }
 0x912   :  { %v11689_v14 = vld [vmem:[#allocation16_spill] sm:$0xff] }
 0x913   :  { %v9679_v19 = vpop.permute.xlu0 %3675  ;;  %v9681_v63 = vpop.permute.xlu1 %3667  ;;  %v4519_v26 = vsel %vm1168_vm1, %v11689_v14, %v11688_v25 }
 0x915   :  { %3689 = vrot.lane.b32.xlu0 %v3462_v61, %s6344_s28  ;;  %3685 = vrot.lane.b32.xlu1 %v3460_v35, %s6344_s28  ;;  %v3429_v35 = vsel %vm1069_vm4, %v11669_v29, %v9148_v44 }
 0x917   :  { %v9690_v22 = vpop.permute.xlu0 %3625  ;;  %v9692_v7 = vpop.permute.xlu1 %4670 }
 0x918   :  { %11687 = vst [vmem:[#allocation72_spill] sm:$0xff] %v9692_v7  ;;  %v3427_v7 = vsel %vm1069_vm4, %v11652_v62, %v9055_v40 }
 0x919   :  { %4718 = vrot.lane.b32.xlu0 %v4519_v26, %s6344_s28  ;;  %3613 = vrot.lane.b32.xlu1 %v3364_v12, %s6344_s28  ;;  %v4486_v26 = vsel %vm1135_vm2, %v9048_v31, %v9156_v43  ;;  %v3333_v12 = vsel %vm972_vm7, %v9063_v0, %v11677_v52 }
 0x91b   :  { %v9702_v45 = vpop.permute.xlu0 %3607  ;;  %v9704_v61 = vpop.permute.xlu1 %3623 }
 0x91d   :  { %3665 = vrot.lane.b32.xlu0 %v3429_v35, %s6344_s28  ;;  %3661 = vrot.lane.b32.xlu1 %v3427_v7, %s6344_s28  ;;  %v11690_v7 = vld [vmem:[#allocation78_spill] sm:$0xff]  ;;  %v11691_v35 = vld [vmem:[#allocation64_spill] sm:$0xff] }
 0x91e   :  { %v4455_v31 = vsel %vm1102_vm3, %v9172_v60, %v11690_v7  ;;  %v3399_v0 = vsel %vm1038_vm5, %v9074_v17, %v11691_v35 }
 0x91f   :  { %v9714_v53 = vpop.permute.xlu0 %3655  ;;  %v3738_v11 = vpop.permute.xlu1 %3737 }
 0x920   :  { %v3838_v44 = vsel %vm1410_vm8, %v3738_v11, %v9574_v48  ;;  %v3837_v40 = vsel %vm1410_vm8, %v3736_v33, %v3738_v11  ;;  %v3827_v33 = vsel %vm1410_vm8, %v9490_v10, %v9586_v34 }
 0x921   :  { %4694 = vrot.lane.b32.xlu0 %v4486_v26, %s6344_s28  ;;  %3593 = vrot.lane.b32.xlu1 %v3333_v12, %s6344_s28  ;;  %v11692_v12 = vld [vmem:[#allocation53_spill] sm:$0xff] }
 0x922   :  { %3954 = vmatprep.subr.mxu0 %v3838_v44  ;;  %v3368_v17 = vsel %vm1005_vm6, %v11692_v12, %v9180_v23  ;;  %v3367_v44 = vsel %vm1005_vm6, %v11674_v54, %v11692_v12  ;;  %v4422_v23 = vsel %vm1069_vm4, %v9084_v56, %v9188_v30 }
 0x923   :  { %3955 = vmatpush1.msra.mxu0 %v3837_v40  ;;  %v9727_v62 = vpop.permute.xlu0 %3583  ;;  %v3718_v29 = vpop.permute.xlu1 %3717 }
 0x924   :  { %v3828_v52 = vsel %vm1410_vm8, %v9586_v34, %v3718_v29 }
 0x925   :  { %4674 = vrot.lane.b32.xlu0 %v4455_v31, %s6344_s28  ;;  %3641 = vrot.lane.b32.xlu1 %v3399_v0, %s6344_s28  ;;  %v11693_v0 = vld [vmem:[#allocation54_spill] sm:$0xff] }
 0x926   :  { %3956 = vmatprep.subr.mxu0 %v3828_v52  ;;  %v3335_v54 = vsel %vm972_vm7, %v11676_v6, %v11693_v0 }
 0x927   :  { %3957 = vmatpush1.msra.mxu0 %v3827_v33  ;;  %v9742_v11 = vpop.permute.xlu0 %3631  ;;  %v3694_v26 = vpop.permute.xlu1 %3693  ;;  %v11694_v33 = vld [vmem:[#allocation18_spill] sm:$0xff] }
 0x928   :  { %v3818_v40 = vsel %vm1410_vm8, %v3694_v26, %v9598_v27  ;;  %v3817_v31 = vsel %vm1410_vm8, %v3692_v2, %v3694_v26  ;;  %v6153_v26 = vunpack.i.l.bf16 %v11694_v33 }
 0x929   :  { %3621 = vrot.lane.b32.xlu0 %v3368_v17, %s6344_s28  ;;  %3619 = vrot.lane.b32.xlu1 %v3367_v44, %s6344_s28  ;;  %v11695_v17 = vld [vmem:[#allocation14_spill] sm:$0xff] }
 0x92a   :  { %3958 = vmatprep.subr.mxu0 %v3818_v40  ;;  %v4394_v6 = vsel %vm1038_vm5, %v9204_v1, %v11695_v17  ;;  %v3558_v44 = vsel %vm1201_vm0, %v11678_v9, %v6153_v26  ;;  %v11696_v40 = vld [vmem:[#allocation31_spill] sm:$0xff]  ;;  %v11697_v9 = vld [vmem:[#allocation74_spill] sm:$0xff] }
 0x92b   :  { %3959 = vmatpush1.msra.mxu0 %v3817_v31  ;;  %v9755_v10 = vpop.permute.xlu0 %3581  ;;  %v3742_v34 = vpop.permute.xlu1 %3741  ;;  %v6158_v31 = vunpack.i.l.bf16 %v11696_v40 }
 0x92c   :  { %v3840_v2 = vsel %vm1410_vm8, %v3742_v34, %v9610_v59  ;;  %v3839_v52 = vsel %vm1410_vm8, %v9574_v48, %v3742_v34  ;;  %v3807_v34 = vsel %vm1410_vm8, %v9502_v8, %v9622_v5  ;;  %v6144_v8 = vunpack.i.h.bf16 %v11649_v4 }
 0x92d   :  { %4650 = vrot.lane.b32.xlu0 %v4422_v23, %s6344_s28  ;;  %3597 = vrot.lane.b32.xlu1 %v3335_v54, %s6344_s28 }
 0x92e   :  { %4025 = vmatprep.subr.mxu1 %v3840_v2  ;;  %v4361_v2 = vsel %vm1005_vm6, %v9212_v39, %v11697_v9 }
 0x92f   :  { %4026 = vmatpush1.msra.mxu1 %v3839_v52  ;;  %v9770_v12 = vpop.permute.xlu0 %3611  ;;  %v3674_v56 = vpop.permute.xlu1 %3673  ;;  %v3526_v52 = vsel %vm1168_vm1, %v11680_v47, %v6158_v31  ;;  %v4360_v31 = vsel %vm1005_vm6, %v6144_v8, %v9212_v39 }
 0x930   :  { %v3808_v48 = vsel %vm1410_vm8, %v9622_v5, %v3674_v56  ;;  %v11698_v5 = vld [vmem:[#allocation24_spill] sm:$0xff] }
 0x931   :  { %4630 = vrot.lane.b32.xlu0 %v4394_v6, %s6344_s28  ;;  %3755 = vrot.lane.b32.xlu1 %v3558_v44, %s6344_s28  ;;  %v6163_v6 = vunpack.i.l.bf16 %v11698_v5  ;;  %v3829_v44 = vsel %vm1410_vm8, %v3718_v29, %v9634_v55 }
 0x932   :  { %3960 = vmatprep.subr.mxu0 %v3808_v48 }
 0x933   :  { %3961 = vmatpush1.msra.mxu0 %v3807_v34  ;;  %v9785_v23 = vpop.permute.xlu0 %3589  ;;  %v9787_v54 = vpop.permute.xlu1 %3721  ;;  %v3494_v34 = vsel %vm1135_vm2, %v11681_v18, %v6163_v6  ;;  %v11700_v18 = vld [vmem:[#allocation23_spill] sm:$0xff] }
 0x934   :  { %v3830_v26 = vsel %vm1410_vm8, %v9634_v55, %v9787_v54 }
 0x935   :  { %4606 = vrot.lane.b32.xlu0 %v4361_v2, %s6344_s28  ;;  %3733 = vrot.lane.b32.xlu1 %v3526_v52, %s6344_s28  ;;  %v11699_v52 = vld [vmem:[#allocation65_spill] sm:$0xff] }
 0x936   :  { %4027 = vmatprep.subr.mxu1 %v3830_v26  ;;  %v4330_v39 = vsel %vm972_vm7, %v9228_v50, %v11699_v52  ;;  %v4551_v26 = vsel %vm1201_vm0, %v11683_v28, %v11700_v18 }
 0x937   :  { %4028 = vmatpush1.msra.mxu1 %v3829_v44  ;;  %v9803_v48 = vpop.permute.xlu0 %3747  ;;  %v3650_v47 = vpop.permute.xlu1 %3649 }
 0x938   :  { %v3798_v2 = vsel %vm1410_vm8, %v3650_v47, %v9644_v38  ;;  %v3797_v4 = vsel %vm1410_vm8, %v9656_v37, %v3650_v47  ;;  %v11701_v47 = vld [vmem:[#allocation36_spill] sm:$0xff] }
 0x939   :  { %4604 = vrot.lane.b32.xlu0 %v4360_v31, %s6344_s28  ;;  %3711 = vrot.lane.b32.xlu1 %v3494_v34, %s6344_s28  ;;  %v4553_v28 = vsel %vm1201_vm0, %v9236_v3, %v11701_v47  ;;  %v3461_v31 = vsel %vm1102_vm3, %v11686_v41, %v11685_v13  ;;  %v3787_v34 = vsel %vm1410_vm8, %v9690_v22, %v9666_v36 }
 0x93a   :  { %3962 = vmatprep.subr.mxu0 %v3798_v2  ;;  %v4520_v41 = vsel %vm1168_vm1, %v11688_v25, %v9244_v15  ;;  %v4518_v13 = vsel %vm1168_vm1, %v9024_v24, %v11689_v14 }
 0x93b   :  { %3963 = vmatpush1.msra.mxu0 %v3797_v4  ;;  %v9815_v55 = vpop.permute.xlu0 %3723  ;;  %v3698_v29 = vpop.permute.xlu1 %3697 }
 0x93c   :  { %v3820_v37 = vsel %vm1410_vm8, %v3698_v29, %v9654_v20  ;;  %v3819_v8 = vsel %vm1410_vm8, %v9598_v27, %v3698_v29 }
 0x93d   :  { %4586 = vrot.lane.b32.xlu0 %v4330_v39, %s6344_s28  ;;  %4740 = vrot.lane.b32.xlu1 %v4551_v26, %s6344_s28  ;;  %v11702_v39 = vld [vmem:[#allocation76_spill] sm:$0xff] }
 0x93e   :  { %4029 = vmatprep.subr.mxu1 %v3820_v37  ;;  %v4488_v24 = vsel %vm1135_vm2, %v11702_v39, %v9252_v58  ;;  %v4487_v14 = vsel %vm1135_vm2, %v9156_v43, %v11702_v39  ;;  %v4554_v37 = vsel %vm1201_vm0, %v11701_v47, %v9262_v42  ;;  %v11706_v39 = vld [vmem:[#allocation82_spill] sm:$0xff] }
 0x93f   :  { %4030 = vmatpush1.msra.mxu1 %v3819_v8  ;;  %v9829_v6 = vpop.permute.xlu0 %3703  ;;  %v9831_v44 = vpop.permute.xlu1 %3629  ;;  %v11703_v8 = vld [vmem:[#allocation17_spill] sm:$0xff] }
 0x940   :  { %v3788_v27 = vsel %vm1410_vm8, %v9666_v36, %v9831_v44  ;;  %v3809_v36 = vsel %vm1410_vm8, %v3674_v56, %v9679_v19 }
 0x941   :  { %4744 = vrot.lane.b32.xlu0 %v4553_v28, %s6344_s28  ;;  %3687 = vrot.lane.b32.xlu1 %v3461_v31, %s6344_s28  ;;  %v3400_v28 = vsel %vm1038_vm5, %v11691_v35, %v11703_v8 }
 0x942   :  { %3964 = vmatprep.subr.mxu0 %v3788_v27 }
 0x943   :  { %3965 = vmatpush1.msra.mxu0 %v3787_v34  ;;  %v9847_v2 = vpop.permute.xlu0 %3751  ;;  %v9849_v4 = vpop.permute.xlu1 %3677 }
 0x944   :  { %v3810_v29 = vsel %vm1410_vm8, %v9679_v19, %v9849_v4 }
 0x945   :  { %4720 = vrot.lane.b32.xlu0 %v4520_v41, %s6344_s28  ;;  %4716 = vrot.lane.b32.xlu1 %v4518_v13, %s6344_s28  ;;  %v11704_v41 = vld [vmem:[#allocation86_spill] sm:$0xff]  ;;  %v4454_v13 = vsel %vm1102_vm3, %v9065_v51, %v9172_v60  ;;  %v11708_v51 = vld [vmem:[#allocation33_spill] sm:$0xff] }
 0x946   :  { %4031 = vmatprep.subr.mxu1 %v3810_v29  ;;  %v4456_v35 = vsel %vm1102_vm3, %v11690_v7, %v11704_v41  ;;  %v6173_v60 = vunpack.i.l.bf16 %v11708_v51 }
 0x947   :  { %4032 = vmatpush1.msra.mxu1 %v3809_v36  ;;  %v9864_v22 = vpop.permute.xlu0 %3679  ;;  %v3606_v25 = vpop.permute.xlu1 %3605  ;;  %v11705_v36 = vld [vmem:[#allocation85_spill] sm:$0xff] }
 0x948   :  { %v3778_v26 = vsel %vm1410_vm8, %v3606_v25, %v9702_v45  ;;  %v3757_v8 = vsel %vm1410_vm8, %v6173_v60, %v9420_v57 }
 0x949   :  { %4698 = vrot.lane.b32.xlu0 %v4488_v24, %s6344_s28  ;;  %4696 = vrot.lane.b32.xlu1 %v4487_v14, %s6344_s28  ;;  %v11707_v24 = vld [vmem:[#allocation60_spill] sm:$0xff] }
 0x94a   :  { %3966 = vmatprep.subr.mxu0 %v3778_v26  ;;  %v4423_v7 = vsel %vm1069_vm4, %v9188_v30, %v11707_v24  ;;  %v3767_v26 = vsel %vm1410_vm8, %v9755_v10, %v9727_v62  ;;  %v3758_v30 = vsel %vm1410_vm8, %v9420_v57, %v9290_v49  ;;  %v9935_v10 = vld [vmem:[%s11090_s6] sm:$0xff] }
 0x94b   :  { %v9876_v19 = vpop.permute.xlu0 %3727  ;;  %v3654_v56 = vpop.permute.xlu1 %3653 }
 0x94c   :  { %v3800_v43 = vsel %vm1410_vm8, %v3654_v56, %v9714_v53  ;;  %v3799_v31 = vsel %vm1410_vm8, %v9644_v38, %v3654_v56 }
 0x94d   :  { %4746 = vrot.lane.b32.xlu0 %v4554_v37, %s6344_s28  ;;  %3643 = vrot.lane.b32.xlu1 %v3400_v28, %s6344_s28  ;;  %v4424_v28 = vsel %vm1069_vm4, %v11707_v24, %v9292_v16  ;;  %v11711_v24 = vmov 0.0  }
 0x94e   :  { %4033 = vmatprep.subr.mxu1 %v3800_v43  ;;  %v11709_v43 = vld [vmem:[#allocation93_spill] sm:$0xff] }
 0x94f   :  { %4034 = vmatpush1.msra.mxu1 %v3799_v31  ;;  %v9890_v27 = vpop.permute.xlu0 %3659  ;;  %v3604_v34 = vpop.permute.xlu1 %3603  ;;  %v3336_v57 = vsel %vm972_vm7, %v11693_v0, %v11709_v43  ;;  %v3789_v31 = vsel %vm1410_vm8, %v9831_v44, %v9742_v11  ;;  %v11715_v43 = vld [vmem:[#allocation95_spill] sm:$0xff] }
 0x950   :  { %v3777_v47 = vsel %vm1410_vm8, %v3604_v34, %v3606_v25  ;;  %v4522_v25 = vsel %vm1168_vm1, %v11706_v39, %v11705_v36 }
 0x951   :  { %4676 = vrot.lane.b32.xlu0 %v4456_v35, %s6344_s28  ;;  %4672 = vrot.lane.b32.xlu1 %v4454_v13, %s6344_s28  ;;  %v11710_v35 = vld [vmem:[#allocation41_spill] sm:$0xff] }
 0x952   :  { %3967 = vmatpush1.msra.mxu0 %v3777_v47  ;;  %v4490_v13 = vsel %vm1135_vm2, %v11710_v35, %v9302_v21 }
 0x953   :  { %v9901_v38 = vpop.permute.xlu0 %3707  ;;  %v3586_v29 = vpop.permute.xlu1 %3585 }
 0x954   :  { %v3768_v14 = vsel %vm1410_vm8, %v9727_v62, %v3586_v29 }
 0x955   :  { %4724 = vrot.lane.b32.xlu0 %v4522_v25, %s6344_s28  ;;  %4652 = vrot.lane.b32.xlu1 %v4423_v7, %s6344_s28  ;;  %v6139_v7 = vunpack.i.h.bf16 %v8445_v46  ;;  %v11714_v46 = vld [vmem:[#allocation112_spill] sm:$0xff] }
 0x956   :  { %3968 = vmatprep.subr.mxu0 %v3768_v14 }
 0x957   :  { %3969 = vmatpush1.msra.mxu0 %v3767_v26  ;;  %v9917_v56 = vpop.permute.xlu0 %3635  ;;  %v9922_v37 = vpop.permute.xlu1 %3633  ;;  %v11713_v26 = vld [vmem:[#allocation94_spill] sm:$0xff] }
 0x958   :  { %3970 = vmatprep.subr.mxu0 %v3758_v30  ;;  %v3790_v62 = vsel %vm1410_vm8, %v9742_v11, %v9922_v37  ;;  %v11712_v11 = vld [vmem:[#allocation63_spill] sm:$0xff] }
 0x959   :  { %3971 = vmatpush1.msra.mxu0 %v3757_v8  ;;  %4654 = vrot.lane.b32.xlu0 %v4424_v28, %s6344_s28  ;;  %v4393_v44 = vsel %vm1038_vm5, %v11712_v11, %v9204_v1  ;;  %v4392_v1 = vsel %vm1038_vm5, %v6139_v7, %v11712_v11  ;;  %v3760_v28 = vsel %vm1410_vm8, %v11714_v46, %v9468_v32 }
 0x95a   :  { %3599 = vrot.lane.b32.xlu1 %v3336_v57, %s6344_s28  ;;  %4035 = vmatprep.subr.mxu1 %v3790_v62  ;;  %v11716_v57 = vld [vmem:[#allocation104_spill] sm:$0xff] }
 0x95b   :  { %4036 = vmatpush1.msra.mxu1 %v3789_v31  ;;  %v9945_v34 = vpop.permute.xlu0 %3683  ;;  %v3610_v47 = vpop.permute.xlu1 %3609  ;;  %6069 = vmatmul.mubr.msk.f32.vlgmr.msra.gmra.mxu0 %vm1591_vm9, %v9935_v10  ;;  %v4458_v31 = vsel %vm1102_vm3, %v11716_v57, %v11715_v43 }
 0x95c   :  { %v3780_v0 = vsel %vm1410_vm8, %v3610_v47, %v9770_v12  ;;  %v3779_v25 = vsel %vm1410_vm8, %v9702_v45, %v3610_v47  ;;  %4146 = vmatprep.mubr.f32.mxu0 %v11711_v24  ;;  %v4395_v45 = vsel %vm1038_vm5, %v11695_v17, %v11713_v26 }
 0x95d   :  { %4702 = vrot.lane.b32.xlu0 %v4490_v13, %s6344_s28  ;;  %4037 = vmatprep.subr.mxu1 %v3780_v0  ;;  %v11717_v0 = vld [vmem:[#allocation97_spill] sm:$0xff] }
 0x95e   :  { %4628 = vrot.lane.b32.xlu1 %v4393_v44, %s6344_s28  ;;  %4038 = vmatpush1.msra.mxu1 %v3779_v25  ;;  %v4362_v25 = vsel %vm1005_vm6, %v11697_v9, %v11717_v0  ;;  %v11718_v44 = vld [vmem:[#allocation113_spill] sm:$0xff]  ;;  %v11719_v9 = vld [vmem:[#allocation90_spill] sm:$0xff] }
 0x95f   :  { %v9963_v14 = vpop.permute.xlu0 %3615  ;;  %v3588_v60 = vpop.permute.xlu1 %3587 }
 0x960   :  { %v3770_v30 = vsel %vm1410_vm8, %v3588_v60, %v9785_v23  ;;  %v3769_v8 = vsel %vm1410_vm8, %v3586_v29, %v3588_v60  ;;  %v3759_v29 = vsel %vm1410_vm8, %v9290_v49, %v11714_v46  ;;  %v4329_v60 = vsel %vm972_vm7, %v11719_v9, %v9228_v50  ;;  %v11721_v46 = vld [vmem:[#allocation91_spill] sm:$0xff] }
 0x961   :  { %4632 = vrot.lane.b32.xlu0 %v4395_v45, %s6344_s28  ;;  %4039 = vmatprep.subr.mxu1 %v3770_v30  ;;  %v3831_v45 = vsel %vm1410_vm8, %v9787_v54, %v9815_v55  ;;  %v4552_v54 = vsel %vm1201_vm0, %v11700_v18, %v9236_v3 }
 0x962   :  { %4626 = vrot.lane.b32.xlu1 %v4392_v1, %s6344_s28  ;;  %4040 = vmatpush1.msra.mxu1 %v3769_v8  ;;  %v11720_v1 = vld [vmem:[#allocation115_spill] sm:$0xff] }
 0x963   :  { %v9978_v62 = vpop.permute.xlu0 %3663  ;;  %4041 = vmatprep.subr.mxu1 %v3760_v28  ;;  %v3746_v17 = vpop.permute.xlu1 %3745  ;;  %v4426_v28 = vsel %vm1069_vm4, %v11721_v46, %v11720_v1 }
 0x964   :  { %4042 = vmatpush1.msra.mxu1 %v3759_v29  ;;  %v3842_v47 = vsel %vm1410_vm8, %v3746_v17, %v9803_v48  ;;  %v3841_v13 = vsel %vm1410_vm8, %v9610_v59, %v3746_v17  ;;  %v4363_v59 = vsel %vm1005_vm6, %v11717_v0, %v11718_v44 }
 0x965   :  { %4680 = vrot.lane.b32.xlu0 %v4458_v31, %s6344_s28  ;;  %4096 = vmatprep.subr.mxu0 %v3842_v47 }
 0x966   :  { %4608 = vrot.lane.b32.xlu1 %v4362_v25, %s6344_s28  ;;  %4097 = vmatpush1.msra.mxu0 %v3841_v13  ;;  %v11723_v13 = vld [vmem:[#allocation99_spill] sm:$0xff] }
 0x967   :  { %v9995_v49 = vpop.permute.xlu0 %3591  ;;  %v3726_v11 = vpop.permute.xlu1 %3725  ;;  %6070 = vmatmul.mubr.msk.f32.vlgmr.msra.gmra.mxu1 %vm1591_vm9, %v9935_v10  ;;  %v4331_v0 = vsel %vm972_vm7, %v11699_v52, %v11723_v13  ;;  %v11725_v52 = vld [vmem:[#allocation109_spill] sm:$0xff] }
 0x968   :  { %v3832_v7 = vsel %vm1410_vm8, %v9815_v55, %v3726_v11  ;;  %4217 = vmatprep.mubr.f32.mxu1 %v11711_v24  ;;  %v11722_v55 = vld [vmem:[#allocation50_spill] sm:$0xff] }
 0x969   :  { %4610 = vrot.lane.b32.xlu0 %v4363_v59, %s6344_s28  ;;  %4098 = vmatprep.subr.mxu0 %v3832_v7  ;;  %v6149_v29 = vunpack.i.h.bf16 %v11722_v55  ;;  %v11724_v7 = vld [vmem:[#allocation100_spill] sm:$0xff] }
 0x96a   :  { %4584 = vrot.lane.b32.xlu1 %v4329_v60, %s6344_s28  ;;  %4099 = vmatpush1.msra.mxu0 %v3831_v45  ;;  %v4397_v60 = vsel %vm1038_vm5, %v11725_v52, %v11724_v7 }
 0x96b   :  { %v10013_v30 = vpop.permute.xlu0 %3639  ;;  %v3702_v8 = vpop.permute.xlu1 %3701  ;;  %v4328_v3 = vsel %vm972_vm7, %v6149_v29, %v11719_v9  ;;  %v3811_v9 = vsel %vm1410_vm8, %v9849_v4, %v9864_v22  ;;  %v4489_v4 = vsel %vm1135_vm2, %v9252_v58, %v11710_v35  ;;  %v11728_v29 = vld [vmem:[#allocation102_spill] sm:$0xff]  ;;  %v11730_v35 = vld [vmem:[#allocation56_spill] sm:$0xff] }
 0x96c   :  { %v3822_v17 = vsel %vm1410_vm8, %v3702_v8, %v9829_v6  ;;  %v3821_v50 = vsel %vm1410_vm8, %v9654_v20, %v3702_v8 }
 0x96d   :  { %4658 = vrot.lane.b32.xlu0 %v4426_v28, %s6344_s28  ;;  %4100 = vmatprep.subr.mxu0 %v3822_v17  ;;  %v11726_v17 = vld [vmem:[#allocation121_spill] sm:$0xff] }
 0x96e   :  { %4742 = vrot.lane.b32.xlu1 %v4552_v54, %s6344_s28  ;;  %4101 = vmatpush1.msra.mxu0 %v3821_v50  ;;  %v11727_v50 = vld [vmem:[#allocation96_spill] sm:$0xff] }
 0x96f   :  { %v10028_v31 = vpop.permute.xlu0 %3617  ;;  %v3750_v47 = vpop.permute.xlu1 %3749  ;;  %v4365_v54 = vsel %vm1005_vm6, %v11727_v50, %v11726_v17 }
 0x970   :  { %v3844_v20 = vsel %vm1410_vm8, %v3750_v47, %v9847_v2  ;;  %v3843_v25 = vsel %vm1410_vm8, %v9803_v48, %v3750_v47  ;;  %v4521_v48 = vsel %vm1168_vm1, %v9244_v15, %v11706_v39  ;;  %v11729_v47 = vld [vmem:[#allocation117_spill] sm:$0xff] }
 0x971   :  { %4588 = vrot.lane.b32.xlu0 %v4331_v0, %s6344_s28  ;;  %4167 = vmatprep.subr.mxu1 %v3844_v20  ;;  %v4333_v0 = vsel %vm972_vm7, %v11729_v47, %v11728_v29 }
 0x972   :  { %4582 = vrot.lane.b32.xlu1 %v4328_v3, %s6344_s28  ;;  %4168 = vmatpush1.msra.mxu1 %v3843_v25  ;;  %v11731_v3 = vld [vmem:[#allocation103_spill] sm:$0xff] }
 0x973   :  { %v10041_v18 = vpop.permute.xlu0 %3595  ;;  %v3682_v59 = vpop.permute.xlu1 %3681 }
 0x974   :  { %v3812_v45 = vsel %vm1410_vm8, %v9864_v22, %v3682_v59  ;;  %v3833_v22 = vsel %vm1410_vm8, %v3726_v11, %v9876_v19 }
 0x975   :  { %4636 = vrot.lane.b32.xlu0 %v4397_v60, %s6344_s28  ;;  %4102 = vmatprep.subr.mxu0 %v3812_v45  ;;  %v4556_v60 = vsel %vm1201_vm0, %v11730_v35, %v11731_v3 }
 0x976   :  { %4722 = vrot.lane.b32.xlu1 %v4521_v48, %s6344_s28  ;;  %4103 = vmatpush1.msra.mxu0 %v3811_v9 }
 0x977   :  { %v10056_v8 = vpop.permute.xlu0 %3753  ;;  %v10058_v28 = vpop.permute.xlu1 %3729 }
 0x978   :  { %v3834_v15 = vsel %vm1410_vm8, %v9876_v19, %v10058_v28  ;;  %v4555_v19 = vsel %vm1201_vm0, %v9262_v42, %v11730_v35  ;;  %v4457_v42 = vsel %vm1102_vm3, %v11704_v41, %v11716_v57  ;;  %v3791_v57 = vsel %vm1410_vm8, %v9922_v37, %v9917_v56 }
 0x979   :  { %4614 = vrot.lane.b32.xlu0 %v4365_v54, %s6344_s28  ;;  %4169 = vmatprep.subr.mxu1 %v3834_v15  ;;  %v11732_v54 = vld [vmem:[#allocation61_spill] sm:$0xff]  ;;  %v11733_v15 = vld [vmem:[#allocation106_spill] sm:$0xff]  ;;  %v3813_v37 = vsel %vm1410_vm8, %v3682_v59, %v9945_v34 }
 0x97a   :  { %4700 = vrot.lane.b32.xlu1 %v4489_v4, %s6344_s28  ;;  %4170 = vmatpush1.msra.mxu1 %v3833_v22  ;;  %v4524_v4 = vsel %vm1168_vm1, %v11733_v15, %v11732_v54  ;;  %v4523_v41 = vsel %vm1168_vm1, %v11705_v36, %v11733_v15  ;;  %v11739_v15 = vld [vmem:[#allocation111_spill] sm:$0xff] }
 0x97b   :  { %v10073_v39 = vpop.permute.xlu0 %3731  ;;  %v3658_v55 = vpop.permute.xlu1 %3657 }
 0x97c   :  { %v3802_v20 = vsel %vm1410_vm8, %v3658_v55, %v9890_v27  ;;  %v3801_v58 = vsel %vm1410_vm8, %v9714_v53, %v3658_v55 }
 0x97d   :  { %4592 = vrot.lane.b32.xlu0 %v4333_v0, %s6344_s28  ;;  %4104 = vmatprep.subr.mxu0 %v3802_v20  ;;  %v11734_v0 = vld [vmem:[#allocation107_spill] sm:$0xff]  ;;  %v11735_v20 = vld [vmem:[#allocation92_spill] sm:$0xff] }
 0x97e   :  { %4748 = vrot.lane.b32.xlu1 %v4555_v19, %s6344_s28  ;;  %4105 = vmatpush1.msra.mxu0 %v3801_v58  ;;  %v4492_v58 = vsel %vm1135_vm2, %v11735_v20, %v11734_v0 }
 0x97f   :  { %v10087_v11 = vpop.permute.xlu0 %3709  ;;  %v3706_v25 = vpop.permute.xlu1 %3705 }
 0x980   :  { %v3824_v53 = vsel %vm1410_vm8, %v3706_v25, %v9901_v38  ;;  %v3823_v45 = vsel %vm1410_vm8, %v9829_v6, %v3706_v25  ;;  %v11736_v25 = vld [vmem:[#allocation108_spill] sm:$0xff] }
 0x981   :  { %4750 = vrot.lane.b32.xlu0 %v4556_v60, %s6344_s28  ;;  %4171 = vmatprep.subr.mxu1 %v3824_v53  ;;  %v11737_v60 = vld [vmem:[#allocation124_spill] sm:$0xff] }
 0x982   :  { %4678 = vrot.lane.b32.xlu1 %v4457_v42, %s6344_s28  ;;  %4172 = vmatpush1.msra.mxu1 %v3823_v45  ;;  %v4558_v53 = vsel %vm1201_vm0, %v11737_v60, %v11736_v25  ;;  %v11738_v42 = vld [vmem:[#allocation38_spill] sm:$0xff] }
 0x983   :  { %v10101_v48 = vpop.permute.xlu0 %4738  ;;  %v3638_v9 = vpop.permute.xlu1 %3637 }
 0x984   :  { %v3792_v6 = vsel %vm1410_vm8, %v9917_v56, %v3638_v9  ;;  %v4425_v56 = vsel %vm1069_vm4, %v9292_v16, %v11721_v46 }
 0x985   :  { %4728 = vrot.lane.b32.xlu0 %v4524_v4, %s6344_s28  ;;  %4106 = vmatprep.subr.mxu0 %v3792_v6  ;;  %v4460_v4 = vsel %vm1102_vm3, %v11739_v15, %v11738_v42 }
 0x986   :  { %4726 = vrot.lane.b32.xlu1 %v4523_v41, %s6344_s28  ;;  %4107 = vmatpush1.msra.mxu0 %v3791_v57 }
 0x987   :  { %v10116_v22 = vpop.permute.xlu0 %3689  ;;  %v10118_v55 = vpop.permute.xlu1 %3685 }
 0x988   :  { %v3814_v36 = vsel %vm1410_vm8, %v9945_v34, %v10118_v55  ;;  %v4491_v34 = vsel %vm1135_vm2, %v9302_v21, %v11735_v20  ;;  %v4396_v21 = vsel %vm1038_vm5, %v11713_v26, %v11725_v52  ;;  %v11740_v20 = vld [vmem:[#allocation12_spill] sm:$0xff]  ;;  %v4459_v26 = vsel %vm1102_vm3, %v11715_v43, %v11739_v15 }
 0x989   :  { %4706 = vrot.lane.b32.xlu0 %v4492_v58, %s6344_s28  ;;  %4173 = vmatprep.subr.mxu1 %v3814_v36  ;;  %v11741_v58 = vld [vmem:[#allocation105_spill] sm:$0xff]  ;;  %v3771_v52 = vsel %vm1410_vm8, %v9785_v23, %v9995_v49  ;;  %v3793_v15 = vsel %vm1410_vm8, %v3638_v9, %v10013_v30 }
 0x98a   :  { %4656 = vrot.lane.b32.xlu1 %v4425_v56, %s6344_s28  ;;  %4174 = vmatpush1.msra.mxu1 %v3813_v37  ;;  %v4526_v36 = vsel %vm1168_vm1, %v11741_v58, %v11740_v20  ;;  %v11742_v56 = vld [vmem:[#allocation77_spill] sm:$0xff] }
 0x98b   :  { %v10133_v35 = vpop.permute.xlu0 %4718  ;;  %v3614_v19 = vpop.permute.xlu1 %3613  ;;  %v11743_v37 = vld [vmem:[#allocation125_spill] sm:$0xff] }
 0x98c   :  { %v3782_v45 = vsel %vm1410_vm8, %v3614_v19, %v9963_v14  ;;  %v3781_v16 = vsel %vm1410_vm8, %v9770_v12, %v3614_v19  ;;  %v3762_v19 = vsel %vm1410_vm8, %v11743_v37, %v11742_v56  ;;  %v3761_v43 = vsel %vm1410_vm8, %v9468_v32, %v11743_v37  ;;  %v11750_v37 = vld [vmem:[#allocation13_spill] sm:$0xff] }
 0x98d   :  { %4754 = vrot.lane.b32.xlu0 %v4558_v53, %s6344_s28  ;;  %4108 = vmatprep.subr.mxu0 %v3782_v45 }
 0x98e   :  { %4704 = vrot.lane.b32.xlu1 %v4491_v34, %s6344_s28  ;;  %4109 = vmatpush1.msra.mxu0 %v3781_v16  ;;  %v11744_v16 = vld [vmem:[#allocation114_spill] sm:$0xff] }
 0x98f   :  { %v10147_v46 = vpop.permute.xlu0 %3665  ;;  %v3662_v59 = vpop.permute.xlu1 %3661  ;;  %v11745_v34 = vld [vmem:[#allocation98_spill] sm:$0xff] }
 0x990   :  { %v3804_v12 = vsel %vm1410_vm8, %v3662_v59, %v9978_v62  ;;  %v3803_v6 = vsel %vm1410_vm8, %v9890_v27, %v3662_v59  ;;  %v4428_v23 = vsel %vm1069_vm4, %v11745_v34, %v11744_v16  ;;  %v4364_v59 = vsel %vm1005_vm6, %v11718_v44, %v11727_v50 }
 0x991   :  { %4684 = vrot.lane.b32.xlu0 %v4460_v4, %s6344_s28  ;;  %4175 = vmatprep.subr.mxu1 %v3804_v12  ;;  %v11746_v12 = vld [vmem:[#allocation116_spill] sm:$0xff]  ;;  %v3783_v50 = vsel %vm1410_vm8, %v9963_v14, %v10028_v31  ;;  %v4332_v14 = vsel %vm972_vm7, %v11723_v13, %v11729_v47  ;;  %v11752_v13 = vld [vmem:[#allocation79_spill] sm:$0xff]  ;;  %v11753_v47 = vld [vmem:[#allocation110_spill] sm:$0xff] }
 0x992   :  { %4634 = vrot.lane.b32.xlu1 %v4396_v21, %s6344_s28  ;;  %4176 = vmatpush1.msra.mxu1 %v3803_v6  ;;  %v11747_v6 = vld [vmem:[#allocation126_spill] sm:$0xff] }
 0x993   :  { %v10161_v41 = vpop.permute.xlu0 %4694  ;;  %v3594_v57 = vpop.permute.xlu1 %3593  ;;  %v4494_v21 = vsel %vm1135_vm2, %v11747_v6, %v11746_v12 }
 0x994   :  { %v3772_v27 = vsel %vm1410_vm8, %v9995_v49, %v3594_v57 }
 0x995   :  { %4732 = vrot.lane.b32.xlu0 %v4526_v36, %s6344_s28  ;;  %4110 = vmatprep.subr.mxu0 %v3772_v27  ;;  %v11748_v27 = vld [vmem:[#allocation34_spill] sm:$0xff] }
 0x996   :  { %4682 = vrot.lane.b32.xlu1 %v4459_v26, %s6344_s28  ;;  %4111 = vmatpush1.msra.mxu0 %v3771_v52  ;;  %v11749_v26 = vld [vmem:[#allocation119_spill] sm:$0xff] }
 0x997   :  { %v10179_v53 = vpop.permute.xlu0 %4674  ;;  %4112 = vmatprep.subr.mxu0 %v3762_v19  ;;  %v10181_v45 = vpop.permute.xlu1 %3641  ;;  %v4399_v52 = vsel %vm1038_vm5, %v11749_v26, %v11748_v27  ;;  %v11751_v19 = vld [vmem:[#allocation44_spill] sm:$0xff] }
 0x998   :  { %4113 = vmatpush1.msra.mxu0 %v3761_v43  ;;  %v3794_v49 = vsel %vm1410_vm8, %v10013_v30, %v10181_v45  ;;  %v4427_v30 = vsel %vm1069_vm4, %v11720_v1, %v11745_v34  ;;  %v3764_v43 = vsel %vm1410_vm8, %v11751_v19, %v11750_v37 }
 0x999   :  { %4662 = vrot.lane.b32.xlu0 %v4428_v23, %s6344_s28  ;;  %4177 = vmatprep.subr.mxu1 %v3794_v49  ;;  %v3763_v49 = vsel %vm1410_vm8, %v11742_v56, %v11751_v19 }
 0x99a   :  { %4612 = vrot.lane.b32.xlu1 %v4364_v59, %s6344_s28  ;;  %4178 = vmatpush1.msra.mxu1 %v3793_v15  ;;  %v4398_v59 = vsel %vm1038_vm5, %v11724_v7, %v11749_v26  ;;  %v3845_v15 = vsel %vm1410_vm8, %v9847_v2, %v10056_v8 }
 0x99b   :  { %v10199_v32 = vpop.permute.xlu0 %3621  ;;  %v10201_v4 = vpop.permute.xlu1 %3619  ;;  %6071 = vmatmul.mubr.msk.f32.vlgmr.msra.gmra.mxu0 %vm1591_vm9, %v9935_v10 }
 0x99c   :  { %v3784_v44 = vsel %vm1410_vm8, %v10028_v31, %v10201_v4  ;;  %4288 = vmatprep.mubr.f32.mxu0 %v11711_v24  ;;  %v3773_v31 = vsel %vm1410_vm8, %v3594_v57, %v10041_v18 }
 0x99d   :  { %4710 = vrot.lane.b32.xlu0 %v4494_v21, %s6344_s28  ;;  %4179 = vmatprep.subr.mxu1 %v3784_v44  ;;  %v11754_v44 = vld [vmem:[#allocation120_spill] sm:$0xff] }
 0x99e   :  { %4660 = vrot.lane.b32.xlu1 %v4427_v30, %s6344_s28  ;;  %4180 = vmatpush1.msra.mxu1 %v3783_v50  ;;  %v11755_v30 = vld [vmem:[#allocation101_spill] sm:$0xff] }
 0x99f   :  { %v10220_v9 = vpop.permute.xlu0 %4650  ;;  %v10222_v36 = vpop.permute.xlu1 %3597  ;;  %v4367_v50 = vsel %vm1005_vm6, %v11755_v30, %v11754_v44  ;;  %v4366_v2 = vsel %vm1005_vm6, %v11726_v17, %v11755_v30  ;;  %v11758_v17 = vld [vmem:[#allocation123_spill] sm:$0xff]  ;;  %v11762_v30 = vld [vmem:[#allocation118_spill] sm:$0xff] }
 0x9a0   :  { %v3774_v1 = vsel %vm1410_vm8, %v10041_v18, %v10222_v36  ;;  %v4462_v18 = vsel %vm1102_vm3, %v11753_v47, %v11752_v13 }
 0x9a1   :  { %4640 = vrot.lane.b32.xlu0 %v4399_v52, %s6344_s28  ;;  %4181 = vmatprep.subr.mxu1 %v3774_v1  ;;  %v11756_v1 = vld [vmem:[#allocation122_spill] sm:$0xff] }
 0x9a2   :  { %4590 = vrot.lane.b32.xlu1 %v4332_v14, %s6344_s28  ;;  %4182 = vmatpush1.msra.mxu1 %v3773_v31  ;;  %v11757_v14 = vld [vmem:[#allocation71_spill] sm:$0xff] }
 0x9a3   :  { %v10240_v34 = vpop.permute.xlu0 %4630  ;;  %4183 = vmatprep.subr.mxu1 %v3764_v43  ;;  %v3756_v23 = vpop.permute.xlu1 %3755  ;;  %v4430_v31 = vsel %vm1069_vm4, %v11757_v14, %v11756_v1  ;;  %v4334_v43 = vsel %vm972_vm7, %v11728_v29, %v11758_v17 }
 0x9a4   :  { %4184 = vmatpush1.msra.mxu1 %v3763_v49  ;;  %v3846_v57 = vsel %vm1410_vm8, %v10056_v8, %v3756_v23  ;;  %v3835_v8 = vsel %vm1410_vm8, %v10058_v28, %v10073_v39  ;;  %v3825_v28 = vsel %vm1410_vm8, %v9901_v38, %v10087_v11  ;;  %v11759_v49 = vld [vmem:[#allocation73_spill] sm:$0xff]  ;;  %v4557_v38 = vsel %vm1201_vm0, %v11731_v3, %v11737_v60 }
 0x9a5   :  { %4688 = vrot.lane.b32.xlu0 %v4462_v18, %s6344_s28  ;;  %4238 = vmatprep.subr.mxu0 %v3846_v57  ;;  %v4335_v18 = vsel %vm972_vm7, %v11758_v17, %v11759_v49  ;;  %v3806_v60 = vsel %vm1410_vm8, %v10147_v46, %v9681_v63  ;;  %v4493_v63 = vsel %vm1135_vm2, %v11734_v0, %v11747_v6  ;;  %v11766_v17 = vld [vmem:[#allocation81_spill] sm:$0xff]  ;;  %v11767_v0 = vld [vmem:[#allocation58_spill] sm:$0xff] }
 0x9a6   :  { %4638 = vrot.lane.b32.xlu1 %v4398_v59, %s6344_s28  ;;  %4239 = vmatpush1.msra.mxu0 %v3845_v15  ;;  %v4818_v6 = vsel %vm1410_vm8, %v11767_v0, %v10161_v41 }
 0x9a7   :  { %v10258_v56 = vpop.permute.xlu0 %4606  ;;  %v3734_v21 = vpop.permute.xlu1 %3733  ;;  %6072 = vmatmul.mubr.msk.f32.vlgmr.msra.gmra.mxu1 %vm1591_vm9, %v9935_v10 }
 0x9a8   :  { %v3836_v7 = vsel %vm1410_vm8, %v10073_v39, %v3734_v21  ;;  %5002 = vmatprep.mubr.f32.mxu1 %v11711_v24  ;;  %v11761_v21 = vld [vmem:[#allocation29_spill] sm:$0xff] }
 0x9a9   :  { %4618 = vrot.lane.b32.xlu0 %v4367_v50, %s6344_s28  ;;  %4240 = vmatprep.subr.mxu0 %v3836_v7  ;;  %v4401_v50 = vsel %vm1038_vm5, %v11762_v30, %v11761_v21 }
 0x9aa   :  { %4616 = vrot.lane.b32.xlu1 %v4366_v2, %s6344_s28  ;;  %4241 = vmatpush1.msra.mxu0 %v3835_v8 }
 0x9ab   :  { %v10276_v26 = vpop.permute.xlu0 %4604  ;;  %v3712_v52 = vpop.permute.xlu1 %3711 }
 0x9ac   :  { %v3826_v19 = vsel %vm1410_vm8, %v10087_v11, %v3712_v52  ;;  %v11760_v11 = vld [vmem:[#allocation32_spill] sm:$0xff]  ;;  %v11764_v52 = vld [vmem:[#allocation37_spill] sm:$0xff] }
 0x9ad   :  { %4666 = vrot.lane.b32.xlu0 %v4430_v31, %s6344_s28  ;;  %4242 = vmatprep.subr.mxu0 %v3826_v19  ;;  %v4838_v57 = vsel %vm1410_vm8, %v11760_v11, %v10101_v48  ;;  %v11765_v19 = vld [vmem:[#allocation40_spill] sm:$0xff]  ;;  %v11768_v11 = vld [vmem:[#allocation66_spill] sm:$0xff] }
 0x9ae   :  { %4594 = vrot.lane.b32.xlu1 %v4334_v43, %s6344_s28  ;;  %4243 = vmatpush1.msra.mxu0 %v3825_v28  ;;  %v4369_v43 = vsel %vm1005_vm6, %v11766_v17, %v11765_v19 }
 0x9af   :  { %v10291_v39 = vpop.permute.xlu0 %4586  ;;  %v10293_v23 = vpop.permute.xlu1 %4740 }
 0x9b0   :  { %v4839_v29 = vsel %vm1410_vm8, %v10101_v48, %v10293_v23  ;;  %v4525_v48 = vsel %vm1168_vm1, %v11732_v54, %v11741_v58  ;;  %v11763_v58 = vld [vmem:[#allocation39_spill] sm:$0xff] }
 0x9b1   :  { %4596 = vrot.lane.b32.xlu0 %v4335_v18, %s6344_s28  ;;  %4952 = vmatprep.subr.mxu1 %v4839_v29 }
 0x9b2   :  { %4752 = vrot.lane.b32.xlu1 %v4557_v38, %s6344_s28  ;;  %4953 = vmatpush1.msra.mxu1 %v4838_v57  ;;  %v11769_v57 = vld [vmem:[#allocation26_spill] sm:$0xff] }
 0x9b3   :  { %v10309_v59 = vpop.permute.xlu0 %4744  ;;  %v3688_v15 = vpop.permute.xlu1 %3687 }
 0x9b4   :  { %v3816_v7 = vsel %vm1410_vm8, %v3688_v15, %v10116_v22  ;;  %v3815_v3 = vsel %vm1410_vm8, %v10118_v55, %v3688_v15  ;;  %v3805_v55 = vsel %vm1410_vm8, %v9978_v62, %v10147_v46  ;;  %v6154_v62 = vunpack.i.h.bf16 %v11694_v33 }
 0x9b5   :  { %4644 = vrot.lane.b32.xlu0 %v4401_v50, %s6344_s28  ;;  %4244 = vmatprep.subr.mxu0 %v3816_v7  ;;  %v4337_v15 = vsel %vm972_vm7, %v11769_v57, %v11768_v11  ;;  %v6159_v7 = vunpack.i.h.bf16 %v11696_v40 }
 0x9b6   :  { %4730 = vrot.lane.b32.xlu1 %v4525_v48, %s6344_s28  ;;  %4245 = vmatpush1.msra.mxu0 %v3815_v3  ;;  %v4559_v33 = vsel %vm1201_vm0, %v11736_v25, %v6154_v62  ;;  %v4461_v25 = vsel %vm1102_vm3, %v11738_v42, %v11753_v47 }
 0x9b7   :  { %v10326_v2 = vpop.permute.xlu0 %4720  ;;  %4246 = vmatprep.subr.mxu0 %v3806_v60  ;;  %v4717_v22 = vpop.permute.xlu1 %4716  ;;  %v3785_v60 = vsel %vm1410_vm8, %v10201_v4, %v10199_v32 }
 0x9b8   :  { %4247 = vmatpush1.msra.mxu0 %v3805_v55  ;;  %v4829_v54 = vsel %vm1410_vm8, %v4717_v22, %v10133_v35  ;;  %v4828_v8 = vsel %vm1410_vm8, %v11763_v58, %v4717_v22  ;;  %v11771_v22 = vld [vmem:[#allocation72_spill] sm:$0xff]  ;;  %v11772_v55 = vld [vmem:[#allocation57_spill] sm:$0xff] }
 0x9b9   :  { %4574 = vrot.lane.b32.xlu0 %v11764_v52, %s6344_s28  ;;  %4954 = vmatprep.subr.mxu1 %v4829_v54  ;;  %v11773_v54 = vld [vmem:[#allocation48_spill] sm:$0xff] }
 0x9ba   :  { %4708 = vrot.lane.b32.xlu1 %v4493_v63, %s6344_s28  ;;  %4955 = vmatpush1.msra.mxu1 %v4828_v8  ;;  %v4798_v58 = vsel %vm1410_vm8, %v11773_v54, %v10220_v9  ;;  %v6164_v8 = vunpack.i.h.bf16 %v11698_v5  ;;  %v11776_v5 = vld [vmem:[#allocation28_spill] sm:$0xff]  ;;  %v11780_v54 = vld [vmem:[#allocation83_spill] sm:$0xff] }
 0x9bb   :  { %v10342_v46 = vpop.permute.xlu0 %4698  ;;  %v10344_v31 = vpop.permute.xlu1 %4696 }
 0x9bc   :  { %v4819_v28 = vsel %vm1410_vm8, %v10161_v41, %v10344_v31  ;;  %v11770_v41 = vld [vmem:[#allocation30_spill] sm:$0xff] }
 0x9bd   :  { %4622 = vrot.lane.b32.xlu0 %v4369_v43, %s6344_s28  ;;  %4956 = vmatprep.subr.mxu1 %v4819_v28  ;;  %v4495_v43 = vsel %vm1135_vm2, %v11746_v12, %v6164_v8  ;;  %v4400_v12 = vsel %vm1038_vm5, %v11748_v27, %v11762_v30 }
 0x9be   :  { %4756 = vrot.lane.b32.xlu1 %v4559_v33, %s6344_s28  ;;  %4957 = vmatpush1.msra.mxu1 %v4818_v6 }
 0x9bf   :  { %v10359_v18 = vpop.permute.xlu0 %4746  ;;  %v3644_v29 = vpop.permute.xlu1 %3643 }
 0x9c0   :  { %v3795_v38 = vsel %vm1410_vm8, %v10181_v45, %v3644_v29  ;;  %v3796_v50 = vsel %vm1410_vm8, %v3644_v29, %v11770_v41  ;;  %v3786_v45 = vsel %vm1410_vm8, %v10199_v32, %v9704_v61  ;;  %v4527_v61 = vsel %vm1168_vm1, %v11740_v20, %v6159_v7  ;;  %v11777_v29 = vld [vmem:[#allocation35_spill] sm:$0xff] }
 0x9c1   :  { %4600 = vrot.lane.b32.xlu0 %v4337_v15, %s6344_s28  ;;  %4248 = vmatprep.subr.mxu0 %v3796_v50  ;;  %v4429_v20 = vsel %vm1069_vm4, %v11744_v16, %v11757_v14  ;;  %v11775_v14 = vld [vmem:[#allocation55_spill] sm:$0xff]  ;;  %v4778_v7 = vsel %vm1410_vm8, %v10276_v26, %v10258_v56 }
 0x9c2   :  { %4686 = vrot.lane.b32.xlu1 %v4461_v25, %s6344_s28  ;;  %4249 = vmatpush1.msra.mxu0 %v3795_v38  ;;  %v3766_v0 = vsel %vm1410_vm8, %v11776_v5, %v11775_v14  ;;  %v6169_v38 = vunpack.i.h.bf16 %v11777_v29  ;;  %v4368_v25 = vsel %vm1005_vm6, %v11754_v44, %v11766_v17 }
 0x9c3   :  { %v10377_v3 = vpop.permute.xlu0 %4676  ;;  %4250 = vmatprep.subr.mxu0 %v3786_v45  ;;  %v4673_v48 = vpop.permute.xlu1 %4672 }
 0x9c4   :  { %v4808_v42 = vsel %vm1410_vm8, %v11771_v22, %v4673_v48  ;;  %4251 = vmatpush1.msra.mxu0 %v3785_v60  ;;  %v4809_v47 = vsel %vm1410_vm8, %v4673_v48, %v10179_v53  ;;  %v4463_v27 = vsel %vm1102_vm3, %v11752_v13, %v6169_v38 }
 0x9c5   :  { %4578 = vrot.lane.b32.xlu0 %v11772_v55, %s6344_s28  ;;  %4958 = vmatprep.subr.mxu1 %v4809_v47 }
 0x9c6   :  { %4734 = vrot.lane.b32.xlu1 %v4527_v61, %s6344_s28  ;;  %4959 = vmatpush1.msra.mxu1 %v4808_v42 }
 0x9c7   :  { %v10391_v40 = vpop.permute.xlu0 %4724  ;;  %v10393_v32 = vpop.permute.xlu1 %4652 }
 0x9c8   :  { %v4799_v4 = vsel %vm1410_vm8, %v10220_v9, %v10393_v32  ;;  %v11774_v9 = vld [vmem:[#allocation52_spill] sm:$0xff] }
 0x9c9   :  { %4960 = vmatprep.subr.mxu1 %v4799_v4 }
 0x9ca   :  { %4664 = vrot.lane.b32.xlu1 %v4429_v20, %s6344_s28  ;;  %4961 = vmatpush1.msra.mxu1 %v4798_v58 }
 0x9cb   :  { %v10406_v52 = vpop.permute.xlu0 %4654 }
 0x9cc   :  { %v3600_v63 = vpop.permute.xlu1 %3599  ;;  %v4800_v14 = vsel %vm1410_vm8, %v10393_v32, %v10406_v52 }
 0x9cd   :  { %v3775_v62 = vsel %vm1410_vm8, %v10222_v36, %v3600_v63  ;;  %v3776_v28 = vsel %vm1410_vm8, %v3600_v63, %v11774_v9  ;;  %v3765_v36 = vsel %vm1410_vm8, %v11750_v37, %v11776_v5  ;;  %v11781_v9 = vld [vmem:[#allocation70_spill] sm:$0xff] }
 0x9ce   :  { %4712 = vrot.lane.b32.xlu1 %v4495_v43, %s6344_s28  ;;  %4252 = vmatprep.subr.mxu0 %v3776_v28 }
 0x9cf   :  { %4253 = vmatpush1.msra.mxu0 %v3775_v62  ;;  %v10415_v16 = vpop.permute.xlu0 %4702  ;;  %v4842_v62 = vsel %vm1410_vm8, %v10309_v59, %v10359_v18 }
 0x9d0   :  { %4254 = vmatprep.subr.mxu0 %v3766_v0  ;;  %v4629_v6 = vpop.permute.xlu1 %4628 }
 0x9d1   :  { %4255 = vmatpush1.msra.mxu0 %v3765_v36  ;;  %v4789_v33 = vsel %vm1410_vm8, %v4629_v6, %v10240_v34 }
 0x9d2   :  { %4642 = vrot.lane.b32.xlu1 %v4400_v12, %s6344_s28  ;;  %4962 = vmatprep.subr.mxu1 %v4789_v33 }
 0x9d3   :  { %v10430_v15 = vpop.permute.xlu0 %4632  ;;  %6073 = vmatmul.mubr.msk.f32.vlgmr.msra.gmra.mxu0 %vm1591_vm9, %v9935_v10 }
 0x9d4   :  { %v4627_v41 = vpop.permute.xlu1 %4626  ;;  %5073 = vmatprep.mubr.f32.mxu0 %v11711_v24  ;;  %v4790_v32 = vsel %vm1410_vm8, %v10240_v34, %v10430_v15 }
 0x9d5   :  { %v4788_v37 = vsel %vm1410_vm8, %v4627_v41, %v4629_v6 }
 0x9d6   :  { %4690 = vrot.lane.b32.xlu1 %v4463_v27, %s6344_s28  ;;  %4963 = vmatpush1.msra.mxu1 %v4788_v37 }
 0x9d7   :  { %v10439_v30 = vpop.permute.xlu0 %4680 }
 0x9d8   :  { %v10441_v50 = vpop.permute.xlu1 %4608 }
 0x9d9   :  { %v4779_v45 = vsel %vm1410_vm8, %v10258_v56, %v10441_v50  ;;  %v4336_v56 = vsel %vm972_vm7, %v11759_v49, %v11769_v57  ;;  %v11779_v49 = vld [vmem:[#allocation42_spill] sm:$0xff] }
 0x9da   :  { %4620 = vrot.lane.b32.xlu1 %v4368_v25, %s6344_s28  ;;  %4964 = vmatprep.subr.mxu1 %v4779_v45 }
 0x9db   :  { %4965 = vmatpush1.msra.mxu1 %v4778_v7  ;;  %v10455_v60 = vpop.permute.xlu0 %4610 }
 0x9dc   :  { %v4585_v13 = vpop.permute.xlu1 %4584  ;;  %v4780_v34 = vsel %vm1410_vm8, %v10441_v50, %v10455_v60 }
 0x9dd   :  { %v4769_v48 = vsel %vm1410_vm8, %v4585_v13, %v10291_v39 }
 0x9de   :  { %4668 = vrot.lane.b32.xlu1 %v11756_v1, %s6344_s28  ;;  %4966 = vmatprep.subr.mxu1 %v4769_v48  ;;  %v6174_v1 = vunpack.i.h.bf16 %v11708_v51  ;;  %v4830_v51 = vsel %vm1410_vm8, %v10133_v35, %v10326_v2  ;;  %v4820_v35 = vsel %vm1410_vm8, %v10344_v31, %v10342_v46  ;;  %v4810_v31 = vsel %vm1410_vm8, %v10179_v53, %v10377_v3  ;;  %v11783_v48 = vld [vmem:[#allocation69_spill] sm:$0xff] }
 0x9df   :  { %v10467_v22 = vpop.permute.xlu0 %4658 }
 0x9e0   :  { %v4743_v44 = vpop.permute.xlu1 %4742  ;;  %v4758_v55 = vsel %vm1410_vm8, %v6174_v1, %v11779_v49 }
 0x9e1   :  { %v4840_v17 = vsel %vm1410_vm8, %v10293_v23, %v4743_v44  ;;  %v4841_v26 = vsel %vm1410_vm8, %v4743_v44, %v10309_v59  ;;  %v11778_v23 = vld [vmem:[#allocation47_spill] sm:$0xff] }
 0x9e2   :  { %4598 = vrot.lane.b32.xlu1 %v4336_v56, %s6344_s28  ;;  %5023 = vmatprep.subr.mxu0 %v4841_v26  ;;  %v4759_v57 = vsel %vm1410_vm8, %v11779_v49, %v11778_v23 }
 0x9e3   :  { %5024 = vmatpush1.msra.mxu0 %v4840_v17  ;;  %v4760_v17 = vsel %vm1410_vm8, %v11778_v23, %v11783_v48 }
 0x9e4   :  { %v4583_v42 = vpop.permute.xlu1 %4582 }
 0x9e5   :  { %v4768_v47 = vsel %vm1410_vm8, %v4583_v42, %v4585_v13  ;;  %v11782_v13 = vld [vmem:[#allocation11_spill] sm:$0xff] }
 0x9e6   :  { %4646 = vrot.lane.b32.xlu1 %v11761_v21, %s6344_s28  ;;  %4967 = vmatpush1.msra.mxu1 %v4768_v47  ;;  %v10485_v21 = vpop.permute.xlu0 %4588 }
 0x9e7   :  { %4968 = vmatprep.subr.mxu1 %v4759_v57  ;;  %v4770_v50 = vsel %vm1410_vm8, %v10291_v39, %v10485_v21 }
 0x9e8   :  { %4969 = vmatpush1.msra.mxu1 %v4758_v55  ;;  %v4723_v61 = vpop.permute.xlu1 %4722  ;;  %v11784_v55 = vld [vmem:[#allocation67_spill] sm:$0xff] }
 0x9e9   :  { %v4831_v4 = vsel %vm1410_vm8, %v10326_v2, %v4723_v61  ;;  %6074 = vmatmul.mubr.msk.f32.vlgmr.msra.gmra.mxu1 %vm1591_vm9, %v9935_v10 }
 0x9ea   :  { %4576 = vrot.lane.b32.xlu1 %v11780_v54, %s6344_s28  ;;  %5025 = vmatprep.subr.mxu0 %v4831_v4  ;;  %v10497_v2 = vpop.permute.xlu0 %4636 }
 0x9eb   :  { %5026 = vmatpush1.msra.mxu0 %v4830_v51  ;;  %5144 = vmatprep.mubr.f32.mxu1 %v11711_v24 }
 0x9ec   :  { %v4701_v58 = vpop.permute.xlu1 %4700 }
 0x9ed   :  { %v4821_v20 = vsel %vm1410_vm8, %v10342_v46, %v4701_v58 }
 0x9ee   :  { %4624 = vrot.lane.b32.xlu1 %v11765_v19, %s6344_s28  ;;  %5027 = vmatprep.subr.mxu0 %v4821_v20  ;;  %v10514_v43 = vpop.permute.xlu0 %4614 }
 0x9ef   :  { %5028 = vmatpush1.msra.mxu0 %v4820_v35 }
 0x9f0   :  { %v10499_v8 = vpop.permute.xlu1 %4748 }
 0x9f1   :  { %v4843_v63 = vsel %vm1410_vm8, %v10359_v18, %v10499_v8 }
 0x9f2   :  { %4602 = vrot.lane.b32.xlu1 %v11768_v11, %s6344_s28  ;;  %5094 = vmatprep.subr.mxu1 %v4843_v63  ;;  %v4832_v11 = vsel %vm1410_vm8, %v4723_v61, %v10391_v40  ;;  %v4593_v28 = vpop.permute.xlu0 %4592  ;;  %v11785_v61 = vld [vmem:[#allocation46_spill] sm:$0xff] }
 0x9f3   :  { %5095 = vmatpush1.msra.mxu1 %v4842_v62  ;;  %v4763_v4 = vsel %vm1410_vm8, %v11785_v61, %v11784_v55 }
 0x9f4   :  { %v4679_v19 = vpop.permute.xlu1 %4678 }
 0x9f5   :  { %v4811_v46 = vsel %vm1410_vm8, %v10377_v3, %v4679_v19  ;;  %v4812_v29 = vsel %vm1410_vm8, %v4679_v19, %v10439_v30 }
 0x9f6   :  { %4580 = vrot.lane.b32.xlu1 %v11781_v9, %s6344_s28  ;;  %5029 = vmatprep.subr.mxu0 %v4811_v46  ;;  %v4751_v6 = vpop.permute.xlu0 %4750 }
 0x9f7   :  { %5030 = vmatpush1.msra.mxu0 %v4810_v31 }
 0x9f8   :  { %v10518_v59 = vpop.permute.xlu1 %4726 }
 0x9f9   :  { %v4833_v18 = vsel %vm1410_vm8, %v10391_v40, %v10518_v59  ;;  %v4822_v40 = vsel %vm1410_vm8, %v4701_v58, %v10415_v16  ;;  %v4844_v58 = vsel %vm1410_vm8, %v10499_v8, %v4751_v6 }
 0x9fa   :  { %5096 = vmatprep.subr.mxu1 %v4833_v18 }
 0x9fb   :  { %5097 = vmatpush1.msra.mxu1 %v4832_v11 }
 0x9fc   :  { %v4657_v53 = vpop.permute.xlu1 %4656 }
 0x9fd   :  { %v4801_v3 = vsel %vm1410_vm8, %v10406_v52, %v4657_v53  ;;  %v4729_v52 = vpop.permute.xlu0 %4728 }
 0x9fe   :  { %5031 = vmatprep.subr.mxu0 %v4801_v3  ;;  %v4834_v63 = vsel %vm1410_vm8, %v10518_v59, %v4729_v52 }
 0x9ff   :  { %5032 = vmatpush1.msra.mxu0 %v4800_v14 }
 0xa00   :  { %v10530_v5 = vpop.permute.xlu1 %4704 }
 0xa01   :  { %v4823_v0 = vsel %vm1410_vm8, %v10415_v16, %v10530_v5 }
 0xa02   :  { %5098 = vmatprep.subr.mxu1 %v4823_v0 }
 0xa03   :  { %5099 = vmatpush1.msra.mxu1 %v4822_v40 }
 0xa04   :  { %v4635_v36 = vpop.permute.xlu1 %4634 }
 0xa05   :  { %v4791_v12 = vsel %vm1410_vm8, %v10430_v15, %v4635_v36  ;;  %v4707_v15 = vpop.permute.xlu0 %4706  ;;  %v4792_v39 = vsel %vm1410_vm8, %v4635_v36, %v10497_v2 }
 0xa06   :  { %5033 = vmatprep.subr.mxu0 %v4791_v12  ;;  %v4824_v46 = vsel %vm1410_vm8, %v10530_v5, %v4707_v15 }
 0xa07   :  { %5034 = vmatpush1.msra.mxu0 %v4790_v32 }
 0xa08   :  { %v10542_v33 = vpop.permute.xlu1 %4682 }
 0xa09   :  { %v4813_v16 = vsel %vm1410_vm8, %v10439_v30, %v10542_v33  ;;  %v4802_v30 = vsel %vm1410_vm8, %v4657_v53, %v10467_v22  ;;  %v4755_v25 = vpop.permute.xlu0 %4754 }
 0xa0a   :  { %5100 = vmatprep.subr.mxu1 %v4813_v16 }
 0xa0b   :  { %5101 = vmatpush1.msra.mxu1 %v4812_v29 }
 0xa0c   :  { %v4613_v38 = vpop.permute.xlu1 %4612 }
 0xa0d   :  { %v4781_v41 = vsel %vm1410_vm8, %v10455_v60, %v4613_v38  ;;  %v4761_v60 = vsel %vm1410_vm8, %v11783_v48, %v11782_v13  ;;  %v4685_v26 = vpop.permute.xlu0 %4684  ;;  %v4782_v1 = vsel %vm1410_vm8, %v4613_v38, %v10514_v43 }
 0xa0e   :  { %5035 = vmatprep.subr.mxu0 %v4781_v41  ;;  %v4814_v11 = vsel %vm1410_vm8, %v10542_v33, %v4685_v26 }
 0xa0f   :  { %5036 = vmatpush1.msra.mxu0 %v4780_v34 }
 0xa10   :  { %v10554_v37 = vpop.permute.xlu1 %4660 }
 0xa11   :  { %v4803_v27 = vsel %vm1410_vm8, %v10467_v22, %v10554_v37  ;;  %v4733_v47 = vpop.permute.xlu0 %4732 }
 0xa12   :  { %5102 = vmatprep.subr.mxu1 %v4803_v27 }
 0xa13   :  { %5103 = vmatpush1.msra.mxu1 %v4802_v30 }
 0xa14   :  { %v4591_v45 = vpop.permute.xlu1 %4590 }
 0xa15   :  { %v4771_v7 = vsel %vm1410_vm8, %v10485_v21, %v4591_v45  ;;  %v4772_v57 = vsel %vm1410_vm8, %v4591_v45, %v4593_v28  ;;  %v4762_v21 = vsel %vm1410_vm8, %v11782_v13, %v11785_v61  ;;  %v4663_v20 = vpop.permute.xlu0 %4662 }
 0xa16   :  { %5037 = vmatprep.subr.mxu0 %v4771_v7  ;;  %v4804_v40 = vsel %vm1410_vm8, %v10554_v37, %v4663_v20 }
 0xa17   :  { %5038 = vmatpush1.msra.mxu0 %v4770_v50 }
 0xa18   :  { %5039 = vmatprep.subr.mxu0 %v4761_v60  ;;  %v10569_v44 = vpop.permute.xlu1 %4638 }
 0xa19   :  { %5040 = vmatpush1.msra.mxu0 %v4760_v17  ;;  %v4793_v56 = vsel %vm1410_vm8, %v10497_v2, %v10569_v44  ;;  %v4711_v62 = vpop.permute.xlu0 %4710 }
 0xa1a   :  { %5104 = vmatprep.subr.mxu1 %v4793_v56  ;;  %6075 = vmatmul.mubr.msk.f32.vlgmr.msra.gmra.mxu0 %vm1591_vm9, %v9935_v10 }
 0xa1b   :  { %5105 = vmatpush1.msra.mxu1 %v4792_v39  ;;  %5215 = vmatprep.mubr.f32.mxu0 %v11711_v24 }
 0xa1c   :  { %v10582_v22 = vpop.permute.xlu1 %4616 }
 0xa1d   :  { %v4783_v42 = vsel %vm1410_vm8, %v10514_v43, %v10582_v22  ;;  %v4641_v43 = vpop.permute.xlu0 %4640 }
 0xa1e   :  { %5106 = vmatprep.subr.mxu1 %v4783_v42  ;;  %v4794_v29 = vsel %vm1410_vm8, %v10569_v44, %v4641_v43 }
 0xa1f   :  { %5107 = vmatpush1.msra.mxu1 %v4782_v1 }
 0xa20   :  { %v10589_v23 = vpop.permute.xlu1 %4594 }
 0xa21   :  { %v4773_v49 = vsel %vm1410_vm8, %v4593_v28, %v10589_v23  ;;  %v4689_v28 = vpop.permute.xlu0 %4688 }
 0xa22   :  { %5108 = vmatprep.subr.mxu1 %v4773_v49 }
 0xa23   :  { %5109 = vmatpush1.msra.mxu1 %v4772_v57 }
 0xa24   :  { %5110 = vmatprep.subr.mxu1 %v4763_v4  ;;  %v4753_v51 = vpop.permute.xlu1 %4752 }
 0xa25   :  { %5111 = vmatpush1.msra.mxu1 %v4762_v21  ;;  %v4845_v54 = vsel %vm1410_vm8, %v4751_v6, %v4753_v51  ;;  %v4846_v9 = vsel %vm1410_vm8, %v4753_v51, %v4755_v25  ;;  %v4619_v6 = vpop.permute.xlu0 %4618 }
 0xa26   :  { %5165 = vmatprep.subr.mxu0 %v4845_v54  ;;  %6076 = vmatmul.mubr.msk.f32.vlgmr.msra.gmra.mxu1 %vm1591_vm9, %v9935_v10  ;;  %v4784_v30 = vsel %vm1410_vm8, %v10582_v22, %v4619_v6 }
 0xa27   :  { %5166 = vmatpush1.msra.mxu0 %v4844_v58  ;;  %5286 = vmatprep.mubr.f32.mxu1 %v11711_v24 }
 0xa28   :  { %v4731_v35 = vpop.permute.xlu1 %4730 }
 0xa29   :  { %v4835_v2 = vsel %vm1410_vm8, %v4729_v52, %v4731_v35  ;;  %v4836_v14 = vsel %vm1410_vm8, %v4731_v35, %v4733_v47  ;;  %v4667_v52 = vpop.permute.xlu0 %4666  ;;  %v10655_v35 = vpop.f32.mrf.mxu0 }
 0xa2a   :  { %5167 = vmatprep.subr.mxu0 %v4835_v2 }
 0xa2b   :  { %5168 = vmatpush1.msra.mxu0 %v4834_v63  ;;  %v10657_v2 = vpop.f32.mrf.mxu0  ;;  %v11786_v63 = vld [vmem:[#allocation15_spill] sm:$0xff] }
 0xa2c   :  { %v4709_v19 = vpop.permute.xlu1 %4708 }
 0xa2d   :  { %v4825_v8 = vsel %vm1410_vm8, %v4707_v15, %v4709_v19  ;;  %v4826_v32 = vsel %vm1410_vm8, %v4709_v19, %v4711_v62  ;;  %v4597_v34 = vpop.permute.xlu0 %4596  ;;  %v11787_v19 = vld [vmem:[#allocation51_spill] sm:$0xff] }
 0xa2e   :  { %5169 = vmatprep.subr.mxu0 %v4825_v8  ;;  %v4774_v60 = vsel %vm1410_vm8, %v10589_v23, %v4597_v34  ;;  %v5294_v8 = vmul.f32 %v10657_v2, %v11787_v19 }
 0xa2f   :  { %5170 = vmatpush1.msra.mxu0 %v4824_v46  ;;  %v10663_v46 = vpop.f32.mrf.mxu1 }
 0xa30   :  { %v4757_v10 = vpop.permute.xlu1 %4756 }
 0xa31   :  { %v4847_v31 = vsel %vm1410_vm8, %v4755_v25, %v4757_v10  ;;  %v4645_v25 = vpop.permute.xlu0 %4644 }
 0xa32   :  { %5236 = vmatprep.subr.mxu1 %v4847_v31  ;;  %v11788_v31 = vld [vmem:[#allocation22_spill] sm:$0xff] }
 0xa33   :  { %5237 = vmatpush1.msra.mxu1 %v4846_v9  ;;  %v10667_v9 = vpop.f32.mrf.mxu1 }
 0xa34   :  { %v4687_v59 = vpop.permute.xlu1 %4686 }
 0xa35   :  { %v4815_v18 = vsel %vm1410_vm8, %v4685_v26, %v4687_v59  ;;  %v4816_v15 = vsel %vm1410_vm8, %v4687_v59, %v4689_v28  ;;  %v4575_v44 = vpop.permute.xlu0 %4574 }
 0xa36   :  { %5171 = vmatprep.subr.mxu0 %v4815_v18  ;;  %v4764_v1 = vsel %vm1410_vm8, %v11784_v55, %v4575_v44  ;;  %v11789_v18 = vld [vmem:[#allocation43_spill] sm:$0xff] }
 0xa37   :  { %5172 = vmatpush1.msra.mxu0 %v4814_v11  ;;  %v5296_v11 = vmul.f32 %v10667_v9, %v11789_v18 }
 0xa38   :  { %v4735_v53 = vpop.permute.xlu1 %4734 }
 0xa39   :  { %v4837_v3 = vsel %vm1410_vm8, %v4733_v47, %v4735_v53  ;;  %v4623_v39 = vpop.permute.xlu0 %4622  ;;  %v6270_v47 = vld [vmem:[%s11090_s6] sm:$0xff] }
 0xa3a   :  { %5238 = vmatprep.subr.mxu1 %v4837_v3  ;;  %v11790_v3 = vld [vmem:[#allocation45_spill] sm:$0xff] }
 0xa3b   :  { %5239 = vmatpush1.msra.mxu1 %v4836_v14 }
 0xa3c   :  { %v4665_v5 = vpop.permute.xlu1 %4664 }
 0xa3d   :  { %v4805_v0 = vsel %vm1410_vm8, %v4663_v20, %v4665_v5  ;;  %v4806_v50 = vsel %vm1410_vm8, %v4665_v5, %v4667_v52  ;;  %v4601_v57 = vpop.permute.xlu0 %4600 }
 0xa3e   :  { %5173 = vmatprep.subr.mxu0 %v4805_v0 }
 0xa3f   :  { %5174 = vmatpush1.msra.mxu0 %v4804_v40  ;;  %v11791_v40 = vld [vmem:[#allocation87_spill] sm:$0xff] }
 0xa40   :  { %v4713_v36 = vpop.permute.xlu1 %4712 }
 0xa41   :  { %v4827_v12 = vsel %vm1410_vm8, %v4711_v62, %v4713_v36  ;;  %v4579_v21 = vpop.permute.xlu0 %4578  ;;  %v5293_v62 = vmul.f32 %v10655_v35, %v11786_v63 }
 0xa42   :  { %5240 = vmatprep.subr.mxu1 %v4827_v12 }
 0xa43   :  { %5241 = vmatpush1.msra.mxu1 %v4826_v32  ;;  %v5303_v10 = vadd.f32 %v5294_v8, %v5293_v62  ;;  %v11792_v32 = vld [vmem:[#allocation27_spill] sm:$0xff] }
 0xa44   :  { %v4643_v33 = vpop.permute.xlu1 %4642 }
 0xa45   :  { %v4795_v16 = vsel %vm1410_vm8, %v4641_v43, %v4643_v33  ;;  %v4796_v26 = vsel %vm1410_vm8, %v4643_v33, %v4645_v25  ;;  %v5295_v43 = vmul.f32 %v10663_v46, %v11788_v31 }
 0xa46   :  { %5175 = vmatprep.subr.mxu0 %v4795_v16 }
 0xa47   :  { %5176 = vmatpush1.msra.mxu0 %v4794_v29  ;;  %v5304_v59 = vadd.f32 %v5303_v10, %v5295_v43  ;;  %v11793_v29 = vld [vmem:[#allocation20_spill] sm:$0xff] }
 0xa48   :  { %v4691_v38 = vpop.permute.xlu1 %4690 }
 0xa49   :  { %v4817_v41 = vsel %vm1410_vm8, %v4689_v28, %v4691_v38  ;;  %v5305_v53 = vadd.f32 %v5304_v59, %v5296_v11 }
 0xa4a   :  { %5242 = vmatprep.subr.mxu1 %v4817_v41 }
 0xa4b   :  { %5243 = vmatpush1.msra.mxu1 %v4816_v15  ;;  %v11794_v15 = vld [vmem:[#allocation25_spill] sm:$0xff] }
 0xa4c   :  { %v4621_v37 = vpop.permute.xlu1 %4620 }
 0xa4d   :  { %v4785_v27 = vsel %vm1410_vm8, %v4619_v6, %v4621_v37  ;;  %v4786_v61 = vsel %vm1410_vm8, %v4621_v37, %v4623_v39 }
 0xa4e   :  { %5177 = vmatprep.subr.mxu0 %v4785_v27 }
 0xa4f   :  { %5178 = vmatpush1.msra.mxu0 %v4784_v30 }
 0xa50   :  { %v4669_v45 = vpop.permute.xlu1 %4668 }
 0xa51   :  { %v4807_v7 = vsel %vm1410_vm8, %v4667_v52, %v4669_v45 }
 0xa52   :  { %5244 = vmatprep.subr.mxu1 %v4807_v7 }
 0xa53   :  { %5245 = vmatpush1.msra.mxu1 %v4806_v50 }
 0xa54   :  { %v4599_v13 = vpop.permute.xlu1 %4598 }
 0xa55   :  { %v4775_v48 = vsel %vm1410_vm8, %v4597_v34, %v4599_v13  ;;  %v4776_v51 = vsel %vm1410_vm8, %v4599_v13, %v4601_v57 }
 0xa56   :  { %5179 = vmatprep.subr.mxu0 %v4775_v48 }
 0xa57   :  { %5180 = vmatpush1.msra.mxu0 %v4774_v60 }
 0xa58   :  { %v4647_v17 = vpop.permute.xlu1 %4646 }
 0xa59   :  { %v4797_v56 = vsel %vm1410_vm8, %v4645_v25, %v4647_v17  ;;  %v11795_v25 = vld [vmem:[#allocation21_spill] sm:$0xff] }
 0xa5a   :  { %5246 = vmatprep.subr.mxu1 %v4797_v56 }
 0xa5b   :  { %5247 = vmatpush1.msra.mxu1 %v4796_v26  ;;  %v10671_v28 = vpop.f32.mrf.mxu0 }
 0xa5c   :  { %v4577_v22 = vpop.permute.xlu1 %4576  ;;  %v5297_v14 = vmul.f32 %v10671_v28, %v11790_v3 }
 0xa5d   :  { %v4765_v42 = vsel %vm1410_vm8, %v4575_v44, %v4577_v22  ;;  %v4766_v20 = vsel %vm1410_vm8, %v4577_v22, %v4579_v21  ;;  %v10675_v5 = vpop.f32.mrf.mxu0 }
 0xa5e   :  { %5181 = vmatprep.subr.mxu0 %v4765_v42  ;;  %v5306_v0 = vadd.f32 %v5305_v53, %v5297_v14  ;;  %v5298_v6 = vmul.f32 %v10675_v5, %v11791_v40 }
 0xa5f   :  { %5182 = vmatpush1.msra.mxu0 %v4764_v1 }
 0xa60   :  { %6077 = vmatmul.mubr.msk.f32.vlgmr.msra.gmra.mxu0 %vm1591_vm9, %v6270_v47  ;;  %v4625_v23 = vpop.permute.xlu1 %4624  ;;  %6107 = vmatprep.subr.mxu0 %v11711_v24  ;;  %v5307_v12 = vadd.f32 %v5306_v0, %v5298_v6 }
 0xa61   :  { %v4787_v49 = vsel %vm1410_vm8, %v4623_v39, %v4625_v23  ;;  %6109 = vmatprep.mubr.msk.f32.mxu0 %vm6351_vm10, %v11711_v24 }
 0xa62   :  { %5248 = vmatprep.subr.mxu1 %v4787_v49 }
 0xa63   :  { %5249 = vmatpush1.msra.mxu1 %v4786_v61 }
 0xa64   :  { %v4603_v4 = vpop.permute.xlu1 %4602 }
 0xa65   :  { %v4777_v55 = vsel %vm1410_vm8, %v4601_v57, %v4603_v4 }
 0xa66   :  { %5250 = vmatprep.subr.mxu1 %v4777_v55 }
 0xa67   :  { %5251 = vmatpush1.msra.mxu1 %v4776_v51  ;;  %v10679_v36 = vpop.f32.mrf.mxu1 }
 0xa68   :  { %v4581_v54 = vpop.permute.xlu1 %4580  ;;  %v5299_v52 = vmul.f32 %v10679_v36, %v11792_v32 }
 0xa69   :  { %v4767_v58 = vsel %vm1410_vm8, %v4579_v21, %v4581_v54  ;;  %v10683_v33 = vpop.f32.mrf.mxu1 }
 0xa6a   :  { %5252 = vmatprep.subr.mxu1 %v4767_v58  ;;  %v5308_v16 = vadd.f32 %v5307_v12, %v5299_v52  ;;  %v5300_v38 = vmul.f32 %v10683_v33, %v11793_v29 }
 0xa6b   :  { %5253 = vmatpush1.msra.mxu1 %v4766_v20 }
 0xa6c   :  { %6078 = vmatmul.mubr.msk.f32.vlgmr.msra.gmra.mxu1 %vm1591_vm9, %v6270_v47  ;;  %6112 = vmatprep.subr.mxu1 %v11711_v24  ;;  %v5309_v41 = vadd.f32 %v5308_v16, %v5300_v38 }
 0xa6d   :  { %6114 = vmatprep.mubr.msk.f32.mxu1 %vm6351_vm10, %v11711_v24 }
 0xa93   :  { %v10687_v34 = vpop.f32.mrf.mxu0 }
 0xa94   :  { %v5301_v37 = vmul.f32 %v10687_v34, %v11794_v15 }
 0xa95   :  { %v10691_v27 = vpop.f32.mrf.mxu0 }
 0xa96   :  { %v5310_v30 = vadd.f32 %v5309_v41, %v5301_v37  ;;  %v5302_v45 = vmul.f32 %v10691_v27, %v11795_v25 }
 0xa98   :  { %v5311_v7 = vadd.f32 %v5310_v30, %v5302_v45 }
 0xa9a   :  { %5312 = vadd.xlane.f32.xlu0 %v5311_v7 }
 0xaa9   :  { %v10695_v50 = vpop.f32.mrf.mxu1 }
 0xaaa   :  { %v5314_v48 = vmul.f32 %v10695_v50, %v11786_v63 }
 0xaab   :  { %v10697_v13 = vpop.f32.mrf.mxu1 }
 0xaac   :  { %v5315_v60 = vmul.f32 %v10697_v13, %v11787_v19 }
 0xaae   :  { %v5324_v17 = vadd.f32 %v5315_v60, %v5314_v48 }
 0xada   :  { %v10703_v44 = vpop.f32.mrf.mxu0 }
 0xadb   :  { %v5316_v56 = vmul.f32 %v10703_v44, %v11788_v31 }
 0xadc   :  { %v10707_v26 = vpop.f32.mrf.mxu0 }
 0xadd   :  { %v5325_v39 = vadd.f32 %v5324_v17, %v5316_v56  ;;  %v5317_v22 = vmul.f32 %v10707_v26, %v11789_v18 }
 0xadf   :  { %v5326_v1 = vadd.f32 %v5325_v39, %v5317_v22 }
 0xae6   :  { %v10711_v42 = vpop.f32.mrf.mxu1 }
 0xae7   :  { %v5318_v47 = vmul.f32 %v10711_v42, %v11790_v3 }
 0xae8   :  { %v10715_v23 = vpop.f32.mrf.mxu1 }
 0xae9   :  { %v5327_v57 = vadd.f32 %v5326_v1, %v5318_v47  ;;  %v5319_v61 = vmul.f32 %v10715_v23, %v11791_v40 }
 0xaeb   :  { %v5328_v51 = vadd.f32 %v5327_v57, %v5319_v61 }
 0xb20   :  { %v10717_v49 = vpop.f32.mrf.mxu0 }
 0xb21   :  { %v5320_v4 = vmul.f32 %v10717_v49, %v11792_v32 }
 0xb22   :  { %v10723_v55 = vpop.f32.mrf.mxu0 }
 0xb23   :  { %v5329_v21 = vadd.f32 %v5328_v51, %v5320_v4  ;;  %v5321_v54 = vmul.f32 %v10723_v55, %v11793_v29  ;;  %v5313_v11 = vpop.xlane.xlu0 %5312 }
 0xb25   :  { %v5330_v20 = vadd.f32 %v5329_v21, %v5321_v54 }
 0xb2c   :  { %v10727_v58 = vpop.f32.mrf.mxu1 }
 0xb2d   :  { %v5322_v62 = vmul.f32 %v10727_v58, %v11794_v15 }
 0xb2e   :  { %v10731_v8 = vpop.f32.mrf.mxu1 }
 0xb2f   :  { %v5331_v10 = vadd.f32 %v5330_v20, %v5322_v62  ;;  %v5323_v43 = vmul.f32 %v10731_v8, %v11795_v25 }
 0xb31   :  { %v5332_v59 = vadd.f32 %v5331_v10, %v5323_v43 }
 0xb33   :  { %5333 = vadd.xlane.f32.xlu1 %v5332_v59 }
 0xbbc   :  { %v5334_v53 = vpop.xlane.xlu1 %5333 }
 0xbbd   :  { %v5335_v14 = vadd.f32 %v5334_v53, %v5313_v11 }
 0xbbf   :  { %v10735_v0 = vmul.f32 0.00048828125, %v5335_v14 }
 0xbc1   :  { %v5337_v6 = vsub.f32 %v10655_v35, %v10735_v0  ;;  %v5338_v12 = vsub.f32 %v10657_v2, %v10735_v0  ;;  %v5339_v52 = vsub.f32 %v10663_v46, %v10735_v0  ;;  %v5340_v16 = vsub.f32 %v10667_v9, %v10735_v0 }
 0xbc2   :  { %v5341_v37 = vsub.f32 %v10671_v28, %v10735_v0  ;;  %v5342_v45 = vsub.f32 %v10675_v5, %v10735_v0  ;;  %v5343_v17 = vsub.f32 %v10679_v36, %v10735_v0  ;;  %v5378_v1 = vsub.f32 %v10695_v50, %v10735_v0 }
 0xbc3   :  { %v5347_v38 = vmul.f32 %v5337_v6, %v11786_v63  ;;  %v5348_v41 = vmul.f32 %v5338_v12, %v11787_v19  ;;  %v5349_v30 = vmul.f32 %v5339_v52, %v11788_v31  ;;  %v5350_v7 = vmul.f32 %v5340_v16, %v11789_v18 }
 0xbc4   :  { %v5351_v56 = vmul.f32 %v5341_v37, %v11790_v3  ;;  %v5344_v47 = vsub.f32 %v10683_v33, %v10735_v0  ;;  %v5379_v57 = vsub.f32 %v10697_v13, %v10735_v0  ;;  %v5380_v61 = vsub.f32 %v10703_v44, %v10735_v0 }
 0xbc5   :  { %v5357_v48 = vmul.f32 %v5347_v38, %v5347_v38  ;;  %v5358_v60 = vmul.f32 %v5348_v41, %v5348_v41  ;;  %v5359_v39 = vmul.f32 %v5349_v30, %v5349_v30  ;;  %v5352_v4 = vmul.f32 %v5342_v45, %v11791_v40 }
 0xbc6   :  { %v5360_v51 = vmul.f32 %v5350_v7, %v5350_v7  ;;  %v5381_v54 = vsub.f32 %v10707_v26, %v10735_v0  ;;  %v5388_v20 = vmul.f32 %v5378_v1, %v11786_v63  ;;  %v5389_v62 = vmul.f32 %v5379_v57, %v11787_v19 }
 0xbc7   :  { %v5367_v22 = vadd.f32 %v5358_v60, %v5357_v48  ;;  %v5345_v10 = vsub.f32 %v10687_v34, %v10735_v0  ;;  %v5353_v43 = vmul.f32 %v5343_v17, %v11792_v32  ;;  %v5361_v59 = vmul.f32 %v5351_v56, %v5351_v56 }
 0xbc8   :  { %v5346_v53 = vsub.f32 %v10691_v27, %v10735_v0  ;;  %v5354_v14 = vmul.f32 %v5344_v47, %v11793_v29  ;;  %v5382_v6 = vsub.f32 %v10711_v42, %v10735_v0  ;;  %v5390_v12 = vmul.f32 %v5380_v61, %v11788_v31 }
 0xbc9   :  { %v5368_v21 = vadd.f32 %v5367_v22, %v5359_v39  ;;  %v5362_v52 = vmul.f32 %v5352_v4, %v5352_v4  ;;  %v5398_v38 = vmul.f32 %v5388_v20, %v5388_v20  ;;  %v5399_v41 = vmul.f32 %v5389_v62, %v5389_v62 }
 0xbca   :  { %v5383_v37 = vsub.f32 %v10715_v23, %v10735_v0  ;;  %v5391_v30 = vmul.f32 %v5381_v54, %v11789_v18  ;;  %v5355_v45 = vmul.f32 %v5345_v10, %v11794_v15  ;;  %v5363_v7 = vmul.f32 %v5353_v43, %v5353_v43 }
 0xbcb   :  { %v5369_v11 = vadd.f32 %v5368_v21, %v5360_v51  ;;  %v5384_v60 = vsub.f32 %v10717_v49, %v10735_v0  ;;  %v5392_v17 = vmul.f32 %v5382_v6, %v11790_v3  ;;  %v5400_v56 = vmul.f32 %v5390_v12, %v5390_v12 }
 0xbcc   :  { %v5408_v39 = vadd.f32 %v5399_v41, %v5398_v38  ;;  %v5356_v22 = vmul.f32 %v5346_v53, %v11795_v25  ;;  %v5364_v1 = vmul.f32 %v5354_v14, %v5354_v14  ;;  %v5385_v57 = vsub.f32 %v10723_v55, %v10735_v0 }
 0xbcd   :  { %v5370_v16 = vadd.f32 %v5369_v11, %v5361_v59  ;;  %v5393_v61 = vmul.f32 %v5383_v37, %v11791_v40  ;;  %v5401_v4 = vmul.f32 %v5391_v30, %v5391_v30  ;;  %v5365_v21 = vmul.f32 %v5355_v45, %v5355_v45 }
 0xbce   :  { %v5409_v51 = vadd.f32 %v5408_v39, %v5400_v56  ;;  %v5386_v20 = vsub.f32 %v10727_v58, %v10735_v0  ;;  %v5394_v62 = vmul.f32 %v5384_v60, %v11792_v32  ;;  %v5402_v10 = vmul.f32 %v5392_v17, %v5392_v17 }
 0xbcf   :  { %v5371_v48 = vadd.f32 %v5370_v16, %v5362_v52  ;;  %v5366_v59 = vmul.f32 %v5356_v22, %v5356_v22  ;;  %v5387_v53 = vsub.f32 %v10731_v8, %v10735_v0  ;;  %v5395_v14 = vmul.f32 %v5385_v57, %v11793_v29 }
 0xbd0   :  { %v5410_v43 = vadd.f32 %v5409_v51, %v5401_v4  ;;  %v5403_v6 = vmul.f32 %v5393_v61, %v5393_v61  ;;  %v5396_v16 = vmul.f32 %v5386_v20, %v11794_v15  ;;  %v5404_v38 = vmul.f32 %v5394_v62, %v5394_v62  ;;  %v3292_v61 = vld [vmem:[%s11091_s7] sm:$0xff] }
 0xbd1   :  { %v5372_v47 = vadd.f32 %v5371_v48, %v5363_v7  ;;  %v5397_v37 = vmul.f32 %v5387_v53, %v11795_v25  ;;  %v5405_v30 = vmul.f32 %v5395_v14, %v5395_v14 }
 0xbd2   :  { %v5411_v12 = vadd.f32 %v5410_v43, %v5402_v10  ;;  %v5406_v7 = vmul.f32 %v5396_v16, %v5396_v16 }
 0xbd3   :  { %v5373_v54 = vadd.f32 %v5372_v47, %v5364_v1  ;;  %v5407_v60 = vmul.f32 %v5397_v37, %v5397_v37 }
 0xbd4   :  { %v5412_v41 = vadd.f32 %v5411_v12, %v5403_v6 }
 0xbd5   :  { %v5374_v11 = vadd.f32 %v5373_v54, %v5365_v21  ;;  %v3293_v21 = vld [vmem:[%s11092_s8] sm:$0xff] }
 0xbd6   :  { %v5413_v45 = vadd.f32 %v5412_v41, %v5404_v38 }
 0xbd7   :  { %v5375_v52 = vadd.f32 %v5374_v11, %v5366_v59 }
 0xbd8   :  { %v5414_v48 = vadd.f32 %v5413_v45, %v5405_v30 }
 0xbd9   :  { %5376 = vadd.xlane.f32.xlu0 %v5375_v52 }
 0xbda   :  { %v5415_v17 = vadd.f32 %v5414_v48, %v5406_v7 }
 0xbdc   :  { %v5416_v56 = vadd.f32 %v5415_v17, %v5407_v60 }
 0xbde   :  { %5417 = vadd.xlane.f32.xlu0 %v5416_v56 }
 0xc62   :  { %v5377_v39 = vpop.xlane.xlu0 %5376 }
 0xc67   :  { %v5418_v22 = vpop.xlane.xlu0 %5417 }
 0xc68   :  { %v5419_v1 = vadd.f32 %v5418_v22, %v5377_v39 }
 0xc6a   :  { %v5420_v47 = vmul.f32 0.00048828125, %v5419_v1 }
 0xc6c   :  { %v5421_v57 = vadd.f32 1e-05, %v5420_v47 }
 0xc6e   :  { %6180 = vrsqrt.f32 %v5421_v57 }
 0xc7b   :  { %v6181_v4 = vpop.eup %6180 }
 0xc7c   :  { %v5423_v51 = vmul.f32 %v6181_v4, %v3292_v61 }
 0xc7e   :  { %5428 = vperm.xlu1 %6175, %v5423_v51   ;;  %v5424_v54 = vmul.f32 %v5423_v51, %v10735_v0 }
 0xc80   :  { %v5425_v20 = vsub.f32 %v3293_v21, %v5424_v54 }
 0xc82   :  { %5443 = vperm.xlu0 %6176, %v5425_v20  }
 0xcf9   :  { %v10804_v62 = vpop.permute.xlu1 %5428 }
 0xcfa   :  { %v5431_v10 = vmul.f32 %v10804_v62, %v10655_v35  ;;  %v5432_v43 = vmul.f32 %v10804_v62, %v10657_v2  ;;  %v5433_v59 = vmul.f32 %v10804_v62, %v10663_v46  ;;  %v5434_v53 = vmul.f32 %v10804_v62, %v10667_v9 }
 0xcfb   :  { %v5435_v35 = vmul.f32 %v10804_v62, %v10671_v28  ;;  %v5436_v2 = vmul.f32 %v10804_v62, %v10675_v5  ;;  %v5437_v9 = vmul.f32 %v10804_v62, %v10679_v36  ;;  %v5438_v37 = vmul.f32 %v10804_v62, %v10683_v33 }
 0xcfc   :  { %v5439_v5 = vmul.f32 %v10804_v62, %v10687_v34  ;;  %v5476_v36 = vmul.f32 %v10804_v62, %v10695_v50  ;;  %v5477_v48 = vmul.f32 %v10804_v62, %v10697_v13  ;;  %v5478_v56 = vmul.f32 %v10804_v62, %v10703_v44 }
 0xcfd   :  { %v10812_v11 = vpop.permute.xlu0 %5443  ;;  %v5479_v22 = vmul.f32 %v10804_v62, %v10707_v26  ;;  %v5440_v44 = vmul.f32 %v10804_v62, %v10691_v27  ;;  %v5480_v26 = vmul.f32 %v10804_v62, %v10711_v42  ;;  %v5481_v27 = vmul.f32 %v10804_v62, %v10715_v23 }
 0xcfe   :  { %v5446_v0 = vadd.f32 %v10812_v11, %v5431_v10  ;;  %v5447_v14 = vadd.f32 %v10812_v11, %v5432_v43  ;;  %v5448_v6 = vadd.f32 %v10812_v11, %v5433_v59  ;;  %v5449_v12 = vadd.f32 %v10812_v11, %v5434_v53 }
 0xcff   :  { %v5450_v16 = vadd.f32 %v10812_v11, %v5435_v35  ;;  %v5451_v41 = vadd.f32 %v10812_v11, %v5436_v2  ;;  %v5452_v7 = vadd.f32 %v10812_v11, %v5437_v9  ;;  %v5453_v34 = vadd.f32 %v10812_v11, %v5438_v37 }
 0xd00   :  { %v5456_v46 = vmax.f32 %v5446_v0, 0.0  ;;  %v5457_v52 = vmax.f32 %v5447_v14, 0.0  ;;  %v5458_v38 = vmax.f32 %v5448_v6, 0.0  ;;  %v5459_v30 = vmax.f32 %v5449_v12, 0.0 }
 0xd01   :  { %v5460_v60 = vmax.f32 %v5450_v16, 0.0  ;;  %v5461_v39 = vmax.f32 %v5451_v41, 0.0  ;;  %v5486_v50 = vadd.f32 %v5476_v36, %v10812_v11  ;;  %v5487_v47 = vadd.f32 %v5477_v48, %v10812_v11 }
 0xd02   :  { %v10831_v28 = vmul.f32 %v5456_v46, %v11786_v63  ;;  %v10834_v45 = vmul.f32 %v5457_v52, %v11787_v19  ;;  %v10844_v33 = vmul.f32 %v5458_v38, %v11788_v31  ;;  %v10855_v13 = vmul.f32 %v5459_v30, %v11789_v18 }
 0xd03   :  { %v5488_v57 = vadd.f32 %v5478_v56, %v10812_v11  ;;  %v5454_v61 = vadd.f32 %v10812_v11, %v5439_v5  ;;  %v5462_v4 = vmax.f32 %v5452_v7, 0.0  ;;  %v10866_v51 = vmul.f32 %v5460_v60, %v11790_v3 }
 0xd04   :  { %v5516_v17 = vadd.f32 %v10834_v45, %v10831_v28  ;;  %v5489_v54 = vadd.f32 %v5479_v22, %v10812_v11  ;;  %v5496_v20 = vmax.f32 %v5486_v50, 0.0  ;;  %v5455_v10 = vadd.f32 %v10812_v11, %v5440_v44 }
 0xd05   :  { %v5463_v43 = vmax.f32 %v5453_v34, 0.0  ;;  %v5497_v59 = vmax.f32 %v5487_v47, 0.0  ;;  %v10874_v53 = vmul.f32 %v5461_v39, %v11791_v40  ;;  %v5490_v0 = vadd.f32 %v5480_v26, %v10812_v11 }
 0xd06   :  { %v5517_v1 = vadd.f32 %v5516_v17, %v10844_v33  ;;  %v5498_v14 = vmax.f32 %v5488_v57, 0.0  ;;  %v5464_v6 = vmax.f32 %v5454_v61, 0.0  ;;  %v5482_v35 = vmul.f32 %v10804_v62, %v10717_v49 }
 0xd07   :  { %11796 = vst [vmem:[#allocation88_spill] sm:$0xff] %v10874_v53  ;;  %v10881_v12 = vmul.f32 %v5496_v20, %v11786_v63  ;;  %v10884_v2 = vmul.f32 %v5497_v59, %v11787_v19  ;;  %v10887_v23 = vmul.f32 %v5462_v4, %v11792_v32  ;;  %v5491_v52 = vadd.f32 %v5481_v27, %v10812_v11  ;;  %v5545_v59 = vld [vmem:[#allocation8] sm:$0xf] }
 0xd08   :  { %v5518_v21 = vadd.f32 %v5517_v1, %v10855_v13  ;;  %v5499_v16 = vmax.f32 %v5489_v54, 0.0  ;;  %v5465_v38 = vmax.f32 %v5455_v10, 0.0  ;;  %v10892_v9 = vmul.f32 %v5463_v43, %v11793_v29 }
 0xd09   :  { %11797 = vst [vmem:[#allocation62_spill] sm:$0xff] %v10887_v23  ;;  %v5483_v49 = vmul.f32 %v10804_v62, %v10723_v55  ;;  %v5492_v63 = vadd.f32 %v5482_v35, %v10812_v11  ;;  %v5500_v41 = vmax.f32 %v5490_v0, 0.0  ;;  %v10899_v37 = vmul.f32 %v5498_v14, %v11788_v31 }
 0xd0a   :  { %v5519_v42 = vadd.f32 %v5518_v21, %v10866_v51  ;;  %11798 = vst [vmem:[#allocation89_spill] sm:$0xff] %v10892_v9  ;;  %v5530_v30 = vadd.f32 %v10884_v2, %v10881_v12  ;;  %v10904_v5 = vmul.f32 %v5464_v6, %v11794_v15  ;;  %v5484_v7 = vmul.f32 %v10804_v62, %v10727_v58 }
 0xd0b   :  { %v5493_v36 = vadd.f32 %v5483_v49, %v10812_v11  ;;  %v5501_v48 = vmax.f32 %v5491_v52, 0.0  ;;  %v10911_v60 = vmul.f32 %v5499_v16, %v11789_v18  ;;  %v10915_v17 = vmul.f32 %v5465_v38, %v11795_v25 }
 0xd0c   :  { %v5520_v46 = vadd.f32 %v5519_v42, %v10874_v53  ;;  %11799 = vst [vmem:[#allocation49_spill] sm:$0xff] %v10904_v5  ;;  %v5531_v31 = vadd.f32 %v5530_v30, %v10899_v37  ;;  %v5485_v56 = vmul.f32 %v10804_v62, %v10731_v8  ;;  %v5494_v34 = vadd.f32 %v5484_v7, %v10812_v11 }
 0xd0d   :  { %v5502_v39 = vmax.f32 %v5492_v63, 0.0  ;;  %v10922_v22 = vmul.f32 %v5500_v41, %v11790_v3  ;;  %v5503_v47 = vmax.f32 %v5493_v36, 0.0  ;;  %v10928_v57 = vmul.f32 %v5501_v48, %v11791_v40 }
 0xd0e   :  { %v5521_v19 = vadd.f32 %v5520_v46, %v10887_v23  ;;  %v5532_v50 = vadd.f32 %v5531_v31, %v10911_v60  ;;  %v5495_v18 = vadd.f32 %v5485_v56, %v10812_v11  ;;  %v5504_v62 = vmax.f32 %v5494_v34, 0.0  ;;  %v5627_v46 = vld [vmem:[%s11095_s11] sm:$0xff] }
 0xd0f   :  { %v10932_v44 = vmul.f32 %v5502_v39, %v11792_v32  ;;  %v10936_v4 = vmul.f32 %v5503_v47, %v11793_v29  ;;  %v5546_v29 = vld [vmem:[%s11094_s10] sm:$0xf]  ;;  %v6352_v52 = vmov 1  }
 0xd10   :  { %v5522_v55 = vadd.f32 %v5521_v19, %v10892_v9  ;;  %v5533_v8 = vadd.f32 %v5532_v50, %v10922_v22  ;;  %v5505_v61 = vmax.f32 %v5495_v18, 0.0  ;;  %v10940_v26 = vmul.f32 %v5504_v62, %v11794_v15  ;;  %v5718_v15 = vld [vmem:[%s11097_s13] sm:$0xff] }
 0xd12   :  { %v5523_v58 = vadd.f32 %v5522_v55, %v10904_v5  ;;  %v5534_v3 = vadd.f32 %v5533_v8, %v10928_v57  ;;  %v10944_v21 = vmul.f32 %v5505_v61, %v11795_v25  ;;  %v5628_v25 = vld [vmem:[%s11096_s12] sm:$0xff] }
 0xd14   :  { %v5524_v1 = vadd.f32 %v5523_v58, %v10915_v17  ;;  %v5535_v11 = vadd.f32 %v5534_v3, %v10932_v44 }
 0xd16   :  { %5525 = vadd.xlane.f32.xlu1 %v5524_v1  ;;  %v5536_v40 = vadd.f32 %v5535_v11, %v10936_v4 }
 0xd18   :  { %v5537_v54 = vadd.f32 %v5536_v40, %v10940_v26 }
 0xd1a   :  { %v5538_v32 = vadd.f32 %v5537_v54, %v10944_v21 }
 0xd1c   :  { %5539 = vadd.xlane.f32.xlu0 %v5538_v32 }
 0xd27   :  { %5549 = vperm.xlu1 %6175, %v5546_v29  }
 0xd2b   :  { %5721 = vperm.xlu1 %6175, %v5718_v15  }
 0xd32   :  { %5631 = vperm.xlu0 %6176, %v5628_v25  }
 0xd36   :  { %6177 = vset.pattern.permute.xlu0 %v6352_v52 }
 0xd9f   :  { %v5526_v20 = vpop.xlane.xlu1 %5525 }
 0xda0   :  { %v5527_v10 = vmul.f32 0.0009765625, %v5526_v20 }
 0xda2   :  { %5529 = vst.msk [vmem:[#allocation3] sm:$0xff] %vm5528_vm11, %v5527_v10 }
 0xda3   :  { %v5550_v0 = vpop.permute.xlu1 %5549 }
 0xda5   :  { %v5540_v43 = vpop.xlane.xlu0 %5539 }
 0xda6   :  { %v5541_v27 = vmul.f32 0.0009765625, %v5540_v43 }
 0xda7   :  { %v10962_v36 = vpop.permute.xlu1 %5721 }
 0xda8   :  { %5543 = vst.msk [vmem:[#allocation3] sm:$0xff] %vm5542_vm12, %v5541_v27  ;;  %v5889_v55 = vmul.f32 %v10962_v36, %v10881_v12  ;;  %v5890_v48 = vmul.f32 %v10962_v36, %v10884_v2  ;;  %v5891_v31 = vmul.f32 %v10962_v36, %v10899_v37  ;;  %v5892_v56 = vmul.f32 %v10962_v36, %v10911_v60 }
 0xda9   :  { %v5893_v34 = vmul.f32 %v10962_v36, %v10922_v22  ;;  %v5894_v39 = vmul.f32 %v10962_v36, %v10928_v57  ;;  %v5895_v50 = vmul.f32 %v10962_v36, %v10932_v44  ;;  %v5896_v18 = vmul.f32 %v10962_v36, %v10936_v4 }
 0xdaa   :  { %v5899_v58 = vrot.slane %v5889_v55, 4  ;;  %v5905_v1 = vrot.slane %v5890_v48, 4  ;;  %v5911_v47 = vrot.slane %v5891_v31, 4  ;;  %v5917_v8 = vrot.slane %v5892_v56, 4 }
 0xdab   :  { %v5923_v3 = vrot.slane %v5893_v34, 4  ;;  %v5929_v61 = vrot.slane %v5894_v39, 4  ;;  %v5935_v11 = vrot.slane %v5895_v50, 4  ;;  %v5941_v54 = vrot.slane %v5896_v18, 4 }
 0xdac   :  { %v5900_v62 = vadd.f32 %v5899_v58, %v5889_v55  ;;  %v5906_v40 = vadd.f32 %v5905_v1, %v5890_v48  ;;  %v5912_v32 = vadd.f32 %v5911_v47, %v5891_v31  ;;  %v5918_v29 = vadd.f32 %v5917_v8, %v5892_v56 }
 0xdad   :  { %v5632_v16 = vpop.permute.xlu0 %5631  ;;  %v5924_v25 = vadd.f32 %v5923_v3, %v5893_v34  ;;  %v5930_v20 = vadd.f32 %v5929_v61, %v5894_v39  ;;  %v5936_v10 = vadd.f32 %v5935_v11, %v5895_v50  ;;  %v5942_v27 = vadd.f32 %v5941_v54, %v5896_v18 }
 0xdae   :  { %v5901_v15 = vrot.slane %v5900_v62, 2  ;;  %v5907_v43 = vrot.slane %v5906_v40, 2  ;;  %v5725_v55 = vmul.f32 %v10962_v36, %v10834_v45  ;;  %v5726_v34 = vmul.f32 %v10962_v36, %v10844_v33 }
 0xdaf   :  { %v5544_v42 = vld [vmem:[#allocation3] sm:$0xff]  ;;  %v5943_v52 = vrot.slane %v5942_v27, 2  ;;  %v5727_v18 = vmul.f32 %v10962_v36, %v10855_v13  ;;  %v5728_v8 = vmul.f32 %v10962_v36, %v10866_v51  ;;  %v5729_v11 = vmul.f32 %v10962_v36, %v10874_v53 }
 0xdb0   :  { %6108 = vmatpush3.msra.mxu0 %v5544_v42  ;;  %v5919_v42 = vrot.slane %v5918_v29, 2 }
 0xdb1   :  { %6110 = vmatmul.mubr.msk.f32.vlgmr.msra.gmra.mxu0 %vm5552_vm13, %v5545_v59  ;;  %v5913_v59 = vrot.slane %v5912_v32, 2  ;;  %v5944_v31 = vadd.f32 %v5943_v52, %v5942_v27 }
 0xdb3   :  { %v5945_v54 = vrot.slane %v5944_v31, 1 }
 0xe71   :  { %v5622_v14 = vpop.f32.mrf.mxu0 }
 0xe72   :  { %v5623_v6 = vadd.f32 %v5622_v14, %v5550_v0  ;;  %v5902_v0 = vadd.f32 %v5901_v15, %v5900_v62  ;;  %v5925_v14 = vrot.slane %v5924_v25, 2  ;;  %v5746_v15 = vrot.slane %v5726_v34, 4 }
 0xe73   :  { %v6111_v35 = vpop.f32.mrf.mxu0 }
 0xe74   :  { %v5626_v24 = vmax.f32 %v5623_v6, 0.0  ;;  %v5931_v6 = vrot.slane %v5930_v20, 2  ;;  %v5937_v35 = vrot.slane %v5936_v10, 2 }
 0xe76   :  { %6113 = vmatpush3.msk.msra.mxu1 %vm5638_vm14, %v5626_v24  ;;  %v5897_v24 = vmul.f32 %v10962_v36, %v10940_v26 }
 0xe77   :  { %6115 = vmatmul.mubr.msk.f32.vlgmr.msra.gmra.mxu1 %vm5634_vm15, %v5627_v46  ;;  %v5908_v46 = vadd.f32 %v5907_v43, %v5906_v40  ;;  %v5740_v40 = vrot.slane %v5725_v55, 4  ;;  %v5752_v43 = vrot.slane %v5727_v18, 4 }
 0xe78   :  { %v5947_v56 = vrot.slane %v5897_v24, 4 }
 0xe79   :  { %v5909_v48 = vrot.slane %v5908_v46, 1 }
 0xf37   :  { %v5708_v38 = vpop.f32.mrf.mxu1 }
 0xf38   :  { %v5709_v49 = vadd.f32 %v5708_v38, %v5632_v16  ;;  %v5898_v16 = vmul.f32 %v10962_v36, %v10944_v21  ;;  %v5914_v38 = vadd.f32 %v5913_v59, %v5912_v32  ;;  %v5948_v32 = vadd.f32 %v5947_v56, %v5897_v24 }
 0xf39   :  { %v6116_v63 = vpop.f32.mrf.mxu1  ;;  %v5732_v59 = vmul.f32 %v10962_v36, %v10904_v5  ;;  %v5764_v24 = vrot.slane %v5729_v11, 4 }
 0xf3a   :  { %v6082_v19 = vmul.f32 -1.442695, %v5709_v49  ;;  %v5920_v49 = vadd.f32 %v5919_v42, %v5918_v29  ;;  %v5903_v63 = vrot.slane %v5902_v0, 1  ;;  %v5915_v58 = vrot.slane %v5914_v38, 1 }
 0xf3b   :  { %v5953_v50 = vrot.slane %v5898_v16, 4  ;;  %v5730_v29 = vmul.f32 %v10962_v36, %v10887_v23  ;;  %v5782_v5 = vrot.slane %v5732_v59, 4 }
 0xf3c   :  { %6182 = vpow2.f32 %v6082_v19  ;;  %v5926_v19 = vadd.f32 %v5925_v14, %v5924_v25  ;;  %v5921_v39 = vrot.slane %v5920_v49, 1  ;;  %v5904_v1 = vadd.f32 %v5903_v63, %v5902_v0 }
 0xf3d   :  { %v5910_v25 = vadd.f32 %v5909_v48, %v5908_v46  ;;  %v5916_v27 = vadd.f32 %v5915_v58, %v5914_v38  ;;  %v5758_v0 = vrot.slane %v5728_v8, 4  ;;  %v5949_v63 = vrot.slane %v5948_v32, 2 }
 0xf3e   :  { %v5927_v47 = vrot.slane %v5926_v19, 1  ;;  %v5922_v14 = vadd.f32 %v5921_v39, %v5920_v49  ;;  %v5747_v46 = vadd.f32 %v5746_v15, %v5726_v34  ;;  %v5765_v49 = vadd.f32 %v5764_v24, %v5729_v11 }
 0xf3f   :  { %v5759_v23 = vadd.f32 %v5758_v0, %v5728_v8  ;;  %v5950_v53 = vadd.f32 %v5949_v63, %v5948_v32 }
 0xf40   :  { %v5928_v52 = vadd.f32 %v5927_v47, %v5926_v19  ;;  %v6094_v47 = vmul.f32 -1.442695, %v5910_v25  ;;  %v5766_v8 = vrot.slane %v5765_v49, 2 }
 0xf49   :  { %v6183_v41 = vpop.eup %6182 }
 0xf4a   :  { %v5715_v30 = vadd.f32 1.0, %v6183_v41  ;;  %v5724_v41 = vmul.f32 %v10962_v36, %v10831_v28 }
 0xf4c   :  { %6184 = vrcp.f32 %v5715_v30  ;;  %v5932_v30 = vadd.f32 %v5931_v6, %v5930_v20  ;;  %v5734_v62 = vrot.slane %v5724_v41, 4  ;;  %v5954_v20 = vadd.f32 %v5953_v50, %v5898_v16 }
 0xf4d   :  { %v5733_v6 = vmul.f32 %v10962_v36, %v10915_v17  ;;  %v5770_v16 = vrot.slane %v5730_v29, 4  ;;  %v5753_v50 = vadd.f32 %v5752_v43, %v5727_v18  ;;  %v5760_v18 = vrot.slane %v5759_v23, 2 }
 0xf4e   :  { %v5933_v3 = vrot.slane %v5932_v30, 1  ;;  %v5735_v42 = vadd.f32 %v5734_v62, %v5724_v41  ;;  %v5955_v56 = vrot.slane %v5954_v20, 2  ;;  %v5946_v41 = vadd.f32 %v5945_v54, %v5944_v31 }
 0xf4f   :  { %v5788_v39 = vrot.slane %v5733_v6, 4  ;;  %v5754_v34 = vrot.slane %v5753_v50, 2  ;;  %v5783_v43 = vadd.f32 %v5782_v5, %v5732_v59  ;;  %v5951_v31 = vrot.slane %v5950_v53, 1 }
 0xf50   :  { %v5934_v48 = vadd.f32 %v5933_v3, %v5932_v30  ;;  %v5736_v58 = vrot.slane %v5735_v42, 2  ;;  %v5956_v19 = vadd.f32 %v5955_v56, %v5954_v20  ;;  %v6095_v30 = vmul.f32 -1.442695, %v5916_v27 }
 0xf51   :  { %v5789_v0 = vadd.f32 %v5788_v39, %v5733_v6  ;;  %v6097_v54 = vmul.f32 -1.442695, %v5928_v52  ;;  %v5761_v63 = vadd.f32 %v5760_v18, %v5759_v23  ;;  %v5952_v59 = vadd.f32 %v5951_v31, %v5950_v53 }
 0xf52   :  { %v5737_v3 = vadd.f32 %v5736_v58, %v5735_v42  ;;  %v5957_v32 = vrot.slane %v5956_v19, 1  ;;  %v6098_v20 = vmul.f32 -1.442695, %v5934_v48  ;;  %v5767_v42 = vadd.f32 %v5766_v8, %v5765_v49 }
 0xf53   :  { %v5790_v5 = vrot.slane %v5789_v0, 2  ;;  %v6100_v52 = vmul.f32 -1.442695, %v5946_v41 }
 0xf54   :  { %v5738_v25 = vrot.slane %v5737_v3, 1  ;;  %v5768_v23 = vrot.slane %v5767_v42, 1 }
 0xf56   :  { %v5739_v56 = vadd.f32 %v5738_v25, %v5737_v3 }
 0xf59   :  { %v6185_v7 = vpop.eup %6184 }
 0xf5a   :  { %6020 = vperm.xlu0 %6177, %v6185_v7   ;;  %5856 = vperm.xlu1 %6175, %v6185_v7   ;;  %v5938_v7 = vadd.f32 %v5937_v35, %v5936_v10  ;;  %v5731_v10 = vmul.f32 %v10962_v36, %v10892_v9  ;;  %v5741_v35 = vadd.f32 %v5740_v40, %v5725_v55  ;;  %v6093_v36 = vmul.f32 -1.442695, %v5904_v1 }
 0xf5b   :  { %v5748_v55 = vrot.slane %v5747_v46, 2  ;;  %v5771_v40 = vadd.f32 %v5770_v16, %v5730_v29  ;;  %v5755_v1 = vadd.f32 %v5754_v34, %v5753_v50  ;;  %v5762_v50 = vrot.slane %v5761_v63, 1 }
 0xf5c   :  { %v5939_v61 = vrot.slane %v5938_v7, 1  ;;  %v5776_v9 = vrot.slane %v5731_v10, 4  ;;  %v5742_v62 = vrot.slane %v5741_v35, 2  ;;  %6186 = vpow2.f32 %v6093_v36 }
 0xf5d   :  { %v5749_v11 = vadd.f32 %v5748_v55, %v5747_v46  ;;  %v5772_v24 = vrot.slane %v5771_v40, 2  ;;  %6188 = vpow2.f32 %v6094_v47  ;;  %v5756_v46 = vrot.slane %v5755_v1, 1 }
 0xf5e   :  { %v5940_v38 = vadd.f32 %v5939_v61, %v5938_v7  ;;  %v5777_v15 = vadd.f32 %v5776_v9, %v5731_v10  ;;  %v6096_v7 = vmul.f32 -1.442695, %v5922_v14  ;;  %v5743_v61 = vadd.f32 %v5742_v62, %v5741_v35 }
 0xf5f   :  { %v5784_v9 = vrot.slane %v5783_v43, 2  ;;  %v5750_v14 = vrot.slane %v5749_v11, 1  ;;  %v5773_v6 = vadd.f32 %v5772_v24, %v5771_v40  ;;  %v5958_v35 = vadd.f32 %v5957_v32, %v5956_v19 }
 0xf60   :  { %v5778_v29 = vrot.slane %v5777_v15, 2  ;;  %v6099_v10 = vmul.f32 -1.442695, %v5940_v38  ;;  %v5744_v27 = vrot.slane %v5743_v61, 1  ;;  %6190 = vpow2.f32 %v6095_v30 }
 0xf61   :  { %v5785_v58 = vadd.f32 %v5784_v9, %v5783_v43  ;;  %6192 = vpow2.f32 %v6096_v7  ;;  %v5791_v62 = vadd.f32 %v5790_v5, %v5789_v0  ;;  %v6101_v38 = vmul.f32 -1.442695, %v5952_v59 }
 0xf62   :  { %v5779_v16 = vadd.f32 %v5778_v29, %v5777_v15  ;;  %v5745_v48 = vadd.f32 %v5744_v27, %v5743_v61  ;;  %6194 = vpow2.f32 %v6097_v54  ;;  %v5751_v49 = vadd.f32 %v5750_v14, %v5749_v11 }
 0xf63   :  { %v5774_v39 = vrot.slane %v5773_v6, 1  ;;  %6196 = vpow2.f32 %v6098_v20  ;;  %v6102_v53 = vmul.f32 -1.442695, %v5958_v35  ;;  %v5757_v36 = vadd.f32 %v5756_v46, %v5755_v1 }
 0xf64   :  { %v5780_v55 = vrot.slane %v5779_v16, 1  ;;  %6198 = vpow2.f32 %v6099_v10  ;;  %v5763_v41 = vadd.f32 %v5762_v50, %v5761_v63  ;;  %v5786_v40 = vrot.slane %v5785_v58, 1 }
 0xf65   :  { %v6083_v19 = vmul.f32 -1.442695, %v5739_v56  ;;  %6200 = vpow2.f32 %v6100_v52  ;;  %v5769_v47 = vadd.f32 %v5768_v23, %v5767_v42  ;;  %v5792_v34 = vrot.slane %v5791_v62, 1 }
 0xf66   :  { %v6084_v15 = vmul.f32 -1.442695, %v5745_v48  ;;  %6202 = vpow2.f32 %v6101_v38  ;;  %v5775_v30 = vadd.f32 %v5774_v39, %v5773_v6  ;;  %v6085_v3 = vmul.f32 -1.442695, %v5751_v49 }
 0xf67   :  { %6204 = vpow2.f32 %v6102_v53  ;;  %v5781_v18 = vadd.f32 %v5780_v55, %v5779_v16  ;;  %v6086_v43 = vmul.f32 -1.442695, %v5757_v36  ;;  %v5787_v61 = vadd.f32 %v5786_v40, %v5785_v58 }
 0xf68   :  { %6206 = vpow2.f32 %v6083_v19  ;;  %v6087_v8 = vmul.f32 -1.442695, %v5763_v41  ;;  %v5793_v0 = vadd.f32 %v5792_v34, %v5791_v62  ;;  %v6088_v31 = vmul.f32 -1.442695, %v5769_v47 }
 0xf69   :  { %v6187_v7 = vpop.eup %6186  ;;  %6208 = vpow2.f32 %v6084_v15  ;;  %v6089_v54 = vmul.f32 -1.442695, %v5775_v30  ;;  %v6090_v24 = vmul.f32 -1.442695, %v5781_v18  ;;  %v6091_v32 = vmul.f32 -1.442695, %v5787_v61 }
 0xf6a   :  { %6210 = vpow2.f32 %v6085_v3  ;;  %v6189_v11 = vpop.eup %6188  ;;  %v6092_v29 = vmul.f32 -1.442695, %v5793_v0  ;;  %v5989_v25 = vadd.f32 1.0, %v6187_v7 }
 0xf6b   :  { %6212 = vpow2.f32 %v6086_v43  ;;  %v5990_v9 = vadd.f32 1.0, %v6189_v11 }
 0xf6c   :  { %6214 = vpow2.f32 %v6087_v8 }
 0xf6d   :  { %v6191_v1 = vpop.eup %6190  ;;  %6216 = vpow2.f32 %v6088_v31 }
 0xf6e   :  { %v6193_v20 = vpop.eup %6192  ;;  %6218 = vpow2.f32 %v6089_v54  ;;  %v5991_v27 = vadd.f32 1.0, %v6191_v1 }
 0xf6f   :  { %v6195_v63 = vpop.eup %6194  ;;  %6220 = vpow2.f32 %v6090_v24  ;;  %v5992_v5 = vadd.f32 1.0, %v6193_v20 }
 0xf70   :  { %v6197_v10 = vpop.eup %6196  ;;  %6222 = vpow2.f32 %v6091_v32  ;;  %v5993_v14 = vadd.f32 1.0, %v6195_v63 }
 0xf71   :  { %v6199_v42 = vpop.eup %6198  ;;  %6224 = vpow2.f32 %v6092_v29  ;;  %v5994_v35 = vadd.f32 1.0, %v6197_v10 }
 0xf72   :  { %v6201_v59 = vpop.eup %6200  ;;  %6226 = vrcp.f32 %v5989_v25  ;;  %v5995_v46 = vadd.f32 1.0, %v6199_v42 }
 0xf73   :  { %v6203_v6 = vpop.eup %6202  ;;  %6228 = vrcp.f32 %v5990_v9  ;;  %v5996_v56 = vadd.f32 1.0, %v6201_v59 }
 0xf74   :  { %v6205_v52 = vpop.eup %6204  ;;  %6230 = vrcp.f32 %v5991_v27  ;;  %v5997_v58 = vadd.f32 1.0, %v6203_v6 }
 0xf75   :  { %v6207_v16 = vpop.eup %6206  ;;  %6232 = vrcp.f32 %v5992_v5  ;;  %v5998_v23 = vadd.f32 1.0, %v6205_v52 }
 0xf76   :  { %v6209_v50 = vpop.eup %6208  ;;  %6234 = vrcp.f32 %v5993_v14  ;;  %v5824_v38 = vadd.f32 1.0, %v6207_v16 }
 0xf77   :  { %v6211_v48 = vpop.eup %6210  ;;  %6236 = vrcp.f32 %v5994_v35  ;;  %v5825_v39 = vadd.f32 1.0, %v6209_v50 }
 0xf78   :  { %v6213_v62 = vpop.eup %6212  ;;  %6238 = vrcp.f32 %v5995_v46  ;;  %v5826_v36 = vadd.f32 1.0, %v6211_v48 }
 0xf79   :  { %v6215_v49 = vpop.eup %6214  ;;  %6240 = vrcp.f32 %v5996_v56  ;;  %v5827_v41 = vadd.f32 1.0, %v6213_v62 }
 0xf7a   :  { %v6217_v53 = vpop.eup %6216  ;;  %6242 = vrcp.f32 %v5997_v58  ;;  %v5828_v19 = vadd.f32 1.0, %v6215_v49 }
 0xf7b   :  { %v6219_v55 = vpop.eup %6218  ;;  %6244 = vrcp.f32 %v5998_v23  ;;  %v5829_v34 = vadd.f32 1.0, %v6217_v53  ;;  %v11802_v53 = vld [vmem:[#allocation89_spill] sm:$0xff] }
 0xf7c   :  { %v6221_v40 = vpop.eup %6220  ;;  %6246 = vrcp.f32 %v5824_v38  ;;  %v5830_v30 = vadd.f32 1.0, %v6219_v55 }
 0xf7d   :  { %v6223_v47 = vpop.eup %6222  ;;  %6248 = vrcp.f32 %v5825_v39  ;;  %v5831_v18 = vadd.f32 1.0, %v6221_v40 }
 0xf7e   :  { %v6225_v15 = vpop.eup %6224  ;;  %6250 = vrcp.f32 %v5826_v36  ;;  %v5832_v7 = vadd.f32 1.0, %v6223_v47 }
 0xf7f   :  { %v6227_v3 = vpop.eup %6226  ;;  %6252 = vrcp.f32 %v5827_v41  ;;  %v5833_v8 = vadd.f32 1.0, %v6225_v15  ;;  %v11803_v41 = vld [vmem:[#allocation49_spill] sm:$0xff] }
 0xf80   :  { %v6229_v43 = vpop.eup %6228  ;;  %6254 = vrcp.f32 %v5828_v19 }
 0xf81   :  { %v6231_v61 = vpop.eup %6230  ;;  %6256 = vrcp.f32 %v5829_v34 }
 0xf82   :  { %v6233_v0 = vpop.eup %6232  ;;  %6258 = vrcp.f32 %v5830_v30 }
 0xf83   :  { %v6235_v31 = vpop.eup %6234  ;;  %6260 = vrcp.f32 %v5831_v18 }
 0xf84   :  { %v6237_v54 = vpop.eup %6236  ;;  %6262 = vrcp.f32 %v5832_v7 }
 0xf85   :  { %v6239_v11 = vpop.eup %6238  ;;  %6264 = vrcp.f32 %v5833_v8 }
 0xf86   :  { %v6241_v24 = vpop.eup %6240 }
 0xf87   :  { %v6243_v32 = vpop.eup %6242 }
 0xf88   :  { %v6245_v1 = vpop.eup %6244 }
 0xf89   :  { %v6247_v29 = vpop.eup %6246 }
 0xf8a   :  { %v6249_v25 = vpop.eup %6248 }
 0xf8b   :  { %v6251_v42 = vpop.eup %6250 }
 0xf8c   :  { %v6253_v35 = vpop.eup %6252 }
 0xfd5   :  { %v6021_v20 = vpop.permute.xlu0 %6020  ;;  %v5857_v16 = vpop.permute.xlu1 %5856 }
 0xfd6   :  { %v6023_v63 = vmul.f32 %v6021_v20, %v10881_v12  ;;  %v6024_v9 = vmul.f32 %v6021_v20, %v10884_v2  ;;  %v6025_v10 = vmul.f32 %v6021_v20, %v10899_v37  ;;  %v6026_v27 = vmul.f32 %v6021_v20, %v10911_v60  ;;  %v6255_v37 = vpop.eup %6254 }
 0xfd7   :  { %v6027_v5 = vmul.f32 %v6021_v20, %v10922_v22  ;;  %v6028_v59 = vmul.f32 %v6021_v20, %v10928_v57  ;;  %v6029_v14 = vmul.f32 %v6021_v20, %v10932_v44  ;;  %v6030_v6 = vmul.f32 %v6021_v20, %v10936_v4  ;;  %v6257_v22 = vpop.eup %6256 }
 0xfd8   :  { %v6031_v52 = vmul.f32 %v6021_v20, %v10940_v26  ;;  %v6032_v12 = vmul.f32 %v6021_v20, %v10944_v21  ;;  %v6033_v46 = vmul.f32 %v6227_v3, %v6023_v63  ;;  %v6034_v2 = vmul.f32 %v6229_v43, %v6024_v9  ;;  %v6259_v4 = vpop.eup %6258 }
 0xfd9   :  { %v6035_v56 = vmul.f32 %v6231_v61, %v6025_v10  ;;  %v6036_v60 = vmul.f32 %v6233_v0, %v6026_v27  ;;  %v6037_v50 = vmul.f32 %v6235_v31, %v6027_v5  ;;  %v6038_v58 = vmul.f32 %v6237_v54, %v6028_v59  ;;  %v6261_v49 = vpop.eup %6260 }
 0xfda   :  { %v6039_v48 = vmul.f32 %v6239_v11, %v6029_v14  ;;  %v6040_v57 = vmul.f32 %v6241_v24, %v6030_v6  ;;  %v6041_v23 = vmul.f32 %v6243_v32, %v6031_v52  ;;  %v6042_v44 = vmul.f32 %v6245_v1, %v6032_v12  ;;  %6043 = vst [vmem:[%s11098_s14 + $0x50] sm:$0xff] %v6033_v46  ;;  %v6263_v55 = vpop.eup %6262 }
 0xfdb   :  { %6044 = vst [vmem:[%s11098_s14 + $0x58] sm:$0xff] %v6034_v2  ;;  %6045 = vst [vmem:[%s11098_s14 + $0x60] sm:$0xff] %v6035_v56  ;;  %v5859_v26 = vmul.f32 %v5857_v16, %v10831_v28  ;;  %v5860_v21 = vmul.f32 %v5857_v16, %v10834_v45  ;;  %v5861_v62 = vmul.f32 %v5857_v16, %v10844_v33  ;;  %v11800_v45 = vld [vmem:[#allocation88_spill] sm:$0xff]  ;;  %v6265_v15 = vpop.eup %6264 }
 0xfdc   :  { %6046 = vst [vmem:[%s11098_s14 + $0x68] sm:$0xff] %v6036_v60  ;;  %6047 = vst [vmem:[%s11098_s14 + $0x70] sm:$0xff] %v6037_v50  ;;  %v5862_v38 = vmul.f32 %v5857_v16, %v10855_v13  ;;  %v5863_v28 = vmul.f32 %v5857_v16, %v10866_v51  ;;  %v5864_v33 = vmul.f32 %v5857_v16, %v11800_v45  ;;  %v11801_v13 = vld [vmem:[#allocation62_spill] sm:$0xff] }
 0xfdd   :  { %6048 = vst [vmem:[%s11098_s14 + $0x78] sm:$0xff] %v6038_v58  ;;  %6049 = vst [vmem:[%s11098_s14 + $0x80] sm:$0xff] %v6039_v48  ;;  %v5865_v39 = vmul.f32 %v5857_v16, %v11801_v13  ;;  %v5866_v36 = vmul.f32 %v5857_v16, %v11802_v53  ;;  %v5867_v40 = vmul.f32 %v5857_v16, %v11803_v41 }
 0xfde   :  { %6050 = vst [vmem:[%s11098_s14 + $0x88] sm:$0xff] %v6040_v57  ;;  %6051 = vst [vmem:[%s11098_s14 + $0x90] sm:$0xff] %v6041_v23  ;;  %v5868_v19 = vmul.f32 %v5857_v16, %v10915_v17  ;;  %v5869_v47 = vmul.f32 %v6247_v29, %v5859_v26  ;;  %v5870_v34 = vmul.f32 %v6249_v25, %v5860_v21 }
 0xfdf   :  { %6052 = vst [vmem:[%s11098_s14 + $0x98] sm:$0xff] %v6042_v44  ;;  %v5871_v30 = vmul.f32 %v6251_v42, %v5861_v62  ;;  %v5872_v3 = vmul.f32 %v6253_v35, %v5862_v38  ;;  %v5873_v18 = vmul.f32 %v6255_v37, %v5863_v28  ;;  %v5874_v43 = vmul.f32 %v6257_v22, %v5864_v33 }
 0xfe0   :  { %v5875_v7 = vmul.f32 %v6259_v4, %v5865_v39  ;;  %v5876_v51 = vmul.f32 %v6261_v49, %v5866_v36  ;;  %v5877_v61 = vmul.f32 %v6263_v55, %v5867_v40  ;;  %v5878_v8 = vmul.f32 %v6265_v15, %v5868_v19  ;;  %5879 = vst [vmem:[%s11098_s14] sm:$0xff] %v5869_v47 }
 0xfe1   :  { %5880 = vst [vmem:[%s11098_s14 + $0x8] sm:$0xff] %v5870_v34  ;;  %5881 = vst [vmem:[%s11098_s14 + $0x10] sm:$0xff] %v5871_v30 }
 0xfe2   :  { %5882 = vst [vmem:[%s11098_s14 + $0x18] sm:$0xff] %v5872_v3  ;;  %5883 = vst [vmem:[%s11098_s14 + $0x20] sm:$0xff] %v5873_v18 }
 0xfe3   :  { %5884 = vst [vmem:[%s11098_s14 + $0x28] sm:$0xff] %v5874_v43  ;;  %5885 = vst [vmem:[%s11098_s14 + $0x30] sm:$0xff] %v5875_v7 }
 0xfe4   :  { %5886 = vst [vmem:[%s11098_s14 + $0x38] sm:$0xff] %v5876_v51  ;;  %5887 = vst [vmem:[%s11098_s14 + $0x40] sm:$0xff] %v5877_v61 }
 0xfe5   :  { %5888 = vst [vmem:[%s11098_s14 + $0x48] sm:$0xff] %v5878_v8 }
 0xfe6   :  { %6057 = vsyncpa [#allocation5], 1 }
 0xfe7   :  { %6058 = vsyncpa [#allocation7], 1 }

</bundles_post_ra>
